<compile_context>
chip_gen: v6e
topology: v6e:2x2x1
jax: 0.10.0
libtpu: 0.0.40
codegen_flags: <defaults>
</compile_context>

<pallas_src>
import math
import jax
import jax.numpy as jnp
from jax.experimental import pallas as pl
from jax.experimental.pallas import tpu as pltpu

D_MODEL = 512
D_FF = 2048
N_HEADS = 8
D_K = 64          # = d_v
N_LAYERS = 6
VOCAB = 11
NEG_INF = -1000000000.0


def _layernorm(x, eps=1e-5):
    # PyTorch nn.LayerNorm with default weight=1, bias=0 (biased variance), f32 math.
    mean = jnp.mean(x, axis=-1, keepdims=True)
    var = jnp.mean((x - mean) * (x - mean), axis=-1, keepdims=True)
    return (x - mean) * jax.lax.rsqrt(var + eps)


def _make_encoder_stack_kernel(B, S):
    BS = B * S

    def kernel(mask_ref, x_ref, wqkv_ref, wo_ref, w1_ref, w2_ref,
               out_ref, attn_ref, x_scr):
        # mask_ref: (B, S, S) int32, 1 == key position is PAD
        # x_ref:    (BS, D)   f32 (only consumed at layer 0)
        # wqkv_ref: (D, 3D)   bf16 fused [W_Q | W_K | W_V], stored [in, out]
        # wo/w1/w2: bf16 weights of the CURRENT layer, stored [in, out] (y = x @ W)
        layer = pl.program_id(0)

        @pl.when(layer == 0)
        def _():
            x_scr[...] = x_ref[...]

        x = x_scr[...]                                   # (BS, D) f32 residual stream

        # Hoisted pad mask: broadcast once per layer over the (head, batch) batch dim.
        mask_hb = jnp.broadcast_to(
            mask_ref[...][None, :, :, :], (N_HEADS, B, S, S)
        ).reshape(N_HEADS * B, S, S)                     # (H*B, S, S) int32

        xb = x.astype(jnp.bfloat16)

        # ---------------- fused QKV projection (one MXU launch, N=1536) -------------
        qkv = jnp.dot(xb, wqkv_ref[...], preferred_element_type=jnp.float32)  # (BS, 3D)
        q3 = qkv[:, 0:D_MODEL].reshape(B, S, D_MODEL)
        k3 = qkv[:, D_MODEL:2 * D_MODEL].reshape(B, S, D_MODEL)
        v3 = qkv[:, 2 * D_MODEL:3 * D_MODEL].reshape(B, S, D_MODEL)

        # Gather heads into a single leading batch dim (H*B) so the whole attention
        # stage runs as ONE batched dot per matmul instead of 8 per-head launches.
        def split_heads(t):                              # (B, S, D) -> (H*B, S, D_K)
            return jnp.stack(
                [t[:, :, h * D_K:(h + 1) * D_K] for h in range(N_HEADS)], axis=0
            ).reshape(N_HEADS * B, S, D_K)

        qh = split_heads(q3)
        kh = split_heads(k3)
        vh = split_heads(v3)

        scale = 1.0 / math.sqrt(D_K)
        scores = jax.lax.dot_general(
            qh, kh, (((2,), (2,)), ((0,), (0,))),
            preferred_element_type=jnp.float32) * scale                 # (H*B, S, S)
        scores = jnp.where(mask_hb != 0, NEG_INF, scores)               # single select
        m = jnp.max(scores, axis=-1, keepdims=True)
        p = jnp.exp(scores - m)
        attn = p * pl.reciprocal(jnp.sum(p, axis=-1, keepdims=True), approx=True)

        # single store of the per-layer attention maps (head-major; reordered outside)
        attn_ref[...] = attn.reshape(N_HEADS, B, S, S)

        ctx = jax.lax.dot_general(
            attn, vh, (((2,), (1,)), ((0,), (0,))),
            preferred_element_type=jnp.float32)                         # (H*B, S, D_K)
        ctx4 = ctx.reshape(N_HEADS, B, S, D_K)
        context = jnp.concatenate(
            [ctx4[h] for h in range(N_HEADS)], axis=-1).reshape(BS, D_MODEL)

        mha = jnp.dot(context.astype(jnp.bfloat16), wo_ref[...],
                      preferred_element_type=jnp.float32)               # (BS, 512)
        y = _layernorm(mha + x)                                          # residual + LN

        # ---------------- position-wise FFN ----------------
        h1 = jnp.maximum(
            jnp.dot(y.astype(jnp.bfloat16), w1_ref[...],
                    preferred_element_type=jnp.float32), 0.0)            # ReLU
        h2 = jnp.dot(h1.astype(jnp.bfloat16), w2_ref[...],
                     preferred_element_type=jnp.float32)
        new_x = _layernorm(y + h2)                                       # residual + LN

        x_scr[...] = new_x                       # feed next layer

        @pl.when(layer == N_LAYERS - 1)
        def _():
            out_ref[...] = new_x                 # one VMEM store, one HBM writeback

    return kernel


def encoder_stack(x2d, attn_mask, wqkv, wo, w1, w2):
    BS, D = x2d.shape
    B, S, _ = attn_mask.shape
    kernel = _make_encoder_stack_kernel(B, S)

    grid_spec = pltpu.PrefetchScalarGridSpec(
        num_scalar_prefetch=0,
        grid=(N_LAYERS,),
        in_specs=[
            pl.BlockSpec((B, S, S), lambda l: (0, 0, 0)),            # pad mask (constant)
            pl.BlockSpec((BS, D), lambda l: (0, 0)),                 # initial activations
            pl.BlockSpec((None, D, 3 * D), lambda l: (l, 0, 0)),     # fused W_QKV (bf16)
            pl.BlockSpec((None, D, D), lambda l: (l, 0, 0)),         # fc (output proj)
            pl.BlockSpec((None, D, D_FF), lambda l: (l, 0, 0)),      # FFN W1
            pl.BlockSpec((None, D_FF, D), lambda l: (l, 0, 0)),      # FFN W2
        ],
        out_specs=(
            # constant index over the layer axis -> resident, one HBM writeback
            pl.BlockSpec((BS, D), lambda l: (0, 0)),
            pl.BlockSpec((None, N_HEADS, B, S, S), lambda l: (l, 0, 0, 0, 0)),
        ),
        scratch_shapes=[pltpu.VMEM((BS, D), jnp.float32)],            # residual stream
    )

    return pl.pallas_call(
        kernel,
        out_shape=(
            jax.ShapeDtypeStruct((BS, D), jnp.float32),
            jax.ShapeDtypeStruct((N_LAYERS, N_HEADS, B, S, S), jnp.float32),
        ),
        grid_spec=grid_spec,
        compiler_params=pltpu.CompilerParams(
            # layer axis is a serial dependence -> arbitrary
            dimension_semantics=("arbitrary",),
            # ~6 MiB bf16 weights/layer, double-buffered ~12 MiB; fits v7x's 64 MiB VMEM
            vmem_limit_bytes=40 * 1024 * 1024,
        ),
    )(attn_mask, x2d, wqkv, wo, w1, w2)


def positional_encoding(max_len, d_model):
    position = jnp.arange(max_len, dtype=jnp.float32)[:, None]
    div_term = jnp.exp(jnp.arange(0, d_model, 2, dtype=jnp.float32)
                       * (-math.log(10000.0) / d_model))
    pe = jnp.zeros((max_len, d_model), jnp.float32)
    pe = pe.at[:, 0::2].set(jnp.sin(position * div_term))
    pe = pe.at[:, 1::2].set(jnp.cos(position * div_term))
    return pe


def init_params(key):
    keys = jax.random.split(key, 7)
    emb = jax.random.normal(keys[0], (VOCAB, D_MODEL), jnp.float32)

    def w(k, shape):
        # weights stored [in, out] (== torch Linear weight transposed), stacked per layer,
        # cast to bf16 for HBM/VMEM traffic (f32 accumulation inside the kernel).
        full = jax.random.normal(k, (N_LAYERS,) + shape, jnp.float32) * 0.02
        return full.astype(jnp.bfloat16)

    wq = w(keys[1], (D_MODEL, D_MODEL))
    wk = w(keys[2], (D_MODEL, D_MODEL))
    wv = w(keys[3], (D_MODEL, D_MODEL))
    # fuse along the output (lane) dim: columns [ Q | K | V ]
    wqkv = jnp.concatenate([wq, wk, wv], axis=-1)      # (L, D, 3D) bf16

    return {
        "emb": emb,
        "wqkv": wqkv,
        "wo": w(keys[4], (D_MODEL, D_MODEL)),
        "w1": w(keys[5], (D_MODEL, D_FF)),
        "w2": w(keys[6], (D_FF, D_MODEL)),
    }


def encoder_forward(enc_inputs, params):
    """enc_inputs: [batch, src_len] int32 token ids."""
    B, S = enc_inputs.shape
    # nn.Embedding lookup (glue)
    x = params["emb"][enc_inputs]                                   # (B, S, D)
    # PositionalEncoding: x[seq, batch, :] + pe[seq]  <=>  add pe per position
    pe = positional_encoding(S, D_MODEL)                            # (S, D)
    x = x + pe[None, :, :]
    # TODO(synk): dropout(p=0.1) treated as identity (eval mode).
    # get_attention_pad_mask: mask[b, q, k] = (seq_k[b, k] == 0)
    pad = (enc_inputs == 0).astype(jnp.int32)                       # (B, S)
    attn_mask = jnp.broadcast_to(pad[:, None, :], (B, S, S)).astype(jnp.int32)

    x2d = x.reshape(B * S, D_MODEL).astype(jnp.float32)
    out2d, attn_all = encoder_stack(
        x2d, attn_mask,
        params["wqkv"], params["wo"], params["w1"], params["w2"])

    enc_outputs = out2d.reshape(B, S, D_MODEL)
    # kernel stores attn as (L, H, B, S, S); reorder to torch's (L, B, H, S, S) outside
    attn_all = jnp.transpose(attn_all, (0, 2, 1, 3, 4))
    enc_self_attns = [attn_all[i] for i in range(N_LAYERS)]
    return enc_outputs, enc_self_attns


if __name__ == "__main__":
    key = jax.random.PRNGKey(0)
    B, S = 2, 8

    params = init_params(key)
    enc_inputs = jax.random.randint(jax.random.fold_in(key, 123),
                                    (B, S), 1, VOCAB, dtype=jnp.int32)
    # force some PAD (id 0) tokens so the attention pad mask is exercised
    enc_inputs = enc_inputs.at[:, -2:].set(0)

    enc_outputs, enc_self_attns = encoder_forward(enc_inputs, params)
    jax.block_until_ready(enc_outputs)
    jax.block_until_ready(enc_self_attns)

    assert enc_outputs.shape == (B, S, D_MODEL)
    assert len(enc_self_attns) == N_LAYERS
    assert enc_self_attns[0].shape == (B, N_HEADS, S, S)
    assert bool(jnp.all(jnp.isfinite(enc_outputs)))
    # softmax rows should sum to ~1 (approx reciprocal -> loose tolerance)
    row_sums = jnp.sum(enc_self_attns[0], axis=-1)
    assert bool(jnp.all(jnp.abs(row_sums - 1.0) < 1e-2))
    print("KERNEL_OK")
</pallas_src>

<mosaic_0001>
module attributes {stable_mosaic.version = 11 : i64} {
  func.func @kernel(%arg0: i32, %arg1: memref<2x8x8xi32, #tpu.memory_space<vmem>>, %arg2: memref<16x512xf32, #tpu.memory_space<vmem>>, %arg3: memref<1x512x1536xbf16, #tpu.memory_space<vmem>>, %arg4: memref<1x512x512xbf16, #tpu.memory_space<vmem>>, %arg5: memref<1x512x2048xbf16, #tpu.memory_space<vmem>>, %arg6: memref<1x2048x512xbf16, #tpu.memory_space<vmem>>, %arg7: memref<16x512xf32, #tpu.memory_space<vmem>>, %arg8: memref<1x8x2x8x8xf32, #tpu.memory_space<vmem>>, %arg9: memref<16x512xf32, #tpu.memory_space<vmem>>) attributes {dimension_semantics = [#tpu.dimension_semantics<arbitrary>], iteration_bounds = array<i64: 6>, scalar_prefetch = 0 : i64, scratch_operands = 1 : i64, tpu.core_type = #tpu.core_type<tc>, window_params = [{pipeline_mode = #tpu.pipeline_mode<synchronous>, transform_indices = @transform_0, window_bounds = array<i64: 2, 8, 8>}, {pipeline_mode = #tpu.pipeline_mode<synchronous>, transform_indices = @transform_1, window_bounds = array<i64: 16, 512>}, {transform_indices = @transform_2, window_bounds = array<i64: 1, 512, 1536>}, {transform_indices = @transform_3, window_bounds = array<i64: 1, 512, 512>}, {transform_indices = @transform_4, window_bounds = array<i64: 1, 512, 2048>}, {transform_indices = @transform_5, window_bounds = array<i64: 1, 2048, 512>}, {pipeline_mode = #tpu.pipeline_mode<synchronous>, transform_indices = @transform_6, window_bounds = array<i64: 16, 512>}, {transform_indices = @transform_7, window_bounds = array<i64: 1, 8, 2, 8, 8>}]} {
    %c0_i32 = arith.constant 0 : i32
    %0 = arith.cmpi eq, %arg0, %c0_i32 : i32
    %1 = arith.extui %0 : i1 to i32
    %c0_i32_0 = arith.constant 0 : i32
    %2 = arith.cmpi ne, %1, %c0_i32_0 : i32
    scf.if %2 {
      %c0_46 = arith.constant 0 : index
      %c0_47 = arith.constant 0 : index
      %174 = vector.load %arg2[%c0_46, %c0_47] : memref<16x512xf32, #tpu.memory_space<vmem>>, vector<16x512xf32>
      %c0_48 = arith.constant 0 : index
      %c0_49 = arith.constant 0 : index
      %175 = vector.load %arg9[%c0_48, %c0_49] : memref<16x512xf32, #tpu.memory_space<vmem>>, vector<16x512xf32>
      tpu.vector_store %arg9[%c0_48, %c0_49], %174 {strides = array<i32>} : memref<16x512xf32, #tpu.memory_space<vmem>>, vector<16x512xf32>,
    } else {
    }
    %c0 = arith.constant 0 : index
    %c0_1 = arith.constant 0 : index
    %3 = vector.load %arg9[%c0, %c0_1] : memref<16x512xf32, #tpu.memory_space<vmem>>, vector<16x512xf32>
    %c0_2 = arith.constant 0 : index
    %c0_3 = arith.constant 0 : index
    %c0_4 = arith.constant 0 : index
    %4 = vector.load %arg1[%c0_2, %c0_3, %c0_4] : memref<2x8x8xi32, #tpu.memory_space<vmem>>, vector<2x8x8xi32>
    %5 = vector.shape_cast %4 : vector<2x8x8xi32> to vector<1x2x8x8xi32>
    %6 = vector.shape_cast %5 : vector<1x2x8x8xi32> to vector<1x2x8x8xi32>
    %7 = vector.broadcast %6 : vector<1x2x8x8xi32> to vector<8x2x8x8xi32>
    %8 = vector.shape_cast %7 : vector<8x2x8x8xi32> to vector<16x8x8xi32>
    %9 = arith.truncf %3 : vector<16x512xf32> to vector<16x512xbf16>
    %c0_5 = arith.constant 0 : index
    %c0_6 = arith.constant 0 : index
    %c0_7 = arith.constant 0 : index
    %10 = vector.load %arg3[%c0_5, %c0_6, %c0_7] : memref<1x512x1536xbf16, #tpu.memory_space<vmem>>, vector<1x512x1536xbf16>
    %11 = vector.shape_cast %10 : vector<1x512x1536xbf16> to vector<512x1536xbf16>
    %cst = arith.constant dense<0.000000e+00> : vector<16x1536xf32>
    %12 = tpu.matmul %9, %11, %cst {dimension_numbers = #tpu.dot_dimension_numbers<[1], [0], [0], [1], [0, 0, 1, 1], [], []>} : vector<16x512xbf16>, vector<512x1536xbf16>, vector<16x1536xf32> -> vector<16x1536xf32>
    %13 = vector.extract_strided_slice %12 {offsets = [0, 0], sizes = [16, 512], strides = [1, 1]} : vector<16x1536xf32> to vector<16x512xf32>
    %14 = vector.shape_cast %13 : vector<16x512xf32> to vector<2x8x512xf32>
    %15 = vector.extract_strided_slice %12 {offsets = [0, 512], sizes = [16, 512], strides = [1, 1]} : vector<16x1536xf32> to vector<16x512xf32>
    %16 = vector.shape_cast %15 : vector<16x512xf32> to vector<2x8x512xf32>
    %17 = vector.extract_strided_slice %12 {offsets = [0, 1024], sizes = [16, 512], strides = [1, 1]} : vector<16x1536xf32> to vector<16x512xf32>
    %18 = vector.shape_cast %17 : vector<16x512xf32> to vector<2x8x512xf32>
    %19 = vector.extract_strided_slice %14 {offsets = [0, 0, 0], sizes = [2, 8, 64], strides = [1, 1, 1]} : vector<2x8x512xf32> to vector<2x8x64xf32>
    %20 = vector.extract_strided_slice %14 {offsets = [0, 0, 64], sizes = [2, 8, 64], strides = [1, 1, 1]} : vector<2x8x512xf32> to vector<2x8x64xf32>
    %21 = vector.extract_strided_slice %14 {offsets = [0, 0, 128], sizes = [2, 8, 64], strides = [1, 1, 1]} : vector<2x8x512xf32> to vector<2x8x64xf32>
    %22 = vector.extract_strided_slice %14 {offsets = [0, 0, 192], sizes = [2, 8, 64], strides = [1, 1, 1]} : vector<2x8x512xf32> to vector<2x8x64xf32>
    %23 = vector.extract_strided_slice %14 {offsets = [0, 0, 256], sizes = [2, 8, 64], strides = [1, 1, 1]} : vector<2x8x512xf32> to vector<2x8x64xf32>
    %24 = vector.extract_strided_slice %14 {offsets = [0, 0, 320], sizes = [2, 8, 64], strides = [1, 1, 1]} : vector<2x8x512xf32> to vector<2x8x64xf32>
    %25 = vector.extract_strided_slice %14 {offsets = [0, 0, 384], sizes = [2, 8, 64], strides = [1, 1, 1]} : vector<2x8x512xf32> to vector<2x8x64xf32>
    %26 = vector.extract_strided_slice %14 {offsets = [0, 0, 448], sizes = [2, 8, 64], strides = [1, 1, 1]} : vector<2x8x512xf32> to vector<2x8x64xf32>
    %27 = vector.shape_cast %19 : vector<2x8x64xf32> to vector<1x2x8x64xf32>
    %28 = vector.shape_cast %20 : vector<2x8x64xf32> to vector<1x2x8x64xf32>
    %29 = vector.shape_cast %21 : vector<2x8x64xf32> to vector<1x2x8x64xf32>
    %30 = vector.shape_cast %22 : vector<2x8x64xf32> to vector<1x2x8x64xf32>
    %31 = vector.shape_cast %23 : vector<2x8x64xf32> to vector<1x2x8x64xf32>
    %32 = vector.shape_cast %24 : vector<2x8x64xf32> to vector<1x2x8x64xf32>
    %33 = vector.shape_cast %25 : vector<2x8x64xf32> to vector<1x2x8x64xf32>
    %34 = vector.shape_cast %26 : vector<2x8x64xf32> to vector<1x2x8x64xf32>
    %35 = tpu.concatenate %27, %28, %29, %30, %31, %32, %33, %34 in 0 : vector<1x2x8x64xf32>, vector<1x2x8x64xf32>, vector<1x2x8x64xf32>, vector<1x2x8x64xf32>, vector<1x2x8x64xf32>, vector<1x2x8x64xf32>, vector<1x2x8x64xf32>, vector<1x2x8x64xf32> -> vector<8x2x8x64xf32>
    %36 = vector.shape_cast %35 : vector<8x2x8x64xf32> to vector<16x8x64xf32>
    %37 = vector.extract_strided_slice %16 {offsets = [0, 0, 0], sizes = [2, 8, 64], strides = [1, 1, 1]} : vector<2x8x512xf32> to vector<2x8x64xf32>
    %38 = vector.extract_strided_slice %16 {offsets = [0, 0, 64], sizes = [2, 8, 64], strides = [1, 1, 1]} : vector<2x8x512xf32> to vector<2x8x64xf32>
    %39 = vector.extract_strided_slice %16 {offsets = [0, 0, 128], sizes = [2, 8, 64], strides = [1, 1, 1]} : vector<2x8x512xf32> to vector<2x8x64xf32>
    %40 = vector.extract_strided_slice %16 {offsets = [0, 0, 192], sizes = [2, 8, 64], strides = [1, 1, 1]} : vector<2x8x512xf32> to vector<2x8x64xf32>
    %41 = vector.extract_strided_slice %16 {offsets = [0, 0, 256], sizes = [2, 8, 64], strides = [1, 1, 1]} : vector<2x8x512xf32> to vector<2x8x64xf32>
    %42 = vector.extract_strided_slice %16 {offsets = [0, 0, 320], sizes = [2, 8, 64], strides = [1, 1, 1]} : vector<2x8x512xf32> to vector<2x8x64xf32>
    %43 = vector.extract_strided_slice %16 {offsets = [0, 0, 384], sizes = [2, 8, 64], strides = [1, 1, 1]} : vector<2x8x512xf32> to vector<2x8x64xf32>
    %44 = vector.extract_strided_slice %16 {offsets = [0, 0, 448], sizes = [2, 8, 64], strides = [1, 1, 1]} : vector<2x8x512xf32> to vector<2x8x64xf32>
    %45 = vector.shape_cast %37 : vector<2x8x64xf32> to vector<1x2x8x64xf32>
    %46 = vector.shape_cast %38 : vector<2x8x64xf32> to vector<1x2x8x64xf32>
    %47 = vector.shape_cast %39 : vector<2x8x64xf32> to vector<1x2x8x64xf32>
    %48 = vector.shape_cast %40 : vector<2x8x64xf32> to vector<1x2x8x64xf32>
    %49 = vector.shape_cast %41 : vector<2x8x64xf32> to vector<1x2x8x64xf32>
    %50 = vector.shape_cast %42 : vector<2x8x64xf32> to vector<1x2x8x64xf32>
    %51 = vector.shape_cast %43 : vector<2x8x64xf32> to vector<1x2x8x64xf32>
    %52 = vector.shape_cast %44 : vector<2x8x64xf32> to vector<1x2x8x64xf32>
    %53 = tpu.concatenate %45, %46, %47, %48, %49, %50, %51, %52 in 0 : vector<1x2x8x64xf32>, vector<1x2x8x64xf32>, vector<1x2x8x64xf32>, vector<1x2x8x64xf32>, vector<1x2x8x64xf32>, vector<1x2x8x64xf32>, vector<1x2x8x64xf32>, vector<1x2x8x64xf32> -> vector<8x2x8x64xf32>
    %54 = vector.shape_cast %53 : vector<8x2x8x64xf32> to vector<16x8x64xf32>
    %55 = vector.extract_strided_slice %18 {offsets = [0, 0, 0], sizes = [2, 8, 64], strides = [1, 1, 1]} : vector<2x8x512xf32> to vector<2x8x64xf32>
    %56 = vector.extract_strided_slice %18 {offsets = [0, 0, 64], sizes = [2, 8, 64], strides = [1, 1, 1]} : vector<2x8x512xf32> to vector<2x8x64xf32>
    %57 = vector.extract_strided_slice %18 {offsets = [0, 0, 128], sizes = [2, 8, 64], strides = [1, 1, 1]} : vector<2x8x512xf32> to vector<2x8x64xf32>
    %58 = vector.extract_strided_slice %18 {offsets = [0, 0, 192], sizes = [2, 8, 64], strides = [1, 1, 1]} : vector<2x8x512xf32> to vector<2x8x64xf32>
    %59 = vector.extract_strided_slice %18 {offsets = [0, 0, 256], sizes = [2, 8, 64], strides = [1, 1, 1]} : vector<2x8x512xf32> to vector<2x8x64xf32>
    %60 = vector.extract_strided_slice %18 {offsets = [0, 0, 320], sizes = [2, 8, 64], strides = [1, 1, 1]} : vector<2x8x512xf32> to vector<2x8x64xf32>
    %61 = vector.extract_strided_slice %18 {offsets = [0, 0, 384], sizes = [2, 8, 64], strides = [1, 1, 1]} : vector<2x8x512xf32> to vector<2x8x64xf32>
    %62 = vector.extract_strided_slice %18 {offsets = [0, 0, 448], sizes = [2, 8, 64], strides = [1, 1, 1]} : vector<2x8x512xf32> to vector<2x8x64xf32>
    %63 = vector.shape_cast %55 : vector<2x8x64xf32> to vector<1x2x8x64xf32>
    %64 = vector.shape_cast %56 : vector<2x8x64xf32> to vector<1x2x8x64xf32>
    %65 = vector.shape_cast %57 : vector<2x8x64xf32> to vector<1x2x8x64xf32>
    %66 = vector.shape_cast %58 : vector<2x8x64xf32> to vector<1x2x8x64xf32>
    %67 = vector.shape_cast %59 : vector<2x8x64xf32> to vector<1x2x8x64xf32>
    %68 = vector.shape_cast %60 : vector<2x8x64xf32> to vector<1x2x8x64xf32>
    %69 = vector.shape_cast %61 : vector<2x8x64xf32> to vector<1x2x8x64xf32>
    %70 = vector.shape_cast %62 : vector<2x8x64xf32> to vector<1x2x8x64xf32>
    %71 = tpu.concatenate %63, %64, %65, %66, %67, %68, %69, %70 in 0 : vector<1x2x8x64xf32>, vector<1x2x8x64xf32>, vector<1x2x8x64xf32>, vector<1x2x8x64xf32>, vector<1x2x8x64xf32>, vector<1x2x8x64xf32>, vector<1x2x8x64xf32>, vector<1x2x8x64xf32> -> vector<8x2x8x64xf32>
    %72 = vector.shape_cast %71 : vector<8x2x8x64xf32> to vector<16x8x64xf32>
    %cst_8 = arith.constant dense<0.000000e+00> : vector<16x8x8xf32>
    %73 = tpu.matmul %36, %54, %cst_8 {dimension_numbers = #tpu.dot_dimension_numbers<[2], [2], [1], [1], [0, 0, 0, 1, 1, 1], [0], [0]>} : vector<16x8x64xf32>, vector<16x8x64xf32>, vector<16x8x8xf32> -> vector<16x8x8xf32>
    %cst_9 = arith.constant 1.250000e-01 : f32
    %74 = vector.broadcast %cst_9 : f32 to vector<16x8x8xf32>
    %75 = arith.mulf %73, %74 : vector<16x8x8xf32>
    %c0_i32_10 = arith.constant 0 : i32
    %76 = vector.broadcast %c0_i32_10 : i32 to vector<16x8x8xi32>
    %77 = arith.cmpi ne, %8, %76 : vector<16x8x8xi32>
    %cst_11 = arith.constant -1.000000e+09 : f32
    %78 = vector.broadcast %cst_11 : f32 to vector<16x8x8xf32>
    %79 = arith.select %77, %78, %75 : vector<16x8x8xi1>, vector<16x8x8xf32>
    %cst_12 = arith.constant dense<0xFF800000> : vector<16x8xf32>
    %80 = vector.multi_reduction <maximumf>, %79, %cst_12 [2] : vector<16x8x8xf32> to vector<16x8xf32>
    %81 = vector.shape_cast %80 : vector<16x8xf32> to vector<16x8x1xf32>
    %82 = vector.broadcast %81 : vector<16x8x1xf32> to vector<16x8x8xf32>
    %83 = arith.subf %79, %82 : vector<16x8x8xf32>
    %84 = math.exp %83 : vector<16x8x8xf32>
    %cst_13 = arith.constant dense<0.000000e+00> : vector<16x8xf32>
    %85 = vector.multi_reduction <add>, %84, %cst_13 [2] : vector<16x8x8xf32> to vector<16x8xf32>
    %86 = vector.shape_cast %85 : vector<16x8xf32> to vector<16x8x1xf32>
    %87 = tpu.reciprocal %86 {approx = true} : vector<16x8x1xf32> -> vector<16x8x1xf32>
    %88 = vector.broadcast %87 : vector<16x8x1xf32> to vector<16x8x8xf32>
    %89 = arith.mulf %84, %88 : vector<16x8x8xf32>
    %90 = vector.shape_cast %89 : vector<16x8x8xf32> to vector<8x2x8x8xf32>
    %c0_14 = arith.constant 0 : index
    %c0_15 = arith.constant 0 : index
    %c0_16 = arith.constant 0 : index
    %c0_17 = arith.constant 0 : index
    %c0_18 = arith.constant 0 : index
    %91 = vector.load %arg8[%c0_14, %c0_15, %c0_16, %c0_17, %c0_18] : memref<1x8x2x8x8xf32, #tpu.memory_space<vmem>>, vector<1x8x2x8x8xf32>
    %92 = vector.shape_cast %91 : vector<1x8x2x8x8xf32> to vector<8x2x8x8xf32>
    %93 = vector.shape_cast %90 : vector<8x2x8x8xf32> to vector<1x8x2x8x8xf32>
    tpu.vector_store %arg8[%c0_14, %c0_15, %c0_16, %c0_17, %c0_18], %93 {strides = array<i32>} : memref<1x8x2x8x8xf32, #tpu.memory_space<vmem>>, vector<1x8x2x8x8xf32>,
    %cst_19 = arith.constant dense<0.000000e+00> : vector<16x8x64xf32>
    %94 = tpu.matmul %89, %72, %cst_19 {dimension_numbers = #tpu.dot_dimension_numbers<[2], [1], [1], [2], [0, 0, 0, 1, 1, 2], [0], [0]>} : vector<16x8x8xf32>, vector<16x8x64xf32>, vector<16x8x64xf32> -> vector<16x8x64xf32>
    %95 = vector.shape_cast %94 : vector<16x8x64xf32> to vector<8x2x8x64xf32>
    %96 = vector.extract_strided_slice %95 {offsets = [0, 0, 0, 0], sizes = [1, 2, 8, 64], strides = [1, 1, 1, 1]} : vector<8x2x8x64xf32> to vector<1x2x8x64xf32>
    %97 = vector.shape_cast %96 : vector<1x2x8x64xf32> to vector<2x8x64xf32>
    %98 = vector.extract_strided_slice %95 {offsets = [1, 0, 0, 0], sizes = [1, 2, 8, 64], strides = [1, 1, 1, 1]} : vector<8x2x8x64xf32> to vector<1x2x8x64xf32>
    %99 = vector.shape_cast %98 : vector<1x2x8x64xf32> to vector<2x8x64xf32>
    %100 = vector.extract_strided_slice %95 {offsets = [2, 0, 0, 0], sizes = [1, 2, 8, 64], strides = [1, 1, 1, 1]} : vector<8x2x8x64xf32> to vector<1x2x8x64xf32>
    %101 = vector.shape_cast %100 : vector<1x2x8x64xf32> to vector<2x8x64xf32>
    %102 = vector.extract_strided_slice %95 {offsets = [3, 0, 0, 0], sizes = [1, 2, 8, 64], strides = [1, 1, 1, 1]} : vector<8x2x8x64xf32> to vector<1x2x8x64xf32>
    %103 = vector.shape_cast %102 : vector<1x2x8x64xf32> to vector<2x8x64xf32>
    %104 = vector.extract_strided_slice %95 {offsets = [4, 0, 0, 0], sizes = [1, 2, 8, 64], strides = [1, 1, 1, 1]} : vector<8x2x8x64xf32> to vector<1x2x8x64xf32>
    %105 = vector.shape_cast %104 : vector<1x2x8x64xf32> to vector<2x8x64xf32>
    %106 = vector.extract_strided_slice %95 {offsets = [5, 0, 0, 0], sizes = [1, 2, 8, 64], strides = [1, 1, 1, 1]} : vector<8x2x8x64xf32> to vector<1x2x8x64xf32>
    %107 = vector.shape_cast %106 : vector<1x2x8x64xf32> to vector<2x8x64xf32>
    %108 = vector.extract_strided_slice %95 {offsets = [6, 0, 0, 0], sizes = [1, 2, 8, 64], strides = [1, 1, 1, 1]} : vector<8x2x8x64xf32> to vector<1x2x8x64xf32>
    %109 = vector.shape_cast %108 : vector<1x2x8x64xf32> to vector<2x8x64xf32>
    %110 = vector.extract_strided_slice %95 {offsets = [7, 0, 0, 0], sizes = [1, 2, 8, 64], strides = [1, 1, 1, 1]} : vector<8x2x8x64xf32> to vector<1x2x8x64xf32>
    %111 = vector.shape_cast %110 : vector<1x2x8x64xf32> to vector<2x8x64xf32>
    %112 = tpu.concatenate %97, %99, %101, %103, %105, %107, %109, %111 in 2 : vector<2x8x64xf32>, vector<2x8x64xf32>, vector<2x8x64xf32>, vector<2x8x64xf32>, vector<2x8x64xf32>, vector<2x8x64xf32>, vector<2x8x64xf32>, vector<2x8x64xf32> -> vector<2x8x512xf32>
    %113 = vector.shape_cast %112 : vector<2x8x512xf32> to vector<16x512xf32>
    %114 = arith.truncf %113 : vector<16x512xf32> to vector<16x512xbf16>
    %c0_20 = arith.constant 0 : index
    %c0_21 = arith.constant 0 : index
    %c0_22 = arith.constant 0 : index
    %115 = vector.load %arg4[%c0_20, %c0_21, %c0_22] : memref<1x512x512xbf16, #tpu.memory_space<vmem>>, vector<1x512x512xbf16>
    %116 = vector.shape_cast %115 : vector<1x512x512xbf16> to vector<512x512xbf16>
    %cst_23 = arith.constant dense<0.000000e+00> : vector<16x512xf32>
    %117 = tpu.matmul %114, %116, %cst_23 {dimension_numbers = #tpu.dot_dimension_numbers<[1], [0], [0], [1], [0, 0, 1, 1], [], []>} : vector<16x512xbf16>, vector<512x512xbf16>, vector<16x512xf32> -> vector<16x512xf32>
    %118 = arith.addf %117, %3 : vector<16x512xf32>
    %cst_24 = arith.constant dense<0.000000e+00> : vector<16xf32>
    %119 = vector.multi_reduction <add>, %118, %cst_24 [1] : vector<16x512xf32> to vector<16xf32>
    %120 = vector.shape_cast %119 : vector<16xf32> to vector<16x1xf32>
    %cst_25 = arith.constant 5.120000e+02 : f32
    %121 = vector.broadcast %cst_25 : f32 to vector<16x1xf32>
    %122 = arith.divf %120, %121 : vector<16x1xf32>
    %123 = vector.broadcast %122 : vector<16x1xf32> to vector<16x512xf32>
    %124 = arith.subf %118, %123 : vector<16x512xf32>
    %125 = vector.broadcast %122 : vector<16x1xf32> to vector<16x512xf32>
    %126 = arith.subf %118, %125 : vector<16x512xf32>
    %127 = arith.mulf %124, %126 : vector<16x512xf32>
    %cst_26 = arith.constant dense<0.000000e+00> : vector<16xf32>
    %128 = vector.multi_reduction <add>, %127, %cst_26 [1] : vector<16x512xf32> to vector<16xf32>
    %129 = vector.shape_cast %128 : vector<16xf32> to vector<16x1xf32>
    %cst_27 = arith.constant 5.120000e+02 : f32
    %130 = vector.broadcast %cst_27 : f32 to vector<16x1xf32>
    %131 = arith.divf %129, %130 : vector<16x1xf32>
    %132 = vector.broadcast %122 : vector<16x1xf32> to vector<16x512xf32>
    %133 = arith.subf %118, %132 : vector<16x512xf32>
    %cst_28 = arith.constant 9.99999974E-6 : f32
    %134 = vector.broadcast %cst_28 : f32 to vector<16x1xf32>
    %135 = arith.addf %131, %134 : vector<16x1xf32>
    %136 = math.rsqrt %135 : vector<16x1xf32>
    %137 = vector.broadcast %136 : vector<16x1xf32> to vector<16x512xf32>
    %138 = arith.mulf %133, %137 : vector<16x512xf32>
    %139 = arith.truncf %138 : vector<16x512xf32> to vector<16x512xbf16>
    %c0_29 = arith.constant 0 : index
    %c0_30 = arith.constant 0 : index
    %c0_31 = arith.constant 0 : index
    %140 = vector.load %arg5[%c0_29, %c0_30, %c0_31] : memref<1x512x2048xbf16, #tpu.memory_space<vmem>>, vector<1x512x2048xbf16>
    %141 = vector.shape_cast %140 : vector<1x512x2048xbf16> to vector<512x2048xbf16>
    %cst_32 = arith.constant dense<0.000000e+00> : vector<16x2048xf32>
    %142 = tpu.matmul %139, %141, %cst_32 {dimension_numbers = #tpu.dot_dimension_numbers<[1], [0], [0], [1], [0, 0, 1, 1], [], []>} : vector<16x512xbf16>, vector<512x2048xbf16>, vector<16x2048xf32> -> vector<16x2048xf32>
    %cst_33 = arith.constant 0.000000e+00 : f32
    %143 = vector.broadcast %cst_33 : f32 to vector<16x2048xf32>
    %144 = arith.maximumf %142, %143 : vector<16x2048xf32>
    %145 = arith.truncf %144 : vector<16x2048xf32> to vector<16x2048xbf16>
    %c0_34 = arith.constant 0 : index
    %c0_35 = arith.constant 0 : index
    %c0_36 = arith.constant 0 : index
    %146 = vector.load %arg6[%c0_34, %c0_35, %c0_36] : memref<1x2048x512xbf16, #tpu.memory_space<vmem>>, vector<1x2048x512xbf16>
    %147 = vector.shape_cast %146 : vector<1x2048x512xbf16> to vector<2048x512xbf16>
    %cst_37 = arith.constant dense<0.000000e+00> : vector<16x512xf32>
    %148 = tpu.matmul %145, %147, %cst_37 {dimension_numbers = #tpu.dot_dimension_numbers<[1], [0], [0], [1], [0, 0, 1, 1], [], []>} : vector<16x2048xbf16>, vector<2048x512xbf16>, vector<16x512xf32> -> vector<16x512xf32>
    %149 = arith.addf %138, %148 : vector<16x512xf32>
    %cst_38 = arith.constant dense<0.000000e+00> : vector<16xf32>
    %150 = vector.multi_reduction <add>, %149, %cst_38 [1] : vector<16x512xf32> to vector<16xf32>
    %151 = vector.shape_cast %150 : vector<16xf32> to vector<16x1xf32>
    %cst_39 = arith.constant 5.120000e+02 : f32
    %152 = vector.broadcast %cst_39 : f32 to vector<16x1xf32>
    %153 = arith.divf %151, %152 : vector<16x1xf32>
    %154 = vector.broadcast %153 : vector<16x1xf32> to vector<16x512xf32>
    %155 = arith.subf %149, %154 : vector<16x512xf32>
    %156 = vector.broadcast %153 : vector<16x1xf32> to vector<16x512xf32>
    %157 = arith.subf %149, %156 : vector<16x512xf32>
    %158 = arith.mulf %155, %157 : vector<16x512xf32>
    %cst_40 = arith.constant dense<0.000000e+00> : vector<16xf32>
    %159 = vector.multi_reduction <add>, %158, %cst_40 [1] : vector<16x512xf32> to vector<16xf32>
    %160 = vector.shape_cast %159 : vector<16xf32> to vector<16x1xf32>
    %cst_41 = arith.constant 5.120000e+02 : f32
    %161 = vector.broadcast %cst_41 : f32 to vector<16x1xf32>
    %162 = arith.divf %160, %161 : vector<16x1xf32>
    %163 = vector.broadcast %153 : vector<16x1xf32> to vector<16x512xf32>
    %164 = arith.subf %149, %163 : vector<16x512xf32>
    %cst_42 = arith.constant 9.99999974E-6 : f32
    %165 = vector.broadcast %cst_42 : f32 to vector<16x1xf32>
    %166 = arith.addf %162, %165 : vector<16x1xf32>
    %167 = math.rsqrt %166 : vector<16x1xf32>
    %168 = vector.broadcast %167 : vector<16x1xf32> to vector<16x512xf32>
    %169 = arith.mulf %164, %168 : vector<16x512xf32>
    %c0_43 = arith.constant 0 : index
    %c0_44 = arith.constant 0 : index
    %170 = vector.load %arg9[%c0_43, %c0_44] : memref<16x512xf32, #tpu.memory_space<vmem>>, vector<16x512xf32>
    tpu.vector_store %arg9[%c0_43, %c0_44], %169 {strides = array<i32>} : memref<16x512xf32, #tpu.memory_space<vmem>>, vector<16x512xf32>,
    %c5_i32 = arith.constant 5 : i32
    %171 = arith.cmpi eq, %arg0, %c5_i32 : i32
    %172 = arith.extui %171 : i1 to i32
    %c0_i32_45 = arith.constant 0 : i32
    %173 = arith.cmpi ne, %172, %c0_i32_45 : i32
    scf.if %173 {
      %c0_46 = arith.constant 0 : index
      %c0_47 = arith.constant 0 : index
      %174 = vector.load %arg7[%c0_46, %c0_47] : memref<16x512xf32, #tpu.memory_space<vmem>>, vector<16x512xf32>
      tpu.vector_store %arg7[%c0_46, %c0_47], %169 {strides = array<i32>} : memref<16x512xf32, #tpu.memory_space<vmem>>, vector<16x512xf32>,
    } else {
    }
    return
  }
  func.func @transform_0(%arg0: i32) -> (i32, i32, i32) {
    %c0_i32 = arith.constant 0 : i32
    %c0_i32_0 = arith.constant 0 : i32
    %c0_i32_1 = arith.constant 0 : i32
    %c0_i32_2 = arith.constant 0 : i32
    return %c0_i32, %c0_i32_0, %c0_i32_1 : i32, i32, i32
  }
  func.func @transform_1(%arg0: i32) -> (i32, i32) {
    %c0_i32 = arith.constant 0 : i32
    %c0_i32_0 = arith.constant 0 : i32
    %c0_i32_1 = arith.constant 0 : i32
    return %c0_i32, %c0_i32_0 : i32, i32
  }
  func.func @transform_2(%arg0: i32) -> (i32, i32, i32) {
    %c0_i32 = arith.constant 0 : i32
    %c0_i32_0 = arith.constant 0 : i32
    %c0_i32_1 = arith.constant 0 : i32
    return %arg0, %c0_i32, %c0_i32_0 : i32, i32, i32
  }
  func.func @transform_3(%arg0: i32) -> (i32, i32, i32) {
    %c0_i32 = arith.constant 0 : i32
    %c0_i32_0 = arith.constant 0 : i32
    %c0_i32_1 = arith.constant 0 : i32
    return %arg0, %c0_i32, %c0_i32_0 : i32, i32, i32
  }
  func.func @transform_4(%arg0: i32) -> (i32, i32, i32) {
    %c0_i32 = arith.constant 0 : i32
    %c0_i32_0 = arith.constant 0 : i32
    %c0_i32_1 = arith.constant 0 : i32
    return %arg0, %c0_i32, %c0_i32_0 : i32, i32, i32
  }
  func.func @transform_5(%arg0: i32) -> (i32, i32, i32) {
    %c0_i32 = arith.constant 0 : i32
    %c0_i32_0 = arith.constant 0 : i32
    %c0_i32_1 = arith.constant 0 : i32
    return %arg0, %c0_i32, %c0_i32_0 : i32, i32, i32
  }
  func.func @transform_6(%arg0: i32) -> (i32, i32) {
    %c0_i32 = arith.constant 0 : i32
    %c0_i32_0 = arith.constant 0 : i32
    %c0_i32_1 = arith.constant 0 : i32
    return %c0_i32, %c0_i32_0 : i32, i32
  }
  func.func @transform_7(%arg0: i32) -> (i32, i32, i32, i32, i32) {
    %c0_i32 = arith.constant 0 : i32
    %c0_i32_0 = arith.constant 0 : i32
    %c0_i32_1 = arith.constant 0 : i32
    %c0_i32_2 = arith.constant 0 : i32
    %c0_i32_3 = arith.constant 0 : i32
    return %arg0, %c0_i32, %c0_i32_0, %c0_i32_1, %c0_i32_2 : i32, i32, i32, i32, i32
  }
}

</mosaic_0001>

<bundles_post_ra>
// kernel: tpu_custom_call.1
= control target key start
LH: loop header
LB: loop body
LE: loop exit
PB: predicated region body
PF: predicated region fallthrough
CT: control target
= control target key end

     0   :  { %s21471_s0 = inlined_call_operand.hbm [shape: s32[2,8,8], index: 0, kind: input, shape index: {}]   ;;  %s21472_s1 = inlined_call_operand.hbm [shape: f32[16,512], index: 1, kind: input, shape index: {}]   ;;  %s21473_s2 = inlined_call_operand.hbm [shape: bf16[6,512,1536], index: 2, kind: input, shape index: {}]   ;;  %s21474_s3 = inlined_call_operand.hbm [shape: bf16[6,512,512], index: 3, kind: input, shape index: {}]   ;;  %s21475_s4 = inlined_call_operand.hbm [shape: bf16[6,512,2048], index: 4, kind: input, shape index: {}]   ;;  %s21476_s5 = inlined_call_operand.hbm [shape: bf16[6,2048,512], index: 5, kind: input, shape index: {}]   ;;  %s21477_s6 = inlined_call_operand.hbm [shape: f32[16,512], index: 6, kind: output, shape index: {0}]   ;;  %s21478_s7 = inlined_call_operand.hbm [shape: f32[6,8,2,8,8], index: 7, kind: output, shape index: {1}]  }
   0x1   :  { %21500 = sst [smem:[#allocation32_spill]] %s21471_s0 }
   0x2   :  { %21501 = sst [smem:[#allocation33_spill]] %s21473_s2 }
   0x3   :  { %13 = vsyncpa [#allocation4], 0 }
   0x4   :  { %14 = vsyncpa [#allocation7], 0 }
   0x5   :  { %15 = vsyncpa [#allocation5], 0 }
   0x6   :  { %16 = vsyncpa [#allocation14], 0 }
   0x7   :  { %18 = vsyncpa [#allocation14 + $0x1], 0  ;;  %s18748_s24 = smov 0   ;;  %s18750_s25 = smov 0  }
   0x8   :  { %s18752_s26 = smov 0   ;;  %s18754_s27 = smov 0  }
   0x9 LB: > { %21502 = sst [smem:[#allocation20_spill]] %s18677_s26  ;;  %s18769_s28 = sadd.s32 4294967295, %s18681_s27   ;;  %s18681_s27 = sphi %s18754_s27, %s21551_s27   ;;  %s18677_s26 = sphi %s18752_s26, %s21553_s26   ;;  %s18673_s25 = sphi %s18750_s25, %s21555_s25   ;;  %s18669_s24 = sphi %s18748_s24, %s21554_s24  }
   0xa   : > { %s14829_s29 = sadd.s32 4294967294, %s18681_s27   ;;  %s18773_s30 = sadd.s32 1, %s18681_s27  }
   0xb   : > { %21503 = sst [smem:[#allocation21_spill]] %s18773_s30  ;;  %s73_s8 = sadd.s32 1, %s18677_s26 }
   0xc   : > { %s70_s9 = ssub.s32 %s18681_s27, %s18773_s30  ;;  %p80_p0 = scmp.ne.s32.totalorder %s18677_s26, %s18673_s25 }
   0xd   : > { %p71_p1 = scmp.eq.s32.totalorder %s70_s9, 0  ;;  %p81_p2 = scmp.eq.s32.totalorder %s18681_s27, 0 }
   0xe   : > { %p86_p3 = scmp.ne.s32.totalorder %s18673_s25, %s18669_s24  ;;  %p21485_p4 = scmp.eq.s32.totalorder %s18769_s28, 0 }
   0xf   : > { %s18785_s10 = scalar_select %p71_p1, %s18677_s26, %s73_s8  }
  0x10   : > { %p18787_p5 = por %p81_p2, %p80_p0  ;;  %p18793_p6 = por %p21485_p4, %p86_p3 }
  0x11   : > { %21504 = sst [smem:[#allocation22_spill]] %s18785_s10  ;;  %p21479_p7 = scmp.eq.s32.totalorder %s18769_s28, 5 }
  0x12   : > { %s21506_s12 = scalar_select %p18793_p6, 1, 0 }
  0x13   : > { %p215_p8 = scmp.eq.s32.totalorder %s14829_s29, 5  ;;  %p14830_p9 = scmp.ge.s32.totalorder %s18681_s27, 1 }
  0x14   : > { %p222_p10 = scmp.lt.s32.totalorder %s18681_s27, 7  ;;  %p18802_p11 = por %p21479_p7, %p80_p0 }
  0x15   : > { %p18806_p12 = por %p215_p8, %p86_p3  ;;  %s18683_s16 = smov [#allocation3]  }
  0x16   : > { %s21507_s13 = scalar_select %p18802_p11, 1, 0 }
  0x17   : > { %s21508_s14 = scalar_select %p18806_p12, 1, 0 }
  0x18   : > { %p18810_p13 = pnand %p14830_p9, %p222_p10  ;;  %s234_s17 = sshll.u32 %s18683_s16, 4  ;;  %s235_s17 = int_to_ptr.vmem [resolvable:$true] %s234_s17 }
  0x19   : > { %21509 = sst [smem:[#allocation23_spill]] %s21508_s14  ;;  %p16723_p3 = scmp.lt.s32.totalorder %s18681_s27, 6 }
  0x1a   : > { %s21510_s15 = scalar_select %p18810_p13, 1, 0 }
  0x1b   : > { %p16697_p2 = pneg %p18810_p13  ;;  %s261_s19 = sand.u32 1, %s18681_s27  }
  0x1c   : > { %s18428_s20 = scalar_lea.vmem %s235_s17, 256  ;;  %p18436_p1 = scmp.lt.s32.totalorder %s235_s17, %s235_s17 }
  0x1d   : > { %p18819_p0 = pnand %p16697_p2, %p21485_p4  ;;  %p18429_p9 = scmp.ne.s32.totalorder %s235_s17, %s18428_s20 }
  0x1e   : > { %p18437_p12 = scmp.lt.s32.totalorder %s18428_s20, %s18428_s20 }
  0x1f   : > { %s21511_s18 = scalar_select %p18819_p0, 1, 0 }
  0x20   : > { %p21486_p8 = pneg %p18819_p0  ;;  %p18438_p11 = por %p18437_p12, %p18436_p1 }
  0x22   : > { %p18431_p10 = pnand %p18429_p9, %p21486_p8 }
  0x24   : > { %p18432_p7 = pneg %p18431_p10 }
  0x26   : > { %p18439_p6 = pnand %p18438_p11, %p18432_p7 }
  0x28   : > { %18442 = shalt.err (!%p18439_p6)
}
  0x29   : > { %s18684_s21 = smov 128   ;;  %s18685_s22 = smov 8  }
  0x2a   : > { %s21512_s0 = sld [smem:[#allocation32_spill]]  ;;  %p18839_p2 = pnand %p16723_p3, %p18787_p5 }
  0x2b   : > { %s18844_s9 = sand.u32 1, %s18677_s26   ;;  %s16673_s20 = smul.u32 49152, %s18681_s27 }
  0x2c   : > { %s16672_s16 = smul.u32 3072, %s18844_s9  ;;  %s21514_s2 = sld [smem:[#allocation33_spill]] }
  0x2d   : > { %p18862_p6 = pneg %p18839_p2 }
  0x2e   : > { %s265_s11 = scalar_lea.vmem [#allocation8], %s16672_s16 }
  0x30   : > { %16700 = dma.hbm_to_vmem [thread:$0]  (!%p18819_p0), %s21512_s0, 256, %s235_s17, [#allocation4], %s18684_s21, %s18684_s21, %s18685_s22  }
  0x31   : > { %s272_s17 = sshll.u32 %s265_s11, 4  ;;  %s18856_s22 = scalar_lea.sflag [#allocation4], %s261_s19  ;;  %s18853_s17 = int_to_ptr.vmem [resolvable:$true] %s272_s17 }
  0x32   : > { %s18851_s14 = scalar_lea.hbm %s21514_s2, %s16673_s20  ;;  %s18448_s16 = scalar_lea.hbm %s21514_s2, 294912 }
  0x33   : > { %s18443_s23 = scalar_lea.hbm %s18851_s14, 49152  ;;  %p18449_p12 = scmp.lt.s32.totalorder %s18851_s14, %s21514_s2 }
  0x34   : > { %p18444_p5 = scmp.ne.s32.totalorder %s18851_s14, %s18443_s23  ;;  %p18450_p1 = scmp.lt.s32.totalorder %s18448_s16, %s18443_s23 }
  0x36   : > { %p18446_p7 = pnand %p18862_p6, %p18444_p5  ;;  %p18451_p3 = por %p18450_p1, %p18449_p12 }
  0x38   : > { %p18447_p11 = pneg %p18446_p7 }
  0x3a   : > { %p18452_p9 = pnand %p18451_p3, %p18447_p11 }
  0x3c   : > { %18455 = shalt.err (!%p18452_p9)
}
  0x3d   : > { %s18456_s19 = scalar_lea.vmem %s18853_s17, 49152  ;;  %s18686_s21 = smov [#allocation8]  }
  0x3e   : > { %p18457_p10 = scmp.ne.s32.totalorder %s18853_s17, %s18456_s19  ;;  %s18461_s30 = sshll.u32 %s18686_s21, 4  ;;  %s18462_s30 = int_to_ptr.vmem [resolvable:$false] %s18461_s30 }
  0x3f   : > { %s18463_s10 = scalar_lea.vmem %s18462_s30, 98304  ;;  %p18464_p4 = scmp.lt.s32.totalorder %s18853_s17, %s18462_s30 }
  0x40   : > { %p18459_p5 = pnand %p18457_p10, %p18862_p6  ;;  %p18465_p8 = scmp.lt.s32.totalorder %s18463_s10, %s18456_s19 }
  0x42   : > { %p18460_p7 = pneg %p18459_p5  ;;  %p18466_p13 = por %p18465_p8, %p18464_p4 }
  0x44   : > { %p18467_p0 = pnand %p18466_p13, %p18460_p7 }
  0x46   : > { %18470 = shalt.err (!%p18467_p0)
}
  0x47   : > { %s18687_s23 = smov 768   ;;  %s18688_s16 = smov 48  }
  0x48   : > { %16707 = dma.hbm_to_vmem [thread:$0]  (!%p18839_p2), %s18851_s14, 49152, %s18853_s17, %s18856_s22, %s18687_s23, %s18687_s23, %s18688_s16  }
  0x49   : > { %s16444_s21 = sshll.u32 %s18681_s27, 14  ;;  %s21516_s30 = sshll.u32 %s18844_s9, 10 }
  0x4a   : > { %s18889_s19 = scalar_lea.hbm %s21474_s3, %s16444_s21  ;;  %s286_s10 = scalar_lea.vmem [#allocation9], %s21516_s30 }
  0x4b   : > { %s293_s0 = sshll.u32 %s286_s10, 4  ;;  %s14838_s2 = sshll.u32 %s18844_s9, 12  ;;  %s18893_s0 = int_to_ptr.vmem [resolvable:$true] %s293_s0 }
  0x4c   : > { %s18471_s26 = scalar_lea.hbm %s18889_s19, 16384  ;;  %s18476_s23 = scalar_lea.hbm %s21474_s3, 98304 }
  0x4d   : > { %p18472_p4 = scmp.ne.s32.totalorder %s18889_s19, %s18471_s26  ;;  %p18477_p8 = scmp.lt.s32.totalorder %s18889_s19, %s21474_s3 }
  0x4e   : > { %p18478_p11 = scmp.lt.s32.totalorder %s18476_s23, %s18471_s26 }
  0x4f   : > { %p18474_p13 = pnand %p18472_p4, %p18862_p6 }
  0x50   : > { %p18479_p12 = por %p18478_p11, %p18477_p8 }
  0x51   : > { %p18475_p0 = pneg %p18474_p13 }
  0x53   : > { %p18480_p1 = pnand %p18479_p12, %p18475_p0 }
  0x55   : > { %18483 = shalt.err (!%p18480_p1)
}
  0x56   : > { %s18484_s20 = scalar_lea.vmem %s18893_s0, 16384  ;;  %s18689_s11 = smov [#allocation9]  }
  0x57   : > { %p18485_p3 = scmp.ne.s32.totalorder %s18893_s0, %s18484_s20  ;;  %s18489_s30 = sshll.u32 %s18689_s11, 4  ;;  %s18490_s30 = int_to_ptr.vmem [resolvable:$false] %s18489_s30 }
  0x58   : > { %s18491_s10 = scalar_lea.vmem %s18490_s30, 32768  ;;  %p18492_p5 = scmp.lt.s32.totalorder %s18893_s0, %s18490_s30 }
  0x59   : > { %p18487_p9 = pnand %p18485_p3, %p18862_p6  ;;  %p18493_p7 = scmp.lt.s32.totalorder %s18491_s10, %s18484_s20 }
  0x5b   : > { %p18488_p10 = pneg %p18487_p9  ;;  %p18494_p4 = por %p18493_p7, %p18492_p5 }
  0x5d   : > { %p18495_p13 = pnand %p18494_p4, %p18488_p10 }
  0x5f   : > { %18498 = shalt.err (!%p18495_p13)
}
  0x60   : > { %s21491_s26 = smov 256   ;;  %s21492_s14 = smov 16  }
  0x61   : > { %16710 = dma.hbm_to_vmem [thread:$0]  (!%p18839_p2), %s18889_s19, 16384, %s18893_s0, %s18856_s22, %s21491_s26, %s21491_s26, %s21492_s14  }
  0x62   : > { %s16445_s17 = sshll.u32 %s18681_s27, 16  ;;  %s307_s20 = scalar_lea.vmem [#allocation10], %s14838_s2 }
  0x63   : > { %s18926_s21 = scalar_lea.hbm %s21475_s4, %s16445_s17  ;;  %s314_s11 = sshll.u32 %s307_s20, 4  ;;  %s18930_s11 = int_to_ptr.vmem [resolvable:$true] %s314_s11 }
  0x64   : > { %s18499_s30 = scalar_lea.hbm %s18926_s21, 65536  ;;  %s18504_s10 = scalar_lea.hbm %s21475_s4, 393216 }
  0x65   : > { %p18500_p0 = scmp.ne.s32.totalorder %s18926_s21, %s18499_s30  ;;  %p18505_p12 = scmp.lt.s32.totalorder %s18926_s21, %s21475_s4 }
  0x66   : > { %p18506_p1 = scmp.lt.s32.totalorder %s18504_s10, %s18499_s30 }
  0x67   : > { %p18502_p8 = pnand %p18500_p0, %p18862_p6 }
  0x68   : > { %p18507_p3 = por %p18506_p1, %p18505_p12 }
  0x69   : > { %p18503_p11 = pneg %p18502_p8 }
  0x6b   : > { %p18508_p9 = pnand %p18507_p3, %p18503_p11 }
  0x6d   : > { %18511 = shalt.err (!%p18508_p9)
}
  0x6e   : > { %s18512_s20 = scalar_lea.vmem %s18930_s11, 65536  ;;  %s18692_s26 = smov [#allocation10]  }
  0x6f   : > { %p18513_p10 = scmp.ne.s32.totalorder %s18930_s11, %s18512_s20  ;;  %s18517_s0 = sshll.u32 %s18692_s26, 4  ;;  %s18518_s0 = int_to_ptr.vmem [resolvable:$false] %s18517_s0 }
  0x70   : > { %s18519_s19 = scalar_lea.vmem %s18518_s0, 131072  ;;  %p18520_p4 = scmp.lt.s32.totalorder %s18930_s11, %s18518_s0 }
  0x71   : > { %p18515_p5 = pnand %p18513_p10, %p18862_p6  ;;  %p18521_p13 = scmp.lt.s32.totalorder %s18519_s19, %s18512_s20 }
  0x73   : > { %p18516_p7 = pneg %p18515_p5  ;;  %p18522_p0 = por %p18521_p13, %p18520_p4 }
  0x75   : > { %p18523_p8 = pnand %p18522_p0, %p18516_p7 }
  0x77   : > { %18526 = shalt.err (!%p18523_p8)
}
  0x78   : > { %s18693_s30 = smov 1024   ;;  %s18694_s10 = smov 64  }
  0x79   : > { %16713 = dma.hbm_to_vmem [thread:$0]  (!%p18839_p2), %s18926_s21, 65536, %s18930_s11, %s18856_s22, %s18693_s30, %s18693_s30, %s18694_s10  }
  0x7a   : > { %s18695_s23 = smov [#allocation6]   ;;  %p21517_p12 = scmp.ne.s32.totalorder %s21511_s18, 0 }
  0x7b   : > { %s247_s16 = sshll.u32 %s18695_s23, 4  ;;  %s248_s16 = int_to_ptr.vmem [resolvable:$true] %s247_s16 }
  0x7c   : > { %s18538_s26 = scalar_lea.vmem %s248_s16, 1024  ;;  %p21518_p1 = pneg %p21517_p12 }
  0x7d   : > { %p18539_p11 = scmp.ne.s32.totalorder %s248_s16, %s18538_s26  ;;  %p18546_p10 = scmp.lt.s32.totalorder %s248_s16, %s248_s16 }
  0x7e   : > { %p18547_p5 = scmp.lt.s32.totalorder %s18538_s26, %s18538_s26 }
  0x7f   : > { %p18541_p3 = pnand %p18539_p11, %p21518_p1 }
  0x80   : > { %p18548_p7 = por %p18547_p5, %p18546_p10 }
  0x81   : > { %p18542_p9 = pneg %p18541_p3 }
  0x83   : > { %p18549_p4 = pnand %p18548_p7, %p18542_p9 }
  0x85   : > { %18552 = shalt.err (!%p18549_p4)
}
  0x86   : > { %s18696_s20 = smov 512   ;;  %s18697_s21 = smov 32  }
  0x87   : > { %16703 = dma.hbm_to_vmem [thread:$0]  (!%p21517_p12), %s21472_s1, 1024, %s248_s16, [#allocation7], %s18696_s20, %s18696_s20, %s18697_s21  }
  0x88   : > { %s18966_s10 = scalar_lea.hbm %s21476_s5, %s16445_s17  ;;  %s328_s23 = scalar_lea.vmem [#allocation11], %s14838_s2 }
  0x89   : > { %s335_s26 = sshll.u32 %s328_s23, 4  ;;  %s18553_s14 = scalar_lea.hbm %s18966_s10, 65536  ;;  %s336_s26 = int_to_ptr.vmem [resolvable:$true] %s335_s26 }
  0x8a   : > { %p18554_p13 = scmp.ne.s32.totalorder %s18966_s10, %s18553_s14  ;;  %s18558_s20 = scalar_lea.hbm %s21476_s5, 393216 }
  0x8b   : > { %p18559_p11 = scmp.lt.s32.totalorder %s18966_s10, %s21476_s5  ;;  %p18560_p12 = scmp.lt.s32.totalorder %s18558_s20, %s18553_s14 }
  0x8c   : > { %p18556_p0 = pnand %p18554_p13, %p18862_p6 }
  0x8d   : > { %p18561_p1 = por %p18560_p12, %p18559_p11 }
  0x8e   : > { %p18557_p8 = pneg %p18556_p0 }
  0x90   : > { %p18562_p3 = pnand %p18561_p1, %p18557_p8 }
  0x92   : > { %18565 = shalt.err (!%p18562_p3)
}
  0x93   : > { %s18566_s2 = scalar_lea.vmem %s336_s26, 65536  ;;  %s18698_s9 = smov [#allocation11]  }
  0x94   : > { %p18567_p9 = scmp.ne.s32.totalorder %s336_s26, %s18566_s2  ;;  %s18571_s17 = sshll.u32 %s18698_s9, 4  ;;  %s18572_s17 = int_to_ptr.vmem [resolvable:$false] %s18571_s17 }
  0x95   : > { %s18573_s0 = scalar_lea.vmem %s18572_s17, 131072  ;;  %p18574_p7 = scmp.lt.s32.totalorder %s336_s26, %s18572_s17 }
  0x96   : > { %p18569_p10 = pnand %p18567_p9, %p18862_p6  ;;  %p18575_p4 = scmp.lt.s32.totalorder %s18573_s0, %s18566_s2 }
  0x98   : > { %p18570_p5 = pneg %p18569_p10  ;;  %p18576_p13 = por %p18575_p4, %p18574_p7 }
  0x9a   : > { %p18577_p0 = pnand %p18576_p13, %p18570_p5 }
  0x9c   : > { %18580 = shalt.err (!%p18577_p0)
}
  0x9d   : > { %s21519_s14 = smov 16   ;;  %s21520_s19 = smov 256  }
  0x9e   : > { %16716 = dma.hbm_to_vmem [thread:$0]  (!%p18839_p2), %s18966_s10, 65536, %s336_s26, %s18856_s22, %s21520_s19, %s21520_s19, %s21519_s14  }
  0x9f   : > { %p21521_p6 = scmp.ne.s32.totalorder %s21510_s15, 0 }
  0xa1   : > { %347 = sbr.rel (%p21521_p6) target bundleno = 3705 (0xe79), region = 44 }
  0xa6   : > { %p21522_p8 = scmp.eq.s32.totalorder %s18769_s28, 0 }
  0xa8   : > { %18648 = dma.done.wait (%p21522_p8), [#allocation4], 256   ;;  %p21523_p11 = pmov %p21522_p8 }
  0xa9   : > { %p21524_p12 = pmov %p21522_p8 }
  0xaa   : > { %18650 = vsyncadd (%p21523_p11), [#allocation4], 4294967040 }
  0xab   : > { %18652 = dma.done.wait (%p21524_p12), [#allocation7], 1024   ;;  %p21525_p1 = pmov %p21522_p8 }
  0xac   : > { %s357_s8 = sand.u32 1, %s18769_s28   ;;  %s19002_s22 = sand.u32 1, %s18673_s25  }
  0xad   : > { %18654 = vsyncadd (%p21525_p1), [#allocation7], 4294966272  ;;  %s16674_s15 = smul.u32 3072, %s19002_s22  ;;  %s358_s29 = scalar_lea.sflag [#allocation4], %s357_s8 }
  0xae   : > { %p21526_p2 = scmp.ne.s32.totalorder %s21506_s12, 0 }
  0xaf   : > { %s19005_s30 = scalar_lea.vmem [#allocation8], %s16674_s15 }
  0xb0   : > { %18656 = dma.done.wait (%p21526_p2), %s358_s29, 196608  }
  0xb1   : > { %18658 = vsyncadd (%p21526_p2), %s358_s29, 4294770688  ;;  %s14847_s10 = sshll.u32 %s19002_s22, 10  ;;  %s14848_s23 = sshll.u32 %s19002_s22, 12 }
  0xb2   : > { %s14850_s26 = sshll.u32 %s19002_s22, 7  ;;  %s19014_s18 = scalar_lea.vmem [#allocation9], %s14847_s10 }
  0xb3   : > { %s19016_s16 = scalar_lea.vmem [#allocation10], %s14848_s23  ;;  %s19018_s20 = scalar_lea.vmem [#allocation11], %s14848_s23 }
  0xb4   : > { %s19020_s21 = scalar_lea.vmem [#allocation13], %s14850_s26  ;;  %p21527_p3 = scmp.ne.s32.totalorder %s18769_s28, 0 }
  0xb6   : > { %437 = sbr.rel (%p21527_p3) target bundleno = 192 (0xc0), region = 72 }
  0xbb   : > { %v438_v0 = vld [vmem:[#allocation6] sm:$0xff]  ;;  %v439_v1 = vld [vmem:[#allocation6 + $0x8] sm:$0xff]  ;;  %v440_v2 = vld [vmem:[#allocation6 + $0x10] sm:$0xff] }
  0xbc   : > { %446 = vst [vmem:[#allocation2 + $0x30] sm:$0xff] %v438_v0  ;;  %447 = vst [vmem:[#allocation2] sm:$0xff] %v439_v1  ;;  %v441_v3 = vld [vmem:[#allocation6 + $0x18] sm:$0xff]  ;;  %v442_v4 = vld [vmem:[#allocation6 + $0x20] sm:$0xff] }
  0xbd   : > { %448 = vst [vmem:[#allocation2 + $0x18] sm:$0xff] %v440_v2  ;;  %v443_v5 = vld [vmem:[#allocation6 + $0x28] sm:$0xff]  ;;  %449 = vst [vmem:[#allocation2 + $0x10] sm:$0xff] %v441_v3  ;;  %v444_v6 = vld [vmem:[#allocation6 + $0x30] sm:$0xff] }
  0xbe   : > { %450 = vst [vmem:[#allocation2 + $0x8] sm:$0xff] %v442_v4  ;;  %451 = vst [vmem:[#allocation2 + $0x20] sm:$0xff] %v443_v5  ;;  %v445_v7 = vld [vmem:[#allocation6 + $0x38] sm:$0xff] }
  0xbf   : > { %452 = vst [vmem:[#allocation2 + $0x28] sm:$0xff] %v444_v6  ;;  %453 = vst [vmem:[#allocation2 + $0x38] sm:$0xff] %v445_v7 }
  0xc0 PF: > { %v16801_v8 = vld [vmem:[%s19005_s30 + $0x2a4] ss:$48 sps:$4 sm:$0xff]   ;;  %v16805_v10 = vld [vmem:[%s19005_s30 + $0x2a0] ss:$48 sps:$4 sm:$0xff]   ;;  %s18699_s12 = smov 64   ;;  %vm3368_vm0 = vcmask 523264  }
  0xc1   : > { %v16803_v9 = vld [vmem:[%s19005_s30 + $0x8a4] ss:$48 sps:$4 sm:$0xff]   ;;  %2772 = vmatprep.subr.bf16.mxu0 %v16801_v8  ;;  %v16806_v11 = vld [vmem:[%s19005_s30 + $0x8a0] ss:$48 sps:$4 sm:$0xff]   ;;  %vm18701_vm1 = vmmov 0   ;;  %vm4587_vm3 = vcmask 64512  }
  0xc2   : > { %2815 = vmatprep.subr.bf16.mxu1 %v16803_v9  ;;  %v16807_v12 = vld [vmem:[%s19005_s30 + $0x244] ss:$48 sps:$4 sm:$0xff]   ;;  %2773 = vmatpush1.bf16.msra.mxu0 %v16805_v10  ;;  %v16811_v14 = vld [vmem:[%s19005_s30 + $0x240] ss:$48 sps:$4 sm:$0xff]   ;;  %p16436_p9 = scmp.ne.s32.totalorder %s18769_s28, 5 }
  0xc3   : > { %2816 = vmatpush1.bf16.msra.mxu1 %v16806_v11  ;;  %v16809_v13 = vld [vmem:[%s19005_s30 + $0x844] ss:$48 sps:$4 sm:$0xff]   ;;  %2774 = vmatprep.subr.bf16.mxu0 %v16807_v12  ;;  %v16812_v15 = vld [vmem:[%s19005_s30 + $0x840] ss:$48 sps:$4 sm:$0xff]  }
  0xc4   : > { %2817 = vmatprep.subr.bf16.mxu1 %v16809_v13  ;;  %v16813_v16 = vld [vmem:[%s19005_s30 + $0x1e4] ss:$48 sps:$4 sm:$0xff]   ;;  %v16817_v18 = vld [vmem:[%s19005_s30 + $0x1e0] ss:$48 sps:$4 sm:$0xff]  }
  0xc5   : > { %v16815_v17 = vld [vmem:[%s19005_s30 + $0x7e4] ss:$48 sps:$4 sm:$0xff]   ;;  %v16818_v19 = vld [vmem:[%s19005_s30 + $0x7e0] ss:$48 sps:$4 sm:$0xff]  }
  0xc6   : > { %2775 = vmatpush1.bf16.msra.mxu0 %v16811_v14  ;;  %v16819_v20 = vld [vmem:[%s19005_s30 + $0x184] ss:$48 sps:$4 sm:$0xff]   ;;  %v16823_v22 = vld [vmem:[%s19005_s30 + $0x180] ss:$48 sps:$4 sm:$0xff]   ;;  %v461_v57 = vld [vmem:[#allocation2 + $0x38] sm:$0xff] }
  0xc7   : > { %2818 = vmatpush1.bf16.msra.mxu1 %v16812_v15  ;;  %2776 = vmatprep.subr.bf16.mxu0 %v16813_v16  ;;  %v16821_v21 = vld [vmem:[%s19005_s30 + $0x784] ss:$48 sps:$4 sm:$0xff]   ;;  %v16824_v23 = vld [vmem:[%s19005_s30 + $0x780] ss:$48 sps:$4 sm:$0xff]   ;;  %v458_v15 = vld [vmem:[#allocation2 + $0x8] sm:$0xff] }
  0xc8   : > { %2819 = vmatprep.subr.bf16.mxu1 %v16815_v17  ;;  %v16825_v24 = vld [vmem:[%s19005_s30 + $0x124] ss:$48 sps:$4 sm:$0xff]   ;;  %v16829_v26 = vld [vmem:[%s19005_s30 + $0x120] ss:$48 sps:$4 sm:$0xff]   ;;  %v456_v16 = vld [vmem:[#allocation2 + $0x18] sm:$0xff] }
  0xc9   : > { %v16827_v25 = vld [vmem:[%s19005_s30 + $0x724] ss:$48 sps:$4 sm:$0xff]   ;;  %v16830_v27 = vld [vmem:[%s19005_s30 + $0x720] ss:$48 sps:$4 sm:$0xff]   ;;  %v460_v17 = vld [vmem:[#allocation2 + $0x28] sm:$0xff] }
  0xca   : > { %2777 = vmatpush1.bf16.msra.mxu0 %v16817_v18  ;;  %v16831_v28 = vld [vmem:[%s19005_s30 + $0xc4] ss:$48 sps:$4 sm:$0xff]   ;;  %v16835_v30 = vld [vmem:[%s19005_s30 + $0xc0] ss:$48 sps:$4 sm:$0xff]   ;;  %v16899_v18 = vld [vmem:[%s19005_s30 + $0x2ac] ss:$48 sps:$4 sm:$0xff]  }
  0xcb   : > { %2820 = vmatpush1.bf16.msra.mxu1 %v16818_v19  ;;  %2778 = vmatprep.subr.bf16.mxu0 %v16819_v20  ;;  %v16833_v29 = vld [vmem:[%s19005_s30 + $0x6c4] ss:$48 sps:$4 sm:$0xff]   ;;  %v16836_v31 = vld [vmem:[%s19005_s30 + $0x6c0] ss:$48 sps:$4 sm:$0xff]   ;;  %v16902_v19 = vld [vmem:[%s19005_s30 + $0x8ac] ss:$48 sps:$4 sm:$0xff]  }
  0xcc   : > { %2821 = vmatprep.subr.bf16.mxu1 %v16821_v21  ;;  %v16837_v32 = vld [vmem:[%s19005_s30 + $0x64] ss:$48 sps:$4 sm:$0xff]   ;;  %v16841_v34 = vld [vmem:[%s19005_s30 + $0x60] ss:$48 sps:$4 sm:$0xff]   ;;  %v19098_v21 = vpack.c.bf16 %v460_v17, %v456_v16  ;;  %v16981_v16 = vld [vmem:[%s19005_s30 + $0x368] ss:$48 sps:$4 sm:$0xff]  }
  0xcd   : > { %v16839_v33 = vld [vmem:[%s19005_s30 + $0x664] ss:$48 sps:$4 sm:$0xff]   ;;  %v16842_v35 = vld [vmem:[%s19005_s30 + $0x660] ss:$48 sps:$4 sm:$0xff]   ;;  %v16984_v17 = vld [vmem:[%s19005_s30 + $0x968] ss:$48 sps:$4 sm:$0xff]  }
  0xce   : > { %2779 = vmatpush1.bf16.msra.mxu0 %v16823_v22  ;;  %v16843_v36 = vld [vmem:[%s19005_s30 + $0x4] ss:$48 sps:$4 sm:$0xff]   ;;  %v16847_v38 = vld [vmem:[%s19005_s30] ss:$48 sps:$4 sm:$0xff]   ;;  %v16897_v22 = vld [vmem:[%s19005_s30 + $0x2a8] ss:$48 sps:$4 sm:$0xff]  }
  0xcf   : > { %2822 = vmatpush1.bf16.msra.mxu1 %v16824_v23  ;;  %2780 = vmatprep.subr.bf16.mxu0 %v16825_v24  ;;  %v16845_v37 = vld [vmem:[%s19005_s30 + $0x604] ss:$48 sps:$4 sm:$0xff]   ;;  %v16848_v39 = vld [vmem:[%s19005_s30 + $0x600] ss:$48 sps:$4 sm:$0xff]   ;;  %v16900_v23 = vld [vmem:[%s19005_s30 + $0x8a8] ss:$48 sps:$4 sm:$0xff]  }
  0xd0   : > { %2823 = vmatprep.subr.bf16.mxu1 %v16827_v25  ;;  %v16849_v40 = vld [vmem:[%s19005_s30 + $0x5a4] ss:$48 sps:$4 sm:$0xff]   ;;  %v16853_v42 = vld [vmem:[%s19005_s30 + $0x5a0] ss:$48 sps:$4 sm:$0xff]   ;;  %v16905_v24 = vld [vmem:[%s19005_s30 + $0x24c] ss:$48 sps:$4 sm:$0xff]  }
  0xd1   : > { %v16851_v41 = vld [vmem:[%s19005_s30 + $0xba4] ss:$48 sps:$4 sm:$0xff]   ;;  %v16854_v43 = vld [vmem:[%s19005_s30 + $0xba0] ss:$48 sps:$4 sm:$0xff]   ;;  %v16908_v25 = vld [vmem:[%s19005_s30 + $0x84c] ss:$48 sps:$4 sm:$0xff]  }
  0xd2   : > { %2781 = vmatpush1.bf16.msra.mxu0 %v16829_v26  ;;  %v16855_v44 = vld [vmem:[%s19005_s30 + $0x544] ss:$48 sps:$4 sm:$0xff]   ;;  %v16859_v46 = vld [vmem:[%s19005_s30 + $0x540] ss:$48 sps:$4 sm:$0xff]   ;;  %v16903_v26 = vld [vmem:[%s19005_s30 + $0x248] ss:$48 sps:$4 sm:$0xff]  }
  0xd3   : > { %2824 = vmatpush1.bf16.msra.mxu1 %v16830_v27  ;;  %2782 = vmatprep.subr.bf16.mxu0 %v16831_v28  ;;  %v16857_v45 = vld [vmem:[%s19005_s30 + $0xb44] ss:$48 sps:$4 sm:$0xff]   ;;  %v16860_v47 = vld [vmem:[%s19005_s30 + $0xb40] ss:$48 sps:$4 sm:$0xff]   ;;  %v16906_v27 = vld [vmem:[%s19005_s30 + $0x848] ss:$48 sps:$4 sm:$0xff]  }
  0xd4   : > { %2825 = vmatprep.subr.bf16.mxu1 %v16833_v29  ;;  %v16861_v48 = vld [vmem:[%s19005_s30 + $0x4e4] ss:$48 sps:$4 sm:$0xff]   ;;  %v16865_v50 = vld [vmem:[%s19005_s30 + $0x4e0] ss:$48 sps:$4 sm:$0xff]   ;;  %v16911_v28 = vld [vmem:[%s19005_s30 + $0x1ec] ss:$48 sps:$4 sm:$0xff]  }
  0xd5   : > { %v16863_v49 = vld [vmem:[%s19005_s30 + $0xae4] ss:$48 sps:$4 sm:$0xff]   ;;  %v16866_v51 = vld [vmem:[%s19005_s30 + $0xae0] ss:$48 sps:$4 sm:$0xff]   ;;  %v16914_v29 = vld [vmem:[%s19005_s30 + $0x7ec] ss:$48 sps:$4 sm:$0xff]  }
  0xd6   : > { %2783 = vmatpush1.bf16.msra.mxu0 %v16835_v30  ;;  %v16867_v52 = vld [vmem:[%s19005_s30 + $0x484] ss:$48 sps:$4 sm:$0xff]   ;;  %v16871_v58 = vld [vmem:[%s19005_s30 + $0x480] ss:$48 sps:$4 sm:$0xff]   ;;  %v16909_v30 = vld [vmem:[%s19005_s30 + $0x1e8] ss:$48 sps:$4 sm:$0xff]  }
  0xd7   : > { %2826 = vmatpush1.bf16.msra.mxu1 %v16836_v31  ;;  %2784 = vmatprep.subr.bf16.mxu0 %v16837_v32  ;;  %v16869_v53 = vld [vmem:[%s19005_s30 + $0xa84] ss:$48 sps:$4 sm:$0xff]   ;;  %v16872_v59 = vld [vmem:[%s19005_s30 + $0xa80] ss:$48 sps:$4 sm:$0xff]   ;;  %v16912_v31 = vld [vmem:[%s19005_s30 + $0x7e8] ss:$48 sps:$4 sm:$0xff]  }
  0xd8   : > { %2827 = vmatprep.subr.bf16.mxu1 %v16839_v33  ;;  %v455_v54 = vld [vmem:[#allocation2] sm:$0xff]  ;;  %v457_v56 = vld [vmem:[#allocation2 + $0x10] sm:$0xff]  ;;  %v16917_v32 = vld [vmem:[%s19005_s30 + $0x18c] ss:$48 sps:$4 sm:$0xff]  }
  0xd9   : > { %v459_v55 = vld [vmem:[#allocation2 + $0x20] sm:$0xff]  ;;  %v19075_v62 = vpack.c.bf16 %v461_v57, %v457_v56  ;;  %v454_v14 = vld [vmem:[#allocation2 + $0x30] sm:$0xff]  ;;  %v16920_v33 = vld [vmem:[%s19005_s30 + $0x78c] ss:$48 sps:$4 sm:$0xff]  }
  0xda   : > { %2785 = vmatpush1.bf16.msra.mxu0 %v16841_v34  ;;  %v16873_v60 = vld [vmem:[%s19005_s30 + $0x424] ss:$48 sps:$4 sm:$0xff]   ;;  %v19073_v61 = vpack.c.bf16 %v459_v55, %v455_v54  ;;  %v16877_v0 = vld [vmem:[%s19005_s30 + $0x420] ss:$48 sps:$4 sm:$0xff]   ;;  %v19096_v20 = vpack.c.bf16 %v458_v15, %v454_v14  ;;  %v16915_v34 = vld [vmem:[%s19005_s30 + $0x188] ss:$48 sps:$4 sm:$0xff]  }
  0xdb   : > { %2828 = vmatpush1.bf16.msra.mxu1 %v16842_v35  ;;  %2786 = vmatprep.subr.bf16.mxu0 %v16843_v36  ;;  %v16875_v63 = vld [vmem:[%s19005_s30 + $0xa24] ss:$48 sps:$4 sm:$0xff]   ;;  %v16878_v1 = vld [vmem:[%s19005_s30 + $0xa20] ss:$48 sps:$4 sm:$0xff]   ;;  %v16918_v35 = vld [vmem:[%s19005_s30 + $0x788] ss:$48 sps:$4 sm:$0xff]  }
  0xdc   : > { %2829 = vmatprep.subr.bf16.mxu1 %v16845_v37  ;;  %2804 = vmatprep.mubr.bf16.mxu0 %v19073_v61  ;;  %v16879_v2 = vld [vmem:[%s19005_s30 + $0x3c4] ss:$48 sps:$4 sm:$0xff]   ;;  %v16883_v4 = vld [vmem:[%s19005_s30 + $0x3c0] ss:$48 sps:$4 sm:$0xff]   ;;  %v16923_v36 = vld [vmem:[%s19005_s30 + $0x12c] ss:$48 sps:$4 sm:$0xff]  }
  0xdd   : > { %2847 = vmatprep.mubr.bf16.mxu1 %v19075_v62  ;;  %v16881_v3 = vld [vmem:[%s19005_s30 + $0x9c4] ss:$48 sps:$4 sm:$0xff]   ;;  %v16884_v5 = vld [vmem:[%s19005_s30 + $0x9c0] ss:$48 sps:$4 sm:$0xff]   ;;  %v16926_v37 = vld [vmem:[%s19005_s30 + $0x72c] ss:$48 sps:$4 sm:$0xff]  }
  0xde   : > { %2787 = vmatpush1.bf16.msra.mxu0 %v16847_v38  ;;  %v16885_v6 = vld [vmem:[%s19005_s30 + $0x364] ss:$48 sps:$4 sm:$0xff]   ;;  %v16889_v8 = vld [vmem:[%s19005_s30 + $0x360] ss:$48 sps:$4 sm:$0xff]   ;;  %v16921_v38 = vld [vmem:[%s19005_s30 + $0x128] ss:$48 sps:$4 sm:$0xff]  }
  0xdf   : > { %2830 = vmatpush1.bf16.msra.mxu1 %v16848_v39  ;;  %2788 = vmatprep.subr.bf16.mxu0 %v16849_v40  ;;  %v16887_v7 = vld [vmem:[%s19005_s30 + $0x964] ss:$48 sps:$4 sm:$0xff]   ;;  %v16890_v9 = vld [vmem:[%s19005_s30 + $0x960] ss:$48 sps:$4 sm:$0xff]   ;;  %v16924_v39 = vld [vmem:[%s19005_s30 + $0x728] ss:$48 sps:$4 sm:$0xff]  }
  0xe0   : > { %2831 = vmatprep.subr.bf16.mxu1 %v16851_v41  ;;  %v16891_v10 = vld [vmem:[%s19005_s30 + $0x304] ss:$48 sps:$4 sm:$0xff]   ;;  %v16895_v12 = vld [vmem:[%s19005_s30 + $0x300] ss:$48 sps:$4 sm:$0xff]   ;;  %v16929_v40 = vld [vmem:[%s19005_s30 + $0xcc] ss:$48 sps:$4 sm:$0xff]  }
  0xe1   : > { %v16893_v11 = vld [vmem:[%s19005_s30 + $0x904] ss:$48 sps:$4 sm:$0xff]   ;;  %v16896_v13 = vld [vmem:[%s19005_s30 + $0x900] ss:$48 sps:$4 sm:$0xff]   ;;  %v16932_v41 = vld [vmem:[%s19005_s30 + $0x6cc] ss:$48 sps:$4 sm:$0xff]  }
  0xe2   : > { %2789 = vmatpush2.bf16.msra.mxu0 %v16853_v42  ;;  %v16927_v42 = vld [vmem:[%s19005_s30 + $0xc8] ss:$48 sps:$4 sm:$0xff]   ;;  %v16953_v56 = vld [vmem:[%s19005_s30 + $0x54c] ss:$48 sps:$4 sm:$0xff]  }
  0xe3   : > { %2832 = vmatpush2.bf16.msra.mxu1 %v16854_v43  ;;  %2790 = vmatprep.subr.bf16.mxu0 %v16855_v44  ;;  %v16930_v43 = vld [vmem:[%s19005_s30 + $0x6c8] ss:$48 sps:$4 sm:$0xff]   ;;  %v16935_v44 = vld [vmem:[%s19005_s30 + $0x6c] ss:$48 sps:$4 sm:$0xff]  }
  0xe4   : > { %2833 = vmatprep.subr.bf16.mxu1 %v16857_v45  ;;  %v16938_v45 = vld [vmem:[%s19005_s30 + $0x66c] ss:$48 sps:$4 sm:$0xff]   ;;  %v16945_v54 = vld [vmem:[%s19005_s30 + $0x5a8] ss:$48 sps:$4 sm:$0xff]  }
  0xe5   : > { %v16948_v55 = vld [vmem:[%s19005_s30 + $0xba8] ss:$48 sps:$4 sm:$0xff]   ;;  %v16956_v57 = vld [vmem:[%s19005_s30 + $0xb4c] ss:$48 sps:$4 sm:$0xff]  }
  0xe6   : > { %2791 = vmatpush2.bf16.msra.mxu0 %v16859_v46  ;;  %v16933_v46 = vld [vmem:[%s19005_s30 + $0x68] ss:$48 sps:$4 sm:$0xff]   ;;  %v16983_v14 = vld [vmem:[%s19005_s30 + $0x36c] ss:$48 sps:$4 sm:$0xff]  }
  0xe7   : > { %2834 = vmatpush2.bf16.msra.mxu1 %v16860_v47  ;;  %2792 = vmatprep.subr.bf16.mxu0 %v16861_v48  ;;  %v16936_v47 = vld [vmem:[%s19005_s30 + $0x668] ss:$48 sps:$4 sm:$0xff]   ;;  %v16941_v48 = vld [vmem:[%s19005_s30 + $0xc] ss:$48 sps:$4 sm:$0xff]  }
  0xe8   : > { %2835 = vmatprep.subr.bf16.mxu1 %v16863_v49  ;;  %v16944_v49 = vld [vmem:[%s19005_s30 + $0x60c] ss:$48 sps:$4 sm:$0xff]  }
  0xe9   : > { %v16986_v15 = vld [vmem:[%s19005_s30 + $0x96c] ss:$48 sps:$4 sm:$0xff]  }
  0xea   : > { %2793 = vmatpush2.bf16.msra.mxu0 %v16865_v50  ;;  %v16939_v50 = vld [vmem:[%s19005_s30 + $0x8] ss:$48 sps:$4 sm:$0xff]  }
  0xeb   : > { %2836 = vmatpush2.bf16.msra.mxu1 %v16866_v51  ;;  %2794 = vmatprep.subr.bf16.mxu0 %v16867_v52  ;;  %v16942_v51 = vld [vmem:[%s19005_s30 + $0x608] ss:$48 sps:$4 sm:$0xff]   ;;  %v16947_v52 = vld [vmem:[%s19005_s30 + $0x5ac] ss:$48 sps:$4 sm:$0xff]  }
  0xec   : > { %2837 = vmatprep.subr.bf16.mxu1 %v16869_v53  ;;  %v16950_v53 = vld [vmem:[%s19005_s30 + $0xbac] ss:$48 sps:$4 sm:$0xff]  }
  0xee   : > { %2795 = vmatpush2.bf16.msra.mxu0 %v16871_v58  ;;  %v16951_v58 = vld [vmem:[%s19005_s30 + $0x548] ss:$48 sps:$4 sm:$0xff]  }
  0xef   : > { %2838 = vmatpush2.bf16.msra.mxu1 %v16872_v59  ;;  %2796 = vmatprep.subr.bf16.mxu0 %v16873_v60  ;;  %v16954_v59 = vld [vmem:[%s19005_s30 + $0xb48] ss:$48 sps:$4 sm:$0xff]   ;;  %v16959_v60 = vld [vmem:[%s19005_s30 + $0x4ec] ss:$48 sps:$4 sm:$0xff]  }
  0xf0   : > { %2839 = vmatprep.subr.bf16.mxu1 %v16875_v63  ;;  %v16962_v63 = vld [vmem:[%s19005_s30 + $0xaec] ss:$48 sps:$4 sm:$0xff]  }
  0xf2   : > { %2797 = vmatpush2.bf16.msra.mxu0 %v16877_v0  ;;  %v16957_v0 = vld [vmem:[%s19005_s30 + $0x4e8] ss:$48 sps:$4 sm:$0xff]  }
  0xf3   : > { %2840 = vmatpush2.bf16.msra.mxu1 %v16878_v1  ;;  %2798 = vmatprep.subr.bf16.mxu0 %v16879_v2  ;;  %v16960_v1 = vld [vmem:[%s19005_s30 + $0xae8] ss:$48 sps:$4 sm:$0xff]   ;;  %v16965_v2 = vld [vmem:[%s19005_s30 + $0x48c] ss:$48 sps:$4 sm:$0xff]  }
  0xf4   : > { %2841 = vmatprep.subr.bf16.mxu1 %v16881_v3  ;;  %v16968_v3 = vld [vmem:[%s19005_s30 + $0xa8c] ss:$48 sps:$4 sm:$0xff]  }
  0xf6   : > { %2799 = vmatpush2.bf16.msra.mxu0 %v16883_v4  ;;  %v16963_v4 = vld [vmem:[%s19005_s30 + $0x488] ss:$48 sps:$4 sm:$0xff]  }
  0xf7   : > { %2842 = vmatpush2.bf16.msra.mxu1 %v16884_v5  ;;  %2800 = vmatprep.subr.bf16.mxu0 %v16885_v6  ;;  %v16966_v5 = vld [vmem:[%s19005_s30 + $0xa88] ss:$48 sps:$4 sm:$0xff]   ;;  %v16971_v6 = vld [vmem:[%s19005_s30 + $0x42c] ss:$48 sps:$4 sm:$0xff]  }
  0xf8   : > { %2843 = vmatprep.subr.bf16.mxu1 %v16887_v7  ;;  %v16974_v7 = vld [vmem:[%s19005_s30 + $0xa2c] ss:$48 sps:$4 sm:$0xff]  }
  0xfa   : > { %2801 = vmatpush2.bf16.msra.mxu0 %v16889_v8  ;;  %v16969_v8 = vld [vmem:[%s19005_s30 + $0x428] ss:$48 sps:$4 sm:$0xff]  }
  0xfb   : > { %2844 = vmatpush2.bf16.msra.mxu1 %v16890_v9  ;;  %2802 = vmatprep.subr.bf16.mxu0 %v16891_v10  ;;  %v16972_v9 = vld [vmem:[%s19005_s30 + $0xa28] ss:$48 sps:$4 sm:$0xff]   ;;  %v16977_v10 = vld [vmem:[%s19005_s30 + $0x3cc] ss:$48 sps:$4 sm:$0xff]  }
  0xfc   : > { %2845 = vmatprep.subr.bf16.mxu1 %v16893_v11  ;;  %v16980_v11 = vld [vmem:[%s19005_s30 + $0x9cc] ss:$48 sps:$4 sm:$0xff]  }
  0xfe   : > { %2803 = vmatpush2.bf16.msra.mxu0 %v16895_v12  ;;  %v16975_v12 = vld [vmem:[%s19005_s30 + $0x3c8] ss:$48 sps:$4 sm:$0xff]  }
  0xff   : > { %2846 = vmatpush2.bf16.msra.mxu1 %v16896_v13  ;;  %2858 = vmatprep.subr.bf16.mxu0 %v16899_v18  ;;  %v16978_v13 = vld [vmem:[%s19005_s30 + $0x9c8] ss:$48 sps:$4 sm:$0xff]   ;;  %v16989_v18 = vld [vmem:[%s19005_s30 + $0x30c] ss:$48 sps:$4 sm:$0xff]  }
 0x100   : > { %2901 = vmatprep.subr.bf16.mxu1 %v16902_v19  ;;  %v16992_v19 = vld [vmem:[%s19005_s30 + $0x90c] ss:$48 sps:$4 sm:$0xff]  }
 0x101   : > { %2805 = vmatmul.mubr.bf16.vlgmr.msra.gmra.mxu0 %v19096_v20 }
 0x102   : > { %2848 = vmatmul.mubr.bf16.vlgmr.msra.gmra.mxu1 %v19098_v21  ;;  %2859 = vmatpush1.bf16.msra.mxu0 %v16897_v22  ;;  %v16987_v22 = vld [vmem:[%s19005_s30 + $0x308] ss:$48 sps:$4 sm:$0xff]  }
 0x103   : > { %2902 = vmatpush1.bf16.msra.mxu1 %v16900_v23  ;;  %2860 = vmatprep.subr.bf16.mxu0 %v16905_v24  ;;  %v16990_v23 = vld [vmem:[%s19005_s30 + $0x908] ss:$48 sps:$4 sm:$0xff]   ;;  %v16995_v24 = vld [vmem:[%s19005_s30 + $0x2b4] ss:$48 sps:$4 sm:$0xff]  }
 0x104   : > { %2903 = vmatprep.subr.bf16.mxu1 %v16908_v25  ;;  %2890 = vmatprep.mubr.bf16.mxu0 %v19073_v61  ;;  %v16998_v25 = vld [vmem:[%s19005_s30 + $0x8b4] ss:$48 sps:$4 sm:$0xff]  }
 0x105   : > { %2933 = vmatprep.mubr.bf16.mxu1 %v19075_v62 }
 0x106   : > { %2861 = vmatpush1.bf16.msra.mxu0 %v16903_v26  ;;  %v16993_v26 = vld [vmem:[%s19005_s30 + $0x2b0] ss:$48 sps:$4 sm:$0xff]  }
 0x107   : > { %2904 = vmatpush1.bf16.msra.mxu1 %v16906_v27  ;;  %2862 = vmatprep.subr.bf16.mxu0 %v16911_v28  ;;  %v16996_v27 = vld [vmem:[%s19005_s30 + $0x8b0] ss:$48 sps:$4 sm:$0xff]   ;;  %v17001_v28 = vld [vmem:[%s19005_s30 + $0x254] ss:$48 sps:$4 sm:$0xff]  }
 0x108   : > { %2905 = vmatprep.subr.bf16.mxu1 %v16914_v29  ;;  %v17004_v29 = vld [vmem:[%s19005_s30 + $0x854] ss:$48 sps:$4 sm:$0xff]  }
 0x10a   : > { %2863 = vmatpush1.bf16.msra.mxu0 %v16909_v30  ;;  %v16999_v30 = vld [vmem:[%s19005_s30 + $0x250] ss:$48 sps:$4 sm:$0xff]  }
 0x10b   : > { %2906 = vmatpush1.bf16.msra.mxu1 %v16912_v31  ;;  %2864 = vmatprep.subr.bf16.mxu0 %v16917_v32  ;;  %v17002_v31 = vld [vmem:[%s19005_s30 + $0x850] ss:$48 sps:$4 sm:$0xff]   ;;  %v17007_v32 = vld [vmem:[%s19005_s30 + $0x1f4] ss:$48 sps:$4 sm:$0xff]  }
 0x10c   : > { %2907 = vmatprep.subr.bf16.mxu1 %v16920_v33  ;;  %v17010_v33 = vld [vmem:[%s19005_s30 + $0x7f4] ss:$48 sps:$4 sm:$0xff]  }
 0x10e   : > { %2865 = vmatpush1.bf16.msra.mxu0 %v16915_v34  ;;  %v17005_v34 = vld [vmem:[%s19005_s30 + $0x1f0] ss:$48 sps:$4 sm:$0xff]  }
 0x10f   : > { %2908 = vmatpush1.bf16.msra.mxu1 %v16918_v35  ;;  %2866 = vmatprep.subr.bf16.mxu0 %v16923_v36  ;;  %v17008_v35 = vld [vmem:[%s19005_s30 + $0x7f0] ss:$48 sps:$4 sm:$0xff]   ;;  %v17013_v36 = vld [vmem:[%s19005_s30 + $0x194] ss:$48 sps:$4 sm:$0xff]  }
 0x110   : > { %2909 = vmatprep.subr.bf16.mxu1 %v16926_v37  ;;  %v17016_v37 = vld [vmem:[%s19005_s30 + $0x794] ss:$48 sps:$4 sm:$0xff]  }
 0x112   : > { %2867 = vmatpush1.bf16.msra.mxu0 %v16921_v38  ;;  %v17011_v38 = vld [vmem:[%s19005_s30 + $0x190] ss:$48 sps:$4 sm:$0xff]  }
 0x113   : > { %2910 = vmatpush1.bf16.msra.mxu1 %v16924_v39  ;;  %2868 = vmatprep.subr.bf16.mxu0 %v16929_v40  ;;  %v17014_v39 = vld [vmem:[%s19005_s30 + $0x790] ss:$48 sps:$4 sm:$0xff]   ;;  %v17019_v40 = vld [vmem:[%s19005_s30 + $0x134] ss:$48 sps:$4 sm:$0xff]  }
 0x114   : > { %2911 = vmatprep.subr.bf16.mxu1 %v16932_v41  ;;  %v17022_v41 = vld [vmem:[%s19005_s30 + $0x734] ss:$48 sps:$4 sm:$0xff]  }
 0x116   : > { %2869 = vmatpush1.bf16.msra.mxu0 %v16927_v42  ;;  %v17017_v42 = vld [vmem:[%s19005_s30 + $0x130] ss:$48 sps:$4 sm:$0xff]  }
 0x117   : > { %2912 = vmatpush1.bf16.msra.mxu1 %v16930_v43  ;;  %2870 = vmatprep.subr.bf16.mxu0 %v16935_v44  ;;  %v17020_v43 = vld [vmem:[%s19005_s30 + $0x730] ss:$48 sps:$4 sm:$0xff]   ;;  %v17025_v44 = vld [vmem:[%s19005_s30 + $0xd4] ss:$48 sps:$4 sm:$0xff]  }
 0x118   : > { %2913 = vmatprep.subr.bf16.mxu1 %v16938_v45  ;;  %v17028_v45 = vld [vmem:[%s19005_s30 + $0x6d4] ss:$48 sps:$4 sm:$0xff]  }
 0x11a   : > { %2871 = vmatpush1.bf16.msra.mxu0 %v16933_v46  ;;  %v17023_v46 = vld [vmem:[%s19005_s30 + $0xd0] ss:$48 sps:$4 sm:$0xff]  }
 0x11b   : > { %2914 = vmatpush1.bf16.msra.mxu1 %v16936_v47  ;;  %2872 = vmatprep.subr.bf16.mxu0 %v16941_v48  ;;  %v17026_v47 = vld [vmem:[%s19005_s30 + $0x6d0] ss:$48 sps:$4 sm:$0xff]   ;;  %v17031_v48 = vld [vmem:[%s19005_s30 + $0x74] ss:$48 sps:$4 sm:$0xff]  }
 0x11c   : > { %2915 = vmatprep.subr.bf16.mxu1 %v16944_v49  ;;  %v17034_v49 = vld [vmem:[%s19005_s30 + $0x674] ss:$48 sps:$4 sm:$0xff]  }
 0x11e   : > { %2873 = vmatpush1.bf16.msra.mxu0 %v16939_v50  ;;  %v17029_v50 = vld [vmem:[%s19005_s30 + $0x70] ss:$48 sps:$4 sm:$0xff]  }
 0x11f   : > { %2916 = vmatpush1.bf16.msra.mxu1 %v16942_v51  ;;  %2874 = vmatprep.subr.bf16.mxu0 %v16947_v52  ;;  %v17032_v51 = vld [vmem:[%s19005_s30 + $0x670] ss:$48 sps:$4 sm:$0xff]   ;;  %v17037_v52 = vld [vmem:[%s19005_s30 + $0x14] ss:$48 sps:$4 sm:$0xff]  }
 0x120   : > { %2917 = vmatprep.subr.bf16.mxu1 %v16950_v53  ;;  %v17040_v53 = vld [vmem:[%s19005_s30 + $0x614] ss:$48 sps:$4 sm:$0xff]  }
 0x122   : > { %2875 = vmatpush2.bf16.msra.mxu0 %v16945_v54  ;;  %v17035_v54 = vld [vmem:[%s19005_s30 + $0x10] ss:$48 sps:$4 sm:$0xff]  }
 0x123   : > { %2918 = vmatpush2.bf16.msra.mxu1 %v16948_v55  ;;  %2876 = vmatprep.subr.bf16.mxu0 %v16953_v56  ;;  %v17038_v55 = vld [vmem:[%s19005_s30 + $0x610] ss:$48 sps:$4 sm:$0xff]   ;;  %v17043_v56 = vld [vmem:[%s19005_s30 + $0x5b4] ss:$48 sps:$4 sm:$0xff]  }
 0x124   : > { %2919 = vmatprep.subr.bf16.mxu1 %v16956_v57  ;;  %v17046_v57 = vld [vmem:[%s19005_s30 + $0xbb4] ss:$48 sps:$4 sm:$0xff]  }
 0x126   : > { %2877 = vmatpush2.bf16.msra.mxu0 %v16951_v58  ;;  %v17041_v58 = vld [vmem:[%s19005_s30 + $0x5b0] ss:$48 sps:$4 sm:$0xff]  }
 0x127   : > { %2920 = vmatpush2.bf16.msra.mxu1 %v16954_v59  ;;  %2878 = vmatprep.subr.bf16.mxu0 %v16959_v60  ;;  %v17044_v59 = vld [vmem:[%s19005_s30 + $0xbb0] ss:$48 sps:$4 sm:$0xff]   ;;  %v17049_v60 = vld [vmem:[%s19005_s30 + $0x554] ss:$48 sps:$4 sm:$0xff]  }
 0x128   : > { %2921 = vmatprep.subr.bf16.mxu1 %v16962_v63  ;;  %v17052_v63 = vld [vmem:[%s19005_s30 + $0xb54] ss:$48 sps:$4 sm:$0xff]  }
 0x12a   : > { %2879 = vmatpush2.bf16.msra.mxu0 %v16957_v0  ;;  %v17047_v0 = vld [vmem:[%s19005_s30 + $0x550] ss:$48 sps:$4 sm:$0xff]  }
 0x12b   : > { %2922 = vmatpush2.bf16.msra.mxu1 %v16960_v1  ;;  %2880 = vmatprep.subr.bf16.mxu0 %v16965_v2  ;;  %v17050_v1 = vld [vmem:[%s19005_s30 + $0xb50] ss:$48 sps:$4 sm:$0xff]   ;;  %v17055_v2 = vld [vmem:[%s19005_s30 + $0x4f4] ss:$48 sps:$4 sm:$0xff]  }
 0x12c   : > { %2923 = vmatprep.subr.bf16.mxu1 %v16968_v3  ;;  %v17058_v3 = vld [vmem:[%s19005_s30 + $0xaf4] ss:$48 sps:$4 sm:$0xff]  }
 0x12e   : > { %2881 = vmatpush2.bf16.msra.mxu0 %v16963_v4  ;;  %v17053_v4 = vld [vmem:[%s19005_s30 + $0x4f0] ss:$48 sps:$4 sm:$0xff]  }
 0x12f   : > { %2924 = vmatpush2.bf16.msra.mxu1 %v16966_v5  ;;  %2882 = vmatprep.subr.bf16.mxu0 %v16971_v6  ;;  %v17056_v5 = vld [vmem:[%s19005_s30 + $0xaf0] ss:$48 sps:$4 sm:$0xff]   ;;  %v17061_v6 = vld [vmem:[%s19005_s30 + $0x494] ss:$48 sps:$4 sm:$0xff]  }
 0x130   : > { %2925 = vmatprep.subr.bf16.mxu1 %v16974_v7  ;;  %v17064_v7 = vld [vmem:[%s19005_s30 + $0xa94] ss:$48 sps:$4 sm:$0xff]  }
 0x132   : > { %2883 = vmatpush2.bf16.msra.mxu0 %v16969_v8  ;;  %v17059_v8 = vld [vmem:[%s19005_s30 + $0x490] ss:$48 sps:$4 sm:$0xff]  }
 0x133   : > { %2926 = vmatpush2.bf16.msra.mxu1 %v16972_v9  ;;  %2884 = vmatprep.subr.bf16.mxu0 %v16977_v10  ;;  %v17062_v9 = vld [vmem:[%s19005_s30 + $0xa90] ss:$48 sps:$4 sm:$0xff]   ;;  %v17067_v10 = vld [vmem:[%s19005_s30 + $0x434] ss:$48 sps:$4 sm:$0xff]  }
 0x134   : > { %2927 = vmatprep.subr.bf16.mxu1 %v16980_v11  ;;  %v17070_v11 = vld [vmem:[%s19005_s30 + $0xa34] ss:$48 sps:$4 sm:$0xff]  }
 0x136   : > { %2885 = vmatpush2.bf16.msra.mxu0 %v16975_v12  ;;  %v17065_v12 = vld [vmem:[%s19005_s30 + $0x430] ss:$48 sps:$4 sm:$0xff]  }
 0x137   : > { %2928 = vmatpush2.bf16.msra.mxu1 %v16978_v13  ;;  %2886 = vmatprep.subr.bf16.mxu0 %v16983_v14  ;;  %v17068_v13 = vld [vmem:[%s19005_s30 + $0xa30] ss:$48 sps:$4 sm:$0xff]   ;;  %v17073_v14 = vld [vmem:[%s19005_s30 + $0x3d4] ss:$48 sps:$4 sm:$0xff]  }
 0x138   : > { %2929 = vmatprep.subr.bf16.mxu1 %v16986_v15  ;;  %v17076_v15 = vld [vmem:[%s19005_s30 + $0x9d4] ss:$48 sps:$4 sm:$0xff]  }
 0x13a   : > { %2887 = vmatpush2.bf16.msra.mxu0 %v16981_v16  ;;  %v17071_v16 = vld [vmem:[%s19005_s30 + $0x3d0] ss:$48 sps:$4 sm:$0xff]  }
 0x13b   : > { %2930 = vmatpush2.bf16.msra.mxu1 %v16984_v17  ;;  %2888 = vmatprep.subr.bf16.mxu0 %v16989_v18  ;;  %v17074_v17 = vld [vmem:[%s19005_s30 + $0x9d0] ss:$48 sps:$4 sm:$0xff]   ;;  %v17079_v18 = vld [vmem:[%s19005_s30 + $0x374] ss:$48 sps:$4 sm:$0xff]  }
 0x13c   : > { %2931 = vmatprep.subr.bf16.mxu1 %v16992_v19  ;;  %v17082_v19 = vld [vmem:[%s19005_s30 + $0x974] ss:$48 sps:$4 sm:$0xff]  }
 0x13e   : > { %2889 = vmatpush2.bf16.msra.mxu0 %v16987_v22  ;;  %v17077_v22 = vld [vmem:[%s19005_s30 + $0x370] ss:$48 sps:$4 sm:$0xff]  }
 0x13f   : > { %2932 = vmatpush2.bf16.msra.mxu1 %v16990_v23  ;;  %2944 = vmatprep.subr.bf16.mxu0 %v16995_v24  ;;  %v17080_v23 = vld [vmem:[%s19005_s30 + $0x970] ss:$48 sps:$4 sm:$0xff]   ;;  %v17085_v24 = vld [vmem:[%s19005_s30 + $0x314] ss:$48 sps:$4 sm:$0xff]  }
 0x140   : > { %2987 = vmatprep.subr.bf16.mxu1 %v16998_v25  ;;  %v17088_v25 = vld [vmem:[%s19005_s30 + $0x914] ss:$48 sps:$4 sm:$0xff]  }
 0x141   : > { %2891 = vmatmul.mubr.bf16.vlgmr.msra.gmra.mxu0 %v19096_v20 }
 0x142   : > { %2934 = vmatmul.mubr.bf16.vlgmr.msra.gmra.mxu1 %v19098_v21  ;;  %2945 = vmatpush1.bf16.msra.mxu0 %v16993_v26  ;;  %v17083_v26 = vld [vmem:[%s19005_s30 + $0x310] ss:$48 sps:$4 sm:$0xff]  }
 0x143   : > { %2988 = vmatpush1.bf16.msra.mxu1 %v16996_v27  ;;  %2946 = vmatprep.subr.bf16.mxu0 %v17001_v28  ;;  %v17086_v27 = vld [vmem:[%s19005_s30 + $0x910] ss:$48 sps:$4 sm:$0xff]   ;;  %v17091_v28 = vld [vmem:[%s19005_s30 + $0x2bc] ss:$48 sps:$4 sm:$0xff]  }
 0x144   : > { %2989 = vmatprep.subr.bf16.mxu1 %v17004_v29  ;;  %2976 = vmatprep.mubr.bf16.mxu0 %v19073_v61  ;;  %v17094_v29 = vld [vmem:[%s19005_s30 + $0x8bc] ss:$48 sps:$4 sm:$0xff]  }
 0x145   : > { %3019 = vmatprep.mubr.bf16.mxu1 %v19075_v62 }
 0x146   : > { %2947 = vmatpush1.bf16.msra.mxu0 %v16999_v30  ;;  %v17089_v30 = vld [vmem:[%s19005_s30 + $0x2b8] ss:$48 sps:$4 sm:$0xff]  }
 0x147   : > { %2990 = vmatpush1.bf16.msra.mxu1 %v17002_v31  ;;  %2948 = vmatprep.subr.bf16.mxu0 %v17007_v32  ;;  %v17092_v31 = vld [vmem:[%s19005_s30 + $0x8b8] ss:$48 sps:$4 sm:$0xff]   ;;  %v17097_v32 = vld [vmem:[%s19005_s30 + $0x25c] ss:$48 sps:$4 sm:$0xff]  }
 0x148   : > { %2991 = vmatprep.subr.bf16.mxu1 %v17010_v33  ;;  %v17100_v33 = vld [vmem:[%s19005_s30 + $0x85c] ss:$48 sps:$4 sm:$0xff]  }
 0x14a   : > { %2949 = vmatpush1.bf16.msra.mxu0 %v17005_v34  ;;  %v17095_v34 = vld [vmem:[%s19005_s30 + $0x258] ss:$48 sps:$4 sm:$0xff]  }
 0x14b   : > { %2992 = vmatpush1.bf16.msra.mxu1 %v17008_v35  ;;  %2950 = vmatprep.subr.bf16.mxu0 %v17013_v36  ;;  %v17098_v35 = vld [vmem:[%s19005_s30 + $0x858] ss:$48 sps:$4 sm:$0xff]   ;;  %v17103_v36 = vld [vmem:[%s19005_s30 + $0x1fc] ss:$48 sps:$4 sm:$0xff]  }
 0x14c   : > { %2993 = vmatprep.subr.bf16.mxu1 %v17016_v37  ;;  %v17106_v37 = vld [vmem:[%s19005_s30 + $0x7fc] ss:$48 sps:$4 sm:$0xff]  }
 0x14e   : > { %2951 = vmatpush1.bf16.msra.mxu0 %v17011_v38  ;;  %v17101_v38 = vld [vmem:[%s19005_s30 + $0x1f8] ss:$48 sps:$4 sm:$0xff]  }
 0x14f   : > { %2994 = vmatpush1.bf16.msra.mxu1 %v17014_v39  ;;  %2952 = vmatprep.subr.bf16.mxu0 %v17019_v40  ;;  %v17104_v39 = vld [vmem:[%s19005_s30 + $0x7f8] ss:$48 sps:$4 sm:$0xff]   ;;  %v17109_v40 = vld [vmem:[%s19005_s30 + $0x19c] ss:$48 sps:$4 sm:$0xff]  }
 0x150   : > { %2995 = vmatprep.subr.bf16.mxu1 %v17022_v41  ;;  %v17112_v41 = vld [vmem:[%s19005_s30 + $0x79c] ss:$48 sps:$4 sm:$0xff]  }
 0x152   : > { %2953 = vmatpush1.bf16.msra.mxu0 %v17017_v42  ;;  %v17107_v42 = vld [vmem:[%s19005_s30 + $0x198] ss:$48 sps:$4 sm:$0xff]  }
 0x153   : > { %2996 = vmatpush1.bf16.msra.mxu1 %v17020_v43  ;;  %2954 = vmatprep.subr.bf16.mxu0 %v17025_v44  ;;  %v17110_v43 = vld [vmem:[%s19005_s30 + $0x798] ss:$48 sps:$4 sm:$0xff]   ;;  %v17115_v44 = vld [vmem:[%s19005_s30 + $0x13c] ss:$48 sps:$4 sm:$0xff]  }
 0x154   : > { %2997 = vmatprep.subr.bf16.mxu1 %v17028_v45  ;;  %v17118_v45 = vld [vmem:[%s19005_s30 + $0x73c] ss:$48 sps:$4 sm:$0xff]  }
 0x156   : > { %2955 = vmatpush1.bf16.msra.mxu0 %v17023_v46  ;;  %v17113_v46 = vld [vmem:[%s19005_s30 + $0x138] ss:$48 sps:$4 sm:$0xff]  }
 0x157   : > { %2998 = vmatpush1.bf16.msra.mxu1 %v17026_v47  ;;  %2956 = vmatprep.subr.bf16.mxu0 %v17031_v48  ;;  %v17116_v47 = vld [vmem:[%s19005_s30 + $0x738] ss:$48 sps:$4 sm:$0xff]   ;;  %v17121_v48 = vld [vmem:[%s19005_s30 + $0xdc] ss:$48 sps:$4 sm:$0xff]  }
 0x158   : > { %2999 = vmatprep.subr.bf16.mxu1 %v17034_v49  ;;  %v17124_v49 = vld [vmem:[%s19005_s30 + $0x6dc] ss:$48 sps:$4 sm:$0xff]  }
 0x15a   : > { %2957 = vmatpush1.bf16.msra.mxu0 %v17029_v50  ;;  %v17119_v50 = vld [vmem:[%s19005_s30 + $0xd8] ss:$48 sps:$4 sm:$0xff]  }
 0x15b   : > { %3000 = vmatpush1.bf16.msra.mxu1 %v17032_v51  ;;  %2958 = vmatprep.subr.bf16.mxu0 %v17037_v52  ;;  %v17122_v51 = vld [vmem:[%s19005_s30 + $0x6d8] ss:$48 sps:$4 sm:$0xff]   ;;  %v17127_v52 = vld [vmem:[%s19005_s30 + $0x7c] ss:$48 sps:$4 sm:$0xff]  }
 0x15c   : > { %3001 = vmatprep.subr.bf16.mxu1 %v17040_v53  ;;  %v17130_v53 = vld [vmem:[%s19005_s30 + $0x67c] ss:$48 sps:$4 sm:$0xff]  }
 0x15e   : > { %2959 = vmatpush1.bf16.msra.mxu0 %v17035_v54  ;;  %v17125_v54 = vld [vmem:[%s19005_s30 + $0x78] ss:$48 sps:$4 sm:$0xff]  }
 0x15f   : > { %3002 = vmatpush1.bf16.msra.mxu1 %v17038_v55  ;;  %2960 = vmatprep.subr.bf16.mxu0 %v17043_v56  ;;  %v17128_v55 = vld [vmem:[%s19005_s30 + $0x678] ss:$48 sps:$4 sm:$0xff]   ;;  %v17133_v56 = vld [vmem:[%s19005_s30 + $0x1c] ss:$48 sps:$4 sm:$0xff]  }
 0x160   : > { %3003 = vmatprep.subr.bf16.mxu1 %v17046_v57  ;;  %v17136_v57 = vld [vmem:[%s19005_s30 + $0x61c] ss:$48 sps:$4 sm:$0xff]  }
 0x162   : > { %2961 = vmatpush2.bf16.msra.mxu0 %v17041_v58  ;;  %v17131_v58 = vld [vmem:[%s19005_s30 + $0x18] ss:$48 sps:$4 sm:$0xff]  }
 0x163   : > { %3004 = vmatpush2.bf16.msra.mxu1 %v17044_v59  ;;  %2962 = vmatprep.subr.bf16.mxu0 %v17049_v60  ;;  %v17134_v59 = vld [vmem:[%s19005_s30 + $0x618] ss:$48 sps:$4 sm:$0xff]   ;;  %v17139_v60 = vld [vmem:[%s19005_s30 + $0x5bc] ss:$48 sps:$4 sm:$0xff]  }
 0x164   : > { %3005 = vmatprep.subr.bf16.mxu1 %v17052_v63  ;;  %v17142_v63 = vld [vmem:[%s19005_s30 + $0xbbc] ss:$48 sps:$4 sm:$0xff]  }
 0x166   : > { %2963 = vmatpush2.bf16.msra.mxu0 %v17047_v0  ;;  %v17137_v0 = vld [vmem:[%s19005_s30 + $0x5b8] ss:$48 sps:$4 sm:$0xff]  }
 0x167   : > { %3006 = vmatpush2.bf16.msra.mxu1 %v17050_v1  ;;  %2964 = vmatprep.subr.bf16.mxu0 %v17055_v2  ;;  %v17140_v1 = vld [vmem:[%s19005_s30 + $0xbb8] ss:$48 sps:$4 sm:$0xff]   ;;  %v17145_v2 = vld [vmem:[%s19005_s30 + $0x55c] ss:$48 sps:$4 sm:$0xff]  }
 0x168   : > { %3007 = vmatprep.subr.bf16.mxu1 %v17058_v3  ;;  %v17148_v3 = vld [vmem:[%s19005_s30 + $0xb5c] ss:$48 sps:$4 sm:$0xff]  }
 0x16a   : > { %2965 = vmatpush2.bf16.msra.mxu0 %v17053_v4  ;;  %v17143_v4 = vld [vmem:[%s19005_s30 + $0x558] ss:$48 sps:$4 sm:$0xff]  }
 0x16b   : > { %3008 = vmatpush2.bf16.msra.mxu1 %v17056_v5  ;;  %2966 = vmatprep.subr.bf16.mxu0 %v17061_v6  ;;  %v17146_v5 = vld [vmem:[%s19005_s30 + $0xb58] ss:$48 sps:$4 sm:$0xff]   ;;  %v17151_v6 = vld [vmem:[%s19005_s30 + $0x4fc] ss:$48 sps:$4 sm:$0xff]  }
 0x16c   : > { %3009 = vmatprep.subr.bf16.mxu1 %v17064_v7  ;;  %v17154_v7 = vld [vmem:[%s19005_s30 + $0xafc] ss:$48 sps:$4 sm:$0xff]  }
 0x16e   : > { %2967 = vmatpush2.bf16.msra.mxu0 %v17059_v8  ;;  %v17149_v8 = vld [vmem:[%s19005_s30 + $0x4f8] ss:$48 sps:$4 sm:$0xff]  }
 0x16f   : > { %3010 = vmatpush2.bf16.msra.mxu1 %v17062_v9  ;;  %2968 = vmatprep.subr.bf16.mxu0 %v17067_v10  ;;  %v17152_v9 = vld [vmem:[%s19005_s30 + $0xaf8] ss:$48 sps:$4 sm:$0xff]   ;;  %v17157_v10 = vld [vmem:[%s19005_s30 + $0x49c] ss:$48 sps:$4 sm:$0xff]  }
 0x170   : > { %3011 = vmatprep.subr.bf16.mxu1 %v17070_v11  ;;  %v17160_v11 = vld [vmem:[%s19005_s30 + $0xa9c] ss:$48 sps:$4 sm:$0xff]  }
 0x172   : > { %2969 = vmatpush2.bf16.msra.mxu0 %v17065_v12  ;;  %v17155_v12 = vld [vmem:[%s19005_s30 + $0x498] ss:$48 sps:$4 sm:$0xff]  }
 0x173   : > { %3012 = vmatpush2.bf16.msra.mxu1 %v17068_v13  ;;  %2970 = vmatprep.subr.bf16.mxu0 %v17073_v14  ;;  %v17158_v13 = vld [vmem:[%s19005_s30 + $0xa98] ss:$48 sps:$4 sm:$0xff]   ;;  %v17163_v14 = vld [vmem:[%s19005_s30 + $0x43c] ss:$48 sps:$4 sm:$0xff]  }
 0x174   : > { %3013 = vmatprep.subr.bf16.mxu1 %v17076_v15  ;;  %v17166_v15 = vld [vmem:[%s19005_s30 + $0xa3c] ss:$48 sps:$4 sm:$0xff]  }
 0x176   : > { %2971 = vmatpush2.bf16.msra.mxu0 %v17071_v16  ;;  %v17161_v16 = vld [vmem:[%s19005_s30 + $0x438] ss:$48 sps:$4 sm:$0xff]  }
 0x177   : > { %3014 = vmatpush2.bf16.msra.mxu1 %v17074_v17  ;;  %2972 = vmatprep.subr.bf16.mxu0 %v17079_v18  ;;  %v17164_v17 = vld [vmem:[%s19005_s30 + $0xa38] ss:$48 sps:$4 sm:$0xff]   ;;  %v17169_v18 = vld [vmem:[%s19005_s30 + $0x3dc] ss:$48 sps:$4 sm:$0xff]  }
 0x178   : > { %3015 = vmatprep.subr.bf16.mxu1 %v17082_v19  ;;  %v17172_v19 = vld [vmem:[%s19005_s30 + $0x9dc] ss:$48 sps:$4 sm:$0xff]  }
 0x17a   : > { %2973 = vmatpush2.bf16.msra.mxu0 %v17077_v22  ;;  %v17167_v22 = vld [vmem:[%s19005_s30 + $0x3d8] ss:$48 sps:$4 sm:$0xff]  }
 0x17b   : > { %3016 = vmatpush2.bf16.msra.mxu1 %v17080_v23  ;;  %2974 = vmatprep.subr.bf16.mxu0 %v17085_v24  ;;  %v17170_v23 = vld [vmem:[%s19005_s30 + $0x9d8] ss:$48 sps:$4 sm:$0xff]   ;;  %v17175_v24 = vld [vmem:[%s19005_s30 + $0x37c] ss:$48 sps:$4 sm:$0xff]  }
 0x17c   : > { %3017 = vmatprep.subr.bf16.mxu1 %v17088_v25  ;;  %v17178_v25 = vld [vmem:[%s19005_s30 + $0x97c] ss:$48 sps:$4 sm:$0xff]  }
 0x17e   : > { %2975 = vmatpush2.bf16.msra.mxu0 %v17083_v26  ;;  %v17173_v26 = vld [vmem:[%s19005_s30 + $0x378] ss:$48 sps:$4 sm:$0xff]  }
 0x17f   : > { %3018 = vmatpush2.bf16.msra.mxu1 %v17086_v27  ;;  %3030 = vmatprep.subr.bf16.mxu0 %v17091_v28  ;;  %v17176_v27 = vld [vmem:[%s19005_s30 + $0x978] ss:$48 sps:$4 sm:$0xff]   ;;  %v17181_v28 = vld [vmem:[%s19005_s30 + $0x31c] ss:$48 sps:$4 sm:$0xff]  }
 0x180   : > { %3073 = vmatprep.subr.bf16.mxu1 %v17094_v29  ;;  %v17184_v29 = vld [vmem:[%s19005_s30 + $0x91c] ss:$48 sps:$4 sm:$0xff]  }
 0x181   : > { %2977 = vmatmul.mubr.bf16.vlgmr.msra.gmra.mxu0 %v19096_v20 }
 0x182   : > { %3020 = vmatmul.mubr.bf16.vlgmr.msra.gmra.mxu1 %v19098_v21  ;;  %3031 = vmatpush1.bf16.msra.mxu0 %v17089_v30  ;;  %v17179_v30 = vld [vmem:[%s19005_s30 + $0x318] ss:$48 sps:$4 sm:$0xff]  }
 0x183   : > { %3074 = vmatpush1.bf16.msra.mxu1 %v17092_v31  ;;  %3032 = vmatprep.subr.bf16.mxu0 %v17097_v32  ;;  %v17182_v31 = vld [vmem:[%s19005_s30 + $0x918] ss:$48 sps:$4 sm:$0xff]   ;;  %v17187_v32 = vld [vmem:[%s19005_s30 + $0x2c4] ss:$48 sps:$4 sm:$0xff]  }
 0x184   : > { %3075 = vmatprep.subr.bf16.mxu1 %v17100_v33  ;;  %3062 = vmatprep.mubr.bf16.mxu0 %v19073_v61  ;;  %v17190_v33 = vld [vmem:[%s19005_s30 + $0x8c4] ss:$48 sps:$4 sm:$0xff]  }
 0x185   : > { %3105 = vmatprep.mubr.bf16.mxu1 %v19075_v62 }
 0x186   : > { %3033 = vmatpush1.bf16.msra.mxu0 %v17095_v34  ;;  %v17185_v34 = vld [vmem:[%s19005_s30 + $0x2c0] ss:$48 sps:$4 sm:$0xff]  }
 0x187   : > { %3076 = vmatpush1.bf16.msra.mxu1 %v17098_v35  ;;  %3034 = vmatprep.subr.bf16.mxu0 %v17103_v36  ;;  %v17188_v35 = vld [vmem:[%s19005_s30 + $0x8c0] ss:$48 sps:$4 sm:$0xff]   ;;  %v17193_v36 = vld [vmem:[%s19005_s30 + $0x264] ss:$48 sps:$4 sm:$0xff]  }
 0x188   : > { %3077 = vmatprep.subr.bf16.mxu1 %v17106_v37  ;;  %v17196_v37 = vld [vmem:[%s19005_s30 + $0x864] ss:$48 sps:$4 sm:$0xff]  }
 0x18a   : > { %3035 = vmatpush1.bf16.msra.mxu0 %v17101_v38  ;;  %v17191_v38 = vld [vmem:[%s19005_s30 + $0x260] ss:$48 sps:$4 sm:$0xff]  }
 0x18b   : > { %3078 = vmatpush1.bf16.msra.mxu1 %v17104_v39  ;;  %3036 = vmatprep.subr.bf16.mxu0 %v17109_v40  ;;  %v17194_v39 = vld [vmem:[%s19005_s30 + $0x860] ss:$48 sps:$4 sm:$0xff]  }
 0x18c   : > { %3079 = vmatprep.subr.bf16.mxu1 %v17112_v41 }
 0x18e   : > { %3037 = vmatpush1.bf16.msra.mxu0 %v17107_v42  ;;  %v17199_v42 = vld [vmem:[%s19005_s30 + $0x204] ss:$48 sps:$4 sm:$0xff]  }
 0x18f   : > { %3080 = vmatpush1.bf16.msra.mxu1 %v17110_v43  ;;  %3038 = vmatprep.subr.bf16.mxu0 %v17115_v44  ;;  %v17202_v43 = vld [vmem:[%s19005_s30 + $0x804] ss:$48 sps:$4 sm:$0xff]  }
 0x190   : > { %3081 = vmatprep.subr.bf16.mxu1 %v17118_v45 }
 0x192   : > { %3039 = vmatpush1.bf16.msra.mxu0 %v17113_v46 }
 0x193   : > { %3082 = vmatpush1.bf16.msra.mxu1 %v17116_v47  ;;  %3040 = vmatprep.subr.bf16.mxu0 %v17121_v48  ;;  %v17197_v48 = vld [vmem:[%s19005_s30 + $0x200] ss:$48 sps:$4 sm:$0xff]  }
 0x194   : > { %3083 = vmatprep.subr.bf16.mxu1 %v17124_v49  ;;  %v17200_v49 = vld [vmem:[%s19005_s30 + $0x800] ss:$48 sps:$4 sm:$0xff]  }
 0x196   : > { %3041 = vmatpush1.bf16.msra.mxu0 %v17119_v50 }
 0x197   : > { %3084 = vmatpush1.bf16.msra.mxu1 %v17122_v51  ;;  %3042 = vmatprep.subr.bf16.mxu0 %v17127_v52  ;;  %v17205_v52 = vld [vmem:[%s19005_s30 + $0x1a4] ss:$48 sps:$4 sm:$0xff]  }
 0x198   : > { %3085 = vmatprep.subr.bf16.mxu1 %v17130_v53  ;;  %v17208_v53 = vld [vmem:[%s19005_s30 + $0x7a4] ss:$48 sps:$4 sm:$0xff]  }
 0x19a   : > { %3043 = vmatpush1.bf16.msra.mxu0 %v17125_v54 }
 0x19b   : > { %3086 = vmatpush1.bf16.msra.mxu1 %v17128_v55  ;;  %3044 = vmatprep.subr.bf16.mxu0 %v17133_v56  ;;  %v17203_v55 = vld [vmem:[%s19005_s30 + $0x1a0] ss:$48 sps:$4 sm:$0xff]  }
 0x19c   : > { %3087 = vmatprep.subr.bf16.mxu1 %v17136_v57  ;;  %v17206_v56 = vld [vmem:[%s19005_s30 + $0x7a0] ss:$48 sps:$4 sm:$0xff]   ;;  %v17211_v57 = vld [vmem:[%s19005_s30 + $0x144] ss:$48 sps:$4 sm:$0xff]  }
 0x19e   : > { %3045 = vmatpush1.bf16.msra.mxu0 %v17131_v58  ;;  %v17214_v58 = vld [vmem:[%s19005_s30 + $0x744] ss:$48 sps:$4 sm:$0xff]  }
 0x19f   : > { %3088 = vmatpush1.bf16.msra.mxu1 %v17134_v59  ;;  %3046 = vmatprep.subr.bf16.mxu0 %v17139_v60  ;;  %v17209_v59 = vld [vmem:[%s19005_s30 + $0x140] ss:$48 sps:$4 sm:$0xff]  }
 0x1a0   : > { %3089 = vmatprep.subr.bf16.mxu1 %v17142_v63  ;;  %v17212_v60 = vld [vmem:[%s19005_s30 + $0x740] ss:$48 sps:$4 sm:$0xff]   ;;  %v17217_v63 = vld [vmem:[%s19005_s30 + $0xe4] ss:$48 sps:$4 sm:$0xff]  }
 0x1a2   : > { %3047 = vmatpush2.bf16.msra.mxu0 %v17137_v0  ;;  %v17220_v0 = vld [vmem:[%s19005_s30 + $0x6e4] ss:$48 sps:$4 sm:$0xff]  }
 0x1a3   : > { %3090 = vmatpush2.bf16.msra.mxu1 %v17140_v1  ;;  %3048 = vmatprep.subr.bf16.mxu0 %v17145_v2  ;;  %v17215_v1 = vld [vmem:[%s19005_s30 + $0xe0] ss:$48 sps:$4 sm:$0xff]  }
 0x1a4   : > { %3091 = vmatprep.subr.bf16.mxu1 %v17148_v3  ;;  %v17218_v2 = vld [vmem:[%s19005_s30 + $0x6e0] ss:$48 sps:$4 sm:$0xff]   ;;  %v17223_v3 = vld [vmem:[%s19005_s30 + $0x84] ss:$48 sps:$4 sm:$0xff]  }
 0x1a6   : > { %3049 = vmatpush2.bf16.msra.mxu0 %v17143_v4  ;;  %v17226_v4 = vld [vmem:[%s19005_s30 + $0x684] ss:$48 sps:$4 sm:$0xff]  }
 0x1a7   : > { %3092 = vmatpush2.bf16.msra.mxu1 %v17146_v5  ;;  %3050 = vmatprep.subr.bf16.mxu0 %v17151_v6  ;;  %v17221_v5 = vld [vmem:[%s19005_s30 + $0x80] ss:$48 sps:$4 sm:$0xff]  }
 0x1a8   : > { %3093 = vmatprep.subr.bf16.mxu1 %v17154_v7  ;;  %v17224_v6 = vld [vmem:[%s19005_s30 + $0x680] ss:$48 sps:$4 sm:$0xff]   ;;  %v17229_v7 = vld [vmem:[%s19005_s30 + $0x24] ss:$48 sps:$4 sm:$0xff]  }
 0x1aa   : > { %3051 = vmatpush2.bf16.msra.mxu0 %v17149_v8  ;;  %v17232_v8 = vld [vmem:[%s19005_s30 + $0x624] ss:$48 sps:$4 sm:$0xff]  }
 0x1ab   : > { %3094 = vmatpush2.bf16.msra.mxu1 %v17152_v9  ;;  %3052 = vmatprep.subr.bf16.mxu0 %v17157_v10  ;;  %v17227_v9 = vld [vmem:[%s19005_s30 + $0x20] ss:$48 sps:$4 sm:$0xff]  }
 0x1ac   : > { %3095 = vmatprep.subr.bf16.mxu1 %v17160_v11  ;;  %v17230_v10 = vld [vmem:[%s19005_s30 + $0x620] ss:$48 sps:$4 sm:$0xff]   ;;  %v17235_v11 = vld [vmem:[%s19005_s30 + $0x5c4] ss:$48 sps:$4 sm:$0xff]  }
 0x1ae   : > { %3053 = vmatpush2.bf16.msra.mxu0 %v17155_v12  ;;  %v17238_v12 = vld [vmem:[%s19005_s30 + $0xbc4] ss:$48 sps:$4 sm:$0xff]  }
 0x1af   : > { %3096 = vmatpush2.bf16.msra.mxu1 %v17158_v13  ;;  %3054 = vmatprep.subr.bf16.mxu0 %v17163_v14  ;;  %v17233_v13 = vld [vmem:[%s19005_s30 + $0x5c0] ss:$48 sps:$4 sm:$0xff]  }
 0x1b0   : > { %3097 = vmatprep.subr.bf16.mxu1 %v17166_v15  ;;  %v17236_v14 = vld [vmem:[%s19005_s30 + $0xbc0] ss:$48 sps:$4 sm:$0xff]   ;;  %v17241_v15 = vld [vmem:[%s19005_s30 + $0x564] ss:$48 sps:$4 sm:$0xff]  }
 0x1b2   : > { %3055 = vmatpush2.bf16.msra.mxu0 %v17161_v16  ;;  %v17244_v16 = vld [vmem:[%s19005_s30 + $0xb64] ss:$48 sps:$4 sm:$0xff]  }
 0x1b3   : > { %3098 = vmatpush2.bf16.msra.mxu1 %v17164_v17  ;;  %3056 = vmatprep.subr.bf16.mxu0 %v17169_v18  ;;  %v17239_v17 = vld [vmem:[%s19005_s30 + $0x560] ss:$48 sps:$4 sm:$0xff]  }
 0x1b4   : > { %3099 = vmatprep.subr.bf16.mxu1 %v17172_v19  ;;  %v17242_v18 = vld [vmem:[%s19005_s30 + $0xb60] ss:$48 sps:$4 sm:$0xff]   ;;  %v17247_v19 = vld [vmem:[%s19005_s30 + $0x504] ss:$48 sps:$4 sm:$0xff]  }
 0x1b6   : > { %3057 = vmatpush2.bf16.msra.mxu0 %v17167_v22  ;;  %v17250_v22 = vld [vmem:[%s19005_s30 + $0xb04] ss:$48 sps:$4 sm:$0xff]  }
 0x1b7   : > { %3100 = vmatpush2.bf16.msra.mxu1 %v17170_v23  ;;  %3058 = vmatprep.subr.bf16.mxu0 %v17175_v24  ;;  %v17245_v23 = vld [vmem:[%s19005_s30 + $0x500] ss:$48 sps:$4 sm:$0xff]  }
 0x1b8   : > { %3101 = vmatprep.subr.bf16.mxu1 %v17178_v25  ;;  %v17248_v24 = vld [vmem:[%s19005_s30 + $0xb00] ss:$48 sps:$4 sm:$0xff]   ;;  %v17253_v25 = vld [vmem:[%s19005_s30 + $0x4a4] ss:$48 sps:$4 sm:$0xff]  }
 0x1ba   : > { %3059 = vmatpush2.bf16.msra.mxu0 %v17173_v26  ;;  %v17256_v26 = vld [vmem:[%s19005_s30 + $0xaa4] ss:$48 sps:$4 sm:$0xff]  }
 0x1bb   : > { %3102 = vmatpush2.bf16.msra.mxu1 %v17176_v27  ;;  %3060 = vmatprep.subr.bf16.mxu0 %v17181_v28  ;;  %v17251_v27 = vld [vmem:[%s19005_s30 + $0x4a0] ss:$48 sps:$4 sm:$0xff]  }
 0x1bc   : > { %3103 = vmatprep.subr.bf16.mxu1 %v17184_v29  ;;  %v17254_v28 = vld [vmem:[%s19005_s30 + $0xaa0] ss:$48 sps:$4 sm:$0xff]   ;;  %v17259_v29 = vld [vmem:[%s19005_s30 + $0x444] ss:$48 sps:$4 sm:$0xff]  }
 0x1be   : > { %3061 = vmatpush2.bf16.msra.mxu0 %v17179_v30  ;;  %v17262_v30 = vld [vmem:[%s19005_s30 + $0xa44] ss:$48 sps:$4 sm:$0xff]  }
 0x1bf   : > { %3104 = vmatpush2.bf16.msra.mxu1 %v17182_v31  ;;  %3116 = vmatprep.subr.bf16.mxu0 %v17187_v32  ;;  %v17257_v31 = vld [vmem:[%s19005_s30 + $0x440] ss:$48 sps:$4 sm:$0xff]  }
 0x1c0   : > { %3159 = vmatprep.subr.bf16.mxu1 %v17190_v33  ;;  %v17260_v32 = vld [vmem:[%s19005_s30 + $0xa40] ss:$48 sps:$4 sm:$0xff]   ;;  %v17265_v33 = vld [vmem:[%s19005_s30 + $0x3e4] ss:$48 sps:$4 sm:$0xff]  }
 0x1c1   : > { %v2806_v40 = vpop.f32.mrf.mxu0  ;;  %3063 = vmatmul.mubr.bf16.vlgmr.msra.gmra.mxu0 %v19096_v20 }
 0x1c2   : > { %v2849_v41 = vpop.f32.mrf.mxu1  ;;  %3106 = vmatmul.mubr.bf16.vlgmr.msra.gmra.mxu1 %v19098_v21  ;;  %3117 = vmatpush1.bf16.msra.mxu0 %v17185_v34  ;;  %v17268_v34 = vld [vmem:[%s19005_s30 + $0x9e4] ss:$48 sps:$4 sm:$0xff]  }
 0x1c3   : > { %v19314_v44 = vadd.f32 %v2849_v41, %v2806_v40  ;;  %3160 = vmatpush1.bf16.msra.mxu1 %v17188_v35  ;;  %v2808_v45 = vpop.f32.mrf.mxu0  ;;  %3118 = vmatprep.subr.bf16.mxu0 %v17193_v36  ;;  %v17263_v35 = vld [vmem:[%s19005_s30 + $0x3e0] ss:$48 sps:$4 sm:$0xff]   ;;  %v17277_v41 = vld [vmem:[%s19005_s30 + $0x324] ss:$48 sps:$4 sm:$0xff]  }
 0x1c4   : > { %v2851_v46 = vpop.f32.mrf.mxu1  ;;  %3161 = vmatprep.subr.bf16.mxu1 %v17196_v37  ;;  %3148 = vmatprep.mubr.bf16.mxu0 %v19073_v61  ;;  %v17266_v36 = vld [vmem:[%s19005_s30 + $0x9e0] ss:$48 sps:$4 sm:$0xff]   ;;  %v17271_v37 = vld [vmem:[%s19005_s30 + $0x384] ss:$48 sps:$4 sm:$0xff]  }
 0x1c5   : > { %v19316_v47 = vadd.f32 %v2851_v46, %v2808_v45  ;;  %3290 = vrot.lane.b32.xlu1 %v19314_v44, %s18699_s12  ;;  %v2810_v50 = vpop.f32.mrf.mxu0  ;;  %3191 = vmatprep.mubr.bf16.mxu1 %v19075_v62  ;;  %v17272_v40 = vld [vmem:[%s19005_s30 + $0x980] ss:$48 sps:$4 sm:$0xff]   ;;  %v17283_v46 = vld [vmem:[%s19005_s30 + $0x2cc] ss:$48 sps:$4 sm:$0xff]  }
 0x1c6   : > { %v2853_v51 = vpop.f32.mrf.mxu1  ;;  %3119 = vmatpush1.bf16.msra.mxu0 %v17191_v38  ;;  %v17274_v38 = vld [vmem:[%s19005_s30 + $0x984] ss:$48 sps:$4 sm:$0xff]   ;;  %v17278_v45 = vld [vmem:[%s19005_s30 + $0x920] ss:$48 sps:$4 sm:$0xff]  }
 0x1c7   : > { %v19326_v54 = vadd.f32 %v2853_v51, %v2810_v50  ;;  %3162 = vmatpush1.bf16.msra.mxu1 %v17194_v39  ;;  %3120 = vmatprep.subr.bf16.mxu0 %v17199_v42  ;;  %v17269_v39 = vld [vmem:[%s19005_s30 + $0x380] ss:$48 sps:$4 sm:$0xff]   ;;  %v17280_v42 = vld [vmem:[%s19005_s30 + $0x924] ss:$48 sps:$4 sm:$0xff]   ;;  %v17284_v50 = vld [vmem:[%s19005_s30 + $0x8c8] ss:$48 sps:$4 sm:$0xff]  }
 0x1c8   : > { %3163 = vmatprep.subr.bf16.mxu1 %v17202_v43  ;;  %v17275_v43 = vld [vmem:[%s19005_s30 + $0x320] ss:$48 sps:$4 sm:$0xff]   ;;  %v17289_v51 = vld [vmem:[%s19005_s30 + $0x26c] ss:$48 sps:$4 sm:$0xff]  }
 0x1c9   : > { %3292 = vrot.lane.b32.xlu1 %v19326_v54, %s18699_s12 }
 0x1ca   : > { %3121 = vmatpush1.bf16.msra.mxu0 %v17197_v48  ;;  %v17286_v48 = vld [vmem:[%s19005_s30 + $0x8cc] ss:$48 sps:$4 sm:$0xff]  }
 0x1cb   : > { %3164 = vmatpush1.bf16.msra.mxu1 %v17200_v49  ;;  %3122 = vmatprep.subr.bf16.mxu0 %v17205_v52  ;;  %v17281_v49 = vld [vmem:[%s19005_s30 + $0x2c8] ss:$48 sps:$4 sm:$0xff]   ;;  %v17292_v52 = vld [vmem:[%s19005_s30 + $0x86c] ss:$48 sps:$4 sm:$0xff]  }
 0x1cc   : > { %3165 = vmatprep.subr.bf16.mxu1 %v17208_v53  ;;  %v19386_v53 = vpop.f32.mrf.mxu0 }
 0x1ce   : > { %3123 = vmatpush1.bf16.msra.mxu0 %v17203_v55  ;;  %v19388_v55 = vpop.f32.mrf.mxu1 }
 0x1cf   : > { %3166 = vmatpush1.bf16.msra.mxu1 %v17206_v56  ;;  %3124 = vmatprep.subr.bf16.mxu0 %v17211_v57  ;;  %v17287_v56 = vld [vmem:[%s19005_s30 + $0x268] ss:$48 sps:$4 sm:$0xff]  }
 0x1d0   : > { %3167 = vmatprep.subr.bf16.mxu1 %v17214_v58  ;;  %v17290_v57 = vld [vmem:[%s19005_s30 + $0x868] ss:$48 sps:$4 sm:$0xff]  }
 0x1d2   : > { %3125 = vmatpush1.bf16.msra.mxu0 %v17209_v59 }
 0x1d3   : > { %3168 = vmatpush1.bf16.msra.mxu1 %v17212_v60  ;;  %3126 = vmatprep.subr.bf16.mxu0 %v17217_v63  ;;  %v17295_v60 = vld [vmem:[%s19005_s30 + $0x20c] ss:$48 sps:$4 sm:$0xff]  }
 0x1d4   : > { %3169 = vmatprep.subr.bf16.mxu1 %v17220_v0  ;;  %v17298_v63 = vld [vmem:[%s19005_s30 + $0x80c] ss:$48 sps:$4 sm:$0xff]  }
 0x1d6   : > { %3127 = vmatpush1.bf16.msra.mxu0 %v17215_v1 }
 0x1d7   : > { %3170 = vmatpush1.bf16.msra.mxu1 %v17218_v2  ;;  %3128 = vmatprep.subr.bf16.mxu0 %v17223_v3 }
 0x1d8   : > { %3171 = vmatprep.subr.bf16.mxu1 %v17226_v4  ;;  %v17293_v4 = vld [vmem:[%s19005_s30 + $0x208] ss:$48 sps:$4 sm:$0xff]  }
 0x1da   : > { %3129 = vmatpush1.bf16.msra.mxu0 %v17221_v5  ;;  %v17296_v5 = vld [vmem:[%s19005_s30 + $0x808] ss:$48 sps:$4 sm:$0xff]  }
 0x1db   : > { %3172 = vmatpush1.bf16.msra.mxu1 %v17224_v6  ;;  %3130 = vmatprep.subr.bf16.mxu0 %v17229_v7 }
 0x1dc   : > { %3173 = vmatprep.subr.bf16.mxu1 %v17232_v8  ;;  %v17301_v8 = vld [vmem:[%s19005_s30 + $0x1ac] ss:$48 sps:$4 sm:$0xff]  }
 0x1de   : > { %3131 = vmatpush1.bf16.msra.mxu0 %v17227_v9  ;;  %v17304_v9 = vld [vmem:[%s19005_s30 + $0x7ac] ss:$48 sps:$4 sm:$0xff]  }
 0x1df   : > { %3174 = vmatpush1.bf16.msra.mxu1 %v17230_v10  ;;  %3132 = vmatprep.subr.bf16.mxu0 %v17235_v11  ;;  %v17299_v11 = vld [vmem:[%s19005_s30 + $0x1a8] ss:$48 sps:$4 sm:$0xff]  }
 0x1e0   : > { %3175 = vmatprep.subr.bf16.mxu1 %v17238_v12  ;;  %v17302_v12 = vld [vmem:[%s19005_s30 + $0x7a8] ss:$48 sps:$4 sm:$0xff]  }
 0x1e2   : > { %3133 = vmatpush2.bf16.msra.mxu0 %v17233_v13  ;;  %v17305_v13 = vld [vmem:[%s19005_s30 + $0x148] ss:$48 sps:$4 sm:$0xff]  }
 0x1e3   : > { %3176 = vmatpush2.bf16.msra.mxu1 %v17236_v14  ;;  %3134 = vmatprep.subr.bf16.mxu0 %v17241_v15  ;;  %v17308_v14 = vld [vmem:[%s19005_s30 + $0x748] ss:$48 sps:$4 sm:$0xff]   ;;  %v17313_v15 = vld [vmem:[%s19005_s30 + $0xec] ss:$48 sps:$4 sm:$0xff]  }
 0x1e4   : > { %3177 = vmatprep.subr.bf16.mxu1 %v17244_v16  ;;  %v17316_v16 = vld [vmem:[%s19005_s30 + $0x6ec] ss:$48 sps:$4 sm:$0xff]  }
 0x1e6   : > { %3135 = vmatpush2.bf16.msra.mxu0 %v17239_v17  ;;  %v17311_v17 = vld [vmem:[%s19005_s30 + $0xe8] ss:$48 sps:$4 sm:$0xff]  }
 0x1e7   : > { %3178 = vmatpush2.bf16.msra.mxu1 %v17242_v18  ;;  %3136 = vmatprep.subr.bf16.mxu0 %v17247_v19  ;;  %v17314_v18 = vld [vmem:[%s19005_s30 + $0x6e8] ss:$48 sps:$4 sm:$0xff]   ;;  %v17319_v19 = vld [vmem:[%s19005_s30 + $0x8c] ss:$48 sps:$4 sm:$0xff]  }
 0x1e8   : > { %3179 = vmatprep.subr.bf16.mxu1 %v17250_v22  ;;  %v17322_v22 = vld [vmem:[%s19005_s30 + $0x68c] ss:$48 sps:$4 sm:$0xff]  }
 0x1ea   : > { %3137 = vmatpush2.bf16.msra.mxu0 %v17245_v23  ;;  %v17317_v23 = vld [vmem:[%s19005_s30 + $0x88] ss:$48 sps:$4 sm:$0xff]  }
 0x1eb   : > { %3180 = vmatpush2.bf16.msra.mxu1 %v17248_v24  ;;  %3138 = vmatprep.subr.bf16.mxu0 %v17253_v25  ;;  %v17320_v24 = vld [vmem:[%s19005_s30 + $0x688] ss:$48 sps:$4 sm:$0xff]   ;;  %v17325_v25 = vld [vmem:[%s19005_s30 + $0x2c] ss:$48 sps:$4 sm:$0xff]  }
 0x1ec   : > { %3181 = vmatprep.subr.bf16.mxu1 %v17256_v26  ;;  %v17328_v26 = vld [vmem:[%s19005_s30 + $0x62c] ss:$48 sps:$4 sm:$0xff]  }
 0x1ee   : > { %3139 = vmatpush2.bf16.msra.mxu0 %v17251_v27  ;;  %v17323_v27 = vld [vmem:[%s19005_s30 + $0x28] ss:$48 sps:$4 sm:$0xff]  }
 0x1ef   : > { %3182 = vmatpush2.bf16.msra.mxu1 %v17254_v28  ;;  %3140 = vmatprep.subr.bf16.mxu0 %v17259_v29  ;;  %v17326_v28 = vld [vmem:[%s19005_s30 + $0x628] ss:$48 sps:$4 sm:$0xff]   ;;  %v17331_v29 = vld [vmem:[%s19005_s30 + $0x5cc] ss:$48 sps:$4 sm:$0xff]  }
 0x1f0   : > { %3183 = vmatprep.subr.bf16.mxu1 %v17262_v30  ;;  %v17334_v30 = vld [vmem:[%s19005_s30 + $0xbcc] ss:$48 sps:$4 sm:$0xff]  }
 0x1f2   : > { %3141 = vmatpush2.bf16.msra.mxu0 %v17257_v31  ;;  %v17329_v31 = vld [vmem:[%s19005_s30 + $0x5c8] ss:$48 sps:$4 sm:$0xff]  }
 0x1f3   : > { %3184 = vmatpush2.bf16.msra.mxu1 %v17260_v32  ;;  %3142 = vmatprep.subr.bf16.mxu0 %v17265_v33  ;;  %v17332_v32 = vld [vmem:[%s19005_s30 + $0xbc8] ss:$48 sps:$4 sm:$0xff]   ;;  %v17337_v33 = vld [vmem:[%s19005_s30 + $0x56c] ss:$48 sps:$4 sm:$0xff]  }
 0x1f4   : > { %3185 = vmatprep.subr.bf16.mxu1 %v17268_v34  ;;  %v17340_v34 = vld [vmem:[%s19005_s30 + $0xb6c] ss:$48 sps:$4 sm:$0xff]  }
 0x1f6   : > { %3143 = vmatpush2.bf16.msra.mxu0 %v17263_v35  ;;  %v17335_v35 = vld [vmem:[%s19005_s30 + $0x568] ss:$48 sps:$4 sm:$0xff]  }
 0x1f7   : > { %3186 = vmatpush2.bf16.msra.mxu1 %v17266_v36  ;;  %3144 = vmatprep.subr.bf16.mxu0 %v17271_v37  ;;  %v17338_v36 = vld [vmem:[%s19005_s30 + $0xb68] ss:$48 sps:$4 sm:$0xff]   ;;  %v17343_v37 = vld [vmem:[%s19005_s30 + $0x50c] ss:$48 sps:$4 sm:$0xff]  }
 0x1f8   : > { %3187 = vmatprep.subr.bf16.mxu1 %v17274_v38  ;;  %v17346_v38 = vld [vmem:[%s19005_s30 + $0xb0c] ss:$48 sps:$4 sm:$0xff]  }
 0x1fa   : > { %3145 = vmatpush2.bf16.msra.mxu0 %v17269_v39  ;;  %v17341_v39 = vld [vmem:[%s19005_s30 + $0x508] ss:$48 sps:$4 sm:$0xff]  }
 0x1fb   : > { %3188 = vmatpush2.bf16.msra.mxu1 %v17272_v40  ;;  %3146 = vmatprep.subr.bf16.mxu0 %v17277_v41  ;;  %v17344_v40 = vld [vmem:[%s19005_s30 + $0xb08] ss:$48 sps:$4 sm:$0xff]   ;;  %v17349_v41 = vld [vmem:[%s19005_s30 + $0x4ac] ss:$48 sps:$4 sm:$0xff]  }
 0x1fc   : > { %3189 = vmatprep.subr.bf16.mxu1 %v17280_v42  ;;  %v17352_v42 = vld [vmem:[%s19005_s30 + $0xaac] ss:$48 sps:$4 sm:$0xff]  }
 0x1fe   : > { %3147 = vmatpush2.bf16.msra.mxu0 %v17275_v43  ;;  %v17347_v43 = vld [vmem:[%s19005_s30 + $0x4a8] ss:$48 sps:$4 sm:$0xff]  }
 0x1ff   : > { %3190 = vmatpush2.bf16.msra.mxu1 %v17278_v45  ;;  %3202 = vmatprep.subr.bf16.mxu0 %v17283_v46  ;;  %v17350_v45 = vld [vmem:[%s19005_s30 + $0xaa8] ss:$48 sps:$4 sm:$0xff]   ;;  %v17355_v46 = vld [vmem:[%s19005_s30 + $0x44c] ss:$48 sps:$4 sm:$0xff]  }
 0x200   : > { %3245 = vmatprep.subr.bf16.mxu1 %v17286_v48  ;;  %v17358_v48 = vld [vmem:[%s19005_s30 + $0xa4c] ss:$48 sps:$4 sm:$0xff]  }
 0x201   : > { %v2892_v58 = vpop.f32.mrf.mxu0  ;;  %3149 = vmatmul.mubr.bf16.vlgmr.msra.gmra.mxu0 %v19096_v20 }
 0x202   : > { %v2935_v59 = vpop.f32.mrf.mxu1  ;;  %3192 = vmatmul.mubr.bf16.vlgmr.msra.gmra.mxu1 %v19098_v21  ;;  %3203 = vmatpush1.bf16.msra.mxu0 %v17281_v49  ;;  %v17353_v49 = vld [vmem:[%s19005_s30 + $0x448] ss:$48 sps:$4 sm:$0xff]  }
 0x203   : > { %v19396_v0 = vadd.f32 %v2935_v59, %v2892_v58  ;;  %3246 = vmatpush1.bf16.msra.mxu1 %v17284_v50  ;;  %v2894_v1 = vpop.f32.mrf.mxu0  ;;  %3204 = vmatprep.subr.bf16.mxu0 %v17289_v51  ;;  %v17356_v50 = vld [vmem:[%s19005_s30 + $0xa48] ss:$48 sps:$4 sm:$0xff]   ;;  %v17361_v51 = vld [vmem:[%s19005_s30 + $0x3ec] ss:$48 sps:$4 sm:$0xff]  }
 0x204   : > { %v2937_v2 = vpop.f32.mrf.mxu1  ;;  %3247 = vmatprep.subr.bf16.mxu1 %v17292_v52  ;;  %3234 = vmatprep.mubr.bf16.mxu0 %v19073_v61  ;;  %v17307_v61 = vld [vmem:[%s19005_s30 + $0x14c] ss:$48 sps:$4 sm:$0xff]  }
 0x205   : > { %v19398_v3 = vadd.f32 %v2937_v2, %v2894_v1  ;;  %3277 = vmatprep.mubr.bf16.mxu1 %v19075_v62  ;;  %v2896_v6 = vpop.f32.mrf.mxu0  ;;  %v17310_v62 = vld [vmem:[%s19005_s30 + $0x74c] ss:$48 sps:$4 sm:$0xff]  }
 0x206   : > { %v2939_v7 = vpop.f32.mrf.mxu1  ;;  %3205 = vmatpush1.bf16.msra.mxu0 %v17287_v56  ;;  %v17364_v52 = vld [vmem:[%s19005_s30 + $0x9ec] ss:$48 sps:$4 sm:$0xff]   ;;  %v17359_v56 = vld [vmem:[%s19005_s30 + $0x3e8] ss:$48 sps:$4 sm:$0xff]  }
 0x207   : > { %v19406_v10 = vadd.f32 %v2939_v7, %v2896_v6  ;;  %3248 = vmatpush1.bf16.msra.mxu1 %v17290_v57  ;;  %3206 = vmatprep.subr.bf16.mxu0 %v17295_v60  ;;  %v17362_v57 = vld [vmem:[%s19005_s30 + $0x9e8] ss:$48 sps:$4 sm:$0xff]   ;;  %v17367_v58 = vld [vmem:[%s19005_s30 + $0x38c] ss:$48 sps:$4 sm:$0xff]   ;;  %v2898_v6 = vpop.f32.mrf.mxu0 }
 0x208   : > { %3249 = vmatprep.subr.bf16.mxu1 %v17298_v63  ;;  %v17370_v59 = vld [vmem:[%s19005_s30 + $0x98c] ss:$48 sps:$4 sm:$0xff]   ;;  %v17365_v60 = vld [vmem:[%s19005_s30 + $0x388] ss:$48 sps:$4 sm:$0xff]   ;;  %v2941_v7 = vpop.f32.mrf.mxu1 }
 0x209   : > { %v17368_v63 = vld [vmem:[%s19005_s30 + $0x988] ss:$48 sps:$4 sm:$0xff]   ;;  %v17373_v1 = vld [vmem:[%s19005_s30 + $0x32c] ss:$48 sps:$4 sm:$0xff]  }
 0x20a   : > { %3207 = vmatpush1.bf16.msra.mxu0 %v17293_v4  ;;  %v17376_v2 = vld [vmem:[%s19005_s30 + $0x92c] ss:$48 sps:$4 sm:$0xff]   ;;  %v17371_v4 = vld [vmem:[%s19005_s30 + $0x328] ss:$48 sps:$4 sm:$0xff]  }
 0x20b   : > { %3250 = vmatpush1.bf16.msra.mxu1 %v17296_v5  ;;  %3208 = vmatprep.subr.bf16.mxu0 %v17301_v8  ;;  %v17374_v5 = vld [vmem:[%s19005_s30 + $0x928] ss:$48 sps:$4 sm:$0xff]   ;;  %v18700_v8 = vmov 0.0  }
 0x20c   : > { %3251 = vmatprep.subr.bf16.mxu1 %v17304_v9 }
 0x20e   : > { %3209 = vmatpush1.bf16.msra.mxu0 %v17299_v11 }
 0x20f   : > { %3252 = vmatpush1.bf16.msra.mxu1 %v17302_v12  ;;  %3210 = vmatprep.subr.bf16.mxu0 %v17307_v61 }
 0x210   : > { %3253 = vmatprep.subr.bf16.mxu1 %v17310_v62 }
 0x212   : > { %3211 = vmatpush1.bf16.msra.mxu0 %v17305_v13 }
 0x213   : > { %3254 = vmatpush1.bf16.msra.mxu1 %v17308_v14  ;;  %3212 = vmatprep.subr.bf16.mxu0 %v17313_v15 }
 0x214   : > { %3255 = vmatprep.subr.bf16.mxu1 %v17316_v16 }
 0x216   : > { %3213 = vmatpush1.bf16.msra.mxu0 %v17311_v17 }
 0x217   : > { %3256 = vmatpush1.bf16.msra.mxu1 %v17314_v18  ;;  %3214 = vmatprep.subr.bf16.mxu0 %v17319_v19  ;;  %v2856_v18 = vadd.f32 %v19388_v55, %v19386_v53 }
 0x218   : > { %3257 = vmatprep.subr.bf16.mxu1 %v17322_v22 }
 0x21a   : > { %3215 = vmatpush1.bf16.msra.mxu0 %v17317_v23 }
 0x21b   : > { %3258 = vmatpush1.bf16.msra.mxu1 %v17320_v24  ;;  %3216 = vmatprep.subr.bf16.mxu0 %v17325_v25 }
 0x21c   : > { %3259 = vmatprep.subr.bf16.mxu1 %v17328_v26 }
 0x21e   : > { %3217 = vmatpush1.bf16.msra.mxu0 %v17323_v27 }
 0x21f   : > { %3260 = vmatpush1.bf16.msra.mxu1 %v17326_v28  ;;  %3218 = vmatprep.subr.bf16.mxu0 %v17331_v29  ;;  %v19503_v29 = vadd.f32 %v2941_v7, %v2898_v6 }
 0x220   : > { %3261 = vmatprep.subr.bf16.mxu1 %v17334_v30 }
 0x222   : > { %3219 = vmatpush2.bf16.msra.mxu0 %v17329_v31 }
 0x223   : > { %3262 = vmatpush2.bf16.msra.mxu1 %v17332_v32  ;;  %3220 = vmatprep.subr.bf16.mxu0 %v17337_v33 }
 0x224   : > { %3263 = vmatprep.subr.bf16.mxu1 %v17340_v34 }
 0x226   : > { %3221 = vmatpush2.bf16.msra.mxu0 %v17335_v35 }
 0x227   : > { %3264 = vmatpush2.bf16.msra.mxu1 %v17338_v36  ;;  %3222 = vmatprep.subr.bf16.mxu0 %v17343_v37 }
 0x228   : > { %3265 = vmatprep.subr.bf16.mxu1 %v17346_v38 }
 0x22a   : > { %3223 = vmatpush2.bf16.msra.mxu0 %v17341_v39 }
 0x22b   : > { %3266 = vmatpush2.bf16.msra.mxu1 %v17344_v40  ;;  %3224 = vmatprep.subr.bf16.mxu0 %v17349_v41 }
 0x22c   : > { %3267 = vmatprep.subr.bf16.mxu1 %v17352_v42 }
 0x22e   : > { %3225 = vmatpush2.bf16.msra.mxu0 %v17347_v43 }
 0x22f   : > { %3268 = vmatpush2.bf16.msra.mxu1 %v17350_v45  ;;  %3226 = vmatprep.subr.bf16.mxu0 %v17355_v46 }
 0x230   : > { %3269 = vmatprep.subr.bf16.mxu1 %v17358_v48 }
 0x232   : > { %3227 = vmatpush2.bf16.msra.mxu0 %v17353_v49 }
 0x233   : > { %3270 = vmatpush2.bf16.msra.mxu1 %v17356_v50  ;;  %3228 = vmatprep.subr.bf16.mxu0 %v17361_v51 }
 0x234   : > { %3271 = vmatprep.subr.bf16.mxu1 %v17364_v52 }
 0x236   : > { %3229 = vmatpush2.bf16.msra.mxu0 %v17359_v56 }
 0x237   : > { %3272 = vmatpush2.bf16.msra.mxu1 %v17362_v57  ;;  %3230 = vmatprep.subr.bf16.mxu0 %v17367_v58  ;;  %v3291_v30 = vpop.permute.xlu1 %3290 }
 0x238   : > { %3273 = vmatprep.subr.bf16.mxu1 %v17370_v59 }
 0x23a   : > { %3231 = vmatpush2.bf16.msra.mxu0 %v17365_v60 }
 0x23b   : > { %3274 = vmatpush2.bf16.msra.mxu1 %v17368_v63  ;;  %3232 = vmatprep.subr.bf16.mxu0 %v17373_v1  ;;  %v3293_v32 = vpop.permute.xlu1 %3292 }
 0x23c   : > { %3275 = vmatprep.subr.bf16.mxu1 %v17376_v2 }
 0x23e   : > { %3233 = vmatpush2.bf16.msra.mxu0 %v17371_v4 }
 0x23f   : > { %3276 = vmatpush2.bf16.msra.mxu1 %v17374_v5  ;;  %16512 = vmatprep.subr.mxu0 %v18700_v8 }
 0x240   : > { %16517 = vmatprep.subr.mxu1 %v18700_v8 }
 0x241   : > { %v2978_v9 = vpop.f32.mrf.mxu0  ;;  %3235 = vmatmul.mubr.bf16.vlgmr.msra.gmra.mxu0 %v19096_v20 }
 0x242   : > { %v3021_v11 = vpop.f32.mrf.mxu1  ;;  %3278 = vmatmul.mubr.bf16.vlgmr.msra.gmra.mxu1 %v19098_v21  ;;  %16514 = vmatprep.mubr.msk.f32.mxu0 %vm18701_vm1, %v18700_v8 }
 0x243   : > { %v3022_v12 = vadd.f32 %v3021_v11, %v2978_v9  ;;  %16519 = vmatprep.mubr.msk.f32.mxu1 %vm18701_vm1, %v18700_v8  ;;  %v2980_v61 = vpop.f32.mrf.mxu0  ;;  %v19594_v9 = vld [vmem:[#allocation3] sm:$0xff] }
 0x244   : > { %v3023_v62 = vpop.f32.mrf.mxu1  ;;  %vm4569_vm2 = vcmp.ne.s32.totalorder %v19594_v9, 0 }
 0x245   : > { %3314 = vrot.lane.b32.xlu0 %v3022_v12, %s18699_s12  ;;  %16513 = vmatpush3.xpose.msk.msra.mxu0 %vm3368_vm0, %v3022_v12  ;;  %v2982_v13 = vpop.f32.mrf.mxu0  ;;  %v3024_v17 = vadd.f32 %v3023_v62, %v2980_v61  ;;  %v19603_v62 = vld [vmem:[#allocation3 + $0x8] sm:$0xff] }
 0x246   : > { %v3025_v14 = vpop.f32.mrf.mxu1  ;;  %16522 = vmatprep.subr.mxu0 %v18700_v8  ;;  %vm4570_vm4 = vcmp.ne.s32.totalorder %v19603_v62, 0 }
 0x247   : > { %v3026_v20 = vadd.f32 %v3025_v14, %v2982_v13  ;;  %v2984_v21 = vpop.f32.mrf.mxu0 }
 0x248   : > { %v3027_v15 = vpop.f32.mrf.mxu1 }
 0x249   : > { %v3028_v16 = vadd.f32 %v3027_v15, %v2984_v21  ;;  %3316 = vrot.lane.b32.xlu0 %v3026_v20, %s18699_s12  ;;  %16518 = vmatpush3.xpose.msk.msra.mxu1 %vm3368_vm0, %v3026_v20 }
 0x24a   : > { %16515 = vmatmul.mubr.msk.f32.vlgmr.msra.gmra.mxu0 %vm3368_vm0, %v19314_v44  ;;  %16527 = vmatprep.subr.mxu1 %v18700_v8 }
 0x24b   : > { %3322 = vrot.lane.b32.xlu1 %v3028_v16, %s18699_s12  ;;  %16524 = vmatprep.mubr.msk.f32.mxu0 %vm18701_vm1, %v18700_v8 }
 0x24c   : > { %16520 = vmatmul.mubr.msk.f32.vlgmr.msra.gmra.mxu1 %vm3368_vm0, %v19326_v54 }
 0x24d   : > { %3320 = vrot.lane.b32.xlu0 %v3024_v17, %s18699_s12  ;;  %16529 = vmatprep.mubr.msk.f32.mxu1 %vm18701_vm1, %v18700_v8 }
 0x24f   : > { %3298 = vrot.lane.b32.xlu1 %v2856_v18, %s18699_s12 }
 0x251   : > { %3296 = vrot.lane.b32.xlu0 %v19316_v47, %s18699_s12 }
 0x281   : > { %v3064_v44 = vpop.f32.mrf.mxu0 }
 0x282   : > { %v3107_v19 = vpop.f32.mrf.mxu1 }
 0x283   : > { %v3108_v22 = vadd.f32 %v3107_v19, %v3064_v44  ;;  %v3066_v23 = vpop.f32.mrf.mxu0 }
 0x284   : > { %v3109_v24 = vpop.f32.mrf.mxu1 }
 0x285   : > { %3326 = vrot.lane.b32.xlu0 %v3108_v22, %s18699_s12  ;;  %v3068_v54 = vpop.f32.mrf.mxu0  ;;  %v19491_v55 = vadd.f32 %v3109_v24, %v3066_v23 }
 0x286   : > { %v3111_v25 = vpop.f32.mrf.mxu1 }
 0x287   : > { %v3112_v53 = vadd.f32 %v3111_v25, %v3068_v54  ;;  %v3070_v26 = vpop.f32.mrf.mxu0 }
 0x288   : > { %v3113_v27 = vpop.f32.mrf.mxu1 }
 0x289   : > { %3302 = vrot.lane.b32.xlu0 %v19396_v0, %s18699_s12  ;;  %3328 = vrot.lane.b32.xlu1 %v3112_v53, %s18699_s12  ;;  %v19497_v28 = vadd.f32 %v3113_v27, %v3070_v26 }
 0x28d   : > { %3332 = vrot.lane.b32.xlu0 %v19491_v55, %s18699_s12  ;;  %3304 = vrot.lane.b32.xlu1 %v19406_v10, %s18699_s12 }
 0x291   : > { %3308 = vrot.lane.b32.xlu0 %v19398_v3, %s18699_s12  ;;  %3334 = vrot.lane.b32.xlu1 %v19497_v28, %s18699_s12 }
 0x295   : > { %3310 = vrot.lane.b32.xlu1 %v19503_v29, %s18699_s12 }
 0x2b7   : > { %v3315_v31 = vpop.permute.xlu0 %3314 }
 0x2b8   : > { %16523 = vmatpush3.xpose.msk.msra.mxu0 %vm3368_vm0, %v3315_v31 }
 0x2b9   : > { %16532 = vmatprep.subr.mxu0 %v18700_v8 }
 0x2bb   : > { %16525 = vmatmul.mubr.msk.f32.vlgmr.msra.gmra.mxu0 %vm3368_vm0, %v3291_v30  ;;  %v3317_v33 = vpop.permute.xlu0 %3316 }
 0x2bc   : > { %16528 = vmatpush3.xpose.msk.msra.mxu1 %vm3368_vm0, %v3317_v33  ;;  %16533 = vmatpush3.xpose.msk.msra.mxu0 %vm3368_vm0, %v3024_v17 }
 0x2bd   : > { %16534 = vmatprep.mubr.msk.f32.mxu0 %vm18701_vm1, %v18700_v8  ;;  %16542 = vmatprep.subr.mxu0 %v18700_v8  ;;  %v3323_v34 = vpop.permute.xlu1 %3322 }
 0x2be   : > { %16537 = vmatprep.subr.mxu1 %v18700_v8 }
 0x2bf   : > { %16535 = vmatmul.mubr.msk.f32.vlgmr.msra.gmra.mxu0 %vm3368_vm0, %v19316_v47  ;;  %v3321_v35 = vpop.permute.xlu0 %3320  ;;  %16530 = vmatmul.mubr.msk.f32.vlgmr.msra.gmra.mxu1 %vm3368_vm0, %v3293_v32 }
 0x2c0   : > { %16538 = vmatpush3.xpose.msk.msra.mxu1 %vm3368_vm0, %v3028_v16  ;;  %16543 = vmatpush3.xpose.msk.msra.mxu0 %vm3368_vm0, %v3321_v35 }
 0x2c1   : > { %16539 = vmatprep.mubr.msk.f32.mxu1 %vm18701_vm1, %v18700_v8  ;;  %16544 = vmatprep.mubr.msk.f32.mxu0 %vm18701_vm1, %v18700_v8  ;;  %v3150_v36 = vpop.f32.mrf.mxu0  ;;  %v3299_v40 = vpop.permute.xlu1 %3298 }
 0x2c2   : > { %16552 = vmatprep.subr.mxu0 %v18700_v8  ;;  %16547 = vmatprep.subr.mxu1 %v18700_v8  ;;  %v3193_v37 = vpop.f32.mrf.mxu1 }
 0x2c3   : > { %v3297_v47 = vpop.permute.xlu0 %3296  ;;  %16540 = vmatmul.mubr.msk.f32.vlgmr.msra.gmra.mxu1 %vm3368_vm0, %v2856_v18  ;;  %v3152_v38 = vpop.f32.mrf.mxu0  ;;  %v19573_v57 = vadd.f32 %v3193_v37, %v3150_v36 }
 0x2c4   : > { %16545 = vmatmul.mubr.msk.f32.vlgmr.msra.gmra.mxu0 %vm3368_vm0, %v3297_v47  ;;  %16548 = vmatpush3.xpose.msk.msra.mxu1 %vm3368_vm0, %v3323_v34  ;;  %v3195_v39 = vpop.f32.mrf.mxu1 }
 0x2c5   : > { %16553 = vmatpush3.xpose.msk.msra.mxu0 %vm3368_vm0, %v3108_v22  ;;  %16549 = vmatprep.mubr.msk.f32.mxu1 %vm18701_vm1, %v18700_v8  ;;  %v19533_v41 = vadd.f32 %v3195_v39, %v3152_v38  ;;  %v3154_v42 = vpop.f32.mrf.mxu0 }
 0x2c6   : > { %16554 = vmatprep.mubr.msk.f32.mxu0 %vm18701_vm1, %v18700_v8  ;;  %16557 = vmatprep.subr.mxu1 %v18700_v8  ;;  %v3197_v43 = vpop.f32.mrf.mxu1 }
 0x2c7   : > { %16550 = vmatmul.mubr.msk.f32.vlgmr.msra.gmra.mxu1 %vm3368_vm0, %v3299_v40  ;;  %16562 = vmatprep.subr.mxu0 %v18700_v8  ;;  %v3156_v45 = vpop.f32.mrf.mxu0  ;;  %v19590_v5 = vadd.f32 %v3197_v43, %v3154_v42 }
 0x2c8   : > { %16555 = vmatmul.mubr.msk.f32.vlgmr.msra.gmra.mxu0 %vm3368_vm0, %v19396_v0  ;;  %16558 = vmatpush3.xpose.msk.msra.mxu1 %vm3368_vm0, %v3112_v53  ;;  %v3199_v46 = vpop.f32.mrf.mxu1 }
 0x2c9   : > { %16559 = vmatprep.mubr.msk.f32.mxu1 %vm18701_vm1, %v18700_v8  ;;  %v19545_v48 = vadd.f32 %v3199_v46, %v3156_v45  ;;  %16564 = vmatprep.mubr.msk.f32.mxu0 %vm18701_vm1, %v18700_v8 }
 0x2ca   : > { %16567 = vmatprep.subr.mxu1 %v18700_v8 }
 0x2cb   : > { %16560 = vmatmul.mubr.msk.f32.vlgmr.msra.gmra.mxu1 %vm3368_vm0, %v19406_v10 }
 0x2cc   : > { %16569 = vmatprep.mubr.msk.f32.mxu1 %vm18701_vm1, %v18700_v8 }
 0x2f7   : > { %v3327_v0 = vpop.permute.xlu0 %3326 }
 0x2f8   : > { %16563 = vmatpush3.xpose.msk.msra.mxu0 %vm3368_vm0, %v3327_v0 }
 0x2f9   : > { %16572 = vmatprep.subr.mxu0 %v18700_v8 }
 0x2fb   : > { %v3303_v49 = vpop.permute.xlu0 %3302  ;;  %v3329_v50 = vpop.permute.xlu1 %3328 }
 0x2fc   : > { %16565 = vmatmul.mubr.msk.f32.vlgmr.msra.gmra.mxu0 %vm3368_vm0, %v3303_v49  ;;  %16568 = vmatpush3.xpose.msk.msra.mxu1 %vm3368_vm0, %v3329_v50 }
 0x2fd   : > { %16573 = vmatpush3.xpose.msk.msra.mxu0 %vm3368_vm0, %v19491_v55  ;;  %16574 = vmatprep.mubr.msk.f32.mxu0 %vm18701_vm1, %v18700_v8 }
 0x2fe   : > { %16582 = vmatprep.subr.mxu0 %v18700_v8  ;;  %16577 = vmatprep.subr.mxu1 %v18700_v8 }
 0x2ff   : > { %v3333_v10 = vpop.permute.xlu0 %3332  ;;  %v3305_v51 = vpop.permute.xlu1 %3304 }
 0x300   : > { %16570 = vmatmul.mubr.msk.f32.vlgmr.msra.gmra.mxu1 %vm3368_vm0, %v3305_v51  ;;  %16575 = vmatmul.mubr.msk.f32.vlgmr.msra.gmra.mxu0 %vm3368_vm0, %v19398_v3 }
 0x301   : > { %16578 = vmatpush3.xpose.msk.msra.mxu1 %vm3368_vm0, %v19497_v28  ;;  %16583 = vmatpush3.xpose.msk.msra.mxu0 %vm3368_vm0, %v3333_v10  ;;  %v3236_v52 = vpop.f32.mrf.mxu0 }
 0x302   : > { %16584 = vmatprep.mubr.msk.f32.mxu0 %vm18701_vm1, %v18700_v8  ;;  %16592 = vmatprep.subr.mxu0 %v18700_v8  ;;  %v3279_v56 = vpop.f32.mrf.mxu1 }
 0x303   : > { %v3309_v58 = vpop.permute.xlu0 %3308  ;;  %v3335_v59 = vpop.permute.xlu1 %3334  ;;  %16579 = vmatprep.mubr.msk.f32.mxu1 %vm18701_vm1, %v18700_v8  ;;  %16587 = vmatprep.subr.mxu1 %v18700_v8  ;;  %v19578_v3 = vadd.f32 %v3279_v56, %v3236_v52 }
 0x304   : > { %v3238_v60 = vpop.f32.mrf.mxu0  ;;  %16580 = vmatmul.mubr.msk.f32.vlgmr.msra.gmra.mxu1 %vm3368_vm0, %v19503_v29  ;;  %16585 = vmatmul.mubr.msk.f32.vlgmr.msra.gmra.mxu0 %vm3368_vm0, %v3309_v58  ;;  %v3281_v63 = vpop.f32.mrf.mxu1 }
 0x305   : > { %16588 = vmatpush3.xpose.msk.msra.mxu1 %vm3368_vm0, %v3335_v59  ;;  %16593 = vmatpush3.msra.mxu0 %v19573_v57  ;;  %v19585_v1 = vadd.f32 %v3281_v63, %v3238_v60 }
 0x306   : > { %v3240_v2 = vpop.f32.mrf.mxu0  ;;  %16589 = vmatprep.mubr.msk.f32.mxu1 %vm18701_vm1, %v18700_v8  ;;  %16597 = vmatprep.subr.mxu1 %v18700_v8  ;;  %v3283_v4 = vpop.f32.mrf.mxu1 }
 0x307   : > { %v3311_v6 = vpop.permute.xlu1 %3310  ;;  %v19592_v7 = vadd.f32 %v3283_v4, %v3240_v2  ;;  %16594 = vmatprep.mubr.msk.f32.mxu0 %vm18701_vm1, %v18700_v8  ;;  %16602 = vmatprep.subr.mxu0 %v18700_v8 }
 0x308   : > { %v3242_v11 = vpop.f32.mrf.mxu0  ;;  %16590 = vmatmul.mubr.msk.f32.vlgmr.msra.gmra.mxu1 %vm3368_vm0, %v3311_v6  ;;  %v3285_v12 = vpop.f32.mrf.mxu1 }
 0x309   : > { %16598 = vmatpush3.msra.mxu1 %v19590_v5  ;;  %v19601_v61 = vadd.f32 %v3285_v12, %v3242_v11  ;;  %16599 = vmatprep.mubr.msk.f32.mxu1 %vm18701_vm1, %v18700_v8 }
 0x30a   : > { %v3439_v13 = vpop.f32.mrf.mxu0  ;;  %16607 = vmatprep.subr.mxu1 %v18700_v8 }
 0x30b   : > { %v4553_v14 = vmul.f32 0.125, %v3439_v13 }
 0x30c   : > { %v16516_v20 = vpop.f32.mrf.mxu0  ;;  %v3513_v21 = vpop.f32.mrf.mxu1 }
 0x30d   : > { %v4554_v15 = vmul.f32 0.125, %v3513_v21  ;;  %v4571_v16 = vsel %vm4569_vm2, -1e+09, %v4553_v14 }
 0x30e   : > { %v16521_v17 = vpop.f32.mrf.mxu1  ;;  %v4588_v18 = vsel %vm4587_vm3, %v4571_v16, -inf }
 0x30f   : > { %4589 = vmax.xlane.f32.xlu0 %v4588_v18  ;;  %v4572_v44 = vsel %vm4570_vm4, -1e+09, %v4554_v15 }
 0x310   : > { %v4591_v19 = vsel %vm4587_vm3, %v4572_v44, -inf }
 0x311   : > { %4592 = vmax.xlane.f32.xlu1 %v4591_v19 }
 0x37b   : > { %v3587_v22 = vpop.f32.mrf.mxu0 }
 0x37c   : > { %v4555_v23 = vmul.f32 0.125, %v3587_v22 }
 0x37d   : > { %v16526_v24 = vpop.f32.mrf.mxu0 }
 0x37e   : > { %v19618_v54 = vsel %vm4569_vm2, -1e+09, %v4555_v23 }
 0x37f   : > { %v3661_v25 = vpop.f32.mrf.mxu1  ;;  %v3735_v53 = vpop.f32.mrf.mxu0  ;;  %v4594_v55 = vsel %vm4587_vm3, %v19618_v54, -inf }
 0x380   : > { %v4556_v26 = vmul.f32 0.125, %v3661_v25  ;;  %v4557_v27 = vmul.f32 0.125, %v3735_v53  ;;  %4595 = vmax.xlane.f32.xlu0 %v4594_v55 }
 0x381   : > { %v16531_v28 = vpop.f32.mrf.mxu1  ;;  %v16536_v29 = vpop.f32.mrf.mxu0 }
 0x382   : > { %v19624_v30 = vsel %vm4570_vm4, -1e+09, %v4556_v26  ;;  %v19628_v31 = vsel %vm4569_vm2, -1e+09, %v4557_v27 }
 0x383   : > { %v3809_v32 = vpop.f32.mrf.mxu1  ;;  %v4597_v33 = vsel %vm4587_vm3, %v19624_v30, -inf  ;;  %v4600_v34 = vsel %vm4587_vm3, %v19628_v31, -inf }
 0x384   : > { %v4558_v35 = vmul.f32 0.125, %v3809_v32  ;;  %4598 = vmax.xlane.f32.xlu0 %v4597_v33  ;;  %v3883_v36 = vpop.f32.mrf.mxu0  ;;  %4601 = vmax.xlane.f32.xlu1 %v4600_v34 }
 0x385   : > { %v4559_v37 = vmul.f32 0.125, %v3883_v36  ;;  %v16541_v47 = vpop.f32.mrf.mxu1 }
 0x386   : > { %v16546_v38 = vpop.f32.mrf.mxu0  ;;  %v19636_v39 = vsel %vm4570_vm4, -1e+09, %v4558_v35 }
 0x387   : > { %v3957_v40 = vpop.f32.mrf.mxu1  ;;  %v4603_v42 = vsel %vm4587_vm3, %v19636_v39, -inf  ;;  %v19642_v43 = vsel %vm4569_vm2, -1e+09, %v4559_v37 }
 0x388   : > { %v4560_v45 = vmul.f32 0.125, %v3957_v40  ;;  %v4031_v46 = vpop.f32.mrf.mxu0  ;;  %4604 = vmax.xlane.f32.xlu0 %v4603_v42  ;;  %v4606_v0 = vsel %vm4587_vm3, %v19642_v43, -inf }
 0x389   : > { %v4561_v49 = vmul.f32 0.125, %v4031_v46  ;;  %4607 = vmax.xlane.f32.xlu1 %v4606_v0  ;;  %v16551_v50 = vpop.f32.mrf.mxu1 }
 0x38a   : > { %v16556_v10 = vpop.f32.mrf.mxu0  ;;  %v19648_v51 = vsel %vm4570_vm4, -1e+09, %v4560_v45 }
 0x38b   : > { %v4105_v52 = vpop.f32.mrf.mxu1  ;;  %v4609_v56 = vsel %vm4587_vm3, %v19648_v51, -inf  ;;  %v19654_v58 = vsel %vm4569_vm2, -1e+09, %v4561_v49 }
 0x38c   : > { %v4562_v59 = vmul.f32 0.125, %v4105_v52  ;;  %4610 = vmax.xlane.f32.xlu0 %v4609_v56  ;;  %v4612_v60 = vsel %vm4587_vm3, %v19654_v58, -inf }
 0x38d   : > { %4613 = vmax.xlane.f32.xlu1 %v4612_v60  ;;  %v16561_v63 = vpop.f32.mrf.mxu1 }
 0x38e   : > { %v19660_v2 = vsel %vm4570_vm4, -1e+09, %v4562_v59 }
 0x38f   : > { %v4615_v4 = vsel %vm4587_vm3, %v19660_v2, -inf }
 0x390   : > { %4616 = vmax.xlane.f32.xlu0 %v4615_v4 }
 0x398   : > { %v4590_v6 = vpop.xlane.xlu0 %4589 }
 0x399   : > { %v4636_v11 = vsub.f32 %v4571_v16, %v4590_v6 }
 0x39a   : > { %v4593_v20 = vpop.xlane.xlu1 %4592 }
 0x39b   : > { %v4652_v12 = vmul.f32 1.442695, %v4636_v11  ;;  %v4637_v21 = vsub.f32 %v4572_v44, %v4593_v20 }
 0x39d   : > { %18337 = vpow2.f32 %v4652_v12  ;;  %v4654_v15 = vmul.f32 1.442695, %v4637_v21 }
 0x39f   : > { %18339 = vpow2.f32 %v4654_v15 }
 0x3aa   : > { %v19664_v13 = vpop.eup %18337 }
 0x3ab   : > { %v4684_v14 = vsel %vm4587_vm3, %v19664_v13, 0.0 }
 0x3ac   : > { %4685 = vadd.xlane.f32.xlu1 %v4684_v14  ;;  %v19704_v50 = vpop.eup %18339 }
 0x3ad   : > { %v4687_v10 = vsel %vm4587_vm3, %v19704_v50, 0.0 }
 0x3bc   : > { %v4179_v17 = vpop.f32.mrf.mxu0 }
 0x3bd   : > { %v4563_v18 = vmul.f32 0.125, %v4179_v17 }
 0x3be   : > { %v16566_v19 = vpop.f32.mrf.mxu0 }
 0x3bf   : > { %v19670_v22 = vsel %vm4569_vm2, -1e+09, %v4563_v18 }
 0x3c0   : > { %v4253_v16 = vpop.f32.mrf.mxu1  ;;  %v4327_v23 = vpop.f32.mrf.mxu0  ;;  %v4618_v24 = vsel %vm4587_vm3, %v19670_v22, -inf }
 0x3c1   : > { %v4564_v25 = vmul.f32 0.125, %v4253_v16  ;;  %v4565_v53 = vmul.f32 0.125, %v4327_v23  ;;  %4619 = vmax.xlane.f32.xlu1 %v4618_v24 }
 0x3c2   : > { %v16571_v55 = vpop.f32.mrf.mxu1  ;;  %v16576_v26 = vpop.f32.mrf.mxu0 }
 0x3c3   : > { %v19676_v44 = vsel %vm4569_vm2, -1e+09, %v4565_v53  ;;  %v19680_v27 = vsel %vm4570_vm4, -1e+09, %v4564_v25 }
 0x3c4   : > { %v4401_v28 = vpop.f32.mrf.mxu1  ;;  %v4475_v29 = vpop.f32.mrf.mxu0  ;;  %v4624_v32 = vsel %vm4587_vm3, %v19676_v44, -inf  ;;  %v4621_v33 = vsel %vm4587_vm3, %v19680_v27, -inf }
 0x3c5   : > { %v4566_v34 = vmul.f32 0.125, %v4401_v28  ;;  %v4567_v35 = vmul.f32 0.125, %v4475_v29  ;;  %4625 = vmax.xlane.f32.xlu1 %v4624_v32  ;;  %4622 = vmax.xlane.f32.xlu0 %v4621_v33 }
 0x3c6   : > { %v16581_v36 = vpop.f32.mrf.mxu1  ;;  %v16586_v37 = vpop.f32.mrf.mxu0 }
 0x3c7   : > { %v19688_v47 = vsel %vm4569_vm2, -1e+09, %v4567_v35  ;;  %v19692_v38 = vsel %vm4570_vm4, -1e+09, %v4566_v34 }
 0x3c8   : > { %v4549_v40 = vpop.f32.mrf.mxu1  ;;  %v4630_v42 = vsel %vm4587_vm3, %v19688_v47, -inf  ;;  %v4627_v45 = vsel %vm4587_vm3, %v19692_v38, -inf }
 0x3c9   : > { %v4568_v46 = vmul.f32 0.125, %v4549_v40  ;;  %4631 = vmax.xlane.f32.xlu1 %v4630_v42  ;;  %4628 = vmax.xlane.f32.xlu0 %v4627_v45 }
 0x3ca   : > { %v16591_v0 = vpop.f32.mrf.mxu1 }
 0x3cb   : > { %v19700_v9 = vsel %vm4570_vm4, -1e+09, %v4568_v46 }
 0x3cc   : > { %v4633_v49 = vsel %vm4587_vm3, %v19700_v9, -inf }
 0x3cd   : > { %4634 = vmax.xlane.f32.xlu0 %v4633_v49 }
 0x3d1   : > { %4688 = vadd.xlane.f32.xlu0 %v4687_v10 }
 0x3da   : > { %3338 = vrot.lane.b32.xlu1 %v19573_v57, %s18699_s12 }
 0x3de   : > { %3346 = vrot.lane.b32.xlu1 %v19533_v41, %s18699_s12 }
 0x3e2   : > { %3348 = vrot.lane.b32.xlu1 %v19545_v48, %s18699_s12 }
 0x3e6   : > { %3356 = vrot.lane.b32.xlu1 %v19592_v7, %s18699_s12 }
 0x3e7   : > { %3340 = vrot.lane.b32.xlu0 %v19590_v5, %s18699_s12 }
 0x3eb   : > { %3354 = vrot.lane.b32.xlu0 %v19578_v3, %s18699_s12 }
 0x409   : > { %v4596_v62 = vpop.xlane.xlu0 %4595 }
 0x40a   : > { %v4638_v52 = vsub.f32 %v19618_v54, %v4596_v62 }
 0x40c   : > { %v4656_v56 = vmul.f32 1.442695, %v4638_v52 }
 0x40d   : > { %v4599_v57 = vpop.xlane.xlu0 %4598  ;;  %v4602_v59 = vpop.xlane.xlu1 %4601 }
 0x40e   : > { %18341 = vpow2.f32 %v4656_v56  ;;  %v4639_v60 = vsub.f32 %v19624_v30, %v4599_v57  ;;  %v4640_v63 = vsub.f32 %v19628_v31, %v4602_v59 }
 0x410   : > { %v4658_v4 = vmul.f32 1.442695, %v4639_v60  ;;  %v4660_v6 = vmul.f32 1.442695, %v4640_v63 }
 0x411   : > { %v4605_v11 = vpop.xlane.xlu0 %4604 }
 0x412   : > { %18343 = vpow2.f32 %v4658_v4  ;;  %v4641_v5 = vsub.f32 %v19636_v39, %v4605_v11  ;;  %v4608_v12 = vpop.xlane.xlu1 %4607 }
 0x413   : > { %18345 = vpow2.f32 %v4660_v6  ;;  %v4642_v14 = vsub.f32 %v19642_v43, %v4608_v12 }
 0x414   : > { %v4662_v20 = vmul.f32 1.442695, %v4641_v5 }
 0x415   : > { %v4664_v54 = vmul.f32 1.442695, %v4642_v14  ;;  %v4611_v21 = vpop.xlane.xlu0 %4610 }
 0x416   : > { %18347 = vpow2.f32 %v4662_v20  ;;  %v4643_v15 = vsub.f32 %v19648_v51, %v4611_v21  ;;  %v4614_v17 = vpop.xlane.xlu1 %4613 }
 0x417   : > { %18349 = vpow2.f32 %v4664_v54  ;;  %v4644_v30 = vsub.f32 %v19654_v58, %v4614_v17 }
 0x418   : > { %v4666_v31 = vmul.f32 1.442695, %v4643_v15 }
 0x419   : > { %v4668_v18 = vmul.f32 1.442695, %v4644_v30  ;;  %v4617_v19 = vpop.xlane.xlu0 %4616 }
 0x41a   : > { %18351 = vpow2.f32 %v4666_v31  ;;  %v4645_v39 = vsub.f32 %v19660_v2, %v4617_v19 }
 0x41b   : > { %v19728_v16 = vpop.eup %18341  ;;  %18353 = vpow2.f32 %v4668_v18 }
 0x41c   : > { %v4670_v43 = vmul.f32 1.442695, %v4645_v39  ;;  %v4690_v23 = vsel %vm4587_vm3, %v19728_v16, 0.0 }
 0x41d   : > { %4691 = vadd.xlane.f32.xlu1 %v4690_v23 }
 0x41e   : > { %18355 = vpow2.f32 %v4670_v43 }
 0x41f   : > { %v19732_v51 = vpop.eup %18343 }
 0x420   : > { %v19734_v24 = vpop.eup %18345  ;;  %v4693_v58 = vsel %vm4587_vm3, %v19732_v51, 0.0 }
 0x421   : > { %v4696_v25 = vsel %vm4587_vm3, %v19734_v24, 0.0  ;;  %4694 = vadd.xlane.f32.xlu0 %v4693_v58 }
 0x422   : > { %4697 = vadd.xlane.f32.xlu1 %v4696_v25 }
 0x423   : > { %v19740_v2 = vpop.eup %18347 }
 0x424   : > { %v19742_v53 = vpop.eup %18349  ;;  %v4699_v55 = vsel %vm4587_vm3, %v19740_v2, 0.0 }
 0x425   : > { %4700 = vadd.xlane.f32.xlu0 %v4699_v55  ;;  %v4702_v26 = vsel %vm4587_vm3, %v19742_v53, 0.0 }
 0x426   : > { %4703 = vadd.xlane.f32.xlu1 %v4702_v26 }
 0x427   : > { %v19748_v28 = vpop.eup %18351 }
 0x428   : > { %v19750_v29 = vpop.eup %18353  ;;  %v4705_v32 = vsel %vm4587_vm3, %v19748_v28, 0.0 }
 0x429   : > { %4706 = vadd.xlane.f32.xlu0 %v4705_v32  ;;  %v4708_v33 = vsel %vm4587_vm3, %v19750_v29, 0.0 }
 0x42a   : > { %4709 = vadd.xlane.f32.xlu1 %v4708_v33 }
 0x42b   : > { %v19756_v34 = vpop.eup %18355 }
 0x42c   : > { %v4711_v35 = vsel %vm4587_vm3, %v19756_v34, 0.0 }
 0x42d   : > { %4712 = vadd.xlane.f32.xlu0 %v4711_v35 }
 0x435   : > { %v4686_v36 = vpop.xlane.xlu1 %4685 }
 0x436   : > { %18357 = vrcp.f32 %v4686_v36 }
 0x443   : > { %v18358_v37 = vpop.eup %18357 }
 0x444   : > { %v4748_v40 = vmul.f32 %v18358_v37, %v19664_v13 }
 0x446   : > { %4764 = vst.msk [vmem:[%s19020_s21] sm:$0xff] %vm4587_vm3, %v4748_v40  ;;  %16595 = vmatmul.mubr.msk.f32.vlgmr.msra.gmra.mxu0 %vm4587_vm3, %v4748_v40 }
 0x447   : > { %16604 = vmatprep.mubr.msk.f32.mxu0 %vm18701_vm1, %v18700_v8 }
 0x44a   : > { %v4620_v42 = vpop.xlane.xlu1 %4619 }
 0x44b   : > { %v4646_v45 = vsub.f32 %v19670_v22, %v4620_v42 }
 0x44d   : > { %v4672_v46 = vmul.f32 1.442695, %v4646_v45 }
 0x44e   : > { %v4626_v0 = vpop.xlane.xlu1 %4625  ;;  %v4623_v49 = vpop.xlane.xlu0 %4622 }
 0x44f   : > { %18359 = vpow2.f32 %v4672_v46  ;;  %v4648_v10 = vsub.f32 %v19676_v44, %v4626_v0  ;;  %v4647_v62 = vsub.f32 %v19680_v27, %v4623_v49 }
 0x451   : > { %v4676_v52 = vmul.f32 1.442695, %v4648_v10  ;;  %v4674_v13 = vmul.f32 1.442695, %v4647_v62 }
 0x452   : > { %v4632_v56 = vpop.xlane.xlu1 %4631  ;;  %v4629_v57 = vpop.xlane.xlu0 %4628 }
 0x453   : > { %18361 = vpow2.f32 %v4676_v52  ;;  %v4650_v59 = vsub.f32 %v19688_v47, %v4632_v56  ;;  %v4649_v60 = vsub.f32 %v19692_v38, %v4629_v57 }
 0x454   : > { %18363 = vpow2.f32 %v4674_v13 }
 0x455   : > { %v4680_v63 = vmul.f32 1.442695, %v4650_v59  ;;  %v4678_v22 = vmul.f32 1.442695, %v4649_v60 }
 0x456   : > { %v3339_v4 = vpop.permute.xlu1 %3338  ;;  %v4635_v6 = vpop.xlane.xlu0 %4634 }
 0x457   : > { %18365 = vpow2.f32 %v4680_v63  ;;  %v4651_v11 = vsub.f32 %v19700_v9, %v4635_v6  ;;  %16603 = vmatpush3.msra.mxu0 %v3339_v4 }
 0x458   : > { %18367 = vpow2.f32 %v4678_v22  ;;  %16612 = vmatprep.subr.mxu0 %v18700_v8 }
 0x459   : > { %v4682_v44 = vmul.f32 1.442695, %v4651_v11 }
 0x45a   : > { %v4689_v27 = vpop.xlane.xlu0 %4688  ;;  %v3347_v39 = vpop.permute.xlu1 %3346 }
 0x45b   : > { %18369 = vpow2.f32 %v4682_v44 }
 0x45c   : > { %v19773_v5 = vpop.eup %18359  ;;  %18371 = vrcp.f32 %v4689_v27 }
 0x45d   : > { %v4714_v47 = vsel %vm4587_vm3, %v19773_v5, 0.0 }
 0x45e   : > { %4715 = vadd.xlane.f32.xlu1 %v4714_v47  ;;  %v3341_v19 = vpop.permute.xlu0 %3340 }
 0x460   : > { %v19777_v38 = vpop.eup %18361 }
 0x461   : > { %v19779_v12 = vpop.eup %18363  ;;  %v4720_v9 = vsel %vm4587_vm3, %v19777_v38, 0.0 }
 0x462   : > { %4721 = vadd.xlane.f32.xlu1 %v4720_v9  ;;  %v4717_v14 = vsel %vm4587_vm3, %v19779_v12, 0.0  ;;  %v3355_v23 = vpop.permute.xlu0 %3354  ;;  %v17379_v9 = vld [vmem:[%s19014_s18 + $0xe4] ss:$16 sps:$4 sm:$0xff]  }
 0x463   : > { %4718 = vadd.xlane.f32.xlu0 %v4717_v14  ;;  %v17377_v14 = vld [vmem:[%s19014_s18 + $0xe0] ss:$16 sps:$4 sm:$0xff]  }
 0x464   : > { %v19785_v20 = vpop.eup %18365 }
 0x465   : > { %v19787_v54 = vpop.eup %18367  ;;  %v4726_v21 = vsel %vm4587_vm3, %v19785_v20, 0.0 }
 0x466   : > { %4727 = vadd.xlane.f32.xlu1 %v4726_v21  ;;  %v4723_v15 = vsel %vm4587_vm3, %v19787_v54, 0.0  ;;  %v17383_v21 = vld [vmem:[%s19014_s18 + $0xa0] ss:$16 sps:$4 sm:$0xff]  }
 0x467   : > { %4724 = vadd.xlane.f32.xlu0 %v4723_v15  ;;  %v17388_v15 = vld [vmem:[%s19014_s18 + $0x84] ss:$16 sps:$4 sm:$0xff]  }
 0x468   : > { %v19793_v17 = vpop.eup %18369 }
 0x469   : > { %v18372_v30 = vpop.eup %18371  ;;  %v4729_v31 = vsel %vm4587_vm3, %v19793_v17, 0.0 }
 0x46a   : > { %v4749_v18 = vmul.f32 %v18372_v30, %v19704_v50  ;;  %v3349_v50 = vpop.permute.xlu1 %3348  ;;  %v17391_v30 = vld [vmem:[%s19014_s18 + $0x64] ss:$16 sps:$4 sm:$0xff]  }
 0x46b   : > { %4730 = vadd.xlane.f32.xlu0 %v4729_v31  ;;  %v17389_v31 = vld [vmem:[%s19014_s18 + $0x60] ss:$16 sps:$4 sm:$0xff]  }
 0x46c   : > { %4765 = vst.msk [vmem:[%s19020_s21 + $0x8] sm:$0xff] %vm4587_vm3, %v4749_v18  ;;  %16600 = vmatmul.mubr.msk.f32.vlgmr.msra.gmra.mxu1 %vm4587_vm3, %v4749_v18  ;;  %v17394_v18 = vld [vmem:[%s19014_s18 + $0x44] ss:$16 sps:$4 sm:$0xff]  }
 0x46d   : > { %16608 = vmatpush3.msra.mxu1 %v3341_v19  ;;  %16609 = vmatprep.mubr.msk.f32.mxu1 %vm18701_vm1, %v18700_v8  ;;  %v17392_v19 = vld [vmem:[%s19014_s18 + $0x40] ss:$16 sps:$4 sm:$0xff]  }
 0x46e   : > { %16617 = vmatprep.subr.mxu1 %v18700_v8  ;;  %v19808_v43 = vpop.permute.xlu1 %3356 }
 0x477   : > { %3364 = vrot.lane.b32.xlu1 %v19601_v61, %s18699_s12 }
 0x481   : > { %3362 = vrot.lane.b32.xlu0 %v19585_v1, %s18699_s12 }
 0x4a6   : > { %v4692_v58 = vpop.xlane.xlu1 %4691 }
 0x4a7   : > { %18373 = vrcp.f32 %v4692_v58  ;;  %v17403_v58 = vld [vmem:[%s19014_s18 + $0x1e4] ss:$16 sps:$4 sm:$0xff]  }
 0x4aa   : > { %v4695_v25 = vpop.xlane.xlu0 %4694 }
 0x4ab   : > { %v4698_v55 = vpop.xlane.xlu1 %4697  ;;  %18375 = vrcp.f32 %v4695_v25  ;;  %v17401_v25 = vld [vmem:[%s19014_s18 + $0x1e0] ss:$16 sps:$4 sm:$0xff]  }
 0x4ac   : > { %18377 = vrcp.f32 %v4698_v55  ;;  %v17406_v55 = vld [vmem:[%s19014_s18 + $0x1c4] ss:$16 sps:$4 sm:$0xff]  }
 0x4ae   : > { %v4701_v26 = vpop.xlane.xlu0 %4700 }
 0x4af   : > { %18379 = vrcp.f32 %v4701_v26  ;;  %v4704_v32 = vpop.xlane.xlu1 %4703  ;;  %v17404_v26 = vld [vmem:[%s19014_s18 + $0x1c0] ss:$16 sps:$4 sm:$0xff]  }
 0x4b0   : > { %18381 = vrcp.f32 %v4704_v32  ;;  %v17409_v32 = vld [vmem:[%s19014_s18 + $0x1a4] ss:$16 sps:$4 sm:$0xff]  }
 0x4b2   : > { %v4707_v33 = vpop.xlane.xlu0 %4706 }
 0x4b3   : > { %18383 = vrcp.f32 %v4707_v33  ;;  %v4710_v35 = vpop.xlane.xlu1 %4709  ;;  %v17407_v33 = vld [vmem:[%s19014_s18 + $0x1a0] ss:$16 sps:$4 sm:$0xff]  }
 0x4b4   : > { %v18374_v36 = vpop.eup %18373  ;;  %18385 = vrcp.f32 %v4710_v35  ;;  %v17412_v35 = vld [vmem:[%s19014_s18 + $0x184] ss:$16 sps:$4 sm:$0xff]  }
 0x4b5   : > { %v4750_v37 = vmul.f32 %v18374_v36, %v19728_v16  ;;  %v17410_v36 = vld [vmem:[%s19014_s18 + $0x180] ss:$16 sps:$4 sm:$0xff]  }
 0x4b6   : > { %v4713_v40 = vpop.xlane.xlu0 %4712 }
 0x4b7   : > { %18387 = vrcp.f32 %v4713_v40  ;;  %4766 = vst.msk [vmem:[%s19020_s21 + $0x10] sm:$0xff] %vm4587_vm3, %v4750_v37  ;;  %16605 = vmatmul.mubr.msk.f32.vlgmr.msra.gmra.mxu0 %vm4587_vm3, %v4750_v37  ;;  %v17415_v37 = vld [vmem:[%s19014_s18 + $0x164] ss:$16 sps:$4 sm:$0xff]   ;;  %v17413_v40 = vld [vmem:[%s19014_s18 + $0x160] ss:$16 sps:$4 sm:$0xff]  }
 0x4b8   : > { %v18376_v42 = vpop.eup %18375  ;;  %16613 = vmatpush3.msra.mxu0 %v19533_v41  ;;  %16614 = vmatprep.mubr.msk.f32.mxu0 %vm18701_vm1, %v18700_v8 }
 0x4b9   : > { %v18378_v45 = vpop.eup %18377  ;;  %16622 = vmatprep.subr.mxu0 %v18700_v8  ;;  %v4751_v46 = vmul.f32 %v18376_v42, %v19732_v51  ;;  %v17418_v42 = vld [vmem:[%s19014_s18 + $0x144] ss:$16 sps:$4 sm:$0xff]  }
 0x4ba   : > { %v4752_v16 = vmul.f32 %v18378_v45, %v19734_v24  ;;  %v17416_v45 = vld [vmem:[%s19014_s18 + $0x140] ss:$16 sps:$4 sm:$0xff]  }
 0x4bb   : > { %4767 = vst.msk [vmem:[%s19020_s21 + $0x18] sm:$0xff] %vm4587_vm3, %v4751_v46  ;;  %16610 = vmatmul.mubr.msk.f32.vlgmr.msra.gmra.mxu1 %vm4587_vm3, %v4751_v46  ;;  %v17421_v46 = vld [vmem:[%s19014_s18 + $0x124] ss:$16 sps:$4 sm:$0xff]  }
 0x4bc   : > { %v18380_v0 = vpop.eup %18379  ;;  %4768 = vst.msk [vmem:[%s19020_s21 + $0x20] sm:$0xff] %vm4587_vm3, %v4752_v16  ;;  %16615 = vmatmul.mubr.msk.f32.vlgmr.msra.gmra.mxu0 %vm4587_vm3, %v4752_v16  ;;  %16618 = vmatpush3.msra.mxu1 %v19545_v48  ;;  %v17419_v16 = vld [vmem:[%s19014_s18 + $0x120] ss:$16 sps:$4 sm:$0xff]  }
 0x4bd   : > { %v18382_v41 = vpop.eup %18381  ;;  %16623 = vmatpush3.msra.mxu0 %v3347_v39  ;;  %16619 = vmatprep.mubr.msk.f32.mxu1 %vm18701_vm1, %v18700_v8  ;;  %v4753_v51 = vmul.f32 %v18380_v0, %v19740_v2  ;;  %v17397_v39 = vld [vmem:[%s19014_s18 + $0x24] ss:$16 sps:$4 sm:$0xff]  }
 0x4be   : > { %16627 = vmatprep.subr.mxu1 %v18700_v8  ;;  %16624 = vmatprep.mubr.msk.f32.mxu0 %vm18701_vm1, %v18700_v8  ;;  %v4754_v24 = vmul.f32 %v18382_v41, %v19742_v53 }
 0x4bf   : > { %4769 = vst.msk [vmem:[%s19020_s21 + $0x28] sm:$0xff] %vm4587_vm3, %v4753_v51  ;;  %16620 = vmatmul.mubr.msk.f32.vlgmr.msra.gmra.mxu1 %vm4587_vm3, %v4753_v51  ;;  %16632 = vmatprep.subr.mxu0 %v18700_v8  ;;  %v17422_v51 = vld [vmem:[%s19014_s18 + $0x100] ss:$16 sps:$4 sm:$0xff]  }
 0x4c0   : > { %v18384_v48 = vpop.eup %18383  ;;  %16628 = vmatpush3.msra.mxu1 %v3349_v50  ;;  %4770 = vst.msk [vmem:[%s19020_s21 + $0x30] sm:$0xff] %vm4587_vm3, %v4754_v24  ;;  %16625 = vmatmul.mubr.msk.f32.vlgmr.msra.gmra.mxu0 %vm4587_vm3, %v4754_v24  ;;  %v17395_v50 = vld [vmem:[%s19014_s18 + $0x20] ss:$16 sps:$4 sm:$0xff]   ;;  %v17424_v24 = vld [vmem:[%s19014_s18 + $0x104] ss:$16 sps:$4 sm:$0xff]  }
 0x4c1   : > { %v18386_v2 = vpop.eup %18385  ;;  %16633 = vmatpush3.msra.mxu0 %v19578_v3  ;;  %16629 = vmatprep.mubr.msk.f32.mxu1 %vm18701_vm1, %v18700_v8  ;;  %v4755_v53 = vmul.f32 %v18384_v48, %v19748_v28 }
 0x4c2   : > { %16637 = vmatprep.subr.mxu1 %v18700_v8  ;;  %16634 = vmatprep.mubr.msk.f32.mxu0 %vm18701_vm1, %v18700_v8  ;;  %v4756_v49 = vmul.f32 %v18386_v2, %v19750_v29 }
 0x4c3   : > { %4771 = vst.msk [vmem:[%s19020_s21 + $0x38] sm:$0xff] %vm4587_vm3, %v4755_v53  ;;  %16630 = vmatmul.mubr.msk.f32.vlgmr.msra.gmra.mxu1 %vm4587_vm3, %v4755_v53  ;;  %16642 = vmatprep.subr.mxu0 %v18700_v8 }
 0x4c4   : > { %v18388_v3 = vpop.eup %18387  ;;  %16638 = vmatpush3.msra.mxu1 %v19592_v7  ;;  %4772 = vst.msk [vmem:[%s19020_s21 + $0x40] sm:$0xff] %vm4587_vm3, %v4756_v49  ;;  %16635 = vmatmul.mubr.msk.f32.vlgmr.msra.gmra.mxu0 %vm4587_vm3, %v4756_v49 }
 0x4c5   : > { %16643 = vmatpush3.msra.mxu0 %v3355_v23  ;;  %16639 = vmatprep.mubr.msk.f32.mxu1 %vm18701_vm1, %v18700_v8  ;;  %v4757_v28 = vmul.f32 %v18388_v3, %v19756_v34  ;;  %v17398_v23 = vld [vmem:[%s19014_s18] ss:$16 sps:$4 sm:$0xff]  }
 0x4c6   : > { %16647 = vmatprep.subr.mxu1 %v18700_v8  ;;  %16644 = vmatprep.mubr.msk.f32.mxu0 %vm18701_vm1, %v18700_v8 }
 0x4c7   : > { %4773 = vst.msk [vmem:[%s19020_s21 + $0x48] sm:$0xff] %vm4587_vm3, %v4757_v28  ;;  %16640 = vmatmul.mubr.msk.f32.vlgmr.msra.gmra.mxu1 %vm4587_vm3, %v4757_v28  ;;  %16652 = vmatprep.subr.mxu0 %v18700_v8  ;;  %v17427_v28 = vld [vmem:[%s19014_s18 + $0xec] ss:$16 sps:$4 sm:$0xff]  }
 0x4c8   : > { %16648 = vmatpush3.msra.mxu1 %v19808_v43  ;;  %16649 = vmatprep.mubr.msk.f32.mxu1 %vm18701_vm1, %v18700_v8  ;;  %v17400_v43 = vld [vmem:[%s19014_s18 + $0x4] ss:$16 sps:$4 sm:$0xff]  }
 0x4c9   : > { %16657 = vmatprep.subr.mxu1 %v18700_v8 }
 0x4e7   : > { %v4716_v7 = vpop.xlane.xlu1 %4715 }
 0x4e8   : > { %18389 = vrcp.f32 %v4716_v7 }
 0x4eb   : > { %v4722_v29 = vpop.xlane.xlu1 %4721 }
 0x4ec   : > { %18391 = vrcp.f32 %v4722_v29  ;;  %v4719_v34 = vpop.xlane.xlu0 %4718  ;;  %v17428_v29 = vld [vmem:[%s19014_s18 + $0x2e0] ss:$16 sps:$4 sm:$0xff]  }
 0x4ed   : > { %18393 = vrcp.f32 %v4719_v34  ;;  %v17430_v34 = vld [vmem:[%s19014_s18 + $0x2e4] ss:$16 sps:$4 sm:$0xff]  }
 0x4ef   : > { %v4728_v10 = vpop.xlane.xlu1 %4727 }
 0x4f0   : > { %18395 = vrcp.f32 %v4728_v10  ;;  %v4725_v62 = vpop.xlane.xlu0 %4724 }
 0x4f1   : > { %18397 = vrcp.f32 %v4725_v62 }
 0x4f3   : > { %v3365_v44 = vpop.permute.xlu1 %3364 }
 0x4f4   : > { %v4731_v52 = vpop.xlane.xlu0 %4730 }
 0x4f5   : > { %v18390_v13 = vpop.eup %18389  ;;  %18399 = vrcp.f32 %v4731_v52  ;;  %v17436_v52 = vld [vmem:[%s19014_s18 + $0x2c4] ss:$16 sps:$4 sm:$0xff]  }
 0x4f6   : > { %v4758_v56 = vmul.f32 %v18390_v13, %v19773_v5 }
 0x4f8   : > { %4774 = vst.msk [vmem:[%s19020_s21 + $0x50] sm:$0xff] %vm4587_vm3, %v4758_v56  ;;  %16645 = vmatmul.mubr.msk.f32.vlgmr.msra.gmra.mxu0 %vm4587_vm3, %v4758_v56  ;;  %v3363_v22 = vpop.permute.xlu0 %3362  ;;  %v17434_v56 = vld [vmem:[%s19014_s18 + $0x2c0] ss:$16 sps:$4 sm:$0xff]  }
 0x4f9   : > { %v18392_v57 = vpop.eup %18391  ;;  %16653 = vmatpush3.msra.mxu0 %v19585_v1  ;;  %16654 = vmatprep.mubr.msk.f32.mxu0 %vm18701_vm1, %v18700_v8 }
 0x4fa   : > { %v18394_v59 = vpop.eup %18393  ;;  %16662 = vmatprep.subr.mxu0 %v18700_v8  ;;  %v4760_v60 = vmul.f32 %v18392_v57, %v19777_v38 }
 0x4fb   : > { %v4759_v63 = vmul.f32 %v18394_v59, %v19779_v12 }
 0x4fc   : > { %4776 = vst.msk [vmem:[%s19020_s21 + $0x60] sm:$0xff] %vm4587_vm3, %v4760_v60  ;;  %16655 = vmatmul.mubr.msk.f32.vlgmr.msra.gmra.mxu0 %vm4587_vm3, %v4760_v60 }
 0x4fd   : > { %v18396_v4 = vpop.eup %18395  ;;  %4775 = vst.msk [vmem:[%s19020_s21 + $0x58] sm:$0xff] %vm4587_vm3, %v4759_v63  ;;  %16650 = vmatmul.mubr.msk.f32.vlgmr.msra.gmra.mxu1 %vm4587_vm3, %v4759_v63  ;;  %16663 = vmatpush3.msra.mxu0 %v3363_v22  ;;  %v17442_v22 = vld [vmem:[%s19014_s18 + $0x2a4] ss:$16 sps:$4 sm:$0xff]  }
 0x4fe   : > { %v18398_v1 = vpop.eup %18397  ;;  %16658 = vmatpush3.msra.mxu1 %v19601_v61  ;;  %16659 = vmatprep.mubr.msk.f32.mxu1 %vm18701_vm1, %v18700_v8  ;;  %v4762_v6 = vmul.f32 %v18396_v4, %v19785_v20  ;;  %v17380_v20 = vld [vmem:[%s19014_s18 + $0xc0] ss:$16 sps:$4 sm:$0xff]  }
 0x4ff   : > { %16664 = vmatprep.mubr.msk.f32.mxu0 %vm18701_vm1, %v18700_v8  ;;  %16667 = vmatprep.subr.mxu1 %v18700_v8  ;;  %v4761_v11 = vmul.f32 %v18398_v1, %v19787_v54  ;;  %v17385_v54 = vld [vmem:[%s19014_s18 + $0xa4] ss:$16 sps:$4 sm:$0xff]   ;;  %v17440_v1 = vld [vmem:[%s19014_s18 + $0x2a0] ss:$16 sps:$4 sm:$0xff]  }
 0x500   : > { %4778 = vst.msk [vmem:[%s19020_s21 + $0x70] sm:$0xff] %vm4587_vm3, %v4762_v6  ;;  %16665 = vmatmul.mubr.msk.f32.vlgmr.msra.gmra.mxu0 %vm4587_vm3, %v4762_v6  ;;  %6760 = vmatprep.subr.bf16.mxu0 %v17379_v9  ;;  %v17458_v9 = vld [vmem:[%s19014_s18 + $0x240] ss:$16 sps:$4 sm:$0xff]  }
 0x501   : > { %4777 = vst.msk [vmem:[%s19020_s21 + $0x68] sm:$0xff] %vm4587_vm3, %v4761_v11  ;;  %16660 = vmatmul.mubr.msk.f32.vlgmr.msra.gmra.mxu1 %vm4587_vm3, %v4761_v11  ;;  %6761 = vmatpush1.bf16.msra.mxu0 %v17377_v14  ;;  %v17466_v14 = vld [vmem:[%s19014_s18 + $0x224] ss:$16 sps:$4 sm:$0xff]  }
 0x502   : > { %v18400_v61 = vpop.eup %18399  ;;  %16668 = vmatpush3.msra.mxu1 %v3365_v44  ;;  %16669 = vmatprep.mubr.msk.f32.mxu1 %vm18701_vm1, %v18700_v8  ;;  %v17382_v8 = vld [vmem:[%s19014_s18 + $0xc4] ss:$16 sps:$4 sm:$0xff]  }
 0x503   : > { %v4763_v27 = vmul.f32 %v18400_v61, %v19793_v17  ;;  %6762 = vmatprep.subr.bf16.mxu0 %v17382_v8  ;;  %v17386_v17 = vld [vmem:[%s19014_s18 + $0x80] ss:$16 sps:$4 sm:$0xff]   ;;  %6803 = vmatprep.subr.bf16.mxu1 %v17430_v34  ;;  %v17448_v44 = vld [vmem:[%s19014_s18 + $0x284] ss:$16 sps:$4 sm:$0xff]  }
 0x504   : > { %v17446_v61 = vld [vmem:[%s19014_s18 + $0x280] ss:$16 sps:$4 sm:$0xff]  }
 0x505   : > { %4779 = vst.msk [vmem:[%s19020_s21 + $0x78] sm:$0xff] %vm4587_vm3, %v4763_v27  ;;  %16670 = vmatmul.mubr.msk.f32.vlgmr.msra.gmra.mxu1 %vm4587_vm3, %v4763_v27  ;;  %6763 = vmatpush1.bf16.msra.mxu0 %v17380_v20  ;;  %v17454_v27 = vld [vmem:[%s19014_s18 + $0x264] ss:$16 sps:$4 sm:$0xff]   ;;  %v17464_v8 = vld [vmem:[%s19014_s18 + $0x220] ss:$16 sps:$4 sm:$0xff]  }
 0x506   : > { %v19907_v5 = vpop.f32.mrf.mxu0  ;;  %6764 = vmatprep.subr.bf16.mxu0 %v17385_v54  ;;  %6804 = vmatpush1.bf16.msra.mxu1 %v17428_v29  ;;  %v17472_v20 = vld [vmem:[%s19014_s18 + $0x204] ss:$16 sps:$4 sm:$0xff]   ;;  %v17470_v54 = vld [vmem:[%s19014_s18 + $0x200] ss:$16 sps:$4 sm:$0xff]  }
 0x507   : > { %6805 = vmatprep.subr.bf16.mxu1 %v17436_v52 }
 0x508   : > { %v16596_v47 = vpop.f32.mrf.mxu0 }
 0x509   : > { %6765 = vmatpush1.bf16.msra.mxu0 %v17383_v21  ;;  %v17452_v47 = vld [vmem:[%s19014_s18 + $0x260] ss:$16 sps:$4 sm:$0xff]   ;;  %v17478_v21 = vld [vmem:[%s19014_s18 + $0x3e4] ss:$16 sps:$4 sm:$0xff]  }
 0x50a   : > { %6766 = vmatprep.subr.bf16.mxu0 %v17388_v15  ;;  %6806 = vmatpush1.bf16.msra.mxu1 %v17434_v56  ;;  %v17476_v15 = vld [vmem:[%s19014_s18 + $0x3e0] ss:$16 sps:$4 sm:$0xff]  }
 0x50b   : > { %6807 = vmatprep.subr.bf16.mxu1 %v17442_v22  ;;  %v17433_v22 = vld [vmem:[%s19014_s18 + $0xcc] ss:$16 sps:$4 sm:$0xff]  }
 0x50d   : > { %6767 = vmatpush1.bf16.msra.mxu0 %v17386_v17  ;;  %v17484_v17 = vld [vmem:[%s19014_s18 + $0x3c4] ss:$16 sps:$4 sm:$0xff]  }
 0x50e   : > { %6768 = vmatprep.subr.bf16.mxu0 %v17391_v30  ;;  %6808 = vmatpush1.bf16.msra.mxu1 %v17440_v1  ;;  %v17482_v30 = vld [vmem:[%s19014_s18 + $0x3c0] ss:$16 sps:$4 sm:$0xff]   ;;  %v17451_v1 = vld [vmem:[%s19014_s18 + $0x6c] ss:$16 sps:$4 sm:$0xff]  }
 0x50f   : > { %6809 = vmatprep.subr.bf16.mxu1 %v17448_v44  ;;  %v17457_v44 = vld [vmem:[%s19014_s18 + $0x4c] ss:$16 sps:$4 sm:$0xff]  }
 0x511   : > { %6769 = vmatpush1.bf16.msra.mxu0 %v17389_v31  ;;  %v17490_v31 = vld [vmem:[%s19014_s18 + $0x3a4] ss:$16 sps:$4 sm:$0xff]  }
 0x512   : > { %6770 = vmatprep.subr.bf16.mxu0 %v17394_v18  ;;  %6810 = vmatpush1.bf16.msra.mxu1 %v17446_v61  ;;  %v17488_v18 = vld [vmem:[%s19014_s18 + $0x3a0] ss:$16 sps:$4 sm:$0xff]   ;;  %v17455_v61 = vld [vmem:[%s19014_s18 + $0x48] ss:$16 sps:$4 sm:$0xff]  }
 0x513   : > { %6811 = vmatprep.subr.bf16.mxu1 %v17454_v27  ;;  %v17463_v27 = vld [vmem:[%s19014_s18 + $0x2c] ss:$16 sps:$4 sm:$0xff]  }
 0x515   : > { %6771 = vmatpush1.bf16.msra.mxu0 %v17392_v19  ;;  %v17496_v19 = vld [vmem:[%s19014_s18 + $0x384] ss:$16 sps:$4 sm:$0xff]  }
 0x516   : > { %6772 = vmatprep.subr.bf16.mxu0 %v17397_v39  ;;  %6812 = vmatpush1.bf16.msra.mxu1 %v17452_v47  ;;  %v17494_v39 = vld [vmem:[%s19014_s18 + $0x380] ss:$16 sps:$4 sm:$0xff]   ;;  %v17461_v47 = vld [vmem:[%s19014_s18 + $0x28] ss:$16 sps:$4 sm:$0xff]  }
 0x519   : > { %6773 = vmatpush1.bf16.msra.mxu0 %v17395_v50  ;;  %v17502_v50 = vld [vmem:[%s19014_s18 + $0x364] ss:$16 sps:$4 sm:$0xff]  }
 0x51a   : > { %6774 = vmatprep.subr.bf16.mxu0 %v17400_v43  ;;  %v17500_v43 = vld [vmem:[%s19014_s18 + $0x360] ss:$16 sps:$4 sm:$0xff]  }
 0x51d   : > { %6775 = vmatpush1.bf16.msra.mxu0 %v17398_v23  ;;  %v17508_v23 = vld [vmem:[%s19014_s18 + $0x344] ss:$16 sps:$4 sm:$0xff]  }
 0x51e   : > { %6776 = vmatprep.subr.bf16.mxu0 %v17403_v58  ;;  %v17506_v58 = vld [vmem:[%s19014_s18 + $0x340] ss:$16 sps:$4 sm:$0xff]  }
 0x521   : > { %6777 = vmatpush2.bf16.msra.mxu0 %v17401_v25  ;;  %v17512_v25 = vld [vmem:[%s19014_s18 + $0x320] ss:$16 sps:$4 sm:$0xff]  }
 0x522   : > { %6778 = vmatprep.subr.bf16.mxu0 %v17406_v55  ;;  %v17514_v55 = vld [vmem:[%s19014_s18 + $0x324] ss:$16 sps:$4 sm:$0xff]  }
 0x525   : > { %6779 = vmatpush2.bf16.msra.mxu0 %v17404_v26 }
 0x526   : > { %6780 = vmatprep.subr.bf16.mxu0 %v17409_v32 }
 0x529   : > { %6781 = vmatpush2.bf16.msra.mxu0 %v17407_v33  ;;  %v17518_v33 = vld [vmem:[%s19014_s18 + $0x300] ss:$16 sps:$4 sm:$0xff]  }
 0x52a   : > { %6782 = vmatprep.subr.bf16.mxu0 %v17412_v35  ;;  %v17520_v35 = vld [vmem:[%s19014_s18 + $0x304] ss:$16 sps:$4 sm:$0xff]  }
 0x52c   : > { %v19909_v38 = vpop.f32.mrf.mxu1 }
 0x52d   : > { %6783 = vmatpush2.bf16.msra.mxu0 %v17410_v36 }
 0x52e   : > { %v16601_v12 = vpop.f32.mrf.mxu1  ;;  %6784 = vmatprep.subr.bf16.mxu0 %v17415_v37 }
 0x52f   : > { %v17460_v12 = vld [vmem:[%s19014_s18 + $0x244] ss:$16 sps:$4 sm:$0xff]  }
 0x530   : > { %6813 = vmatprep.subr.bf16.mxu1 %v17460_v12  ;;  %v17469_v12 = vld [vmem:[%s19014_s18 + $0xc] ss:$16 sps:$4 sm:$0xff]  }
 0x531   : > { %6785 = vmatpush2.bf16.msra.mxu0 %v17413_v40  ;;  %6814 = vmatpush1.bf16.msra.mxu1 %v17458_v9  ;;  %v17467_v9 = vld [vmem:[%s19014_s18 + $0x8] ss:$16 sps:$4 sm:$0xff]  }
 0x532   : > { %6786 = vmatprep.subr.bf16.mxu0 %v17418_v42  ;;  %6815 = vmatprep.subr.bf16.mxu1 %v17466_v14  ;;  %v17475_v14 = vld [vmem:[%s19014_s18 + $0x1ec] ss:$16 sps:$4 sm:$0xff]  }
 0x535   : > { %6787 = vmatpush2.bf16.msra.mxu0 %v17416_v45  ;;  %6816 = vmatpush1.bf16.msra.mxu1 %v17464_v8  ;;  %v17473_v8 = vld [vmem:[%s19014_s18 + $0x1e8] ss:$16 sps:$4 sm:$0xff]  }
 0x536   : > { %6788 = vmatprep.subr.bf16.mxu0 %v17421_v46  ;;  %6817 = vmatprep.subr.bf16.mxu1 %v17472_v20  ;;  %v17523_v46 = vld [vmem:[%s19014_s18 + $0x2ec] ss:$16 sps:$4 sm:$0xff]  }
 0x537   : > { %v17481_v20 = vld [vmem:[%s19014_s18 + $0x1cc] ss:$16 sps:$4 sm:$0xff]  }
 0x539   : > { %6789 = vmatpush2.bf16.msra.mxu0 %v17419_v16  ;;  %6818 = vmatpush1.bf16.msra.mxu1 %v17470_v54  ;;  %v17479_v54 = vld [vmem:[%s19014_s18 + $0x1c8] ss:$16 sps:$4 sm:$0xff]  }
 0x53a   : > { %6790 = vmatprep.subr.bf16.mxu0 %v17424_v24  ;;  %6819 = vmatprep.subr.bf16.mxu1 %v17478_v21  ;;  %v17487_v21 = vld [vmem:[%s19014_s18 + $0x1ac] ss:$16 sps:$4 sm:$0xff]  }
 0x53d   : > { %6791 = vmatpush2.bf16.msra.mxu0 %v17422_v51  ;;  %6820 = vmatpush2.bf16.msra.mxu1 %v17476_v15  ;;  %v17485_v15 = vld [vmem:[%s19014_s18 + $0x1a8] ss:$16 sps:$4 sm:$0xff]  }
 0x53e   : > { %6846 = vmatprep.subr.bf16.mxu0 %v17427_v28  ;;  %6821 = vmatprep.subr.bf16.mxu1 %v17484_v17  ;;  %v17493_v17 = vld [vmem:[%s19014_s18 + $0x18c] ss:$16 sps:$4 sm:$0xff]  }
 0x541   : > { %6822 = vmatpush2.bf16.msra.mxu1 %v17482_v30  ;;  %v17491_v30 = vld [vmem:[%s19014_s18 + $0x188] ss:$16 sps:$4 sm:$0xff]  }
 0x542   : > { %6823 = vmatprep.subr.bf16.mxu1 %v17490_v31  ;;  %v17499_v31 = vld [vmem:[%s19014_s18 + $0x16c] ss:$16 sps:$4 sm:$0xff]  }
 0x545   : > { %6824 = vmatpush2.bf16.msra.mxu1 %v17488_v18  ;;  %v17497_v18 = vld [vmem:[%s19014_s18 + $0x168] ss:$16 sps:$4 sm:$0xff]  }
 0x546   : > { %6825 = vmatprep.subr.bf16.mxu1 %v17496_v19  ;;  %v17505_v19 = vld [vmem:[%s19014_s18 + $0x14c] ss:$16 sps:$4 sm:$0xff]  }
 0x549   : > { %6826 = vmatpush2.bf16.msra.mxu1 %v17494_v39  ;;  %v17503_v39 = vld [vmem:[%s19014_s18 + $0x148] ss:$16 sps:$4 sm:$0xff]  }
 0x54a   : > { %6827 = vmatprep.subr.bf16.mxu1 %v17502_v50  ;;  %v17511_v50 = vld [vmem:[%s19014_s18 + $0x12c] ss:$16 sps:$4 sm:$0xff]  }
 0x54d   : > { %6828 = vmatpush2.bf16.msra.mxu1 %v17500_v43  ;;  %v17509_v43 = vld [vmem:[%s19014_s18 + $0x128] ss:$16 sps:$4 sm:$0xff]  }
 0x54e   : > { %6829 = vmatprep.subr.bf16.mxu1 %v17508_v23 }
 0x551   : > { %6830 = vmatpush2.bf16.msra.mxu1 %v17506_v58  ;;  %v17517_v58 = vld [vmem:[%s19014_s18 + $0x10c] ss:$16 sps:$4 sm:$0xff]  }
 0x552   : > { %6831 = vmatprep.subr.bf16.mxu1 %v17514_v55 }
 0x555   : > { %6832 = vmatpush2.bf16.msra.mxu1 %v17512_v25 }
 0x556   : > { %6833 = vmatprep.subr.bf16.mxu1 %v17520_v35 }
 0x559   : > { %6834 = vmatpush2.bf16.msra.mxu1 %v17518_v33 }
 0x55a   : > { %6889 = vmatprep.subr.bf16.mxu1 %v17523_v46 }
 0x577   : > { %v4995_v0 = vpop.f32.mrf.mxu0 }
 0x579   : > { %v16606_v41 = vpop.f32.mrf.mxu0 }
 0x57b   : > { %v5068_v48 = vpop.f32.mrf.mxu1 }
 0x57c   : > { %v16781_v2 = vpack.i.bf16 %v5068_v48, %v4995_v0  ;;  %v19943_v53 = vpop.f32.mrf.mxu0 }
 0x57d   : > { %v16611_v49 = vpop.f32.mrf.mxu1 }
 0x57e   : > { %v16616_v3 = vpop.f32.mrf.mxu0  ;;  %16782 = vrot.lane.b32.xlu1 %v16781_v2, %s18699_s12 }
 0x57f   : > { %v19947_v7 = vpop.f32.mrf.mxu1 }
 0x580   : > { %v5287_v10 = vpop.f32.mrf.mxu0 }
 0x581   : > { %v16621_v62 = vpop.f32.mrf.mxu1 }
 0x582   : > { %v16626_v13 = vpop.f32.mrf.mxu0 }
 0x583   : > { %v5360_v57 = vpop.f32.mrf.mxu1 }
 0x584   : > { %v16786_v59 = vpack.i.bf16 %v5360_v57, %v5287_v10  ;;  %v19953_v60 = vpop.f32.mrf.mxu0 }
 0x585   : > { %v16631_v63 = vpop.f32.mrf.mxu1 }
 0x586   : > { %v16636_v4 = vpop.f32.mrf.mxu0  ;;  %16787 = vrot.lane.b32.xlu0 %v16786_v59, %s18699_s12  ;;  %v17425_v59 = vld [vmem:[%s19014_s18 + $0xe8] ss:$16 sps:$4 sm:$0xff]  }
 0x587   : > { %v19958_v6 = vpop.f32.mrf.mxu1  ;;  %v17443_v4 = vld [vmem:[%s19014_s18 + $0x88] ss:$16 sps:$4 sm:$0xff]  }
 0x589   : > { %v16641_v11 = vpop.f32.mrf.mxu1 }
 0x58a   : > { %v17449_v11 = vld [vmem:[%s19014_s18 + $0x68] ss:$16 sps:$4 sm:$0xff]  }
 0x5b8   : > { %v5579_v26 = vpop.f32.mrf.mxu0 }
 0x5ba   : > { %v16646_v32 = vpop.f32.mrf.mxu0 }
 0x5bc   : > { %v19986_v36 = vpop.f32.mrf.mxu0 }
 0x5bd   : > { %v5652_v37 = vpop.f32.mrf.mxu1 }
 0x5be   : > { %v16796_v40 = vpack.i.bf16 %v5652_v37, %v5579_v26  ;;  %v16656_v42 = vpop.f32.mrf.mxu0  ;;  %v17515_v26 = vld [vmem:[%s19014_s18 + $0x108] ss:$16 sps:$4 sm:$0xff]  }
 0x5bf   : > { %v16651_v45 = vpop.f32.mrf.mxu1 }
 0x5c0   : > { %16797 = vrot.lane.b32.xlu1 %v16796_v40, %s18699_s12  ;;  %v5871_v16 = vpop.f32.mrf.mxu0 }
 0x5c1   : > { %v19990_v0 = vpop.f32.mrf.mxu1 }
 0x5c2   : > { %v16666_v41 = vpop.f32.mrf.mxu0 }
 0x5c3   : > { %v16661_v51 = vpop.f32.mrf.mxu1 }
 0x5c4   : > { %v17532_v51 = vld [vmem:[%s19014_s18 + $0x28c] ss:$16 sps:$4 sm:$0xff]  }
 0x5c5   : > { %v5944_v24 = vpop.f32.mrf.mxu1 }
 0x5c6   : > { %v16791_v48 = vpack.i.bf16 %v5944_v24, %v5871_v16  ;;  %v17521_v16 = vld [vmem:[%s19014_s18 + $0x2e8] ss:$16 sps:$4 sm:$0xff]  }
 0x5c7   : > { %v16671_v2 = vpop.f32.mrf.mxu1  ;;  %v17530_v24 = vld [vmem:[%s19014_s18 + $0x288] ss:$16 sps:$4 sm:$0xff]  }
 0x5c8   : > { %16792 = vrot.lane.b32.xlu0 %v16791_v48, %s18699_s12  ;;  %v17535_v48 = vld [vmem:[%s19014_s18 + $0x26c] ss:$16 sps:$4 sm:$0xff]   ;;  %v17533_v2 = vld [vmem:[%s19014_s18 + $0x268] ss:$16 sps:$4 sm:$0xff]  }
 0x5f0   : > { %v16783_v49 = vpop.permute.xlu1 %16782 }
 0x5f1   : > { %v16785_v3 = vunpack.i.h.bf16 %v16783_v49  ;;  %v16784_v28 = vunpack.i.l.bf16 %v16783_v49  ;;  %v17538_v49 = vld [vmem:[%s19014_s18 + $0x24c] ss:$16 sps:$4 sm:$0xff]  }
 0x5f3   : > { %v5981_v62 = vsel %vm3368_vm0, %v19909_v38, %v16785_v3  ;;  %v5980_v52 = vsel %vm3368_vm0, %v19907_v5, %v16784_v28  ;;  %v17431_v5 = vld [vmem:[%s19014_s18 + $0xc8] ss:$16 sps:$4 sm:$0xff]   ;;  %v17439_v38 = vld [vmem:[%s19014_s18 + $0xac] ss:$16 sps:$4 sm:$0xff]  }
 0x5f4   : > { %v20002_v63 = vpack.c.bf16 %v5981_v62, %v5980_v52  ;;  %v17536_v3 = vld [vmem:[%s19014_s18 + $0x248] ss:$16 sps:$4 sm:$0xff]   ;;  %v17541_v28 = vld [vmem:[%s19014_s18 + $0x22c] ss:$16 sps:$4 sm:$0xff]  }
 0x5f5   : > { %v17547_v62 = vld [vmem:[%s19014_s18 + $0x3ec] ss:$16 sps:$4 sm:$0xff]   ;;  %v17545_v52 = vld [vmem:[%s19014_s18 + $0x3e8] ss:$16 sps:$4 sm:$0xff]  }
 0x5f8   : > { %v16788_v29 = vpop.permute.xlu0 %16787 }
 0x5f9   : > { %v16790_v34 = vunpack.i.h.bf16 %v16788_v29  ;;  %v16789_v10 = vunpack.i.l.bf16 %v16788_v29  ;;  %v17539_v29 = vld [vmem:[%s19014_s18 + $0x228] ss:$16 sps:$4 sm:$0xff]  }
 0x5fb   : > { %v5982_v13 = vsel %vm3368_vm0, %v19943_v53, %v16789_v10  ;;  %v5983_v56 = vsel %vm3368_vm0, %v19947_v7, %v16790_v34  ;;  %v17437_v53 = vld [vmem:[%s19014_s18 + $0xa8] ss:$16 sps:$4 sm:$0xff]   ;;  %v17445_v7 = vld [vmem:[%s19014_s18 + $0x8c] ss:$16 sps:$4 sm:$0xff]  }
 0x5fc   : > { %v5989_v57 = vpack.c.bf16 %v5983_v56, %v5982_v13  ;;  %v17544_v34 = vld [vmem:[%s19014_s18 + $0x20c] ss:$16 sps:$4 sm:$0xff]   ;;  %v17542_v10 = vld [vmem:[%s19014_s18 + $0x208] ss:$16 sps:$4 sm:$0xff]  }
 0x5fd   : > { %v17550_v13 = vld [vmem:[%s19014_s18 + $0x3cc] ss:$16 sps:$4 sm:$0xff]   ;;  %v17548_v56 = vld [vmem:[%s19014_s18 + $0x3c8] ss:$16 sps:$4 sm:$0xff]  }
 0x5fe   : > { %6792 = vmatprep.mubr.bf16.mxu0 %v5989_v57 }
 0x5ff   : > { %6793 = vmatmul.mubr.bf16.vlgmr.msra.gmra.mxu0 %v20002_v63 }
 0x600   : > { %6847 = vmatpush1.bf16.msra.mxu0 %v17425_v59  ;;  %6878 = vmatprep.mubr.bf16.mxu0 %v5989_v57  ;;  %v17553_v57 = vld [vmem:[%s19014_s18 + $0x3ac] ss:$16 sps:$4 sm:$0xff]   ;;  %v17551_v59 = vld [vmem:[%s19014_s18 + $0x3a8] ss:$16 sps:$4 sm:$0xff]  }
 0x601   : > { %6848 = vmatprep.subr.bf16.mxu0 %v17433_v22  ;;  %v17554_v22 = vld [vmem:[%s19014_s18 + $0x388] ss:$16 sps:$4 sm:$0xff]  }
 0x604   : > { %6849 = vmatpush1.bf16.msra.mxu0 %v17431_v5  ;;  %v17559_v5 = vld [vmem:[%s19014_s18 + $0x36c] ss:$16 sps:$4 sm:$0xff]  }
 0x605   : > { %6850 = vmatprep.subr.bf16.mxu0 %v17439_v38  ;;  %v17557_v38 = vld [vmem:[%s19014_s18 + $0x368] ss:$16 sps:$4 sm:$0xff]  }
 0x608   : > { %6851 = vmatpush1.bf16.msra.mxu0 %v17437_v53  ;;  %v17562_v53 = vld [vmem:[%s19014_s18 + $0x34c] ss:$16 sps:$4 sm:$0xff]  }
 0x609   : > { %6852 = vmatprep.subr.bf16.mxu0 %v17445_v7  ;;  %v17560_v7 = vld [vmem:[%s19014_s18 + $0x348] ss:$16 sps:$4 sm:$0xff]  }
 0x60c   : > { %6853 = vmatpush1.bf16.msra.mxu0 %v17443_v4  ;;  %v17565_v4 = vld [vmem:[%s19014_s18 + $0x32c] ss:$16 sps:$4 sm:$0xff]  }
 0x60d   : > { %6854 = vmatprep.subr.bf16.mxu0 %v17451_v1  ;;  %v17563_v1 = vld [vmem:[%s19014_s18 + $0x328] ss:$16 sps:$4 sm:$0xff]  }
 0x610   : > { %6855 = vmatpush1.bf16.msra.mxu0 %v17449_v11  ;;  %v17568_v11 = vld [vmem:[%s19014_s18 + $0x30c] ss:$16 sps:$4 sm:$0xff]  }
 0x611   : > { %6856 = vmatprep.subr.bf16.mxu0 %v17457_v44  ;;  %v17566_v44 = vld [vmem:[%s19014_s18 + $0x308] ss:$16 sps:$4 sm:$0xff]  }
 0x614   : > { %6857 = vmatpush1.bf16.msra.mxu0 %v17455_v61 }
 0x615   : > { %6858 = vmatprep.subr.bf16.mxu0 %v17463_v27 }
 0x618   : > { %6859 = vmatpush1.bf16.msra.mxu0 %v17461_v47 }
 0x619   : > { %6860 = vmatprep.subr.bf16.mxu0 %v17469_v12 }
 0x61c   : > { %6861 = vmatpush1.bf16.msra.mxu0 %v17467_v9 }
 0x61d   : > { %6862 = vmatprep.subr.bf16.mxu0 %v17475_v14 }
 0x620   : > { %6863 = vmatpush2.bf16.msra.mxu0 %v17473_v8 }
 0x621   : > { %6864 = vmatprep.subr.bf16.mxu0 %v17481_v20 }
 0x624   : > { %6865 = vmatpush2.bf16.msra.mxu0 %v17479_v54 }
 0x625   : > { %6866 = vmatprep.subr.bf16.mxu0 %v17487_v21  ;;  %v18409_v21 = vld [vmem:[#allocation2] sm:$0xff] }
 0x628   : > { %6867 = vmatpush2.bf16.msra.mxu0 %v17485_v15 }
 0x629   : > { %6868 = vmatprep.subr.bf16.mxu0 %v17493_v17  ;;  %v18410_v17 = vld [vmem:[#allocation2 + $0x30] sm:$0xff] }
 0x62c   : > { %6869 = vmatpush2.bf16.msra.mxu0 %v17491_v30 }
 0x62d   : > { %6870 = vmatprep.subr.bf16.mxu0 %v17499_v31 }
 0x630   : > { %6871 = vmatpush2.bf16.msra.mxu0 %v17497_v18 }
 0x631   : > { %6872 = vmatprep.subr.bf16.mxu0 %v17505_v19 }
 0x632   : > { %v16798_v23 = vpop.permute.xlu1 %16797 }
 0x633   : > { %v16800_v25 = vunpack.i.h.bf16 %v16798_v23  ;;  %v16799_v55 = vunpack.i.l.bf16 %v16798_v23 }
 0x634   : > { %6873 = vmatpush2.bf16.msra.mxu0 %v17503_v39  ;;  %v18411_v39 = vld [vmem:[#allocation2 + $0x20] sm:$0xff] }
 0x635   : > { %6874 = vmatprep.subr.bf16.mxu0 %v17511_v50  ;;  %v5985_v37 = vsel %vm3368_vm0, %v19958_v6, %v16800_v25  ;;  %v5984_v40 = vsel %vm3368_vm0, %v19953_v60, %v16799_v55  ;;  %v17526_v6 = vld [vmem:[%s19014_s18 + $0x2cc] ss:$16 sps:$4 sm:$0xff]   ;;  %v17524_v60 = vld [vmem:[%s19014_s18 + $0x2c8] ss:$16 sps:$4 sm:$0xff]  }
 0x636   : > { %v20044_v41 = vpack.c.bf16 %v5985_v37, %v5984_v40  ;;  %v18413_v25 = vld [vmem:[#allocation2 + $0x8] sm:$0xff] }
 0x638   : > { %6875 = vmatpush2.bf16.msra.mxu0 %v17509_v43  ;;  %v18412_v43 = vld [vmem:[#allocation2 + $0x18] sm:$0xff] }
 0x639   : > { %6876 = vmatprep.subr.bf16.mxu0 %v17517_v58 }
 0x63a   : > { %v16793_v32 = vpop.permute.xlu0 %16792 }
 0x63b   : > { %v16795_v33 = vunpack.i.h.bf16 %v16793_v32  ;;  %v16794_v35 = vunpack.i.l.bf16 %v16793_v32  ;;  %v18414_v32 = vld [vmem:[#allocation2 + $0x10] sm:$0xff] }
 0x63c   : > { %6877 = vmatpush2.bf16.msra.mxu0 %v17515_v26 }
 0x63d   : > { %v5986_v42 = vsel %vm3368_vm0, %v19986_v36, %v16794_v35  ;;  %v5987_v45 = vsel %vm3368_vm0, %v19990_v0, %v16795_v33  ;;  %v17529_v36 = vld [vmem:[%s19014_s18 + $0x2ac] ss:$16 sps:$4 sm:$0xff]   ;;  %v17527_v0 = vld [vmem:[%s19014_s18 + $0x2a8] ss:$16 sps:$4 sm:$0xff]  }
 0x63e   : > { %v5991_v46 = vpack.c.bf16 %v5987_v45, %v5986_v42 }
 0x63f   : > { %6879 = vmatmul.mubr.bf16.vlgmr.msra.gmra.mxu0 %v20002_v63  ;;  %v17556_v63 = vld [vmem:[%s19014_s18 + $0x38c] ss:$16 sps:$4 sm:$0xff]  }
 0x640   : > { %6835 = vmatprep.mubr.bf16.mxu1 %v5991_v46 }
 0x641   : > { %6836 = vmatmul.mubr.bf16.vlgmr.msra.gmra.mxu1 %v20044_v41 }
 0x642   : > { %6890 = vmatpush1.bf16.msra.mxu1 %v17521_v16  ;;  %6921 = vmatprep.mubr.bf16.mxu1 %v5991_v46  ;;  %v18415_v46 = vld [vmem:[#allocation2 + $0x28] sm:$0xff] }
 0x643   : > { %6891 = vmatprep.subr.bf16.mxu1 %v17526_v6 }
 0x646   : > { %6892 = vmatpush1.bf16.msra.mxu1 %v17524_v60 }
 0x647   : > { %6893 = vmatprep.subr.bf16.mxu1 %v17529_v36 }
 0x64a   : > { %6894 = vmatpush1.bf16.msra.mxu1 %v17527_v0  ;;  %v18416_v0 = vld [vmem:[#allocation2 + $0x38] sm:$0xff] }
 0x64b   : > { %6895 = vmatprep.subr.bf16.mxu1 %v17532_v51 }
 0x64e   : > { %6896 = vmatpush1.bf16.msra.mxu1 %v17530_v24 }
 0x64f   : > { %6897 = vmatprep.subr.bf16.mxu1 %v17535_v48 }
 0x652   : > { %6898 = vmatpush1.bf16.msra.mxu1 %v17533_v2 }
 0x653   : > { %6899 = vmatprep.subr.bf16.mxu1 %v17538_v49 }
 0x656   : > { %6900 = vmatpush1.bf16.msra.mxu1 %v17536_v3 }
 0x657   : > { %6901 = vmatprep.subr.bf16.mxu1 %v17541_v28 }
 0x65a   : > { %6902 = vmatpush1.bf16.msra.mxu1 %v17539_v29 }
 0x65b   : > { %6903 = vmatprep.subr.bf16.mxu1 %v17544_v34  ;;  %v7101_v34 = vld [vmem:[%s19016_s16 + $0x380] sm:$0xff] }
 0x65e   : > { %6904 = vmatpush1.bf16.msra.mxu1 %v17542_v10  ;;  %v7109_v10 = vld [vmem:[%s19016_s16 + $0x3c0] sm:$0xff] }
 0x65f   : > { %6905 = vmatprep.subr.bf16.mxu1 %v17547_v62  ;;  %v7357_v62 = vld [vmem:[%s19016_s16 + $0xb80] sm:$0xff] }
 0x662   : > { %6906 = vmatpush2.bf16.msra.mxu1 %v17545_v52  ;;  %v15524_v52 = vcombine.low %v7101_v34, %v7109_v10 }
 0x663   : > { %6907 = vmatprep.subr.bf16.mxu1 %v17550_v13  ;;  %v15525_v13 = vcombine.high %v7101_v34, %v7109_v10  ;;  %v7245_v34 = vld [vmem:[%s19016_s16 + $0x800] sm:$0xff] }
 0x664   : > { %v7253_v10 = vld [vmem:[%s19016_s16 + $0x840] sm:$0xff] }
 0x665   : > { %10061 = vmatprep.subr.bf16.mxu0 %v15525_v13 }
 0x666   : > { %6908 = vmatpush2.bf16.msra.mxu1 %v17548_v56  ;;  %v7365_v56 = vld [vmem:[%s19016_s16 + $0xbc0] sm:$0xff]  ;;  %10062 = vmatpush1.bf16.msra.mxu0 %v15524_v52 }
 0x667   : > { %6909 = vmatprep.subr.bf16.mxu1 %v17553_v57  ;;  %v7085_v57 = vld [vmem:[%s19016_s16 + $0x300] sm:$0xff] }
 0x66a   : > { %6910 = vmatpush2.bf16.msra.mxu1 %v17551_v59  ;;  %v7093_v59 = vld [vmem:[%s19016_s16 + $0x340] sm:$0xff] }
 0x66b   : > { %6911 = vmatprep.subr.bf16.mxu1 %v17556_v63  ;;  %v15780_v63 = vcombine.low %v7357_v62, %v7365_v56 }
 0x66e   : > { %6912 = vmatpush2.bf16.msra.mxu1 %v17554_v22  ;;  %v15781_v22 = vcombine.high %v7357_v62, %v7365_v56  ;;  %v15669_v56 = vcombine.high %v7245_v34, %v7253_v10 }
 0x66f   : > { %6913 = vmatprep.subr.bf16.mxu1 %v17559_v5  ;;  %v15509_v5 = vcombine.high %v7085_v57, %v7093_v59 }
 0x671   : > { %10063 = vmatprep.subr.bf16.mxu0 %v15509_v5 }
 0x672   : > { %6914 = vmatpush2.bf16.msra.mxu1 %v17557_v38  ;;  %v7341_v38 = vld [vmem:[%s19016_s16 + $0xb00] sm:$0xff] }
 0x673   : > { %6915 = vmatprep.subr.bf16.mxu1 %v17562_v53  ;;  %v7349_v53 = vld [vmem:[%s19016_s16 + $0xb40] sm:$0xff] }
 0x676   : > { %6916 = vmatpush2.bf16.msra.mxu1 %v17560_v7  ;;  %v7069_v7 = vld [vmem:[%s19016_s16 + $0x280] sm:$0xff] }
 0x677   : > { %6917 = vmatprep.subr.bf16.mxu1 %v17565_v4  ;;  %v15765_v4 = vcombine.high %v7341_v38, %v7349_v53 }
 0x67a   : > { %6918 = vmatpush2.bf16.msra.mxu1 %v17563_v1  ;;  %v7077_v1 = vld [vmem:[%s19016_s16 + $0x2c0] sm:$0xff] }
 0x67b   : > { %6919 = vmatprep.subr.bf16.mxu1 %v17568_v11  ;;  %v7325_v11 = vld [vmem:[%s19016_s16 + $0xa80] sm:$0xff] }
 0x67e   : > { %6920 = vmatpush2.bf16.msra.mxu1 %v17566_v44  ;;  %v7333_v44 = vld [vmem:[%s19016_s16 + $0xac0] sm:$0xff] }
 0x67f   : > { %10104 = vmatprep.subr.bf16.mxu1 %v15781_v22  ;;  %v7493_v22 = vld [vmem:[%s19016_s16 + $0xfc0] sm:$0xff] }
 0x681   : > { %6922 = vmatmul.mubr.bf16.vlgmr.msra.gmra.mxu1 %v20044_v41 }
 0x682   : > { %10105 = vmatpush1.bf16.msra.mxu1 %v15780_v63  ;;  %v7485_v63 = vld [vmem:[%s19016_s16 + $0xf80] sm:$0xff] }
 0x683   : > { %10106 = vmatprep.subr.bf16.mxu1 %v15765_v4  ;;  %v7213_v4 = vld [vmem:[%s19016_s16 + $0x700] sm:$0xff] }
 0x6bf   : > { %v6794_v61 = vpop.f32.mrf.mxu0 }
 0x6c0   : > { %v6795_v30 = vadd.f32 %v18410_v17, %v6794_v61  ;;  %v15508_v61 = vcombine.low %v7085_v57, %v7093_v59  ;;  %v7229_v57 = vld [vmem:[%s19016_s16 + $0x780] sm:$0xff] }
 0x6c1   : > { %v6796_v27 = vpop.f32.mrf.mxu0  ;;  %v7237_v59 = vld [vmem:[%s19016_s16 + $0x7c0] sm:$0xff] }
 0x6c2   : > { %v6797_v15 = vadd.f32 %v18409_v21, %v6796_v27  ;;  %v15764_v27 = vcombine.low %v7341_v38, %v7349_v53  ;;  %10064 = vmatpush1.bf16.msra.mxu0 %v15508_v61  ;;  %v15748_v21 = vcombine.low %v7325_v11, %v7333_v44  ;;  %v15668_v38 = vcombine.low %v7245_v34, %v7253_v10 }
 0x6c3   : > { %v6798_v47 = vpop.f32.mrf.mxu0  ;;  %v15653_v53 = vcombine.high %v7229_v57, %v7237_v59  ;;  %v15652_v61 = vcombine.low %v7229_v57, %v7237_v59  ;;  %v7429_v59 = vld [vmem:[%s19016_s16 + $0xdc0] sm:$0xff] }
 0x6c4   : > { %v6799_v55 = vadd.f32 %v18413_v25, %v6798_v47  ;;  %v15493_v47 = vcombine.high %v7069_v7, %v7077_v1  ;;  %10107 = vmatpush1.bf16.msra.mxu1 %v15764_v27  ;;  %v15908_v27 = vcombine.low %v7485_v63, %v7493_v22 }
 0x6c5   : > { %v6800_v9 = vpop.f32.mrf.mxu0 }
 0x6c6   : > { %v6801_v50 = vadd.f32 %v18411_v39, %v6800_v9  ;;  %v7053_v9 = vld [vmem:[%s19016_s16 + $0x200] sm:$0xff]  ;;  %10065 = vmatprep.subr.bf16.mxu0 %v15493_v47 }
 0x6c7   : > { %v7301_v39 = vld [vmem:[%s19016_s16 + $0x9c0] sm:$0xff] }
 0x6ff   : > { %v6880_v14 = vpop.f32.mrf.mxu0 }
 0x700   : > { %v6881_v23 = vadd.f32 %v18412_v43, %v6880_v14  ;;  %v7061_v14 = vld [vmem:[%s19016_s16 + $0x240] sm:$0xff] }
 0x701   : > { %v6837_v12 = vpop.f32.mrf.mxu1  ;;  %v6882_v20 = vpop.f32.mrf.mxu0 }
 0x702   : > { %v20081_v58 = vadd.f32 %v6837_v12, %v6795_v30  ;;  %v6883_v33 = vadd.f32 %v18414_v32, %v6882_v20  ;;  %v15749_v12 = vcombine.high %v7325_v11, %v7333_v44  ;;  %v7317_v20 = vld [vmem:[%s19016_s16 + $0xa40] sm:$0xff] }
 0x703   : > { %v6839_v8 = vpop.f32.mrf.mxu1  ;;  %v6884_v18 = vpop.f32.mrf.mxu0  ;;  %v7037_v30 = vld [vmem:[%s19016_s16 + $0x180] sm:$0xff] }
 0x704   : > { %v20079_v31 = vadd.f32 %v6839_v8, %v6797_v15  ;;  %v6885_v16 = vadd.f32 %v18415_v46, %v6884_v18  ;;  %v7309_v8 = vld [vmem:[%s19016_s16 + $0xa00] sm:$0xff]  ;;  %v15477_v15 = vcombine.high %v7053_v9, %v7061_v14  ;;  %10108 = vmatprep.subr.bf16.mxu1 %v15749_v12 }
 0x705   : > { %v6841_v54 = vpop.f32.mrf.mxu1  ;;  %v6886_v42 = vpop.f32.mrf.mxu0  ;;  %v15733_v17 = vcombine.high %v7309_v8, %v7317_v20  ;;  %v7045_v18 = vld [vmem:[%s19016_s16 + $0x1c0] sm:$0xff]  ;;  %10109 = vmatpush1.bf16.msra.mxu1 %v15748_v21  ;;  %v15732_v43 = vcombine.low %v7309_v8, %v7317_v20 }
 0x706   : > { %v6932_v35 = vadd.f32 %v20079_v31, %v20081_v58  ;;  %v20089_v41 = vadd.f32 %v6841_v54, %v6799_v55  ;;  %v6887_v51 = vadd.f32 %v18416_v0, %v6886_v42  ;;  %v15492_v54 = vcombine.low %v7069_v7, %v7077_v1  ;;  %v7021_v55 = vld [vmem:[%s19016_s16 + $0x100] sm:$0xff] }
 0x707   : > { %v6843_v19 = vpop.f32.mrf.mxu1  ;;  %10110 = vmatprep.subr.bf16.mxu1 %v15733_v17  ;;  %v7277_v32 = vld [vmem:[%s19016_s16 + $0x900] sm:$0xff]  ;;  %v15909_v7 = vcombine.high %v7485_v63, %v7493_v22 }
 0x708   : > { %v20085_v37 = vadd.f32 %v6843_v19, %v6801_v50  ;;  %v7293_v19 = vld [vmem:[%s19016_s16 + $0x980] sm:$0xff]  ;;  %10066 = vmatpush1.bf16.msra.mxu0 %v15492_v54  ;;  %v15476_v50 = vcombine.low %v7053_v9, %v7061_v14 }
 0x709   : > { %10067 = vmatprep.subr.bf16.mxu0 %v15477_v15  ;;  %v15717_v25 = vcombine.high %v7293_v19, %v7301_v39  ;;  %10111 = vmatpush1.bf16.msra.mxu1 %v15732_v43  ;;  %v15716_v42 = vcombine.low %v7293_v19, %v7301_v39  ;;  %v7269_v0 = vld [vmem:[%s19016_s16 + $0x8c0] sm:$0xff] }
 0x70a   : > { %v6937_v24 = vadd.f32 %v20085_v37, %v20089_v41  ;;  %v7221_v1 = vld [vmem:[%s19016_s16 + $0x740] sm:$0xff] }
 0x70b   : > { %10112 = vmatprep.subr.bf16.mxu1 %v15717_v25  ;;  %v7469_v11 = vld [vmem:[%s19016_s16 + $0xf00] sm:$0xff]  ;;  %v15637_v47 = vcombine.high %v7213_v4, %v7221_v1  ;;  %v15636_v9 = vcombine.low %v7213_v4, %v7221_v1 }
 0x70c   : > { %10068 = vmatpush1.bf16.msra.mxu0 %v15476_v50  ;;  %v7477_v44 = vld [vmem:[%s19016_s16 + $0xf40] sm:$0xff] }
 0x70d   : > { %10113 = vmatpush1.bf16.msra.mxu1 %v15716_v42  ;;  %v15893_v12 = vcombine.high %v7469_v11, %v7477_v44  ;;  %v15892_v14 = vcombine.low %v7469_v11, %v7477_v44  ;;  %v7205_v42 = vld [vmem:[%s19016_s16 + $0x6c0] sm:$0xff] }
 0x70e   : > { %v7149_v63 = vld [vmem:[%s19016_s16 + $0x500] sm:$0xff] }
 0x70f   : > { %v7157_v22 = vld [vmem:[%s19016_s16 + $0x540] sm:$0xff] }
 0x710   : > { %v7413_v4 = vld [vmem:[%s19016_s16 + $0xd40] sm:$0xff] }
 0x711   : > { %v7133_v1 = vld [vmem:[%s19016_s16 + $0x480] sm:$0xff] }
 0x712   : > { %v7141_v44 = vld [vmem:[%s19016_s16 + $0x4c0] sm:$0xff] }
 0x741   : > { %v6923_v26 = vpop.f32.mrf.mxu1 }
 0x742   : > { %v20087_v40 = vadd.f32 %v6923_v26, %v6881_v23  ;;  %v15461_v23 = vcombine.high %v7037_v30, %v7045_v18  ;;  %v7029_v26 = vld [vmem:[%s19016_s16 + $0x140] sm:$0xff] }
 0x743   : > { %v6925_v45 = vpop.f32.mrf.mxu1 }
 0x744   : > { %v6933_v6 = vadd.f32 %v6932_v35, %v20087_v40  ;;  %v20092_v60 = vadd.f32 %v6925_v45, %v6883_v33  ;;  %v7285_v33 = vld [vmem:[%s19016_s16 + $0x940] sm:$0xff]  ;;  %v15460_v35 = vcombine.low %v7037_v30, %v7045_v18  ;;  %10069 = vmatprep.subr.bf16.mxu0 %v15461_v23  ;;  %v15445_v45 = vcombine.high %v7021_v55, %v7029_v26 }
 0x745   : > { %v6927_v36 = vpop.f32.mrf.mxu1  ;;  %v15701_v46 = vcombine.high %v7277_v32, %v7285_v33 }
 0x746   : > { %v20096_v48 = vadd.f32 %v6927_v36, %v6885_v16  ;;  %v6934_v2 = vadd.f32 %v6933_v6, %v20092_v60  ;;  %v7005_v16 = vld [vmem:[%s19016_s16 + $0x80] sm:$0xff]  ;;  %10070 = vmatpush1.bf16.msra.mxu0 %v15460_v35 }
 0x747   : > { %v6929_v49 = vpop.f32.mrf.mxu1  ;;  %v7013_v6 = vld [vmem:[%s19016_s16 + $0xc0] sm:$0xff]  ;;  %10071 = vmatprep.subr.bf16.mxu0 %v15445_v45  ;;  %10114 = vmatprep.subr.bf16.mxu1 %v15701_v46 }
 0x748   : > { %v6938_v3 = vadd.f32 %v6937_v24, %v20096_v48  ;;  %v20100_v28 = vadd.f32 %v6929_v49, %v6887_v51  ;;  %6935 = vadd.xlane.f32.xlu0 %v6934_v2  ;;  %v7261_v36 = vld [vmem:[%s19016_s16 + $0x880] sm:$0xff]  ;;  %v15444_v51 = vcombine.low %v7021_v55, %v7029_v26  ;;  %v15700_v24 = vcombine.low %v7277_v32, %v7285_v33 }
 0x749   : > { %v15429_v2 = vcombine.high %v7005_v16, %v7013_v6  ;;  %v15685_v49 = vcombine.high %v7261_v36, %v7269_v0  ;;  %v15428_v62 = vcombine.low %v7005_v16, %v7013_v6  ;;  %v15684_v52 = vcombine.low %v7261_v36, %v7269_v0  ;;  %v7197_v35 = vld [vmem:[%s19016_s16 + $0x680] sm:$0xff] }
 0x74a   : > { %v6939_v29 = vadd.f32 %v6938_v3, %v20100_v28  ;;  %v6989_v3 = vld [vmem:[%s19016_s16] sm:$0xff]  ;;  %10072 = vmatpush1.bf16.msra.mxu0 %v15444_v51  ;;  %10115 = vmatpush1.bf16.msra.mxu1 %v15700_v24  ;;  %v15621_v46 = vcombine.high %v7197_v35, %v7205_v42  ;;  %v15620_v6 = vcombine.low %v7197_v35, %v7205_v42 }
 0x74b   : > { %10073 = vmatprep.subr.bf16.mxu0 %v15429_v2  ;;  %10116 = vmatprep.subr.bf16.mxu1 %v15685_v49  ;;  %v7453_v45 = vld [vmem:[%s19016_s16 + $0xe80] sm:$0xff] }
 0x74c   : > { %6940 = vadd.xlane.f32.xlu1 %v6939_v29  ;;  %v6997_v29 = vld [vmem:[%s19016_s16 + $0x40] sm:$0xff] }
 0x74d   : > { %v15413_v13 = vcombine.high %v6989_v3, %v6997_v29  ;;  %v15412_v5 = vcombine.low %v6989_v3, %v6997_v29  ;;  %v7461_v16 = vld [vmem:[%s19016_s16 + $0xec0] sm:$0xff] }
 0x74e   : > { %10074 = vmatpush1.bf16.msra.mxu0 %v15428_v62  ;;  %10117 = vmatpush1.bf16.msra.mxu1 %v15684_v52  ;;  %v15876_v36 = vcombine.low %v7453_v45, %v7461_v16  ;;  %v15877_v0 = vcombine.high %v7453_v45, %v7461_v16  ;;  %v7181_v51 = vld [vmem:[%s19016_s16 + $0x600] sm:$0xff] }
 0x74f   : > { %10075 = vmatprep.subr.bf16.mxu0 %v15413_v13  ;;  %10118 = vmatprep.subr.bf16.mxu1 %v15669_v56  ;;  %v7189_v24 = vld [vmem:[%s19016_s16 + $0x640] sm:$0xff] }
 0x750   : > { %v7437_v2 = vld [vmem:[%s19016_s16 + $0xe00] sm:$0xff]  ;;  %v15605_v49 = vcombine.high %v7181_v51, %v7189_v24  ;;  %v15604_v29 = vcombine.low %v7181_v51, %v7189_v24 }
 0x751   : > { %v7445_v3 = vld [vmem:[%s19016_s16 + $0xe40] sm:$0xff] }
 0x752   : > { %10076 = vmatpush1.bf16.msra.mxu0 %v15412_v5  ;;  %10119 = vmatpush1.bf16.msra.mxu1 %v15668_v38  ;;  %v15860_v34 = vcombine.low %v7437_v2, %v7445_v3  ;;  %v15861_v10 = vcombine.high %v7437_v2, %v7445_v3  ;;  %v7165_v62 = vld [vmem:[%s19016_s16 + $0x580] sm:$0xff] }
 0x753   : > { %10077 = vmatprep.subr.bf16.mxu0 %v15653_v53  ;;  %10120 = vmatprep.subr.bf16.mxu1 %v15909_v7  ;;  %v7173_v52 = vld [vmem:[%s19016_s16 + $0x5c0] sm:$0xff]  ;;  %v15573_v53 = vcombine.high %v7149_v63, %v7157_v22 }
 0x754   : > { %v7421_v13 = vld [vmem:[%s19016_s16 + $0xd80] sm:$0xff]  ;;  %v15588_v56 = vcombine.low %v7165_v62, %v7173_v52  ;;  %v15589_v57 = vcombine.high %v7165_v62, %v7173_v52  ;;  %v7070_v62 = vld [vmem:[%s19016_s16 + $0x288] sm:$0xff] }
 0x755   : > { %v15844_v5 = vcombine.low %v7421_v13, %v7429_v59  ;;  %v15845_v38 = vcombine.high %v7421_v13, %v7429_v59  ;;  %v7405_v7 = vld [vmem:[%s19016_s16 + $0xd00] sm:$0xff]  ;;  %v7334_v59 = vld [vmem:[%s19016_s16 + $0xac8] sm:$0xff] }
 0x756   : > { %10078 = vmatpush2.bf16.msra.mxu0 %v15652_v61  ;;  %10121 = vmatpush2.bf16.msra.mxu1 %v15908_v27  ;;  %v15829_v11 = vcombine.high %v7405_v7, %v7413_v4  ;;  %v7389_v61 = vld [vmem:[%s19016_s16 + $0xc80] sm:$0xff] }
 0x757   : > { %10079 = vmatprep.subr.bf16.mxu0 %v15637_v47  ;;  %10122 = vmatprep.subr.bf16.mxu1 %v15893_v12  ;;  %v7397_v27 = vld [vmem:[%s19016_s16 + $0xcc0] sm:$0xff]  ;;  %v15572_v47 = vcombine.low %v7149_v63, %v7157_v22  ;;  %v15828_v12 = vcombine.low %v7405_v7, %v7413_v4  ;;  %v7062_v7 = vld [vmem:[%s19016_s16 + $0x248] sm:$0xff] }
 0x758   : > { %v7310_v4 = vld [vmem:[%s19016_s16 + $0xa08] sm:$0xff] }
 0x75a   : > { %10080 = vmatpush2.bf16.msra.mxu0 %v15636_v9  ;;  %10123 = vmatpush2.bf16.msra.mxu1 %v15892_v14  ;;  %v15557_v9 = vcombine.high %v7133_v1, %v7141_v44  ;;  %v15813_v14 = vcombine.high %v7389_v61, %v7397_v27 }
 0x75b   : > { %10081 = vmatprep.subr.bf16.mxu0 %v15621_v46  ;;  %10124 = vmatprep.subr.bf16.mxu1 %v15877_v0 }
 0x75e   : > { %10082 = vmatpush2.bf16.msra.mxu0 %v15620_v6  ;;  %10125 = vmatpush2.bf16.msra.mxu1 %v15876_v36 }
 0x75f   : > { %10083 = vmatprep.subr.bf16.mxu0 %v15605_v49  ;;  %10126 = vmatprep.subr.bf16.mxu1 %v15861_v10  ;;  %v7342_v10 = vld [vmem:[%s19016_s16 + $0xb08] sm:$0xff] }
 0x762   : > { %10084 = vmatpush2.bf16.msra.mxu0 %v15604_v29  ;;  %10127 = vmatpush2.bf16.msra.mxu1 %v15860_v34  ;;  %v7094_v34 = vld [vmem:[%s19016_s16 + $0x348] sm:$0xff] }
 0x763   : > { %10085 = vmatprep.subr.bf16.mxu0 %v15589_v57  ;;  %10128 = vmatprep.subr.bf16.mxu1 %v15845_v38  ;;  %v7326_v57 = vld [vmem:[%s19016_s16 + $0xa88] sm:$0xff] }
 0x764   : > { %v15751_v38 = vcombine.high %v7326_v57, %v7334_v59 }
 0x766   : > { %10086 = vmatpush2.bf16.msra.mxu0 %v15588_v56  ;;  %10129 = vmatpush2.bf16.msra.mxu1 %v15844_v5  ;;  %v7078_v56 = vld [vmem:[%s19016_s16 + $0x2c8] sm:$0xff] }
 0x767   : > { %10087 = vmatprep.subr.bf16.mxu0 %v15573_v53  ;;  %10130 = vmatprep.subr.bf16.mxu1 %v15829_v11  ;;  %v15495_v5 = vcombine.high %v7070_v62, %v7078_v56  ;;  %v7054_v53 = vld [vmem:[%s19016_s16 + $0x208] sm:$0xff]  ;;  %v15494_v11 = vcombine.low %v7070_v62, %v7078_v56 }
 0x768   : > { %v7486_v62 = vld [vmem:[%s19016_s16 + $0xf88] sm:$0xff] }
 0x76a   : > { %10088 = vmatpush2.bf16.msra.mxu0 %v15572_v47  ;;  %10131 = vmatpush2.bf16.msra.mxu1 %v15828_v12  ;;  %v7038_v47 = vld [vmem:[%s19016_s16 + $0x188] sm:$0xff] }
 0x76b   : > { %10089 = vmatprep.subr.bf16.mxu0 %v15557_v9  ;;  %10132 = vmatprep.subr.bf16.mxu1 %v15813_v14  ;;  %v7046_v12 = vld [vmem:[%s19016_s16 + $0x1c8] sm:$0xff] }
 0x76c   : > { %v7294_v9 = vld [vmem:[%s19016_s16 + $0x988] sm:$0xff] }
 0x76d   : > { %v7302_v14 = vld [vmem:[%s19016_s16 + $0x9c8] sm:$0xff] }
 0x7d1   : > { %v6936_v8 = vpop.xlane.xlu0 %6935 }
 0x7d2   : > { %v6943_v20 = vmul.f32 0.001953125, %v6936_v8  ;;  %v7117_v8 = vld [vmem:[%s19016_s16 + $0x400] sm:$0xff] }
 0x7d4   : > { %v20144_v54 = vsub.f32 %v20081_v58, %v6943_v20  ;;  %v20147_v21 = vsub.f32 %v20079_v31, %v6943_v20  ;;  %v20150_v15 = vsub.f32 %v20087_v40, %v6943_v20  ;;  %v20153_v30 = vsub.f32 %v20092_v60, %v6943_v20  ;;  %v7125_v20 = vld [vmem:[%s19016_s16 + $0x440] sm:$0xff] }
 0x7d5   : > { %v6941_v17 = vpop.xlane.xlu1 %6940 }
 0x7d6   : > { %v6944_v18 = vmul.f32 0.001953125, %v6941_v17  ;;  %v6953_v19 = vmul.f32 %v20144_v54, %v20144_v54  ;;  %v6954_v39 = vmul.f32 %v20147_v21, %v20147_v21  ;;  %v6955_v58 = vmul.f32 %v20150_v15, %v20150_v15  ;;  %v7373_v17 = vld [vmem:[%s19016_s16 + $0xc00] sm:$0xff] }
 0x7d7   : > { %v6956_v43 = vmul.f32 %v20153_v30, %v20153_v30 }
 0x7d8   : > { %v20162_v31 = vsub.f32 %v20089_v41, %v6944_v18  ;;  %v20165_v40 = vsub.f32 %v20085_v37, %v6944_v18  ;;  %v6961_v50 = vadd.f32 %v6954_v39, %v6953_v19  ;;  %v20168_v60 = vsub.f32 %v20096_v48, %v6944_v18 }
 0x7d9   : > { %v20173_v25 = vsub.f32 %v20100_v28, %v6944_v18  ;;  %v7381_v18 = vld [vmem:[%s19016_s16 + $0xc40] sm:$0xff]  ;;  %v15556_v19 = vcombine.low %v7133_v1, %v7141_v44  ;;  %v15812_v39 = vcombine.low %v7389_v61, %v7397_v27  ;;  %v7318_v1 = vld [vmem:[%s19016_s16 + $0xa48] sm:$0xff]  ;;  %v15750_v44 = vcombine.low %v7326_v57, %v7334_v59 }
 0x7da   : > { %v6962_v23 = vadd.f32 %v6961_v50, %v6955_v58  ;;  %v6957_v41 = vmul.f32 %v20162_v31, %v20162_v31  ;;  %v6958_v37 = vmul.f32 %v20165_v40, %v20165_v40  ;;  %v6959_v48 = vmul.f32 %v20168_v60, %v20168_v60 }
 0x7db   : > { %v6960_v32 = vmul.f32 %v20173_v25, %v20173_v25  ;;  %v15541_v58 = vcombine.high %v7117_v8, %v7125_v20  ;;  %v15797_v50 = vcombine.high %v7373_v17, %v7381_v18  ;;  %10090 = vmatpush2.bf16.msra.mxu0 %v15556_v19  ;;  %10133 = vmatpush2.bf16.msra.mxu1 %v15812_v39  ;;  %v7022_v19 = vld [vmem:[%s19016_s16 + $0x108] sm:$0xff] }
 0x7dc   : > { %v6963_v55 = vadd.f32 %v6962_v23, %v6956_v43  ;;  %v6966_v26 = vadd.f32 %v6958_v37, %v6957_v41  ;;  %v15540_v43 = vcombine.low %v7117_v8, %v7125_v20  ;;  %v15796_v23 = vcombine.low %v7373_v17, %v7381_v18  ;;  %v7102_v41 = vld [vmem:[%s19016_s16 + $0x388] sm:$0xff] }
 0x7dd   : > { %10091 = vmatprep.subr.bf16.mxu0 %v15541_v58  ;;  %10134 = vmatprep.subr.bf16.mxu1 %v15797_v50  ;;  %v7110_v37 = vld [vmem:[%s19016_s16 + $0x3c8] sm:$0xff]  ;;  %v15479_v61 = vcombine.high %v7054_v53, %v7062_v7  ;;  %v15735_v27 = vcombine.high %v7310_v4, %v7318_v1  ;;  %v15478_v8 = vcombine.low %v7054_v53, %v7062_v7 }
 0x7de   : > { %6964 = vadd.xlane.f32.xlu0 %v6963_v55  ;;  %v6967_v33 = vadd.f32 %v6966_v26, %v6959_v48  ;;  %v7358_v55 = vld [vmem:[%s19016_s16 + $0xb88] sm:$0xff]  ;;  %v15527_v48 = vcombine.high %v7102_v41, %v7110_v37  ;;  %v15734_v20 = vcombine.low %v7310_v4, %v7318_v1  ;;  %v15463_v17 = vcombine.high %v7038_v47, %v7046_v12 }
 0x7df   : > { %10092 = vmatpush2.bf16.msra.mxu0 %v15540_v43  ;;  %10135 = vmatpush2.bf16.msra.mxu1 %v15796_v23  ;;  %v7366_v26 = vld [vmem:[%s19016_s16 + $0xbc8] sm:$0xff]  ;;  %v15719_v18 = vcombine.high %v7294_v9, %v7302_v14  ;;  %v15462_v43 = vcombine.low %v7038_v47, %v7046_v12  ;;  %v15718_v23 = vcombine.low %v7294_v9, %v7302_v14 }
 0x7e0   : > { %v6968_v28 = vadd.f32 %v6967_v33, %v6960_v32  ;;  %v15526_v32 = vcombine.low %v7102_v41, %v7110_v37  ;;  %v15782_v33 = vcombine.low %v7358_v55, %v7366_v26  ;;  %10147 = vmatprep.subr.bf16.mxu0 %v15527_v48  ;;  %v7030_v39 = vld [vmem:[%s19016_s16 + $0x148] sm:$0xff] }
 0x7e1   : > { %v7278_v58 = vld [vmem:[%s19016_s16 + $0x908] sm:$0xff]  ;;  %v15447_v41 = vcombine.high %v7022_v19, %v7030_v39 }
 0x7e2   : > { %6969 = vadd.xlane.f32.xlu0 %v6968_v28  ;;  %v15783_v28 = vcombine.high %v7358_v55, %v7366_v26  ;;  %v7286_v50 = vld [vmem:[%s19016_s16 + $0x948] sm:$0xff] }
 0x7e3   : > { %v15703_v37 = vcombine.high %v7278_v58, %v7286_v50  ;;  %v7006_v55 = vld [vmem:[%s19016_s16 + $0x88] sm:$0xff] }
 0x7e4   : > { %10190 = vmatprep.subr.bf16.mxu1 %v15783_v28  ;;  %v7014_v48 = vld [vmem:[%s19016_s16 + $0xc8] sm:$0xff]  ;;  %v15702_v28 = vcombine.low %v7278_v58, %v7286_v50 }
 0x7e5   : > { %v7262_v26 = vld [vmem:[%s19016_s16 + $0x888] sm:$0xff] }
 0x867   : > { %v6965_v35 = vpop.xlane.xlu0 %6964 }
 0x868   : > { %v6971_v42 = vmul.f32 0.001953125, %v6965_v35  ;;  %v15431_v35 = vcombine.high %v7006_v55, %v7014_v48 }
 0x86a   : > { %v6973_v45 = vadd.f32 1e-05, %v6971_v42 }
 0x86b   : > { %v6970_v46 = vpop.xlane.xlu0 %6969 }
 0x86c   : > { %v6972_v16 = vmul.f32 0.001953125, %v6970_v46  ;;  %18401 = vrsqrt.f32 %v6973_v45  ;;  %v6990_v45 = vld [vmem:[%s19016_s16 + $0x8] sm:$0xff] }
 0x86d   : > { %v6998_v46 = vld [vmem:[%s19016_s16 + $0x48] sm:$0xff] }
 0x86e   : > { %v6974_v6 = vadd.f32 1e-05, %v6972_v16  ;;  %v7246_v16 = vld [vmem:[%s19016_s16 + $0x808] sm:$0xff] }
 0x870   : > { %18403 = vrsqrt.f32 %v6974_v6  ;;  %v7254_v6 = vld [vmem:[%s19016_s16 + $0x848] sm:$0xff] }
 0x871   : > { %v15670_v56 = vcombine.low %v7246_v16, %v7254_v6 }
 0x879   : > { %v18402_v36 = vpop.eup %18401 }
 0x87a   : > { %v20212_v51 = vmul.f32 %v18402_v36, %v20147_v21  ;;  %v20215_v24 = vmul.f32 %v18402_v36, %v20153_v30  ;;  %v20218_v2 = vmul.f32 %v18402_v36, %v20144_v54  ;;  %v20221_v49 = vmul.f32 %v18402_v36, %v20150_v15  ;;  %v7086_v54 = vld [vmem:[%s19016_s16 + $0x308] sm:$0xff] }
 0x87b   : > { %v7350_v15 = vld [vmem:[%s19016_s16 + $0xb48] sm:$0xff]  ;;  %v15511_v52 = vcombine.high %v7086_v54, %v7094_v34  ;;  %v15510_v63 = vcombine.low %v7086_v54, %v7094_v34  ;;  %v15430_v36 = vcombine.low %v7006_v55, %v7014_v48  ;;  %v15415_v54 = vcombine.high %v6990_v45, %v6998_v46 }
 0x87c   : > { %21528 = vst [vmem:[#allocation24_spill] sm:$0xff] %v20215_v24  ;;  %21529 = vst [vmem:[#allocation25_spill] sm:$0xff] %v20218_v2  ;;  %v15767_v13 = vcombine.high %v7342_v10, %v7350_v15  ;;  %v15766_v22 = vcombine.low %v7342_v10, %v7350_v15  ;;  %v15671_v34 = vcombine.high %v7246_v16, %v7254_v6  ;;  %v7230_v10 = vld [vmem:[%s19016_s16 + $0x788] sm:$0xff] }
 0x87d   : > { %v18404_v0 = vpop.eup %18403  ;;  %21530 = vst [vmem:[#allocation26_spill] sm:$0xff] %v20221_v49  ;;  %v7238_v15 = vld [vmem:[%s19016_s16 + $0x7c8] sm:$0xff] }
 0x87e   : > { %v20224_v3 = vmul.f32 %v18404_v0, %v20165_v40  ;;  %v20227_v29 = vmul.f32 %v18404_v0, %v20173_v25  ;;  %v20230_v21 = vmul.f32 %v18404_v0, %v20162_v31  ;;  %v20233_v30 = vmul.f32 %v18404_v0, %v20168_v60 }
 0x87f   : > { %v15655_v57 = vcombine.high %v7230_v10, %v7238_v15  ;;  %v15654_v53 = vcombine.low %v7230_v10, %v7238_v15 }
 0x880   : > { %21531 = vst [vmem:[#allocation27_spill] sm:$0xff] %v20224_v3  ;;  %21532 = vst [vmem:[#allocation28_spill] sm:$0xff] %v20227_v29  ;;  %v20241_v40 = vpack.c.bf16 %v20224_v3, %v20212_v51  ;;  %v20245_v25 = vpack.c.bf16 %v20227_v29, %v20215_v24  ;;  %v20249_v31 = vpack.c.bf16 %v20230_v21, %v20218_v2 }
 0x881   : > { %21533 = vst [vmem:[#allocation29_spill] sm:$0xff] %v20230_v21  ;;  %21534 = vst [vmem:[#allocation30_spill] sm:$0xff] %v20233_v30  ;;  %v20253_v60 = vpack.c.bf16 %v20233_v30, %v20221_v49 }
 0x882   : > { %10093 = vmatprep.mubr.bf16.mxu0 %v20241_v40  ;;  %10136 = vmatprep.mubr.bf16.mxu1 %v20245_v25 }
 0x883   : > { %10094 = vmatmul.mubr.bf16.vlgmr.msra.gmra.mxu0 %v20249_v31  ;;  %10137 = vmatmul.mubr.bf16.vlgmr.msra.gmra.mxu1 %v20253_v60 }
 0x884   : > { %10148 = vmatpush1.bf16.msra.mxu0 %v15526_v32  ;;  %10191 = vmatpush1.bf16.msra.mxu1 %v15782_v33  ;;  %v7270_v32 = vld [vmem:[%s19016_s16 + $0x8c8] sm:$0xff]  ;;  %v15446_v33 = vcombine.low %v7022_v19, %v7030_v39 }
 0x885   : > { %10179 = vmatprep.mubr.bf16.mxu0 %v20241_v40  ;;  %10222 = vmatprep.mubr.bf16.mxu1 %v20245_v25  ;;  %v15687_v42 = vcombine.high %v7262_v26, %v7270_v32  ;;  %v15686_v0 = vcombine.low %v7262_v26, %v7270_v32 }
 0x886   : > { %10149 = vmatprep.subr.bf16.mxu0 %v15511_v52  ;;  %10192 = vmatprep.subr.bf16.mxu1 %v15767_v13  ;;  %v7494_v52 = vld [vmem:[%s19016_s16 + $0xfc8] sm:$0xff]  ;;  %v15414_v13 = vcombine.low %v6990_v45, %v6998_v46 }
 0x887   : > { %v15911_v59 = vcombine.high %v7486_v62, %v7494_v52  ;;  %v15910_v7 = vcombine.low %v7486_v62, %v7494_v52 }
 0x888   : > { %10150 = vmatpush1.bf16.msra.mxu0 %v15510_v63  ;;  %10193 = vmatpush1.bf16.msra.mxu1 %v15766_v22  ;;  %v7214_v63 = vld [vmem:[%s19016_s16 + $0x708] sm:$0xff] }
 0x889   : > { %10151 = vmatprep.subr.bf16.mxu0 %v15495_v5  ;;  %10194 = vmatprep.subr.bf16.mxu1 %v15751_v38  ;;  %v7222_v22 = vld [vmem:[%s19016_s16 + $0x748] sm:$0xff] }
 0x88a   : > { %v7470_v5 = vld [vmem:[%s19016_s16 + $0xf08] sm:$0xff]  ;;  %v15639_v4 = vcombine.high %v7214_v63, %v7222_v22  ;;  %v15638_v47 = vcombine.low %v7214_v63, %v7222_v22 }
 0x88b   : > { %v7478_v38 = vld [vmem:[%s19016_s16 + $0xf48] sm:$0xff] }
 0x88c   : > { %10152 = vmatpush1.bf16.msra.mxu0 %v15494_v11  ;;  %10195 = vmatpush1.bf16.msra.mxu1 %v15750_v44  ;;  %v15895_v1 = vcombine.high %v7470_v5, %v7478_v38  ;;  %v7198_v11 = vld [vmem:[%s19016_s16 + $0x688] sm:$0xff]  ;;  %v15894_v12 = vcombine.low %v7470_v5, %v7478_v38 }
 0x88d   : > { %10153 = vmatprep.subr.bf16.mxu0 %v15479_v61  ;;  %10196 = vmatprep.subr.bf16.mxu1 %v15735_v27  ;;  %v7206_v44 = vld [vmem:[%s19016_s16 + $0x6c8] sm:$0xff] }
 0x88e   : > { %v7454_v61 = vld [vmem:[%s19016_s16 + $0xe88] sm:$0xff]  ;;  %v15623_v9 = vcombine.high %v7198_v11, %v7206_v44  ;;  %v15622_v19 = vcombine.low %v7198_v11, %v7206_v44 }
 0x88f   : > { %v7462_v27 = vld [vmem:[%s19016_s16 + $0xec8] sm:$0xff] }
 0x890   : > { %10154 = vmatpush1.bf16.msra.mxu0 %v15478_v8  ;;  %10197 = vmatpush1.bf16.msra.mxu1 %v15734_v20  ;;  %v15879_v14 = vcombine.high %v7454_v61, %v7462_v27  ;;  %v7182_v8 = vld [vmem:[%s19016_s16 + $0x608] sm:$0xff]  ;;  %v15878_v39 = vcombine.low %v7454_v61, %v7462_v27 }
 0x891   : > { %10155 = vmatprep.subr.bf16.mxu0 %v15463_v17  ;;  %10198 = vmatprep.subr.bf16.mxu1 %v15719_v18  ;;  %v7190_v20 = vld [vmem:[%s19016_s16 + $0x648] sm:$0xff] }
 0x892   : > { %v7438_v17 = vld [vmem:[%s19016_s16 + $0xe08] sm:$0xff]  ;;  %v15607_v58 = vcombine.high %v7182_v8, %v7190_v20  ;;  %v15606_v55 = vcombine.low %v7182_v8, %v7190_v20 }
 0x893   : > { %v7446_v18 = vld [vmem:[%s19016_s16 + $0xe48] sm:$0xff] }
 0x894   : > { %10156 = vmatpush1.bf16.msra.mxu0 %v15462_v43  ;;  %10199 = vmatpush1.bf16.msra.mxu1 %v15718_v23  ;;  %v15863_v50 = vcombine.high %v7438_v17, %v7446_v18  ;;  %v7166_v43 = vld [vmem:[%s19016_s16 + $0x588] sm:$0xff]  ;;  %v15862_v48 = vcombine.low %v7438_v17, %v7446_v18 }
 0x895   : > { %10157 = vmatprep.subr.bf16.mxu0 %v15447_v41  ;;  %10200 = vmatprep.subr.bf16.mxu1 %v15703_v37  ;;  %v7174_v23 = vld [vmem:[%s19016_s16 + $0x5c8] sm:$0xff] }
 0x896   : > { %v7422_v41 = vld [vmem:[%s19016_s16 + $0xd88] sm:$0xff]  ;;  %v15591_v26 = vcombine.high %v7166_v43, %v7174_v23  ;;  %v15590_v45 = vcombine.low %v7166_v43, %v7174_v23 }
 0x897   : > { %v7430_v37 = vld [vmem:[%s19016_s16 + $0xdc8] sm:$0xff] }
 0x898   : > { %10158 = vmatpush1.bf16.msra.mxu0 %v15446_v33  ;;  %10201 = vmatpush1.bf16.msra.mxu1 %v15702_v28  ;;  %v15847_v32 = vcombine.high %v7422_v41, %v7430_v37  ;;  %v7150_v33 = vld [vmem:[%s19016_s16 + $0x508] sm:$0xff]  ;;  %v15846_v46 = vcombine.low %v7422_v41, %v7430_v37 }
 0x899   : > { %10159 = vmatprep.subr.bf16.mxu0 %v15431_v35  ;;  %10202 = vmatprep.subr.bf16.mxu1 %v15687_v42  ;;  %v7158_v28 = vld [vmem:[%s19016_s16 + $0x548] sm:$0xff] }
 0x89a   : > { %v7406_v35 = vld [vmem:[%s19016_s16 + $0xd08] sm:$0xff]  ;;  %v15575_v16 = vcombine.high %v7150_v33, %v7158_v28  ;;  %v15574_v10 = vcombine.low %v7150_v33, %v7158_v28 }
 0x89b   : > { %v7414_v42 = vld [vmem:[%s19016_s16 + $0xd48] sm:$0xff] }
 0x89c   : > { %10160 = vmatpush1.bf16.msra.mxu0 %v15430_v36  ;;  %10203 = vmatpush1.bf16.msra.mxu1 %v15686_v0  ;;  %v15831_v6 = vcombine.high %v7406_v35, %v7414_v42  ;;  %v7134_v36 = vld [vmem:[%s19016_s16 + $0x488] sm:$0xff]  ;;  %v15830_v15 = vcombine.low %v7406_v35, %v7414_v42 }
 0x89d   : > { %10161 = vmatprep.subr.bf16.mxu0 %v15415_v54  ;;  %10204 = vmatprep.subr.bf16.mxu1 %v15671_v34  ;;  %v7142_v0 = vld [vmem:[%s19016_s16 + $0x4c8] sm:$0xff] }
 0x89e   : > { %v7390_v54 = vld [vmem:[%s19016_s16 + $0xc88] sm:$0xff]  ;;  %v15559_v62 = vcombine.high %v7134_v36, %v7142_v0  ;;  %v15558_v63 = vcombine.low %v7134_v36, %v7142_v0 }
 0x89f   : > { %v7398_v34 = vld [vmem:[%s19016_s16 + $0xcc8] sm:$0xff] }
 0x8a0   : > { %10162 = vmatpush1.bf16.msra.mxu0 %v15414_v13  ;;  %10205 = vmatpush1.bf16.msra.mxu1 %v15670_v56  ;;  %v15815_v52 = vcombine.high %v7390_v54, %v7398_v34  ;;  %v7118_v13 = vld [vmem:[%s19016_s16 + $0x408] sm:$0xff]  ;;  %v15814_v22 = vcombine.low %v7390_v54, %v7398_v34 }
 0x8a1   : > { %10163 = vmatprep.subr.bf16.mxu0 %v15655_v57  ;;  %10206 = vmatprep.subr.bf16.mxu1 %v15911_v59  ;;  %v7126_v56 = vld [vmem:[%s19016_s16 + $0x448] sm:$0xff] }
 0x8a2   : > { %v7374_v57 = vld [vmem:[%s19016_s16 + $0xc08] sm:$0xff]  ;;  %v15543_v5 = vcombine.high %v7118_v13, %v7126_v56  ;;  %v15542_v11 = vcombine.low %v7118_v13, %v7126_v56 }
 0x8a3   : > { %v7382_v59 = vld [vmem:[%s19016_s16 + $0xc48] sm:$0xff] }
 0x8a4   : > { %10164 = vmatpush2.bf16.msra.mxu0 %v15654_v53  ;;  %10207 = vmatpush2.bf16.msra.mxu1 %v15910_v7  ;;  %v15799_v38 = vcombine.high %v7374_v57, %v7382_v59  ;;  %v7103_v53 = vld [vmem:[%s19016_s16 + $0x390] sm:$0xff]  ;;  %v15798_v44 = vcombine.low %v7374_v57, %v7382_v59 }
 0x8a5   : > { %10165 = vmatprep.subr.bf16.mxu0 %v15639_v4  ;;  %10208 = vmatprep.subr.bf16.mxu1 %v15895_v1  ;;  %v7111_v7 = vld [vmem:[%s19016_s16 + $0x3d0] sm:$0xff] }
 0x8a6   : > { %v7359_v4 = vld [vmem:[%s19016_s16 + $0xb90] sm:$0xff]  ;;  %v15529_v61 = vcombine.high %v7103_v53, %v7111_v7  ;;  %v15528_v8 = vcombine.low %v7103_v53, %v7111_v7 }
 0x8a7   : > { %v7367_v1 = vld [vmem:[%s19016_s16 + $0xbd0] sm:$0xff] }
 0x8a8   : > { %10166 = vmatpush2.bf16.msra.mxu0 %v15638_v47  ;;  %10209 = vmatpush2.bf16.msra.mxu1 %v15894_v12  ;;  %v15785_v27 = vcombine.high %v7359_v4, %v7367_v1  ;;  %v7087_v47 = vld [vmem:[%s19016_s16 + $0x310] sm:$0xff]  ;;  %v15784_v20 = vcombine.low %v7359_v4, %v7367_v1 }
 0x8a9   : > { %10167 = vmatprep.subr.bf16.mxu0 %v15623_v9  ;;  %10210 = vmatprep.subr.bf16.mxu1 %v15879_v14  ;;  %v7095_v12 = vld [vmem:[%s19016_s16 + $0x350] sm:$0xff] }
 0x8aa   : > { %v7343_v9 = vld [vmem:[%s19016_s16 + $0xb10] sm:$0xff]  ;;  %v15513_v17 = vcombine.high %v7087_v47, %v7095_v12  ;;  %v15512_v43 = vcombine.low %v7087_v47, %v7095_v12 }
 0x8ab   : > { %v7351_v14 = vld [vmem:[%s19016_s16 + $0xb50] sm:$0xff] }
 0x8ac   : > { %10168 = vmatpush2.bf16.msra.mxu0 %v15622_v19  ;;  %10211 = vmatpush2.bf16.msra.mxu1 %v15878_v39  ;;  %v15769_v18 = vcombine.high %v7343_v9, %v7351_v14  ;;  %v7071_v19 = vld [vmem:[%s19016_s16 + $0x290] sm:$0xff]  ;;  %v15768_v23 = vcombine.low %v7343_v9, %v7351_v14 }
 0x8ad   : > { %10169 = vmatprep.subr.bf16.mxu0 %v15607_v58  ;;  %10212 = vmatprep.subr.bf16.mxu1 %v15863_v50  ;;  %v7079_v39 = vld [vmem:[%s19016_s16 + $0x2d0] sm:$0xff] }
 0x8ae   : > { %v7327_v58 = vld [vmem:[%s19016_s16 + $0xa90] sm:$0xff]  ;;  %v15497_v41 = vcombine.high %v7071_v19, %v7079_v39  ;;  %v15496_v33 = vcombine.low %v7071_v19, %v7079_v39 }
 0x8af   : > { %v7335_v50 = vld [vmem:[%s19016_s16 + $0xad0] sm:$0xff] }
 0x8b0   : > { %10170 = vmatpush2.bf16.msra.mxu0 %v15606_v55  ;;  %10213 = vmatpush2.bf16.msra.mxu1 %v15862_v48  ;;  %v15753_v37 = vcombine.high %v7327_v58, %v7335_v50  ;;  %v7055_v55 = vld [vmem:[%s19016_s16 + $0x210] sm:$0xff]  ;;  %v15752_v28 = vcombine.low %v7327_v58, %v7335_v50 }
 0x8b1   : > { %10171 = vmatprep.subr.bf16.mxu0 %v15591_v26  ;;  %10214 = vmatprep.subr.bf16.mxu1 %v15847_v32  ;;  %v7063_v48 = vld [vmem:[%s19016_s16 + $0x250] sm:$0xff] }
 0x8b2   : > { %v7311_v26 = vld [vmem:[%s19016_s16 + $0xa10] sm:$0xff]  ;;  %v15481_v35 = vcombine.high %v7055_v55, %v7063_v48  ;;  %v15480_v36 = vcombine.low %v7055_v55, %v7063_v48 }
 0x8b3   : > { %v7319_v32 = vld [vmem:[%s19016_s16 + $0xa50] sm:$0xff] }
 0x8b4   : > { %10172 = vmatpush2.bf16.msra.mxu0 %v15590_v45  ;;  %10215 = vmatpush2.bf16.msra.mxu1 %v15846_v46  ;;  %v15737_v42 = vcombine.high %v7311_v26, %v7319_v32  ;;  %v7039_v45 = vld [vmem:[%s19016_s16 + $0x190] sm:$0xff]  ;;  %v15736_v0 = vcombine.low %v7311_v26, %v7319_v32 }
 0x8b5   : > { %10173 = vmatprep.subr.bf16.mxu0 %v15575_v16  ;;  %10216 = vmatprep.subr.bf16.mxu1 %v15831_v6  ;;  %v7047_v46 = vld [vmem:[%s19016_s16 + $0x1d0] sm:$0xff] }
 0x8b6   : > { %v7295_v16 = vld [vmem:[%s19016_s16 + $0x990] sm:$0xff]  ;;  %v15465_v54 = vcombine.high %v7039_v45, %v7047_v46  ;;  %v15464_v13 = vcombine.low %v7039_v45, %v7047_v46 }
 0x8b7   : > { %v7303_v6 = vld [vmem:[%s19016_s16 + $0x9d0] sm:$0xff] }
 0x8b8   : > { %10174 = vmatpush2.bf16.msra.mxu0 %v15574_v10  ;;  %10217 = vmatpush2.bf16.msra.mxu1 %v15830_v15  ;;  %v15721_v34 = vcombine.high %v7295_v16, %v7303_v6  ;;  %v7023_v10 = vld [vmem:[%s19016_s16 + $0x110] sm:$0xff]  ;;  %v15720_v56 = vcombine.low %v7295_v16, %v7303_v6 }
 0x8b9   : > { %10175 = vmatprep.subr.bf16.mxu0 %v15559_v62  ;;  %10218 = vmatprep.subr.bf16.mxu1 %v15815_v52  ;;  %v7031_v15 = vld [vmem:[%s19016_s16 + $0x150] sm:$0xff] }
 0x8ba   : > { %v7279_v62 = vld [vmem:[%s19016_s16 + $0x910] sm:$0xff]  ;;  %v15449_v57 = vcombine.high %v7023_v10, %v7031_v15  ;;  %v15448_v53 = vcombine.low %v7023_v10, %v7031_v15 }
 0x8bb   : > { %v7287_v52 = vld [vmem:[%s19016_s16 + $0x950] sm:$0xff] }
 0x8bc   : > { %10176 = vmatpush2.bf16.msra.mxu0 %v15558_v63  ;;  %10219 = vmatpush2.bf16.msra.mxu1 %v15814_v22  ;;  %v15705_v59 = vcombine.high %v7279_v62, %v7287_v52  ;;  %v7007_v63 = vld [vmem:[%s19016_s16 + $0x90] sm:$0xff]  ;;  %v15704_v7 = vcombine.low %v7279_v62, %v7287_v52 }
 0x8bd   : > { %10177 = vmatprep.subr.bf16.mxu0 %v15543_v5  ;;  %10220 = vmatprep.subr.bf16.mxu1 %v15799_v38  ;;  %v7015_v22 = vld [vmem:[%s19016_s16 + $0xd0] sm:$0xff] }
 0x8be   : > { %v7263_v5 = vld [vmem:[%s19016_s16 + $0x890] sm:$0xff]  ;;  %v15433_v4 = vcombine.high %v7007_v63, %v7015_v22  ;;  %v15432_v47 = vcombine.low %v7007_v63, %v7015_v22 }
 0x8bf   : > { %v7271_v38 = vld [vmem:[%s19016_s16 + $0x8d0] sm:$0xff] }
 0x8c0   : > { %10178 = vmatpush2.bf16.msra.mxu0 %v15542_v11  ;;  %10221 = vmatpush2.bf16.msra.mxu1 %v15798_v44  ;;  %v15689_v1 = vcombine.high %v7263_v5, %v7271_v38  ;;  %v6991_v11 = vld [vmem:[%s19016_s16 + $0x10] sm:$0xff]  ;;  %v15688_v12 = vcombine.low %v7263_v5, %v7271_v38 }
 0x8c1   : > { %10233 = vmatprep.subr.bf16.mxu0 %v15529_v61  ;;  %10276 = vmatprep.subr.bf16.mxu1 %v15785_v27  ;;  %v6999_v44 = vld [vmem:[%s19016_s16 + $0x50] sm:$0xff] }
 0x8c2   : > { %v7247_v61 = vld [vmem:[%s19016_s16 + $0x810] sm:$0xff]  ;;  %v15417_v9 = vcombine.high %v6991_v11, %v6999_v44  ;;  %v15416_v19 = vcombine.low %v6991_v11, %v6999_v44 }
 0x8c3   : > { %10180 = vmatmul.mubr.bf16.vlgmr.msra.gmra.mxu0 %v20249_v31  ;;  %10223 = vmatmul.mubr.bf16.vlgmr.msra.gmra.mxu1 %v20253_v60  ;;  %v7255_v27 = vld [vmem:[%s19016_s16 + $0x850] sm:$0xff] }
 0x8c4   : > { %10234 = vmatpush1.bf16.msra.mxu0 %v15528_v8  ;;  %10265 = vmatprep.mubr.bf16.mxu0 %v20241_v40  ;;  %v15673_v14 = vcombine.high %v7247_v61, %v7255_v27  ;;  %v7231_v8 = vld [vmem:[%s19016_s16 + $0x790] sm:$0xff]  ;;  %v15672_v39 = vcombine.low %v7247_v61, %v7255_v27 }
 0x8c5   : > { %10277 = vmatpush1.bf16.msra.mxu1 %v15784_v20  ;;  %10308 = vmatprep.mubr.bf16.mxu1 %v20245_v25  ;;  %v7239_v20 = vld [vmem:[%s19016_s16 + $0x7d0] sm:$0xff] }
 0x8c6   : > { %10235 = vmatprep.subr.bf16.mxu0 %v15513_v17  ;;  %10278 = vmatprep.subr.bf16.mxu1 %v15769_v18  ;;  %v7487_v17 = vld [vmem:[%s19016_s16 + $0xf90] sm:$0xff]  ;;  %v15657_v58 = vcombine.high %v7231_v8, %v7239_v20  ;;  %v15656_v55 = vcombine.low %v7231_v8, %v7239_v20 }
 0x8c7   : > { %v7495_v18 = vld [vmem:[%s19016_s16 + $0xfd0] sm:$0xff] }
 0x8c8   : > { %10236 = vmatpush1.bf16.msra.mxu0 %v15512_v43  ;;  %v15913_v50 = vcombine.high %v7487_v17, %v7495_v18  ;;  %v7215_v43 = vld [vmem:[%s19016_s16 + $0x710] sm:$0xff]  ;;  %v15912_v48 = vcombine.low %v7487_v17, %v7495_v18 }
 0x8c9   : > { %10279 = vmatpush1.bf16.msra.mxu1 %v15768_v23  ;;  %10237 = vmatprep.subr.bf16.mxu0 %v15497_v41  ;;  %v7223_v23 = vld [vmem:[%s19016_s16 + $0x750] sm:$0xff] }
 0x8ca   : > { %10280 = vmatprep.subr.bf16.mxu1 %v15753_v37  ;;  %v7471_v41 = vld [vmem:[%s19016_s16 + $0xf10] sm:$0xff]  ;;  %v15641_v26 = vcombine.high %v7215_v43, %v7223_v23  ;;  %v15640_v45 = vcombine.low %v7215_v43, %v7223_v23 }
 0x8cb   : > { %v7479_v37 = vld [vmem:[%s19016_s16 + $0xf50] sm:$0xff] }
 0x8cc   : > { %10238 = vmatpush1.bf16.msra.mxu0 %v15496_v33  ;;  %v15897_v32 = vcombine.high %v7471_v41, %v7479_v37  ;;  %v7199_v33 = vld [vmem:[%s19016_s16 + $0x690] sm:$0xff]  ;;  %v15896_v46 = vcombine.low %v7471_v41, %v7479_v37 }
 0x8cd   : > { %10281 = vmatpush1.bf16.msra.mxu1 %v15752_v28  ;;  %10239 = vmatprep.subr.bf16.mxu0 %v15481_v35  ;;  %v7207_v28 = vld [vmem:[%s19016_s16 + $0x6d0] sm:$0xff] }
 0x8ce   : > { %10282 = vmatprep.subr.bf16.mxu1 %v15737_v42  ;;  %v7455_v35 = vld [vmem:[%s19016_s16 + $0xe90] sm:$0xff]  ;;  %v15625_v16 = vcombine.high %v7199_v33, %v7207_v28  ;;  %v15624_v10 = vcombine.low %v7199_v33, %v7207_v28 }
 0x8cf   : > { %v7463_v42 = vld [vmem:[%s19016_s16 + $0xed0] sm:$0xff] }
 0x8d0   : > { %10240 = vmatpush1.bf16.msra.mxu0 %v15480_v36  ;;  %v15881_v6 = vcombine.high %v7455_v35, %v7463_v42  ;;  %v7183_v36 = vld [vmem:[%s19016_s16 + $0x610] sm:$0xff]  ;;  %v15880_v15 = vcombine.low %v7455_v35, %v7463_v42 }
 0x8d1   : > { %10283 = vmatpush1.bf16.msra.mxu1 %v15736_v0  ;;  %10241 = vmatprep.subr.bf16.mxu0 %v15465_v54  ;;  %v7191_v0 = vld [vmem:[%s19016_s16 + $0x650] sm:$0xff] }
 0x8d2   : > { %10284 = vmatprep.subr.bf16.mxu1 %v15721_v34  ;;  %v7439_v54 = vld [vmem:[%s19016_s16 + $0xe10] sm:$0xff]  ;;  %v15609_v62 = vcombine.high %v7183_v36, %v7191_v0  ;;  %v15608_v63 = vcombine.low %v7183_v36, %v7191_v0  ;;  %v7352_v36 = vld [vmem:[%s19016_s16 + $0xb58] sm:$0xff] }
 0x8d3   : > { %v7447_v34 = vld [vmem:[%s19016_s16 + $0xe50] sm:$0xff] }
 0x8d4   : > { %10242 = vmatpush1.bf16.msra.mxu0 %v15464_v13  ;;  %v15865_v52 = vcombine.high %v7439_v54, %v7447_v34  ;;  %v7167_v13 = vld [vmem:[%s19016_s16 + $0x590] sm:$0xff]  ;;  %v15864_v22 = vcombine.low %v7439_v54, %v7447_v34  ;;  %v7072_v34 = vld [vmem:[%s19016_s16 + $0x298] sm:$0xff] }
 0x8d5   : > { %10285 = vmatpush1.bf16.msra.mxu1 %v15720_v56  ;;  %10243 = vmatprep.subr.bf16.mxu0 %v15449_v57  ;;  %v7175_v56 = vld [vmem:[%s19016_s16 + $0x5d0] sm:$0xff] }
 0x8d6   : > { %10286 = vmatprep.subr.bf16.mxu1 %v15705_v59  ;;  %v7423_v57 = vld [vmem:[%s19016_s16 + $0xd90] sm:$0xff]  ;;  %v15593_v5 = vcombine.high %v7167_v13, %v7175_v56  ;;  %v15592_v11 = vcombine.low %v7167_v13, %v7175_v56 }
 0x8d7   : > { %v7431_v59 = vld [vmem:[%s19016_s16 + $0xdd0] sm:$0xff] }
 0x8d8   : > { %10244 = vmatpush1.bf16.msra.mxu0 %v15448_v53  ;;  %v15849_v38 = vcombine.high %v7423_v57, %v7431_v59  ;;  %v7151_v53 = vld [vmem:[%s19016_s16 + $0x510] sm:$0xff]  ;;  %v15848_v44 = vcombine.low %v7423_v57, %v7431_v59 }
 0x8d9   : > { %10287 = vmatpush1.bf16.msra.mxu1 %v15704_v7  ;;  %10245 = vmatprep.subr.bf16.mxu0 %v15433_v4  ;;  %v7159_v7 = vld [vmem:[%s19016_s16 + $0x550] sm:$0xff] }
 0x8da   : > { %10288 = vmatprep.subr.bf16.mxu1 %v15689_v1  ;;  %v7407_v4 = vld [vmem:[%s19016_s16 + $0xd10] sm:$0xff]  ;;  %v15577_v61 = vcombine.high %v7151_v53, %v7159_v7  ;;  %v15576_v8 = vcombine.low %v7151_v53, %v7159_v7 }
 0x8db   : > { %v7415_v1 = vld [vmem:[%s19016_s16 + $0xd50] sm:$0xff] }
 0x8dc   : > { %10246 = vmatpush1.bf16.msra.mxu0 %v15432_v47  ;;  %v15833_v27 = vcombine.high %v7407_v4, %v7415_v1  ;;  %v7135_v47 = vld [vmem:[%s19016_s16 + $0x490] sm:$0xff]  ;;  %v15832_v20 = vcombine.low %v7407_v4, %v7415_v1 }
 0x8dd   : > { %10289 = vmatpush1.bf16.msra.mxu1 %v15688_v12  ;;  %10247 = vmatprep.subr.bf16.mxu0 %v15417_v9  ;;  %v7143_v12 = vld [vmem:[%s19016_s16 + $0x4d0] sm:$0xff] }
 0x8de   : > { %10290 = vmatprep.subr.bf16.mxu1 %v15673_v14  ;;  %v7391_v9 = vld [vmem:[%s19016_s16 + $0xc90] sm:$0xff]  ;;  %v15561_v17 = vcombine.high %v7135_v47, %v7143_v12  ;;  %v15560_v43 = vcombine.low %v7135_v47, %v7143_v12 }
 0x8df   : > { %v7399_v14 = vld [vmem:[%s19016_s16 + $0xcd0] sm:$0xff] }
 0x8e0   : > { %10248 = vmatpush1.bf16.msra.mxu0 %v15416_v19  ;;  %v15817_v18 = vcombine.high %v7391_v9, %v7399_v14  ;;  %v7119_v19 = vld [vmem:[%s19016_s16 + $0x410] sm:$0xff]  ;;  %v15816_v23 = vcombine.low %v7391_v9, %v7399_v14 }
 0x8e1   : > { %10291 = vmatpush1.bf16.msra.mxu1 %v15672_v39  ;;  %10249 = vmatprep.subr.bf16.mxu0 %v15657_v58  ;;  %v7127_v39 = vld [vmem:[%s19016_s16 + $0x450] sm:$0xff] }
 0x8e2   : > { %10292 = vmatprep.subr.bf16.mxu1 %v15913_v50  ;;  %v7375_v58 = vld [vmem:[%s19016_s16 + $0xc10] sm:$0xff]  ;;  %v15545_v41 = vcombine.high %v7119_v19, %v7127_v39  ;;  %v15544_v33 = vcombine.low %v7119_v19, %v7127_v39 }
 0x8e3   : > { %v7383_v50 = vld [vmem:[%s19016_s16 + $0xc50] sm:$0xff] }
 0x8e4   : > { %10250 = vmatpush2.bf16.msra.mxu0 %v15656_v55  ;;  %v15801_v37 = vcombine.high %v7375_v58, %v7383_v50  ;;  %v7104_v55 = vld [vmem:[%s19016_s16 + $0x398] sm:$0xff]  ;;  %v15800_v28 = vcombine.low %v7375_v58, %v7383_v50 }
 0x8e5   : > { %10293 = vmatpush2.bf16.msra.mxu1 %v15912_v48  ;;  %10251 = vmatprep.subr.bf16.mxu0 %v15641_v26  ;;  %v7112_v48 = vld [vmem:[%s19016_s16 + $0x3d8] sm:$0xff] }
 0x8e6   : > { %10294 = vmatprep.subr.bf16.mxu1 %v15897_v32  ;;  %v7360_v26 = vld [vmem:[%s19016_s16 + $0xb98] sm:$0xff]  ;;  %v15531_v35 = vcombine.high %v7104_v55, %v7112_v48 }
 0x8e7   : > { %v7368_v32 = vld [vmem:[%s19016_s16 + $0xbd8] sm:$0xff] }
 0x8e8   : > { %10252 = vmatpush2.bf16.msra.mxu0 %v15640_v45  ;;  %v15787_v42 = vcombine.high %v7360_v26, %v7368_v32  ;;  %v7088_v45 = vld [vmem:[%s19016_s16 + $0x318] sm:$0xff]  ;;  %v15786_v0 = vcombine.low %v7360_v26, %v7368_v32 }
 0x8e9   : > { %10295 = vmatpush2.bf16.msra.mxu1 %v15896_v46  ;;  %10253 = vmatprep.subr.bf16.mxu0 %v15625_v16  ;;  %v7096_v46 = vld [vmem:[%s19016_s16 + $0x358] sm:$0xff]  ;;  %v15530_v16 = vcombine.low %v7104_v55, %v7112_v48 }
 0x8ea   : > { %10296 = vmatprep.subr.bf16.mxu1 %v15881_v6  ;;  %v7344_v6 = vld [vmem:[%s19016_s16 + $0xb18] sm:$0xff]  ;;  %v15515_v54 = vcombine.high %v7088_v45, %v7096_v46  ;;  %v15514_v13 = vcombine.low %v7088_v45, %v7096_v46 }
 0x8eb   : > { %v15770_v56 = vcombine.low %v7344_v6, %v7352_v36 }
 0x8ec   : > { %10254 = vmatpush2.bf16.msra.mxu0 %v15624_v10  ;;  %v7080_v10 = vld [vmem:[%s19016_s16 + $0x2d8] sm:$0xff] }
 0x8ed   : > { %10297 = vmatpush2.bf16.msra.mxu1 %v15880_v15  ;;  %10255 = vmatprep.subr.bf16.mxu0 %v15609_v62  ;;  %v15771_v15 = vcombine.high %v7344_v6, %v7352_v36  ;;  %v7328_v62 = vld [vmem:[%s19016_s16 + $0xa98] sm:$0xff]  ;;  %v15499_v57 = vcombine.high %v7072_v34, %v7080_v10  ;;  %v15498_v53 = vcombine.low %v7072_v34, %v7080_v10 }
 0x8ee   : > { %10298 = vmatprep.subr.bf16.mxu1 %v15865_v52  ;;  %v7336_v52 = vld [vmem:[%s19016_s16 + $0xad8] sm:$0xff] }
 0x8ef   : > { %v15755_v59 = vcombine.high %v7328_v62, %v7336_v52  ;;  %v15754_v7 = vcombine.low %v7328_v62, %v7336_v52  ;;  %v7232_v36 = vld [vmem:[%s19016_s16 + $0x798] sm:$0xff] }
 0x8f0   : > { %10256 = vmatpush2.bf16.msra.mxu0 %v15608_v63  ;;  %v7056_v63 = vld [vmem:[%s19016_s16 + $0x218] sm:$0xff] }
 0x8f1   : > { %10299 = vmatpush2.bf16.msra.mxu1 %v15864_v22  ;;  %10257 = vmatprep.subr.bf16.mxu0 %v15593_v5  ;;  %v7064_v22 = vld [vmem:[%s19016_s16 + $0x258] sm:$0xff] }
 0x8f2   : > { %10300 = vmatprep.subr.bf16.mxu1 %v15849_v38  ;;  %v7312_v5 = vld [vmem:[%s19016_s16 + $0xa18] sm:$0xff]  ;;  %v15483_v4 = vcombine.high %v7056_v63, %v7064_v22  ;;  %v15482_v47 = vcombine.low %v7056_v63, %v7064_v22 }
 0x8f3   : > { %v7320_v38 = vld [vmem:[%s19016_s16 + $0xa58] sm:$0xff] }
 0x8f4   : > { %10258 = vmatpush2.bf16.msra.mxu0 %v15592_v11  ;;  %v15739_v1 = vcombine.high %v7312_v5, %v7320_v38  ;;  %v7040_v11 = vld [vmem:[%s19016_s16 + $0x198] sm:$0xff]  ;;  %v15738_v12 = vcombine.low %v7312_v5, %v7320_v38 }
 0x8f5   : > { %10301 = vmatpush2.bf16.msra.mxu1 %v15848_v44  ;;  %10259 = vmatprep.subr.bf16.mxu0 %v15577_v61  ;;  %v7048_v44 = vld [vmem:[%s19016_s16 + $0x1d8] sm:$0xff] }
 0x8f6   : > { %10302 = vmatprep.subr.bf16.mxu1 %v15833_v27  ;;  %v7296_v61 = vld [vmem:[%s19016_s16 + $0x998] sm:$0xff]  ;;  %v15467_v9 = vcombine.high %v7040_v11, %v7048_v44  ;;  %v15466_v19 = vcombine.low %v7040_v11, %v7048_v44 }
 0x8f7   : > { %v7304_v27 = vld [vmem:[%s19016_s16 + $0x9d8] sm:$0xff] }
 0x8f8   : > { %10260 = vmatpush2.bf16.msra.mxu0 %v15576_v8  ;;  %v15723_v14 = vcombine.high %v7296_v61, %v7304_v27  ;;  %v7024_v8 = vld [vmem:[%s19016_s16 + $0x118] sm:$0xff]  ;;  %v15722_v39 = vcombine.low %v7296_v61, %v7304_v27 }
 0x8f9   : > { %10303 = vmatpush2.bf16.msra.mxu1 %v15832_v20  ;;  %10261 = vmatprep.subr.bf16.mxu0 %v15561_v17  ;;  %v7032_v20 = vld [vmem:[%s19016_s16 + $0x158] sm:$0xff] }
 0x8fa   : > { %10304 = vmatprep.subr.bf16.mxu1 %v15817_v18  ;;  %v7280_v17 = vld [vmem:[%s19016_s16 + $0x918] sm:$0xff]  ;;  %v15451_v58 = vcombine.high %v7024_v8, %v7032_v20  ;;  %v15450_v55 = vcombine.low %v7024_v8, %v7032_v20 }
 0x8fb   : > { %v7288_v18 = vld [vmem:[%s19016_s16 + $0x958] sm:$0xff] }
 0x8fc   : > { %10262 = vmatpush2.bf16.msra.mxu0 %v15560_v43  ;;  %v15707_v50 = vcombine.high %v7280_v17, %v7288_v18  ;;  %v7008_v43 = vld [vmem:[%s19016_s16 + $0x98] sm:$0xff]  ;;  %v15706_v48 = vcombine.low %v7280_v17, %v7288_v18 }
 0x8fd   : > { %10305 = vmatpush2.bf16.msra.mxu1 %v15816_v23  ;;  %10263 = vmatprep.subr.bf16.mxu0 %v15545_v41  ;;  %v7016_v23 = vld [vmem:[%s19016_s16 + $0xd8] sm:$0xff] }
 0x8fe   : > { %10306 = vmatprep.subr.bf16.mxu1 %v15801_v37  ;;  %v7264_v41 = vld [vmem:[%s19016_s16 + $0x898] sm:$0xff]  ;;  %v15435_v26 = vcombine.high %v7008_v43, %v7016_v23  ;;  %v15434_v45 = vcombine.low %v7008_v43, %v7016_v23 }
 0x8ff   : > { %v7272_v37 = vld [vmem:[%s19016_s16 + $0x8d8] sm:$0xff] }
 0x900   : > { %10264 = vmatpush2.bf16.msra.mxu0 %v15544_v33  ;;  %v15691_v32 = vcombine.high %v7264_v41, %v7272_v37  ;;  %v6992_v33 = vld [vmem:[%s19016_s16 + $0x18] sm:$0xff]  ;;  %v15690_v46 = vcombine.low %v7264_v41, %v7272_v37 }
 0x901   : > { %10307 = vmatpush2.bf16.msra.mxu1 %v15800_v28  ;;  %10319 = vmatprep.subr.bf16.mxu0 %v15531_v35  ;;  %v7000_v28 = vld [vmem:[%s19016_s16 + $0x58] sm:$0xff] }
 0x902   : > { %10362 = vmatprep.subr.bf16.mxu1 %v15787_v42  ;;  %v7248_v35 = vld [vmem:[%s19016_s16 + $0x818] sm:$0xff]  ;;  %v15418_v10 = vcombine.low %v6992_v33, %v7000_v28 }
 0x903   : > { %10266 = vmatmul.mubr.bf16.vlgmr.msra.gmra.mxu0 %v20249_v31  ;;  %v7256_v42 = vld [vmem:[%s19016_s16 + $0x858] sm:$0xff] }
 0x904   : > { %10309 = vmatmul.mubr.bf16.vlgmr.msra.gmra.mxu1 %v20253_v60  ;;  %10320 = vmatpush1.bf16.msra.mxu0 %v15530_v16  ;;  %v15419_v16 = vcombine.high %v6992_v33, %v7000_v28  ;;  %v15675_v6 = vcombine.high %v7248_v35, %v7256_v42  ;;  %v7496_v34 = vld [vmem:[%s19016_s16 + $0xfd8] sm:$0xff] }
 0x905   : > { %10351 = vmatprep.mubr.bf16.mxu0 %v20241_v40  ;;  %10363 = vmatpush1.bf16.msra.mxu1 %v15786_v0  ;;  %v7240_v0 = vld [vmem:[%s19016_s16 + $0x7d8] sm:$0xff] }
 0x906   : > { %10394 = vmatprep.mubr.bf16.mxu1 %v20245_v25  ;;  %10321 = vmatprep.subr.bf16.mxu0 %v15515_v54  ;;  %v7488_v54 = vld [vmem:[%s19016_s16 + $0xf98] sm:$0xff]  ;;  %v15659_v62 = vcombine.high %v7232_v36, %v7240_v0  ;;  %v15658_v63 = vcombine.low %v7232_v36, %v7240_v0 }
 0x907   : > { %10364 = vmatprep.subr.bf16.mxu1 %v15771_v15  ;;  %v15674_v15 = vcombine.low %v7248_v35, %v7256_v42  ;;  %v15915_v52 = vcombine.high %v7488_v54, %v7496_v34  ;;  %v15914_v22 = vcombine.low %v7488_v54, %v7496_v34 }
 0x908   : > { %10322 = vmatpush1.bf16.msra.mxu0 %v15514_v13  ;;  %v7216_v13 = vld [vmem:[%s19016_s16 + $0x718] sm:$0xff] }
 0x909   : > { %10365 = vmatpush1.bf16.msra.mxu1 %v15770_v56  ;;  %10323 = vmatprep.subr.bf16.mxu0 %v15499_v57  ;;  %v7224_v56 = vld [vmem:[%s19016_s16 + $0x758] sm:$0xff] }
 0x90a   : > { %10366 = vmatprep.subr.bf16.mxu1 %v15755_v59  ;;  %v7472_v57 = vld [vmem:[%s19016_s16 + $0xf18] sm:$0xff]  ;;  %v15643_v5 = vcombine.high %v7216_v13, %v7224_v56  ;;  %v15642_v11 = vcombine.low %v7216_v13, %v7224_v56 }
 0x90b   : > { %v7480_v59 = vld [vmem:[%s19016_s16 + $0xf58] sm:$0xff] }
 0x90c   : > { %10324 = vmatpush1.bf16.msra.mxu0 %v15498_v53  ;;  %v15899_v38 = vcombine.high %v7472_v57, %v7480_v59  ;;  %v7200_v53 = vld [vmem:[%s19016_s16 + $0x698] sm:$0xff]  ;;  %v15898_v44 = vcombine.low %v7472_v57, %v7480_v59 }
 0x90d   : > { %10367 = vmatpush1.bf16.msra.mxu1 %v15754_v7  ;;  %10325 = vmatprep.subr.bf16.mxu0 %v15483_v4  ;;  %v7208_v7 = vld [vmem:[%s19016_s16 + $0x6d8] sm:$0xff] }
 0x90e   : > { %10368 = vmatprep.subr.bf16.mxu1 %v15739_v1  ;;  %v7456_v4 = vld [vmem:[%s19016_s16 + $0xe98] sm:$0xff]  ;;  %v15627_v61 = vcombine.high %v7200_v53, %v7208_v7  ;;  %v15626_v8 = vcombine.low %v7200_v53, %v7208_v7 }
 0x90f   : > { %v7464_v1 = vld [vmem:[%s19016_s16 + $0xed8] sm:$0xff] }
 0x910   : > { %10326 = vmatpush1.bf16.msra.mxu0 %v15482_v47  ;;  %v15883_v27 = vcombine.high %v7456_v4, %v7464_v1  ;;  %v7184_v47 = vld [vmem:[%s19016_s16 + $0x618] sm:$0xff]  ;;  %v15882_v20 = vcombine.low %v7456_v4, %v7464_v1 }
 0x911   : > { %10369 = vmatpush1.bf16.msra.mxu1 %v15738_v12  ;;  %10327 = vmatprep.subr.bf16.mxu0 %v15467_v9  ;;  %v7192_v12 = vld [vmem:[%s19016_s16 + $0x658] sm:$0xff] }
 0x912   : > { %10370 = vmatprep.subr.bf16.mxu1 %v15723_v14  ;;  %v7440_v9 = vld [vmem:[%s19016_s16 + $0xe18] sm:$0xff]  ;;  %v15611_v17 = vcombine.high %v7184_v47, %v7192_v12  ;;  %v15610_v43 = vcombine.low %v7184_v47, %v7192_v12  ;;  %v7353_v47 = vld [vmem:[%s19016_s16 + $0xb60] sm:$0xff] }
 0x913   : > { %v7448_v14 = vld [vmem:[%s19016_s16 + $0xe58] sm:$0xff] }
 0x914   : > { %10328 = vmatpush1.bf16.msra.mxu0 %v15466_v19  ;;  %v15867_v18 = vcombine.high %v7440_v9, %v7448_v14  ;;  %v7168_v19 = vld [vmem:[%s19016_s16 + $0x598] sm:$0xff]  ;;  %v15866_v23 = vcombine.low %v7440_v9, %v7448_v14  ;;  %v7073_v14 = vld [vmem:[%s19016_s16 + $0x2a0] sm:$0xff] }
 0x915   : > { %10371 = vmatpush1.bf16.msra.mxu1 %v15722_v39  ;;  %10329 = vmatprep.subr.bf16.mxu0 %v15451_v58  ;;  %v7176_v39 = vld [vmem:[%s19016_s16 + $0x5d8] sm:$0xff] }
 0x916   : > { %10372 = vmatprep.subr.bf16.mxu1 %v15707_v50  ;;  %v7424_v58 = vld [vmem:[%s19016_s16 + $0xd98] sm:$0xff]  ;;  %v15595_v41 = vcombine.high %v7168_v19, %v7176_v39  ;;  %v15594_v33 = vcombine.low %v7168_v19, %v7176_v39  ;;  %v7329_v19 = vld [vmem:[%s19016_s16 + $0xaa0] sm:$0xff] }
 0x917   : > { %v7432_v50 = vld [vmem:[%s19016_s16 + $0xdd8] sm:$0xff]  ;;  %v7337_v39 = vld [vmem:[%s19016_s16 + $0xae0] sm:$0xff] }
 0x918   : > { %10330 = vmatpush1.bf16.msra.mxu0 %v15450_v55  ;;  %v15851_v37 = vcombine.high %v7424_v58, %v7432_v50  ;;  %v7152_v55 = vld [vmem:[%s19016_s16 + $0x518] sm:$0xff]  ;;  %v15850_v28 = vcombine.low %v7424_v58, %v7432_v50 }
 0x919   : > { %10373 = vmatpush1.bf16.msra.mxu1 %v15706_v48  ;;  %10331 = vmatprep.subr.bf16.mxu0 %v15435_v26  ;;  %v7160_v48 = vld [vmem:[%s19016_s16 + $0x558] sm:$0xff] }
 0x91a   : > { %10374 = vmatprep.subr.bf16.mxu1 %v15691_v32  ;;  %v7408_v26 = vld [vmem:[%s19016_s16 + $0xd18] sm:$0xff]  ;;  %v15579_v35 = vcombine.high %v7152_v55, %v7160_v48  ;;  %v15578_v36 = vcombine.low %v7152_v55, %v7160_v48  ;;  %v15757_v55 = vcombine.high %v7329_v19, %v7337_v39  ;;  %v7057_v48 = vld [vmem:[%s19016_s16 + $0x220] sm:$0xff] }
 0x91b   : > { %v7416_v32 = vld [vmem:[%s19016_s16 + $0xd58] sm:$0xff] }
 0x91c   : > { %10332 = vmatpush1.bf16.msra.mxu0 %v15434_v45  ;;  %v15835_v42 = vcombine.high %v7408_v26, %v7416_v32  ;;  %v7136_v45 = vld [vmem:[%s19016_s16 + $0x498] sm:$0xff]  ;;  %v15834_v0 = vcombine.low %v7408_v26, %v7416_v32  ;;  %v7065_v26 = vld [vmem:[%s19016_s16 + $0x260] sm:$0xff] }
 0x91d   : > { %10375 = vmatpush1.bf16.msra.mxu1 %v15690_v46  ;;  %10333 = vmatprep.subr.bf16.mxu0 %v15419_v16  ;;  %v7144_v46 = vld [vmem:[%s19016_s16 + $0x4d8] sm:$0xff] }
 0x91e   : > { %10376 = vmatprep.subr.bf16.mxu1 %v15675_v6  ;;  %v7392_v16 = vld [vmem:[%s19016_s16 + $0xc98] sm:$0xff]  ;;  %v15563_v54 = vcombine.high %v7136_v45, %v7144_v46  ;;  %v15562_v13 = vcombine.low %v7136_v45, %v7144_v46  ;;  %v15756_v46 = vcombine.low %v7329_v19, %v7337_v39 }
 0x91f   : > { %v7400_v6 = vld [vmem:[%s19016_s16 + $0xcd8] sm:$0xff] }
 0x920   : > { %10334 = vmatpush1.bf16.msra.mxu0 %v15418_v10  ;;  %v15819_v34 = vcombine.high %v7392_v16, %v7400_v6  ;;  %v7120_v10 = vld [vmem:[%s19016_s16 + $0x418] sm:$0xff]  ;;  %v15818_v56 = vcombine.low %v7392_v16, %v7400_v6  ;;  %v15485_v16 = vcombine.high %v7057_v48, %v7065_v26 }
 0x921   : > { %10377 = vmatpush1.bf16.msra.mxu1 %v15674_v15  ;;  %10335 = vmatprep.subr.bf16.mxu0 %v15659_v62  ;;  %v7128_v15 = vld [vmem:[%s19016_s16 + $0x458] sm:$0xff] }
 0x922   : > { %10378 = vmatprep.subr.bf16.mxu1 %v15915_v52  ;;  %v7376_v62 = vld [vmem:[%s19016_s16 + $0xc18] sm:$0xff]  ;;  %v15547_v57 = vcombine.high %v7120_v10, %v7128_v15  ;;  %v15546_v53 = vcombine.low %v7120_v10, %v7128_v15  ;;  %v7297_v10 = vld [vmem:[%s19016_s16 + $0x9a0] sm:$0xff] }
 0x923   : > { %v7384_v52 = vld [vmem:[%s19016_s16 + $0xc58] sm:$0xff]  ;;  %v7305_v15 = vld [vmem:[%s19016_s16 + $0x9e0] sm:$0xff] }
 0x924   : > { %10336 = vmatpush2.bf16.msra.mxu0 %v15658_v63  ;;  %v15803_v59 = vcombine.high %v7376_v62, %v7384_v52  ;;  %v7105_v63 = vld [vmem:[%s19016_s16 + $0x3a0] sm:$0xff]  ;;  %v15802_v7 = vcombine.low %v7376_v62, %v7384_v52  ;;  %v15484_v52 = vcombine.low %v7057_v48, %v7065_v26 }
 0x925   : > { %10379 = vmatpush2.bf16.msra.mxu1 %v15914_v22  ;;  %10337 = vmatprep.subr.bf16.mxu0 %v15643_v5  ;;  %v7113_v22 = vld [vmem:[%s19016_s16 + $0x3e0] sm:$0xff] }
 0x926   : > { %10380 = vmatprep.subr.bf16.mxu1 %v15899_v38  ;;  %v7361_v5 = vld [vmem:[%s19016_s16 + $0xba0] sm:$0xff]  ;;  %v15533_v4 = vcombine.high %v7105_v63, %v7113_v22 }
 0x927   : > { %v7369_v38 = vld [vmem:[%s19016_s16 + $0xbe0] sm:$0xff] }
 0x928   : > { %10338 = vmatpush2.bf16.msra.mxu0 %v15642_v11  ;;  %v15789_v1 = vcombine.high %v7361_v5, %v7369_v38  ;;  %v7089_v11 = vld [vmem:[%s19016_s16 + $0x320] sm:$0xff]  ;;  %v15788_v12 = vcombine.low %v7361_v5, %v7369_v38 }
 0x929   : > { %10381 = vmatpush2.bf16.msra.mxu1 %v15898_v44  ;;  %10339 = vmatprep.subr.bf16.mxu0 %v15627_v61  ;;  %v7097_v44 = vld [vmem:[%s19016_s16 + $0x360] sm:$0xff]  ;;  %v15532_v61 = vcombine.low %v7105_v63, %v7113_v22 }
 0x92a   : > { %10382 = vmatprep.subr.bf16.mxu1 %v15883_v27  ;;  %v7345_v27 = vld [vmem:[%s19016_s16 + $0xb20] sm:$0xff]  ;;  %v15517_v9 = vcombine.high %v7089_v11, %v7097_v44  ;;  %v15516_v50 = vcombine.low %v7089_v11, %v7097_v44 }
 0x92b   : > { %v7033_v63 = vld [vmem:[%s19016_s16 + $0x160] sm:$0xff] }
 0x92c   : > { %10340 = vmatpush2.bf16.msra.mxu0 %v15626_v8  ;;  %v7081_v8 = vld [vmem:[%s19016_s16 + $0x2e0] sm:$0xff] }
 0x92d   : > { %10383 = vmatpush2.bf16.msra.mxu1 %v15882_v20  ;;  %10341 = vmatprep.subr.bf16.mxu0 %v15611_v17  ;;  %v15500_v45 = vcombine.low %v7073_v14, %v7081_v8  ;;  %v7281_v22 = vld [vmem:[%s19016_s16 + $0x920] sm:$0xff] }
 0x92e   : > { %10384 = vmatprep.subr.bf16.mxu1 %v15867_v18  ;;  %v15773_v18 = vcombine.high %v7345_v27, %v7353_v47  ;;  %v7289_v5 = vld [vmem:[%s19016_s16 + $0x960] sm:$0xff] }
 0x92f   : > { %v7017_v11 = vld [vmem:[%s19016_s16 + $0xe0] sm:$0xff] }
 0x930   : > { %10342 = vmatpush2.bf16.msra.mxu0 %v15610_v43  ;;  %v7265_v44 = vld [vmem:[%s19016_s16 + $0x8a0] sm:$0xff] }
 0x931   : > { %10385 = vmatpush2.bf16.msra.mxu1 %v15866_v23  ;;  %10343 = vmatprep.subr.bf16.mxu0 %v15595_v41  ;;  %v15772_v41 = vcombine.low %v7345_v27, %v7353_v47  ;;  %v15708_v47 = vcombine.low %v7281_v22, %v7289_v5 }
 0x932   : > { %10386 = vmatprep.subr.bf16.mxu1 %v15851_v37  ;;  %v15501_v37 = vcombine.high %v7073_v14, %v7081_v8  ;;  %v6993_v14 = vld [vmem:[%s19016_s16 + $0x20] sm:$0xff] }
 0x933   : > { %v7001_v8 = vld [vmem:[%s19016_s16 + $0x60] sm:$0xff] }
 0x934   : > { %10344 = vmatpush2.bf16.msra.mxu0 %v15594_v33  ;;  %v15421_v39 = vcombine.high %v6993_v14, %v7001_v8  ;;  %v15420_v48 = vcombine.low %v6993_v14, %v7001_v8  ;;  %v7161_v14 = vld [vmem:[%s19016_s16 + $0x560] sm:$0xff] }
 0x935   : > { %10387 = vmatpush2.bf16.msra.mxu1 %v15850_v28  ;;  %10345 = vmatprep.subr.bf16.mxu0 %v15579_v35  ;;  %v7313_v28 = vld [vmem:[%s19016_s16 + $0xa20] sm:$0xff] }
 0x936   : > { %10388 = vmatprep.subr.bf16.mxu1 %v15835_v42  ;;  %v7321_v35 = vld [vmem:[%s19016_s16 + $0xa60] sm:$0xff] }
 0x937   : > { %v7409_v8 = vld [vmem:[%s19016_s16 + $0xd20] sm:$0xff] }
 0x938   : > { %10346 = vmatpush2.bf16.msra.mxu0 %v15578_v36 }
 0x939   : > { %10389 = vmatpush2.bf16.msra.mxu1 %v15834_v0  ;;  %10347 = vmatprep.subr.bf16.mxu0 %v15563_v54  ;;  %v15741_v0 = vcombine.high %v7313_v28, %v7321_v35  ;;  %v7041_v54 = vld [vmem:[%s19016_s16 + $0x1a0] sm:$0xff] }
 0x93a   : > { %10390 = vmatprep.subr.bf16.mxu1 %v15819_v34  ;;  %v7049_v34 = vld [vmem:[%s19016_s16 + $0x1e0] sm:$0xff] }
 0x93b   : > { %v15468_v38 = vcombine.low %v7041_v54, %v7049_v34 }
 0x93c   : > { %10348 = vmatpush2.bf16.msra.mxu0 %v15562_v13  ;;  %v15740_v13 = vcombine.low %v7313_v28, %v7321_v35  ;;  %v7217_v28 = vld [vmem:[%s19016_s16 + $0x720] sm:$0xff] }
 0x93d   : > { %10391 = vmatpush2.bf16.msra.mxu1 %v15818_v56  ;;  %10349 = vmatprep.subr.bf16.mxu0 %v15547_v57  ;;  %v15469_v56 = vcombine.high %v7041_v54, %v7049_v34  ;;  %v15725_v57 = vcombine.high %v7297_v10, %v7305_v15  ;;  %v7225_v35 = vld [vmem:[%s19016_s16 + $0x760] sm:$0xff] }
 0x93e   : > { %10392 = vmatprep.subr.bf16.mxu1 %v15803_v59  ;;  %v7025_v59 = vld [vmem:[%s19016_s16 + $0x120] sm:$0xff] }
 0x93f   : > { %v15452_v27 = vcombine.low %v7025_v59, %v7033_v63  ;;  %v7209_v54 = vld [vmem:[%s19016_s16 + $0x6e0] sm:$0xff] }
 0x940   : > { %10350 = vmatpush2.bf16.msra.mxu0 %v15546_v53  ;;  %v15724_v53 = vcombine.low %v7297_v10, %v7305_v15  ;;  %v7457_v34 = vld [vmem:[%s19016_s16 + $0xea0] sm:$0xff]  ;;  %v15644_v15 = vcombine.low %v7217_v28, %v7225_v35 }
 0x941   : > { %10393 = vmatpush2.bf16.msra.mxu1 %v15802_v7  ;;  %10405 = vmatprep.subr.bf16.mxu0 %v15533_v4  ;;  %v15453_v7 = vcombine.high %v7025_v59, %v7033_v63  ;;  %v15709_v4 = vcombine.high %v7281_v22, %v7289_v5  ;;  %v7465_v10 = vld [vmem:[%s19016_s16 + $0xee0] sm:$0xff] }
 0x942   : > { %10448 = vmatprep.subr.bf16.mxu1 %v15789_v1  ;;  %v7009_v1 = vld [vmem:[%s19016_s16 + $0xa0] sm:$0xff] }
 0x943   : > { %10352 = vmatmul.mubr.bf16.vlgmr.msra.gmra.mxu0 %v20249_v31  ;;  %v10095_v20 = vpop.f32.mrf.mxu0  ;;  %v10138_v17 = vpop.f32.mrf.mxu1  ;;  %v7193_v59 = vld [vmem:[%s19016_s16 + $0x660] sm:$0xff] }
 0x944   : > { %10395 = vmatmul.mubr.bf16.vlgmr.msra.gmra.mxu1 %v20253_v60  ;;  %v10139_v58 = vadd.f32 %v10138_v17, %v10095_v20  ;;  %10406 = vmatpush1.bf16.msra.mxu0 %v15532_v61  ;;  %v7273_v61 = vld [vmem:[%s19016_s16 + $0x8e0] sm:$0xff] }
 0x945   : > { %10437 = vmatprep.mubr.bf16.mxu0 %v20241_v40  ;;  %10449 = vmatpush1.bf16.msra.mxu1 %v15788_v12  ;;  %v20468_v43 = vpop.f32.mrf.mxu0  ;;  %v20470_v23 = vpop.f32.mrf.mxu1  ;;  %v15437_v12 = vcombine.high %v7009_v1, %v7017_v11  ;;  %v7249_v20 = vld [vmem:[%s19016_s16 + $0x820] sm:$0xff]  ;;  %v15692_v19 = vcombine.low %v7265_v44, %v7273_v61 }
 0x946   : > { %10480 = vmatprep.mubr.bf16.mxu1 %v20245_v25  ;;  %10407 = vmatprep.subr.bf16.mxu0 %v15517_v9  ;;  %v10749_v6 = vmax.f32 %v10139_v58, 0.0  ;;  %v15693_v9 = vcombine.high %v7265_v44, %v7273_v61  ;;  %v7257_v17 = vld [vmem:[%s19016_s16 + $0x860] sm:$0xff] }
 0x947   : > { %10450 = vmatprep.subr.bf16.mxu1 %v15773_v18  ;;  %v10099_v32 = vpop.f32.mrf.mxu0  ;;  %v10142_v33 = vpop.f32.mrf.mxu1  ;;  %v15436_v18 = vcombine.low %v7009_v1, %v7017_v11  ;;  %v15677_v58 = vcombine.high %v7249_v20, %v7257_v17  ;;  %v15676_v26 = vcombine.low %v7249_v20, %v7257_v17  ;;  %v7441_v63 = vld [vmem:[%s19016_s16 + $0xe20] sm:$0xff] }
 0x948   : > { %v10143_v42 = vadd.f32 %v10142_v33, %v10099_v32  ;;  %10408 = vmatpush1.bf16.msra.mxu0 %v15516_v50  ;;  %v7233_v50 = vld [vmem:[%s19016_s16 + $0x7a0] sm:$0xff] }
 0x949   : > { %10451 = vmatpush1.bf16.msra.mxu1 %v15772_v41  ;;  %10409 = vmatprep.subr.bf16.mxu0 %v15501_v37  ;;  %v7241_v41 = vld [vmem:[%s19016_s16 + $0x7e0] sm:$0xff] }
 0x94a   : > { %v10765_v36 = vmax.f32 %v10143_v42, 0.0  ;;  %10452 = vmatprep.subr.bf16.mxu1 %v15757_v55  ;;  %v7489_v37 = vld [vmem:[%s19016_s16 + $0xfa0] sm:$0xff]  ;;  %v15661_v32 = vcombine.high %v7233_v50, %v7241_v41 }
 0x94b   : > { %v7497_v55 = vld [vmem:[%s19016_s16 + $0xfe0] sm:$0xff] }
 0x94c   : > { %v20481_v62 = vpack.c.bf16 %v10765_v36, %v10749_v6  ;;  %10410 = vmatpush1.bf16.msra.mxu0 %v15500_v45  ;;  %v15917_v33 = vcombine.high %v7489_v37, %v7497_v55  ;;  %v7473_v42 = vld [vmem:[%s19016_s16 + $0xf20] sm:$0xff]  ;;  %v15645_v6 = vcombine.high %v7217_v28, %v7225_v35 }
 0x94d   : > { %10453 = vmatpush1.bf16.msra.mxu1 %v15756_v46  ;;  %10411 = vmatprep.subr.bf16.mxu0 %v15485_v16  ;;  %v7481_v45 = vld [vmem:[%s19016_s16 + $0xf60] sm:$0xff]  ;;  %v15660_v46 = vcombine.low %v7233_v50, %v7241_v41  ;;  %v15916_v16 = vcombine.low %v7489_v37, %v7497_v55 }
 0x94e   : > { %10454 = vmatprep.subr.bf16.mxu1 %v15741_v0  ;;  %v15901_v36 = vcombine.high %v7473_v42, %v7481_v45  ;;  %v7201_v0 = vld [vmem:[%s19016_s16 + $0x6a0] sm:$0xff] }
 0x94f   : > { %v7449_v22 = vld [vmem:[%s19016_s16 + $0xe60] sm:$0xff]  ;;  %v15628_v5 = vcombine.low %v7201_v0, %v7209_v54 }
 0x950   : > { %10412 = vmatpush1.bf16.msra.mxu0 %v15484_v52  ;;  %v15900_v52 = vcombine.low %v7473_v42, %v7481_v45  ;;  %v7177_v1 = vld [vmem:[%s19016_s16 + $0x5e0] sm:$0xff] }
 0x951   : > { %10455 = vmatpush1.bf16.msra.mxu1 %v15740_v13  ;;  %10413 = vmatprep.subr.bf16.mxu0 %v15469_v56  ;;  %v15629_v13 = vcombine.high %v7201_v0, %v7209_v54  ;;  %v15885_v56 = vcombine.high %v7457_v34, %v7465_v10  ;;  %v7425_v11 = vld [vmem:[%s19016_s16 + $0xda0] sm:$0xff]  ;;  %v7114_v0 = vld [vmem:[%s19016_s16 + $0x3e8] sm:$0xff] }
 0x952   : > { %10456 = vmatprep.subr.bf16.mxu1 %v15725_v57  ;;  %v7185_v57 = vld [vmem:[%s19016_s16 + $0x620] sm:$0xff]  ;;  %v7362_v54 = vld [vmem:[%s19016_s16 + $0xba8] sm:$0xff] }
 0x953   : > { %v7433_v44 = vld [vmem:[%s19016_s16 + $0xde0] sm:$0xff]  ;;  %v15612_v61 = vcombine.low %v7185_v57, %v7193_v59 }
 0x954   : > { %10414 = vmatpush1.bf16.msra.mxu0 %v15468_v38  ;;  %v15884_v38 = vcombine.low %v7457_v34, %v7465_v10  ;;  %v7417_v20 = vld [vmem:[%s19016_s16 + $0xd60] sm:$0xff]  ;;  %v7370_v34 = vld [vmem:[%s19016_s16 + $0xbe8] sm:$0xff] }
 0x955   : > { %10457 = vmatpush1.bf16.msra.mxu1 %v15724_v53  ;;  %10415 = vmatprep.subr.bf16.mxu0 %v15453_v7  ;;  %v15613_v53 = vcombine.high %v7185_v57, %v7193_v59  ;;  %v15869_v7 = vcombine.high %v7441_v63, %v7449_v22  ;;  %v7145_v50 = vld [vmem:[%s19016_s16 + $0x4e0] sm:$0xff]  ;;  %v7098_v57 = vld [vmem:[%s19016_s16 + $0x368] sm:$0xff] }
 0x956   : > { %10458 = vmatprep.subr.bf16.mxu1 %v15709_v4  ;;  %v7169_v4 = vld [vmem:[%s19016_s16 + $0x5a0] sm:$0xff] }
 0x957   : > { %v15596_v17 = vcombine.low %v7169_v4, %v7177_v1  ;;  %v7393_v41 = vld [vmem:[%s19016_s16 + $0xca0] sm:$0xff] }
 0x958   : > { %10416 = vmatpush1.bf16.msra.mxu0 %v15452_v27  ;;  %v15868_v27 = vcombine.low %v7441_v63, %v7449_v22  ;;  %v7401_v37 = vld [vmem:[%s19016_s16 + $0xce0] sm:$0xff]  ;;  %v7346_v63 = vld [vmem:[%s19016_s16 + $0xb28] sm:$0xff] }
 0x959   : > { %10459 = vmatpush1.bf16.msra.mxu1 %v15708_v47  ;;  %10417 = vmatprep.subr.bf16.mxu0 %v15437_v12  ;;  %v15597_v47 = vcombine.high %v7169_v4, %v7177_v1  ;;  %v15853_v12 = vcombine.high %v7425_v11, %v7433_v44  ;;  %v7129_v28 = vld [vmem:[%s19016_s16 + $0x460] sm:$0xff]  ;;  %v7354_v22 = vld [vmem:[%s19016_s16 + $0xb68] sm:$0xff] }
 0x95a   : > { %10460 = vmatprep.subr.bf16.mxu1 %v15693_v9  ;;  %v7153_v9 = vld [vmem:[%s19016_s16 + $0x520] sm:$0xff]  ;;  %v7074_v4 = vld [vmem:[%s19016_s16 + $0x2a8] sm:$0xff] }
 0x95b   : > { %v15580_v55 = vcombine.low %v7153_v9, %v7161_v14  ;;  %v7377_v35 = vld [vmem:[%s19016_s16 + $0xc20] sm:$0xff]  ;;  %v7082_v1 = vld [vmem:[%s19016_s16 + $0x2e8] sm:$0xff] }
 0x95c   : > { %10418 = vmatpush1.bf16.msra.mxu0 %v15436_v18  ;;  %v15852_v18 = vcombine.low %v7425_v11, %v7433_v44  ;;  %v7385_v42 = vld [vmem:[%s19016_s16 + $0xc60] sm:$0xff] }
 0x95d   : > { %10461 = vmatpush1.bf16.msra.mxu1 %v15692_v19  ;;  %10419 = vmatprep.subr.bf16.mxu0 %v15421_v39  ;;  %v15581_v19 = vcombine.high %v7153_v9, %v7161_v14  ;;  %v15837_v39 = vcombine.high %v7409_v8, %v7417_v20 }
 0x95e   : > { %10462 = vmatprep.subr.bf16.mxu1 %v15677_v58  ;;  %v7137_v58 = vld [vmem:[%s19016_s16 + $0x4a0] sm:$0xff] }
 0x95f   : > { %v15564_v45 = vcombine.low %v7137_v58, %v7145_v50 }
 0x960   : > { %10420 = vmatpush1.bf16.msra.mxu0 %v15420_v48  ;;  %v15836_v48 = vcombine.low %v7409_v8, %v7417_v20  ;;  %v15774_v20 = vcombine.low %v7346_v63, %v7354_v22 }
 0x961   : > { %10463 = vmatpush1.bf16.msra.mxu1 %v15676_v26  ;;  %10421 = vmatprep.subr.bf16.mxu0 %v15661_v32  ;;  %v15565_v26 = vcombine.high %v7137_v58, %v7145_v50  ;;  %v15821_v32 = vcombine.high %v7393_v41, %v7401_v37 }
 0x962   : > { %10464 = vmatprep.subr.bf16.mxu1 %v15917_v33  ;;  %v7121_v33 = vld [vmem:[%s19016_s16 + $0x420] sm:$0xff] }
 0x963   : > { %v15548_v10 = vcombine.low %v7121_v33, %v7129_v28 }
 0x964   : > { %10422 = vmatpush2.bf16.msra.mxu0 %v15660_v46  ;;  %v15820_v46 = vcombine.low %v7393_v41, %v7401_v37  ;;  %v7314_v41 = vld [vmem:[%s19016_s16 + $0xa28] sm:$0xff] }
 0x965   : > { %10465 = vmatpush2.bf16.msra.mxu1 %v15916_v16  ;;  %10423 = vmatprep.subr.bf16.mxu0 %v15645_v6  ;;  %v15549_v16 = vcombine.high %v7121_v33, %v7129_v28  ;;  %v15805_v6 = vcombine.high %v7377_v35, %v7385_v42  ;;  %v7322_v37 = vld [vmem:[%s19016_s16 + $0xa68] sm:$0xff] }
 0x966   : > { %10466 = vmatprep.subr.bf16.mxu1 %v15901_v36  ;;  %v7106_v36 = vld [vmem:[%s19016_s16 + $0x3a8] sm:$0xff] }
 0x967   : > { %v15534_v59 = vcombine.low %v7106_v36, %v7114_v0 }
 0x968   : > { %10424 = vmatpush2.bf16.msra.mxu0 %v15644_v15  ;;  %v15804_v15 = vcombine.low %v7377_v35, %v7385_v42  ;;  %v15743_v35 = vcombine.high %v7314_v41, %v7322_v37  ;;  %v7042_v42 = vld [vmem:[%s19016_s16 + $0x1a8] sm:$0xff] }
 0x969   : > { %10467 = vmatpush2.bf16.msra.mxu1 %v15900_v52  ;;  %10425 = vmatprep.subr.bf16.mxu0 %v15629_v13  ;;  %v15535_v52 = vcombine.high %v7106_v36, %v7114_v0  ;;  %v15791_v13 = vcombine.high %v7362_v54, %v7370_v34  ;;  %v15742_v0 = vcombine.low %v7314_v41, %v7322_v37  ;;  %v7498_v41 = vld [vmem:[%s19016_s16 + $0xfe8] sm:$0xff] }
 0x96a   : > { %10468 = vmatprep.subr.bf16.mxu1 %v15885_v56  ;;  %v7090_v56 = vld [vmem:[%s19016_s16 + $0x328] sm:$0xff] }
 0x96b   : > { %v15518_v9 = vcombine.low %v7090_v56, %v7098_v57 }
 0x96c   : > { %10426 = vmatpush2.bf16.msra.mxu0 %v15628_v5  ;;  %v20535_v5 = vpop.f32.mrf.mxu0 }
 0x96d   : > { %10469 = vmatpush2.bf16.msra.mxu1 %v15884_v38  ;;  %10427 = vmatprep.subr.bf16.mxu0 %v15613_v53  ;;  %v20537_v38 = vpop.f32.mrf.mxu1  ;;  %v15790_v53 = vcombine.low %v7362_v54, %v7370_v34 }
 0x96e   : > { %10470 = vmatprep.subr.bf16.mxu1 %v15869_v7  ;;  %v15519_v7 = vcombine.high %v7090_v56, %v7098_v57 }
 0x970   : > { %10428 = vmatpush2.bf16.msra.mxu0 %v15612_v61  ;;  %v15775_v61 = vcombine.high %v7346_v63, %v7354_v22  ;;  %v7010_v22 = vld [vmem:[%s19016_s16 + $0xa8] sm:$0xff] }
 0x971   : > { %10471 = vmatpush2.bf16.msra.mxu1 %v15868_v27  ;;  %10429 = vmatprep.subr.bf16.mxu0 %v15597_v47  ;;  %v7330_v27 = vld [vmem:[%s19016_s16 + $0xaa8] sm:$0xff] }
 0x972   : > { %10472 = vmatprep.subr.bf16.mxu1 %v15853_v12  ;;  %v7338_v47 = vld [vmem:[%s19016_s16 + $0xae8] sm:$0xff] }
 0x974   : > { %10430 = vmatpush2.bf16.msra.mxu0 %v15596_v17  ;;  %v15503_v17 = vcombine.high %v7074_v4, %v7082_v1 }
 0x975   : > { %10473 = vmatpush2.bf16.msra.mxu1 %v15852_v18  ;;  %10431 = vmatprep.subr.bf16.mxu0 %v15581_v19  ;;  %v15759_v18 = vcombine.high %v7330_v27, %v7338_v47  ;;  %v7058_v19 = vld [vmem:[%s19016_s16 + $0x228] sm:$0xff] }
 0x976   : > { %10474 = vmatprep.subr.bf16.mxu1 %v15837_v39  ;;  %v7066_v39 = vld [vmem:[%s19016_s16 + $0x268] sm:$0xff] }
 0x977   : > { %v15486_v36 = vcombine.low %v7058_v19, %v7066_v39 }
 0x978   : > { %10432 = vmatpush2.bf16.msra.mxu0 %v15580_v55 }
 0x979   : > { %10475 = vmatpush2.bf16.msra.mxu1 %v15836_v48  ;;  %10433 = vmatprep.subr.bf16.mxu0 %v15565_v26  ;;  %v15502_v48 = vcombine.low %v7074_v4, %v7082_v1  ;;  %v15758_v26 = vcombine.low %v7330_v27, %v7338_v47  ;;  %v7274_v4 = vld [vmem:[%s19016_s16 + $0x8e8] sm:$0xff] }
 0x97a   : > { %10476 = vmatprep.subr.bf16.mxu1 %v15821_v32  ;;  %v15487_v32 = vcombine.high %v7058_v19, %v7066_v39  ;;  %v6994_v27 = vld [vmem:[%s19016_s16 + $0x28] sm:$0xff] }
 0x97b   : > { %v7002_v47 = vld [vmem:[%s19016_s16 + $0x68] sm:$0xff] }
 0x97c   : > { %10434 = vmatpush2.bf16.msra.mxu0 %v15564_v45  ;;  %v7050_v45 = vld [vmem:[%s19016_s16 + $0x1e8] sm:$0xff]  ;;  %v15422_v37 = vcombine.low %v6994_v27, %v7002_v47 }
 0x97d   : > { %10477 = vmatpush2.bf16.msra.mxu1 %v15820_v46  ;;  %10435 = vmatprep.subr.bf16.mxu0 %v15549_v16  ;;  %v7298_v46 = vld [vmem:[%s19016_s16 + $0x9a8] sm:$0xff]  ;;  %v15471_v54 = vcombine.high %v7042_v42, %v7050_v45  ;;  %v15470_v56 = vcombine.low %v7042_v42, %v7050_v45 }
 0x97e   : > { %10478 = vmatprep.subr.bf16.mxu1 %v15805_v6  ;;  %v7306_v16 = vld [vmem:[%s19016_s16 + $0x9e8] sm:$0xff] }
 0x97f   : > { %v15727_v34 = vcombine.high %v7298_v46, %v7306_v16  ;;  %v15726_v57 = vcombine.low %v7298_v46, %v7306_v16  ;;  %v7234_v39 = vld [vmem:[%s19016_s16 + $0x7a8] sm:$0xff] }
 0x980   : > { %10436 = vmatpush2.bf16.msra.mxu0 %v15548_v10  ;;  %v7026_v10 = vld [vmem:[%s19016_s16 + $0x128] sm:$0xff] }
 0x981   : > { %10479 = vmatpush2.bf16.msra.mxu1 %v15804_v15  ;;  %10491 = vmatprep.subr.bf16.mxu0 %v15535_v52  ;;  %v7034_v15 = vld [vmem:[%s19016_s16 + $0x168] sm:$0xff] }
 0x982   : > { %10534 = vmatprep.subr.bf16.mxu1 %v15791_v13  ;;  %v7282_v52 = vld [vmem:[%s19016_s16 + $0x928] sm:$0xff]  ;;  %v15454_v1 = vcombine.low %v7026_v10, %v7034_v15 }
 0x983   : > { %v10181_v11 = vpop.f32.mrf.mxu0  ;;  %v10224_v44 = vpop.f32.mrf.mxu1  ;;  %10438 = vmatmul.mubr.bf16.vlgmr.msra.gmra.mxu0 %v20249_v31  ;;  %v7290_v13 = vld [vmem:[%s19016_s16 + $0x968] sm:$0xff] }
 0x984   : > { %v10225_v12 = vadd.f32 %v10224_v44, %v10181_v11  ;;  %10481 = vmatmul.mubr.bf16.vlgmr.msra.gmra.mxu1 %v20253_v60  ;;  %10492 = vmatpush1.bf16.msra.mxu0 %v15534_v59  ;;  %v15455_v59 = vcombine.high %v7026_v10, %v7034_v15  ;;  %v15711_v63 = vcombine.high %v7282_v52, %v7290_v13 }
 0x985   : > { %10523 = vmatprep.mubr.bf16.mxu0 %v20241_v40  ;;  %10535 = vmatpush1.bf16.msra.mxu1 %v15790_v53  ;;  %v20546_v14 = vpop.f32.mrf.mxu0  ;;  %v20548_v8 = vpop.f32.mrf.mxu1  ;;  %v7018_v53 = vld [vmem:[%s19016_s16 + $0xe8] sm:$0xff]  ;;  %v15710_v11 = vcombine.low %v7282_v52, %v7290_v13 }
 0x986   : > { %10566 = vmatprep.mubr.bf16.mxu1 %v20245_v25  ;;  %10493 = vmatprep.subr.bf16.mxu0 %v15519_v7  ;;  %v10751_v33 = vmax.f32 %v10225_v12, 0.0  ;;  %v7266_v7 = vld [vmem:[%s19016_s16 + $0x8a8] sm:$0xff]  ;;  %v15439_v44 = vcombine.high %v7010_v22, %v7018_v53 }
 0x987   : > { %v10185_v58 = vpop.f32.mrf.mxu0  ;;  %v10228_v50 = vpop.f32.mrf.mxu1  ;;  %10536 = vmatprep.subr.bf16.mxu1 %v15775_v61  ;;  %v15695_v61 = vcombine.high %v7266_v7, %v7274_v4  ;;  %v7250_v12 = vld [vmem:[%s19016_s16 + $0x828] sm:$0xff] }
 0x988   : > { %v10229_v55 = vadd.f32 %v10228_v50, %v10185_v58  ;;  %10494 = vmatpush1.bf16.msra.mxu0 %v15518_v9  ;;  %v7258_v9 = vld [vmem:[%s19016_s16 + $0x868] sm:$0xff] }
 0x989   : > { %10537 = vmatpush1.bf16.msra.mxu1 %v15774_v20  ;;  %10495 = vmatprep.subr.bf16.mxu0 %v15503_v17  ;;  %v15438_v20 = vcombine.low %v7010_v22, %v7018_v53  ;;  %v15694_v17 = vcombine.low %v7266_v7, %v7274_v4  ;;  %v15679_v19 = vcombine.high %v7250_v12, %v7258_v9  ;;  %v7242_v58 = vld [vmem:[%s19016_s16 + $0x7e8] sm:$0xff] }
 0x98a   : > { %v10767_v28 = vmax.f32 %v10229_v55, 0.0  ;;  %10538 = vmatprep.subr.bf16.mxu1 %v15759_v18  ;;  %v15423_v18 = vcombine.high %v6994_v27, %v7002_v47  ;;  %v7490_v50 = vld [vmem:[%s19016_s16 + $0xfa8] sm:$0xff]  ;;  %v15678_v55 = vcombine.low %v7250_v12, %v7258_v9  ;;  %v15662_v42 = vcombine.low %v7234_v39, %v7242_v58 }
 0x98b   : > { %v15918_v45 = vcombine.low %v7490_v50, %v7498_v41 }
 0x98c   : > { %v20559_v6 = vpack.c.bf16 %v10767_v28, %v10751_v33  ;;  %10496 = vmatpush1.bf16.msra.mxu0 %v15502_v48  ;;  %v15663_v48 = vcombine.high %v7234_v39, %v7242_v58  ;;  %v7226_v33 = vld [vmem:[%s19016_s16 + $0x768] sm:$0xff] }
 0x98d   : > { %10539 = vmatpush1.bf16.msra.mxu1 %v15758_v26  ;;  %10497 = vmatprep.subr.bf16.mxu0 %v15487_v32  ;;  %v15919_v26 = vcombine.high %v7490_v50, %v7498_v41  ;;  %v7218_v32 = vld [vmem:[%s19016_s16 + $0x728] sm:$0xff] }
 0x98e   : > { %10540 = vmatprep.subr.bf16.mxu1 %v15743_v35  ;;  %v7474_v28 = vld [vmem:[%s19016_s16 + $0xf28] sm:$0xff]  ;;  %v15647_v46 = vcombine.high %v7218_v32, %v7226_v33  ;;  %v15646_v10 = vcombine.low %v7218_v32, %v7226_v33 }
 0x98f   : > { %v7482_v35 = vld [vmem:[%s19016_s16 + $0xf68] sm:$0xff] }
 0x990   : > { %10498 = vmatpush1.bf16.msra.mxu0 %v15486_v36  ;;  %v15903_v16 = vcombine.high %v7474_v28, %v7482_v35  ;;  %v7202_v36 = vld [vmem:[%s19016_s16 + $0x6a8] sm:$0xff]  ;;  %v15902_v15 = vcombine.low %v7474_v28, %v7482_v35 }
 0x991   : > { %10541 = vmatpush1.bf16.msra.mxu1 %v15742_v0  ;;  %10499 = vmatprep.subr.bf16.mxu0 %v15471_v54  ;;  %v7210_v0 = vld [vmem:[%s19016_s16 + $0x6e8] sm:$0xff] }
 0x992   : > { %10542 = vmatprep.subr.bf16.mxu1 %v15727_v34  ;;  %v7458_v54 = vld [vmem:[%s19016_s16 + $0xea8] sm:$0xff]  ;;  %v15631_v52 = vcombine.high %v7202_v36, %v7210_v0  ;;  %v15630_v22 = vcombine.low %v7202_v36, %v7210_v0 }
 0x993   : > { %v7466_v34 = vld [vmem:[%s19016_s16 + $0xee8] sm:$0xff] }
 0x994   : > { %10500 = vmatpush1.bf16.msra.mxu0 %v15470_v56  ;;  %v15887_v13 = vcombine.high %v7458_v54, %v7466_v34  ;;  %v7186_v56 = vld [vmem:[%s19016_s16 + $0x628] sm:$0xff]  ;;  %v15886_v53 = vcombine.low %v7458_v54, %v7466_v34 }
 0x995   : > { %10543 = vmatpush1.bf16.msra.mxu1 %v15726_v57  ;;  %10501 = vmatprep.subr.bf16.mxu0 %v15455_v59  ;;  %v7194_v57 = vld [vmem:[%s19016_s16 + $0x668] sm:$0xff] }
 0x996   : > { %10544 = vmatprep.subr.bf16.mxu1 %v15711_v63  ;;  %v7442_v59 = vld [vmem:[%s19016_s16 + $0xe28] sm:$0xff]  ;;  %v15615_v7 = vcombine.high %v7186_v56, %v7194_v57  ;;  %v15614_v27 = vcombine.low %v7186_v56, %v7194_v57 }
 0x997   : > { %v7450_v63 = vld [vmem:[%s19016_s16 + $0xe68] sm:$0xff] }
 0x998   : > { %10502 = vmatpush1.bf16.msra.mxu0 %v15454_v1  ;;  %v15871_v4 = vcombine.high %v7442_v59, %v7450_v63  ;;  %v7170_v1 = vld [vmem:[%s19016_s16 + $0x5a8] sm:$0xff]  ;;  %v15870_v47 = vcombine.low %v7442_v59, %v7450_v63 }
 0x999   : > { %10545 = vmatpush1.bf16.msra.mxu1 %v15710_v11  ;;  %10503 = vmatprep.subr.bf16.mxu0 %v15439_v44  ;;  %v7178_v11 = vld [vmem:[%s19016_s16 + $0x5e8] sm:$0xff] }
 0x99a   : > { %10546 = vmatprep.subr.bf16.mxu1 %v15695_v61  ;;  %v7426_v44 = vld [vmem:[%s19016_s16 + $0xda8] sm:$0xff]  ;;  %v15599_v12 = vcombine.high %v7170_v1, %v7178_v11  ;;  %v15598_v39 = vcombine.low %v7170_v1, %v7178_v11  ;;  %v7355_v1 = vld [vmem:[%s19016_s16 + $0xb70] sm:$0xff]  ;;  %v20613_v11 = vpop.f32.mrf.mxu0 }
 0x99b   : > { %v7434_v61 = vld [vmem:[%s19016_s16 + $0xde8] sm:$0xff] }
 0x99c   : > { %10504 = vmatpush1.bf16.msra.mxu0 %v15438_v20  ;;  %v15855_v9 = vcombine.high %v7426_v44, %v7434_v61  ;;  %v7154_v20 = vld [vmem:[%s19016_s16 + $0x528] sm:$0xff]  ;;  %v15854_v58 = vcombine.low %v7426_v44, %v7434_v61  ;;  %v20615_v61 = vpop.f32.mrf.mxu1 }
 0x99d   : > { %10547 = vmatpush1.bf16.msra.mxu1 %v15694_v17  ;;  %10505 = vmatprep.subr.bf16.mxu0 %v15423_v18  ;;  %v7162_v17 = vld [vmem:[%s19016_s16 + $0x568] sm:$0xff] }
 0x99e   : > { %10548 = vmatprep.subr.bf16.mxu1 %v15679_v19  ;;  %v7410_v18 = vld [vmem:[%s19016_s16 + $0xd28] sm:$0xff]  ;;  %v15583_v50 = vcombine.high %v7154_v20, %v7162_v17  ;;  %v15582_v32 = vcombine.low %v7154_v20, %v7162_v17  ;;  %v7331_v17 = vld [vmem:[%s19016_s16 + $0xab0] sm:$0xff] }
 0x99f   : > { %v7418_v19 = vld [vmem:[%s19016_s16 + $0xd68] sm:$0xff] }
 0x9a0   : > { %10506 = vmatpush1.bf16.msra.mxu0 %v15422_v37  ;;  %v15839_v41 = vcombine.high %v7410_v18, %v7418_v19  ;;  %v7138_v37 = vld [vmem:[%s19016_s16 + $0x4a8] sm:$0xff]  ;;  %v15838_v33 = vcombine.low %v7410_v18, %v7418_v19  ;;  %v7339_v18 = vld [vmem:[%s19016_s16 + $0xaf0] sm:$0xff] }
 0x9a1   : > { %10549 = vmatpush1.bf16.msra.mxu1 %v15678_v55  ;;  %10507 = vmatprep.subr.bf16.mxu0 %v15663_v48  ;;  %v7146_v55 = vld [vmem:[%s19016_s16 + $0x4e8] sm:$0xff] }
 0x9a2   : > { %10550 = vmatprep.subr.bf16.mxu1 %v15919_v26  ;;  %v7394_v48 = vld [vmem:[%s19016_s16 + $0xca8] sm:$0xff]  ;;  %v15567_v28 = vcombine.high %v7138_v37, %v7146_v55  ;;  %v15566_v36 = vcombine.low %v7138_v37, %v7146_v55 }
 0x9a3   : > { %v7402_v26 = vld [vmem:[%s19016_s16 + $0xce8] sm:$0xff] }
 0x9a4   : > { %10508 = vmatpush2.bf16.msra.mxu0 %v15662_v42  ;;  %v15823_v35 = vcombine.high %v7394_v48, %v7402_v26  ;;  %v7122_v42 = vld [vmem:[%s19016_s16 + $0x428] sm:$0xff]  ;;  %v15822_v0 = vcombine.low %v7394_v48, %v7402_v26  ;;  %v15761_v48 = vcombine.high %v7331_v17, %v7339_v18  ;;  %v7059_v26 = vld [vmem:[%s19016_s16 + $0x230] sm:$0xff] }
 0x9a5   : > { %10551 = vmatpush2.bf16.msra.mxu1 %v15918_v45  ;;  %10509 = vmatprep.subr.bf16.mxu0 %v15647_v46  ;;  %v7130_v45 = vld [vmem:[%s19016_s16 + $0x468] sm:$0xff] }
 0x9a6   : > { %10552 = vmatprep.subr.bf16.mxu1 %v15903_v16  ;;  %v7378_v46 = vld [vmem:[%s19016_s16 + $0xc28] sm:$0xff]  ;;  %v15551_v54 = vcombine.high %v7122_v42, %v7130_v45  ;;  %v15550_v56 = vcombine.low %v7122_v42, %v7130_v45 }
 0x9a7   : > { %v7386_v16 = vld [vmem:[%s19016_s16 + $0xc68] sm:$0xff] }
 0x9a8   : > { %10510 = vmatpush2.bf16.msra.mxu0 %v15646_v10  ;;  %v15807_v34 = vcombine.high %v7378_v46, %v7386_v16  ;;  %v7107_v10 = vld [vmem:[%s19016_s16 + $0x3b0] sm:$0xff]  ;;  %v15806_v57 = vcombine.low %v7378_v46, %v7386_v16  ;;  %v15760_v16 = vcombine.low %v7331_v17, %v7339_v18 }
 0x9a9   : > { %10553 = vmatpush2.bf16.msra.mxu1 %v15902_v15  ;;  %10511 = vmatprep.subr.bf16.mxu0 %v15631_v52  ;;  %v7115_v15 = vld [vmem:[%s19016_s16 + $0x3f0] sm:$0xff] }
 0x9aa   : > { %10554 = vmatprep.subr.bf16.mxu1 %v15887_v13  ;;  %v7363_v52 = vld [vmem:[%s19016_s16 + $0xbb0] sm:$0xff]  ;;  %v15537_v59 = vcombine.high %v7107_v10, %v7115_v15 }
 0x9ab   : > { %v7371_v13 = vld [vmem:[%s19016_s16 + $0xbf0] sm:$0xff] }
 0x9ac   : > { %10512 = vmatpush2.bf16.msra.mxu0 %v15630_v22  ;;  %v15793_v63 = vcombine.high %v7363_v52, %v7371_v13  ;;  %v7091_v22 = vld [vmem:[%s19016_s16 + $0x330] sm:$0xff]  ;;  %v15792_v44 = vcombine.low %v7363_v52, %v7371_v13 }
 0x9ad   : > { %10555 = vmatpush2.bf16.msra.mxu1 %v15886_v53  ;;  %10513 = vmatprep.subr.bf16.mxu0 %v15615_v7  ;;  %v7099_v53 = vld [vmem:[%s19016_s16 + $0x370] sm:$0xff]  ;;  %v15536_v7 = vcombine.low %v7107_v10, %v7115_v15 }
 0x9ae   : > { %10556 = vmatprep.subr.bf16.mxu1 %v15871_v4  ;;  %v7347_v4 = vld [vmem:[%s19016_s16 + $0xb30] sm:$0xff] }
 0x9af   : > { %v15777_v20 = vcombine.high %v7347_v4, %v7355_v1  ;;  %v7299_v52 = vld [vmem:[%s19016_s16 + $0x9b0] sm:$0xff] }
 0x9b0   : > { %10514 = vmatpush2.bf16.msra.mxu0 %v15614_v27  ;;  %v15521_v27 = vcombine.high %v7091_v22, %v7099_v53  ;;  %v7307_v13 = vld [vmem:[%s19016_s16 + $0x9f0] sm:$0xff] }
 0x9b1   : > { %10557 = vmatpush2.bf16.msra.mxu1 %v15870_v47  ;;  %10515 = vmatprep.subr.bf16.mxu0 %v15599_v12  ;;  %v7075_v47 = vld [vmem:[%s19016_s16 + $0x2b0] sm:$0xff] }
 0x9b2   : > { %10558 = vmatprep.subr.bf16.mxu1 %v15855_v9  ;;  %v7083_v12 = vld [vmem:[%s19016_s16 + $0x2f0] sm:$0xff] }
 0x9b3   : > { %v15505_v37 = vcombine.high %v7075_v47, %v7083_v12  ;;  %v15504_v45 = vcombine.low %v7075_v47, %v7083_v12  ;;  %v7267_v17 = vld [vmem:[%s19016_s16 + $0x8b0] sm:$0xff] }
 0x9b4   : > { %10516 = vmatpush2.bf16.msra.mxu0 %v15598_v39  ;;  %v15520_v39 = vcombine.low %v7091_v22, %v7099_v53  ;;  %v15729_v22 = vcombine.high %v7299_v52, %v7307_v13  ;;  %v7027_v53 = vld [vmem:[%s19016_s16 + $0x130] sm:$0xff] }
 0x9b5   : > { %10559 = vmatpush2.bf16.msra.mxu1 %v15854_v58  ;;  %10517 = vmatprep.subr.bf16.mxu0 %v15583_v50  ;;  %v7275_v18 = vld [vmem:[%s19016_s16 + $0x8f0] sm:$0xff] }
 0x9b6   : > { %10560 = vmatprep.subr.bf16.mxu1 %v15839_v41  ;;  %v15776_v41 = vcombine.low %v7347_v4, %v7355_v1  ;;  %v7283_v4 = vld [vmem:[%s19016_s16 + $0x930] sm:$0xff] }
 0x9b7   : > { %v7291_v1 = vld [vmem:[%s19016_s16 + $0x970] sm:$0xff] }
 0x9b8   : > { %10518 = vmatpush2.bf16.msra.mxu0 %v15582_v32  ;;  %v7067_v32 = vld [vmem:[%s19016_s16 + $0x270] sm:$0xff]  ;;  %v15713_v12 = vcombine.high %v7283_v4, %v7291_v1 }
 0x9b9   : > { %10561 = vmatpush2.bf16.msra.mxu1 %v15838_v33  ;;  %10519 = vmatprep.subr.bf16.mxu0 %v15567_v28  ;;  %v7315_v28 = vld [vmem:[%s19016_s16 + $0xa30] sm:$0xff] }
 0x9ba   : > { %10562 = vmatprep.subr.bf16.mxu1 %v15823_v35  ;;  %v7323_v35 = vld [vmem:[%s19016_s16 + $0xa70] sm:$0xff] }
 0x9bc   : > { %10520 = vmatpush2.bf16.msra.mxu0 %v15566_v36  ;;  %v15489_v36 = vcombine.high %v7059_v26, %v7067_v32 }
 0x9bd   : > { %10563 = vmatpush2.bf16.msra.mxu1 %v15822_v0  ;;  %10521 = vmatprep.subr.bf16.mxu0 %v15551_v54  ;;  %v15745_v0 = vcombine.high %v7315_v28, %v7323_v35  ;;  %v7043_v54 = vld [vmem:[%s19016_s16 + $0x1b0] sm:$0xff] }
 0x9be   : > { %10564 = vmatprep.subr.bf16.mxu1 %v15807_v34  ;;  %v7051_v34 = vld [vmem:[%s19016_s16 + $0x1f0] sm:$0xff] }
 0x9c0   : > { %10522 = vmatpush2.bf16.msra.mxu0 %v15550_v56  ;;  %v15488_v56 = vcombine.low %v7059_v26, %v7067_v32  ;;  %v7251_v26 = vld [vmem:[%s19016_s16 + $0x830] sm:$0xff] }
 0x9c1   : > { %10565 = vmatpush2.bf16.msra.mxu1 %v15806_v57  ;;  %10577 = vmatprep.subr.bf16.mxu0 %v15537_v59  ;;  %v15744_v59 = vcombine.low %v7315_v28, %v7323_v35  ;;  %v7259_v32 = vld [vmem:[%s19016_s16 + $0x870] sm:$0xff]  ;;  %v15696_v28 = vcombine.low %v7267_v17, %v7275_v18 }
 0x9c2   : > { %10620 = vmatprep.subr.bf16.mxu1 %v15793_v63  ;;  %v15473_v63 = vcombine.high %v7043_v54, %v7051_v34 }
 0x9c3   : > { %v10267_v9 = vpop.f32.mrf.mxu0  ;;  %10524 = vmatmul.mubr.bf16.vlgmr.msra.gmra.mxu0 %v20249_v31 }
 0x9c4   : > { %v10310_v19 = vpop.f32.mrf.mxu1  ;;  %10567 = vmatmul.mubr.bf16.vlgmr.msra.gmra.mxu1 %v20253_v60  ;;  %10578 = vmatpush1.bf16.msra.mxu0 %v15536_v7  ;;  %v7035_v7 = vld [vmem:[%s19016_s16 + $0x170] sm:$0xff] }
 0x9c5   : > { %v10311_v58 = vadd.f32 %v10310_v19, %v10267_v9  ;;  %10609 = vmatprep.mubr.bf16.mxu0 %v20241_v40  ;;  %10621 = vmatpush1.bf16.msra.mxu1 %v15792_v44  ;;  %v20624_v50 = vpop.f32.mrf.mxu0  ;;  %v15472_v44 = vcombine.low %v7043_v54, %v7051_v34  ;;  %v15457_v47 = vcombine.high %v7027_v53, %v7035_v7  ;;  %v7011_v9 = vld [vmem:[%s19016_s16 + $0xb0] sm:$0xff] }
 0x9c6   : > { %10652 = vmatprep.mubr.bf16.mxu1 %v20245_v25  ;;  %v20627_v55 = vpop.f32.mrf.mxu1  ;;  %10579 = vmatprep.subr.bf16.mxu0 %v15521_v27  ;;  %v15728_v27 = vcombine.low %v7299_v52, %v7307_v13  ;;  %v15456_v19 = vcombine.low %v7027_v53, %v7035_v7  ;;  %v15680_v54 = vcombine.low %v7251_v26, %v7259_v32  ;;  %v7227_v52 = vld [vmem:[%s19016_s16 + $0x770] sm:$0xff] }
 0x9c7   : > { %v10271_v33 = vpop.f32.mrf.mxu0  ;;  %10622 = vmatprep.subr.bf16.mxu1 %v15777_v20  ;;  %v10753_v10 = vmax.f32 %v10311_v58, 0.0  ;;  %v7019_v20 = vld [vmem:[%s19016_s16 + $0xf0] sm:$0xff] }
 0x9c8   : > { %v10314_v42 = vpop.f32.mrf.mxu1  ;;  %10580 = vmatpush1.bf16.msra.mxu0 %v15520_v39  ;;  %v15712_v39 = vcombine.low %v7283_v4, %v7291_v1  ;;  %v15441_v58 = vcombine.high %v7011_v9, %v7019_v20  ;;  %v7475_v13 = vld [vmem:[%s19016_s16 + $0xf30] sm:$0xff] }
 0x9c9   : > { %v10315_v46 = vadd.f32 %v10314_v42, %v10271_v33  ;;  %10623 = vmatpush1.bf16.msra.mxu1 %v15776_v41  ;;  %10581 = vmatprep.subr.bf16.mxu0 %v15505_v37  ;;  %v15697_v41 = vcombine.high %v7267_v17, %v7275_v18  ;;  %v6995_v37 = vld [vmem:[%s19016_s16 + $0x30] sm:$0xff]  ;;  %v15440_v33 = vcombine.low %v7011_v9, %v7019_v20 }
 0x9ca   : > { %10624 = vmatprep.subr.bf16.mxu1 %v15761_v48  ;;  %v7003_v48 = vld [vmem:[%s19016_s16 + $0x70] sm:$0xff]  ;;  %v15681_v42 = vcombine.high %v7251_v26, %v7259_v32 }
 0x9cb   : > { %v10769_v15 = vmax.f32 %v10315_v46, 0.0  ;;  %v15425_v35 = vcombine.high %v6995_v37, %v7003_v48  ;;  %v7243_v46 = vld [vmem:[%s19016_s16 + $0x7f0] sm:$0xff] }
 0x9cc   : > { %10582 = vmatpush1.bf16.msra.mxu0 %v15504_v45  ;;  %v7235_v45 = vld [vmem:[%s19016_s16 + $0x7b0] sm:$0xff] }
 0x9cd   : > { %v20637_v57 = vpack.c.bf16 %v10769_v15, %v10753_v10  ;;  %10625 = vmatpush1.bf16.msra.mxu1 %v15760_v16  ;;  %10583 = vmatprep.subr.bf16.mxu0 %v15489_v36  ;;  %v7491_v16 = vld [vmem:[%s19016_s16 + $0xfb0] sm:$0xff]  ;;  %v15665_v34 = vcombine.high %v7235_v45, %v7243_v46 }
 0x9ce   : > { %10626 = vmatprep.subr.bf16.mxu1 %v15745_v0  ;;  %v7499_v36 = vld [vmem:[%s19016_s16 + $0xff0] sm:$0xff]  ;;  %v15424_v0 = vcombine.low %v6995_v37, %v7003_v48 }
 0x9cf   : > { %v15921_v10 = vcombine.high %v7491_v16, %v7499_v36  ;;  %v7219_v15 = vld [vmem:[%s19016_s16 + $0x730] sm:$0xff] }
 0x9d0   : > { %10584 = vmatpush1.bf16.msra.mxu0 %v15488_v56  ;;  %v7483_v56 = vld [vmem:[%s19016_s16 + $0xf70] sm:$0xff] }
 0x9d1   : > { %10627 = vmatpush1.bf16.msra.mxu1 %v15744_v59  ;;  %10585 = vmatprep.subr.bf16.mxu0 %v15473_v63  ;;  %v15664_v59 = vcombine.low %v7235_v45, %v7243_v46  ;;  %v15920_v63 = vcombine.low %v7491_v16, %v7499_v36  ;;  %v15905_v53 = vcombine.high %v7475_v13, %v7483_v56  ;;  %v7203_v7 = vld [vmem:[%s19016_s16 + $0x6b0] sm:$0xff] }
 0x9d2   : > { %10628 = vmatprep.subr.bf16.mxu1 %v15729_v22  ;;  %v15649_v22 = vcombine.high %v7219_v15, %v7227_v52  ;;  %v7211_v4 = vld [vmem:[%s19016_s16 + $0x6f0] sm:$0xff] }
 0x9d3   : > { %v7459_v1 = vld [vmem:[%s19016_s16 + $0xeb0] sm:$0xff] }
 0x9d4   : > { %10586 = vmatpush1.bf16.msra.mxu0 %v15472_v44  ;;  %v7467_v44 = vld [vmem:[%s19016_s16 + $0xef0] sm:$0xff] }
 0x9d5   : > { %10629 = vmatpush1.bf16.msra.mxu1 %v15728_v27  ;;  %10587 = vmatprep.subr.bf16.mxu0 %v15457_v47  ;;  %v15648_v27 = vcombine.low %v7219_v15, %v7227_v52  ;;  %v15904_v47 = vcombine.low %v7475_v13, %v7483_v56  ;;  %v15889_v9 = vcombine.high %v7459_v1, %v7467_v44  ;;  %v7187_v20 = vld [vmem:[%s19016_s16 + $0x630] sm:$0xff] }
 0x9d6   : > { %10630 = vmatprep.subr.bf16.mxu1 %v15713_v12  ;;  %v15633_v12 = vcombine.high %v7203_v7, %v7211_v4  ;;  %v7195_v17 = vld [vmem:[%s19016_s16 + $0x670] sm:$0xff] }
 0x9d7   : > { %v7443_v18 = vld [vmem:[%s19016_s16 + $0xe30] sm:$0xff] }
 0x9d8   : > { %10588 = vmatpush1.bf16.msra.mxu0 %v15456_v19  ;;  %v7451_v19 = vld [vmem:[%s19016_s16 + $0xe70] sm:$0xff] }
 0x9d9   : > { %10631 = vmatpush1.bf16.msra.mxu1 %v15712_v39  ;;  %10589 = vmatprep.subr.bf16.mxu0 %v15441_v58  ;;  %v15632_v39 = vcombine.low %v7203_v7, %v7211_v4  ;;  %v15888_v58 = vcombine.low %v7459_v1, %v7467_v44  ;;  %v15873_v37 = vcombine.high %v7443_v18, %v7451_v19  ;;  %v7171_v48 = vld [vmem:[%s19016_s16 + $0x5b0] sm:$0xff] }
 0x9da   : > { %10632 = vmatprep.subr.bf16.mxu1 %v15697_v41  ;;  %v15617_v41 = vcombine.high %v7187_v20, %v7195_v17  ;;  %v7179_v26 = vld [vmem:[%s19016_s16 + $0x5f0] sm:$0xff] }
 0x9db   : > { %v7427_v32 = vld [vmem:[%s19016_s16 + $0xdb0] sm:$0xff] }
 0x9dc   : > { %10590 = vmatpush1.bf16.msra.mxu0 %v15440_v33  ;;  %v7435_v33 = vld [vmem:[%s19016_s16 + $0xdf0] sm:$0xff] }
 0x9dd   : > { %10633 = vmatpush1.bf16.msra.mxu1 %v15696_v28  ;;  %10591 = vmatprep.subr.bf16.mxu0 %v15425_v35  ;;  %v15616_v28 = vcombine.low %v7187_v20, %v7195_v17  ;;  %v15872_v35 = vcombine.low %v7443_v18, %v7451_v19  ;;  %v15857_v45 = vcombine.high %v7427_v32, %v7435_v33  ;;  %v7155_v46 = vld [vmem:[%s19016_s16 + $0x530] sm:$0xff]  ;;  %v7108_v17 = vld [vmem:[%s19016_s16 + $0x3b8] sm:$0xff] }
 0x9de   : > { %10634 = vmatprep.subr.bf16.mxu1 %v15681_v42  ;;  %v15601_v42 = vcombine.high %v7171_v48, %v7179_v26  ;;  %v7163_v16 = vld [vmem:[%s19016_s16 + $0x570] sm:$0xff]  ;;  %v7116_v18 = vld [vmem:[%s19016_s16 + $0x3f8] sm:$0xff] }
 0x9df   : > { %v7411_v36 = vld [vmem:[%s19016_s16 + $0xd30] sm:$0xff]  ;;  %v7364_v19 = vld [vmem:[%s19016_s16 + $0xbb8] sm:$0xff] }
 0x9e0   : > { %10592 = vmatpush1.bf16.msra.mxu0 %v15424_v0  ;;  %v7419_v0 = vld [vmem:[%s19016_s16 + $0xd70] sm:$0xff] }
 0x9e1   : > { %10635 = vmatpush1.bf16.msra.mxu1 %v15680_v54  ;;  %10593 = vmatprep.subr.bf16.mxu0 %v15665_v34  ;;  %v15600_v54 = vcombine.low %v7171_v48, %v7179_v26  ;;  %v15856_v34 = vcombine.low %v7427_v32, %v7435_v33  ;;  %v15841_v15 = vcombine.high %v7411_v36, %v7419_v0  ;;  %v7139_v52 = vld [vmem:[%s19016_s16 + $0x4b0] sm:$0xff]  ;;  %v7092_v26 = vld [vmem:[%s19016_s16 + $0x338] sm:$0xff] }
 0x9e2   : > { %10636 = vmatprep.subr.bf16.mxu1 %v15921_v10  ;;  %v15585_v10 = vcombine.high %v7155_v46, %v7163_v16  ;;  %v7147_v13 = vld [vmem:[%s19016_s16 + $0x4f0] sm:$0xff]  ;;  %v7100_v32 = vld [vmem:[%s19016_s16 + $0x378] sm:$0xff]  ;;  %v15538_v33 = vcombine.low %v7108_v17, %v7116_v18 }
 0x9e3   : > { %v7395_v56 = vld [vmem:[%s19016_s16 + $0xcb0] sm:$0xff] }
 0x9e4   : > { %10594 = vmatpush2.bf16.msra.mxu0 %v15664_v59  ;;  %v7403_v59 = vld [vmem:[%s19016_s16 + $0xcf0] sm:$0xff] }
 0x9e5   : > { %10637 = vmatpush2.bf16.msra.mxu1 %v15920_v63  ;;  %10595 = vmatprep.subr.bf16.mxu0 %v15649_v22  ;;  %v15584_v63 = vcombine.low %v7155_v46, %v7163_v16  ;;  %v15840_v22 = vcombine.low %v7411_v36, %v7419_v0  ;;  %v15825_v7 = vcombine.high %v7395_v56, %v7403_v59  ;;  %v7123_v4 = vld [vmem:[%s19016_s16 + $0x430] sm:$0xff]  ;;  %v20693_v46 = vpop.f32.mrf.mxu1  ;;  %v7076_v36 = vld [vmem:[%s19016_s16 + $0x2b8] sm:$0xff] }
 0x9e6   : > { %10638 = vmatprep.subr.bf16.mxu1 %v15905_v53  ;;  %v15569_v53 = vcombine.high %v7139_v52, %v7147_v13  ;;  %v7131_v1 = vld [vmem:[%s19016_s16 + $0x470] sm:$0xff]  ;;  %v15523_v16 = vcombine.high %v7092_v26, %v7100_v32  ;;  %v7084_v0 = vld [vmem:[%s19016_s16 + $0x2f8] sm:$0xff] }
 0x9e7   : > { %v7379_v44 = vld [vmem:[%s19016_s16 + $0xc30] sm:$0xff] }
 0x9e8   : > { %10596 = vmatpush2.bf16.msra.mxu0 %v15648_v27  ;;  %v7387_v27 = vld [vmem:[%s19016_s16 + $0xc70] sm:$0xff] }
 0x9e9   : > { %10639 = vmatpush2.bf16.msra.mxu1 %v15904_v47  ;;  %10597 = vmatprep.subr.bf16.mxu0 %v15633_v12  ;;  %v15568_v47 = vcombine.low %v7139_v52, %v7147_v13  ;;  %v15824_v12 = vcombine.low %v7395_v56, %v7403_v59  ;;  %v15809_v20 = vcombine.high %v7379_v44, %v7387_v27 }
 0x9ea   : > { %10640 = vmatprep.subr.bf16.mxu1 %v15889_v9  ;;  %v15553_v9 = vcombine.high %v7123_v4, %v7131_v1  ;;  %v15522_v13 = vcombine.low %v7092_v26, %v7100_v32 }
 0x9ec   : > { %10598 = vmatpush2.bf16.msra.mxu0 %v15632_v39  ;;  %v7372_v39 = vld [vmem:[%s19016_s16 + $0xbf8] sm:$0xff] }
 0x9ed   : > { %10641 = vmatpush2.bf16.msra.mxu1 %v15888_v58  ;;  %10599 = vmatprep.subr.bf16.mxu0 %v15617_v41  ;;  %v15552_v58 = vcombine.low %v7123_v4, %v7131_v1  ;;  %v15808_v41 = vcombine.low %v7379_v44, %v7387_v27  ;;  %v15795_v48 = vcombine.high %v7364_v19, %v7372_v39  ;;  %v7060_v4 = vld [vmem:[%s19016_s16 + $0x238] sm:$0xff] }
 0x9ee   : > { %10642 = vmatprep.subr.bf16.mxu1 %v15873_v37  ;;  %v15539_v37 = vcombine.high %v7108_v17, %v7116_v18  ;;  %v7068_v1 = vld [vmem:[%s19016_s16 + $0x278] sm:$0xff] }
 0x9ef   : > { %v7316_v27 = vld [vmem:[%s19016_s16 + $0xa38] sm:$0xff] }
 0x9f0   : > { %10600 = vmatpush2.bf16.msra.mxu0 %v15616_v28  ;;  %v7348_v28 = vld [vmem:[%s19016_s16 + $0xb38] sm:$0xff] }
 0x9f1   : > { %10643 = vmatpush2.bf16.msra.mxu1 %v15872_v35  ;;  %10601 = vmatprep.subr.bf16.mxu0 %v15601_v42  ;;  %v7356_v35 = vld [vmem:[%s19016_s16 + $0xb78] sm:$0xff]  ;;  %v20691_v42 = vpop.f32.mrf.mxu0 }
 0x9f2   : > { %10644 = vmatprep.subr.bf16.mxu1 %v15857_v45  ;;  %v15794_v45 = vcombine.low %v7364_v19, %v7372_v39  ;;  %v7044_v18 = vld [vmem:[%s19016_s16 + $0x1b8] sm:$0xff] }
 0x9f3   : > { %v7052_v19 = vld [vmem:[%s19016_s16 + $0x1f8] sm:$0xff] }
 0x9f4   : > { %10602 = vmatpush2.bf16.msra.mxu0 %v15600_v54 }
 0x9f5   : > { %10645 = vmatpush2.bf16.msra.mxu1 %v15856_v34  ;;  %10603 = vmatprep.subr.bf16.mxu0 %v15585_v10  ;;  %v15779_v34 = vcombine.high %v7348_v28, %v7356_v35  ;;  %v7332_v10 = vld [vmem:[%s19016_s16 + $0xab8] sm:$0xff] }
 0x9f6   : > { %10646 = vmatprep.subr.bf16.mxu1 %v15841_v15  ;;  %v7340_v15 = vld [vmem:[%s19016_s16 + $0xaf8] sm:$0xff] }
 0x9f8   : > { %10604 = vmatpush2.bf16.msra.mxu0 %v15584_v63  ;;  %v15778_v63 = vcombine.low %v7348_v28, %v7356_v35  ;;  %v7028_v35 = vld [vmem:[%s19016_s16 + $0x138] sm:$0xff] }
 0x9f9   : > { %10647 = vmatpush2.bf16.msra.mxu1 %v15840_v22  ;;  %10605 = vmatprep.subr.bf16.mxu0 %v15569_v53  ;;  %v15507_v22 = vcombine.high %v7076_v36, %v7084_v0 }
 0x9fa   : > { %10648 = vmatprep.subr.bf16.mxu1 %v15825_v7  ;;  %v15763_v7 = vcombine.high %v7332_v10, %v7340_v15 }
 0x9fc   : > { %10606 = vmatpush2.bf16.msra.mxu0 %v15568_v47 }
 0x9fd   : > { %10649 = vmatpush2.bf16.msra.mxu1 %v15824_v12  ;;  %10607 = vmatprep.subr.bf16.mxu0 %v15553_v9  ;;  %v15506_v12 = vcombine.low %v7076_v36, %v7084_v0  ;;  %v7292_v36 = vld [vmem:[%s19016_s16 + $0x978] sm:$0xff]  ;;  %v15474_v0 = vcombine.low %v7044_v18, %v7052_v19 }
 0x9fe   : > { %10650 = vmatprep.subr.bf16.mxu1 %v15809_v20  ;;  %v15491_v20 = vcombine.high %v7060_v4, %v7068_v1 }
 0xa00   : > { %10608 = vmatpush2.bf16.msra.mxu0 %v15552_v58 }
 0xa01   : > { %10651 = vmatpush2.bf16.msra.mxu1 %v15808_v41  ;;  %10663 = vmatprep.subr.bf16.mxu0 %v15539_v37  ;;  %v7300_v41 = vld [vmem:[%s19016_s16 + $0x9b8] sm:$0xff] }
 0xa02   : > { %10706 = vmatprep.subr.bf16.mxu1 %v15795_v48  ;;  %v7308_v37 = vld [vmem:[%s19016_s16 + $0x9f8] sm:$0xff]  ;;  %v15490_v48 = vcombine.low %v7060_v4, %v7068_v1 }
 0xa03   : > { %v10353_v54 = vpop.f32.mrf.mxu0  ;;  %10610 = vmatmul.mubr.bf16.vlgmr.msra.gmra.mxu0 %v20249_v31  ;;  %v15731_v28 = vcombine.high %v7300_v41, %v7308_v37  ;;  %v6996_v1 = vld [vmem:[%s19016_s16 + $0x38] sm:$0xff] }
 0xa04   : > { %v10396_v52 = vpop.f32.mrf.mxu1  ;;  %10653 = vmatmul.mubr.bf16.vlgmr.msra.gmra.mxu1 %v20253_v60  ;;  %10664 = vmatpush1.bf16.msra.mxu0 %v15538_v33  ;;  %v15475_v33 = vcombine.high %v7044_v18, %v7052_v19  ;;  %v7492_v18 = vld [vmem:[%s19016_s16 + $0xfb8] sm:$0xff] }
 0xa05   : > { %v10397_v56 = vadd.f32 %v10396_v52, %v10353_v54  ;;  %10695 = vmatprep.mubr.bf16.mxu0 %v20241_v40  ;;  %10707 = vmatpush1.bf16.msra.mxu1 %v15794_v45  ;;  %v20702_v59 = vpop.f32.mrf.mxu0  ;;  %v7324_v40 = vld [vmem:[%s19016_s16 + $0xa78] sm:$0xff]  ;;  %v15730_v54 = vcombine.low %v7300_v41, %v7308_v37 }
 0xa06   : > { %10738 = vmatprep.mubr.bf16.mxu1 %v20245_v25  ;;  %v20705_v53 = vpop.f32.mrf.mxu1  ;;  %10665 = vmatprep.subr.bf16.mxu0 %v15523_v16  ;;  %v15762_v25 = vcombine.low %v7332_v10, %v7340_v15  ;;  %v15747_v17 = vcombine.high %v7316_v27, %v7324_v40  ;;  %v15746_v32 = vcombine.low %v7316_v27, %v7324_v40  ;;  %v7036_v45 = vld [vmem:[%s19016_s16 + $0x178] sm:$0xff] }
 0xa07   : > { %v10357_v44 = vpop.f32.mrf.mxu0  ;;  %10708 = vmatprep.subr.bf16.mxu1 %v15779_v34  ;;  %v10755_v39 = vmax.f32 %v10397_v56, 0.0  ;;  %v7284_v16 = vld [vmem:[%s19016_s16 + $0x938] sm:$0xff]  ;;  %v15459_v34 = vcombine.high %v7028_v35, %v7036_v45 }
 0xa08   : > { %v10400_v47 = vpop.f32.mrf.mxu1  ;;  %10666 = vmatpush1.bf16.msra.mxu0 %v15522_v13  ;;  %v15715_v10 = vcombine.high %v7284_v16, %v7292_v36  ;;  %v7012_v15 = vld [vmem:[%s19016_s16 + $0xb8] sm:$0xff] }
 0xa09   : > { %v10401_v9 = vadd.f32 %v10400_v47, %v10357_v44  ;;  %10709 = vmatpush1.bf16.msra.mxu1 %v15778_v63  ;;  %10667 = vmatprep.subr.bf16.mxu0 %v15507_v22  ;;  %v7020_v52 = vld [vmem:[%s19016_s16 + $0xf8] sm:$0xff]  ;;  %v15458_v63 = vcombine.low %v7028_v35, %v7036_v45  ;;  %v15714_v22 = vcombine.low %v7284_v16, %v7292_v36 }
 0xa0a   : > { %10710 = vmatprep.subr.bf16.mxu1 %v15763_v7  ;;  %v7268_v13 = vld [vmem:[%s19016_s16 + $0x8b8] sm:$0xff]  ;;  %v15443_v7 = vcombine.high %v7012_v15, %v7020_v52  ;;  %v15442_v47 = vcombine.low %v7012_v15, %v7020_v52 }
 0xa0b   : > { %v10771_v58 = vmax.f32 %v10401_v9, 0.0  ;;  %v7276_v56 = vld [vmem:[%s19016_s16 + $0x8f8] sm:$0xff] }
 0xa0c   : > { %10668 = vmatpush1.bf16.msra.mxu0 %v15506_v12  ;;  %v15699_v4 = vcombine.high %v7268_v13, %v7276_v56  ;;  %v7004_v44 = vld [vmem:[%s19016_s16 + $0x78] sm:$0xff]  ;;  %v15698_v12 = vcombine.low %v7268_v13, %v7276_v56 }
 0xa0d   : > { %v20715_v26 = vpack.c.bf16 %v10771_v58, %v10755_v39  ;;  %10711 = vmatpush1.bf16.msra.mxu1 %v15762_v25  ;;  %10669 = vmatprep.subr.bf16.mxu0 %v15491_v20  ;;  %v7252_v27 = vld [vmem:[%s19016_s16 + $0x838] sm:$0xff]  ;;  %v15427_v9 = vcombine.high %v6996_v1, %v7004_v44  ;;  %v15426_v39 = vcombine.low %v6996_v1, %v7004_v44 }
 0xa0e   : > { %10712 = vmatprep.subr.bf16.mxu1 %v15747_v17  ;;  %v7260_v40 = vld [vmem:[%s19016_s16 + $0x878] sm:$0xff] }
 0xa0f   : > { %v15683_v25 = vcombine.high %v7252_v27, %v7260_v40  ;;  %v7236_v20 = vld [vmem:[%s19016_s16 + $0x7b8] sm:$0xff]  ;;  %v15682_v58 = vcombine.low %v7252_v27, %v7260_v40 }
 0xa10   : > { %10670 = vmatpush1.bf16.msra.mxu0 %v15490_v48  ;;  %v7244_v17 = vld [vmem:[%s19016_s16 + $0x7f8] sm:$0xff] }
 0xa11   : > { %10713 = vmatpush1.bf16.msra.mxu1 %v15746_v32  ;;  %10671 = vmatprep.subr.bf16.mxu0 %v15475_v33  ;;  %v7500_v19 = vld [vmem:[%s19016_s16 + $0xff8] sm:$0xff]  ;;  %v15667_v41 = vcombine.high %v7236_v20, %v7244_v17  ;;  %v15666_v35 = vcombine.low %v7236_v20, %v7244_v17 }
 0xa12   : > { %10714 = vmatprep.subr.bf16.mxu1 %v15731_v28  ;;  %v15923_v37 = vcombine.high %v7492_v18, %v7500_v19  ;;  %v7220_v48 = vld [vmem:[%s19016_s16 + $0x738] sm:$0xff]  ;;  %v15922_v45 = vcombine.low %v7492_v18, %v7500_v19 }
 0xa13   : > { %v7228_v32 = vld [vmem:[%s19016_s16 + $0x778] sm:$0xff] }
 0xa14   : > { %10672 = vmatpush1.bf16.msra.mxu0 %v15474_v0  ;;  %v7476_v33 = vld [vmem:[%s19016_s16 + $0xf38] sm:$0xff]  ;;  %v15651_v16 = vcombine.high %v7220_v48, %v7228_v32  ;;  %v15650_v15 = vcombine.low %v7220_v48, %v7228_v32 }
 0xa15   : > { %10715 = vmatpush1.bf16.msra.mxu1 %v15730_v54  ;;  %10673 = vmatprep.subr.bf16.mxu0 %v15459_v34  ;;  %v7484_v28 = vld [vmem:[%s19016_s16 + $0xf78] sm:$0xff] }
 0xa16   : > { %10716 = vmatprep.subr.bf16.mxu1 %v15715_v10  ;;  %v15907_v36 = vcombine.high %v7476_v33, %v7484_v28  ;;  %v7204_v0 = vld [vmem:[%s19016_s16 + $0x6b8] sm:$0xff]  ;;  %v15906_v52 = vcombine.low %v7476_v33, %v7484_v28 }
 0xa17   : > { %v7212_v54 = vld [vmem:[%s19016_s16 + $0x6f8] sm:$0xff] }
 0xa18   : > { %10674 = vmatpush1.bf16.msra.mxu0 %v15458_v63  ;;  %v7460_v34 = vld [vmem:[%s19016_s16 + $0xeb8] sm:$0xff]  ;;  %v15635_v13 = vcombine.high %v7204_v0, %v7212_v54  ;;  %v15634_v1 = vcombine.low %v7204_v0, %v7212_v54 }
 0xa19   : > { %10717 = vmatpush1.bf16.msra.mxu1 %v15714_v22  ;;  %10675 = vmatprep.subr.bf16.mxu0 %v15443_v7  ;;  %v7468_v10 = vld [vmem:[%s19016_s16 + $0xef8] sm:$0xff] }
 0xa1a   : > { %10718 = vmatprep.subr.bf16.mxu1 %v15699_v4  ;;  %v15891_v56 = vcombine.high %v7460_v34, %v7468_v10  ;;  %v7188_v63 = vld [vmem:[%s19016_s16 + $0x638] sm:$0xff]  ;;  %v15890_v44 = vcombine.low %v7460_v34, %v7468_v10 }
 0xa1b   : > { %v7196_v22 = vld [vmem:[%s19016_s16 + $0x678] sm:$0xff] }
 0xa1c   : > { %10676 = vmatpush1.bf16.msra.mxu0 %v15442_v47  ;;  %v7444_v7 = vld [vmem:[%s19016_s16 + $0xe38] sm:$0xff]  ;;  %v15619_v27 = vcombine.high %v7188_v63, %v7196_v22  ;;  %v15618_v20 = vcombine.low %v7188_v63, %v7196_v22 }
 0xa1d   : > { %10719 = vmatpush1.bf16.msra.mxu1 %v15698_v12  ;;  %10677 = vmatprep.subr.bf16.mxu0 %v15427_v9  ;;  %v7452_v4 = vld [vmem:[%s19016_s16 + $0xe78] sm:$0xff] }
 0xa1e   : > { %10720 = vmatprep.subr.bf16.mxu1 %v15683_v25  ;;  %v15875_v40 = vcombine.high %v7444_v7, %v7452_v4  ;;  %v7172_v47 = vld [vmem:[%s19016_s16 + $0x5b8] sm:$0xff]  ;;  %v15874_v17 = vcombine.low %v7444_v7, %v7452_v4 }
 0xa1f   : > { %v7180_v12 = vld [vmem:[%s19016_s16 + $0x5f8] sm:$0xff] }
 0xa20   : > { %10678 = vmatpush1.bf16.msra.mxu0 %v15426_v39  ;;  %v7428_v9 = vld [vmem:[%s19016_s16 + $0xdb8] sm:$0xff]  ;;  %v15603_v18 = vcombine.high %v7172_v47, %v7180_v12  ;;  %v15602_v48 = vcombine.low %v7172_v47, %v7180_v12  ;;  %v17571_v12 = vld [vmem:[%s19018_s20 + $0xe4] ss:$16 sps:$4 sm:$0xff]  }
 0xa21   : > { %10721 = vmatpush1.bf16.msra.mxu1 %v15682_v58  ;;  %10679 = vmatprep.subr.bf16.mxu0 %v15667_v41  ;;  %v7436_v25 = vld [vmem:[%s19016_s16 + $0xdf8] sm:$0xff] }
 0xa22   : > { %10722 = vmatprep.subr.bf16.mxu1 %v15923_v37  ;;  %v15859_v19 = vcombine.high %v7428_v9, %v7436_v25  ;;  %v7156_v39 = vld [vmem:[%s19016_s16 + $0x538] sm:$0xff]  ;;  %v15858_v32 = vcombine.low %v7428_v9, %v7436_v25  ;;  %v10227_v9 = vadd.f32 %v20548_v8, %v20546_v14  ;;  %v17574_v25 = vld [vmem:[%s19018_s20 + $0x2e4] ss:$16 sps:$4 sm:$0xff]  }
 0xa23   : > { %v7164_v58 = vld [vmem:[%s19016_s16 + $0x578] sm:$0xff]  ;;  %v17577_v14 = vld [vmem:[%s19018_s20 + $0xc4] ss:$16 sps:$4 sm:$0xff]  }
 0xa24   : > { %10680 = vmatpush2.bf16.msra.mxu0 %v15666_v35  ;;  %v7412_v41 = vld [vmem:[%s19016_s16 + $0xd38] sm:$0xff]  ;;  %v15587_v33 = vcombine.high %v7156_v39, %v7164_v58  ;;  %v15586_v0 = vcombine.low %v7156_v39, %v7164_v58 }
 0xa25   : > { %10723 = vmatpush2.bf16.msra.mxu1 %v15922_v45  ;;  %10681 = vmatprep.subr.bf16.mxu0 %v15651_v16  ;;  %v7420_v37 = vld [vmem:[%s19016_s16 + $0xd78] sm:$0xff] }
 0xa26   : > { %10724 = vmatprep.subr.bf16.mxu1 %v15907_v36  ;;  %v15843_v28 = vcombine.high %v7412_v41, %v7420_v37  ;;  %v7140_v35 = vld [vmem:[%s19016_s16 + $0x4b8] sm:$0xff]  ;;  %v15842_v54 = vcombine.low %v7412_v41, %v7420_v37  ;;  %v17575_v41 = vld [vmem:[%s19018_s20 + $0xc0] ss:$16 sps:$4 sm:$0xff]  }
 0xa27   : > { %v7148_v45 = vld [vmem:[%s19016_s16 + $0x4f8] sm:$0xff] }
 0xa28   : > { %10682 = vmatpush2.bf16.msra.mxu0 %v15650_v15  ;;  %v7396_v16 = vld [vmem:[%s19016_s16 + $0xcb8] sm:$0xff]  ;;  %v15571_v34 = vcombine.high %v7140_v35, %v7148_v45  ;;  %v15570_v63 = vcombine.low %v7140_v35, %v7148_v45  ;;  %v17581_v45 = vld [vmem:[%s19018_s20 + $0xa0] ss:$16 sps:$4 sm:$0xff]  }
 0xa29   : > { %10725 = vmatpush2.bf16.msra.mxu1 %v15906_v52  ;;  %10683 = vmatprep.subr.bf16.mxu0 %v15635_v13  ;;  %v7404_v36 = vld [vmem:[%s19016_s16 + $0xcf8] sm:$0xff] }
 0xa2a   : > { %10726 = vmatprep.subr.bf16.mxu1 %v15891_v56  ;;  %v15827_v10 = vcombine.high %v7396_v16, %v7404_v36  ;;  %v7124_v15 = vld [vmem:[%s19016_s16 + $0x438] sm:$0xff]  ;;  %v15826_v22 = vcombine.low %v7396_v16, %v7404_v36  ;;  %v17584_v36 = vld [vmem:[%s19018_s20 + $0x2a0] ss:$16 sps:$4 sm:$0xff]  }
 0xa2b   : > { %v7132_v52 = vld [vmem:[%s19016_s16 + $0x478] sm:$0xff] }
 0xa2c   : > { %10684 = vmatpush2.bf16.msra.mxu0 %v15634_v1  ;;  %v7380_v13 = vld [vmem:[%s19016_s16 + $0xc38] sm:$0xff]  ;;  %v15555_v7 = vcombine.high %v7124_v15, %v7132_v52  ;;  %v10145_v1 = vadd.f32 %v20537_v38, %v20535_v5 }
 0xa2d   : > { %10727 = vmatpush2.bf16.msra.mxu1 %v15890_v44  ;;  %10685 = vmatprep.subr.bf16.mxu0 %v15619_v27  ;;  %v7388_v56 = vld [vmem:[%s19016_s16 + $0xc78] sm:$0xff]  ;;  %v10231_v44 = vadd.f32 %v20615_v61, %v20613_v11  ;;  %v15554_v27 = vcombine.low %v7124_v15, %v7132_v52  ;;  %v17569_v11 = vld [vmem:[%s19018_s20 + $0xe0] ss:$16 sps:$4 sm:$0xff]  }
 0xa2e   : > { %10728 = vmatprep.subr.bf16.mxu1 %v15875_v40  ;;  %v15811_v4 = vcombine.high %v7380_v13, %v7388_v56  ;;  %v10141_v40 = vadd.f32 %v20470_v23, %v20468_v43  ;;  %v15810_v47 = vcombine.low %v7380_v13, %v7388_v56  ;;  %v10766_v5 = vmax.f32 %v10145_v1, 0.0  ;;  %v17572_v43 = vld [vmem:[%s19018_s20 + $0x2e0] ss:$16 sps:$4 sm:$0xff]   ;;  %v17595_v56 = vld [vmem:[%s19018_s20 + $0x64] ss:$16 sps:$4 sm:$0xff]  }
 0xa2f   : > { %v10768_v38 = vmax.f32 %v10231_v44, 0.0  ;;  %v10752_v23 = vmax.f32 %v10227_v9, 0.0  ;;  %v17587_v15 = vld [vmem:[%s19018_s20 + $0x80] ss:$16 sps:$4 sm:$0xff]   ;;  %v17604_v1 = vld [vmem:[%s19018_s20 + $0x244] ss:$16 sps:$4 sm:$0xff]  }
 0xa30   : > { %10686 = vmatpush2.bf16.msra.mxu0 %v15618_v20  ;;  %v10750_v61 = vmax.f32 %v10141_v40, 0.0  ;;  %v20772_v20 = vpop.f32.mrf.mxu0  ;;  %v17590_v13 = vld [vmem:[%s19018_s20 + $0x280] ss:$16 sps:$4 sm:$0xff]   ;;  %v17607_v40 = vld [vmem:[%s19018_s20 + $0x24] ss:$16 sps:$4 sm:$0xff]  }
 0xa31   : > { %10729 = vmatpush2.bf16.msra.mxu1 %v15874_v17  ;;  %10687 = vmatprep.subr.bf16.mxu0 %v15603_v18  ;;  %v20775_v17 = vpop.f32.mrf.mxu1  ;;  %v20782_v39 = vpack.c.bf16 %v10768_v38, %v10752_v23  ;;  %v17599_v44 = vld [vmem:[%s19018_s20 + $0x40] ss:$16 sps:$4 sm:$0xff]  }
 0xa32   : > { %10730 = vmatprep.subr.bf16.mxu1 %v15859_v19  ;;  %v20778_v8 = vpack.c.bf16 %v10766_v5, %v10750_v61  ;;  %v17580_v19 = vld [vmem:[%s19018_s20 + $0x2c4] ss:$16 sps:$4 sm:$0xff]   ;;  %v17608_v9 = vld [vmem:[%s19018_s20 + $0x220] ss:$16 sps:$4 sm:$0xff]  }
 0xa33   : > { %v17616_v5 = vld [vmem:[%s19018_s20 + $0x204] ss:$16 sps:$4 sm:$0xff]   ;;  %v17611_v38 = vld [vmem:[%s19018_s20] ss:$16 sps:$4 sm:$0xff]  }
 0xa34   : > { %10688 = vmatpush2.bf16.msra.mxu0 %v15602_v48  ;;  %v17619_v61 = vld [vmem:[%s19018_s20 + $0x1e4] ss:$16 sps:$4 sm:$0xff]   ;;  %v17617_v23 = vld [vmem:[%s19018_s20 + $0x1e0] ss:$16 sps:$4 sm:$0xff]  }
 0xa35   : > { %10731 = vmatpush2.bf16.msra.mxu1 %v15858_v32  ;;  %10689 = vmatprep.subr.bf16.mxu0 %v15587_v33  ;;  %v17578_v32 = vld [vmem:[%s19018_s20 + $0x2c0] ss:$16 sps:$4 sm:$0xff]  }
 0xa36   : > { %10732 = vmatprep.subr.bf16.mxu1 %v15843_v28 }
 0xa38   : > { %10690 = vmatpush2.bf16.msra.mxu0 %v15586_v0  ;;  %v17589_v0 = vld [vmem:[%s19018_s20 + $0x84] ss:$16 sps:$4 sm:$0xff]  }
 0xa39   : > { %10733 = vmatpush2.bf16.msra.mxu1 %v15842_v54  ;;  %10691 = vmatprep.subr.bf16.mxu0 %v15571_v34  ;;  %v17592_v54 = vld [vmem:[%s19018_s20 + $0x284] ss:$16 sps:$4 sm:$0xff]  }
 0xa3a   : > { %10734 = vmatprep.subr.bf16.mxu1 %v15827_v10 }
 0xa3c   : > { %10692 = vmatpush2.bf16.msra.mxu0 %v15570_v63  ;;  %v17598_v63 = vld [vmem:[%s19018_s20 + $0x264] ss:$16 sps:$4 sm:$0xff]  }
 0xa3d   : > { %10735 = vmatpush2.bf16.msra.mxu1 %v15826_v22  ;;  %10693 = vmatprep.subr.bf16.mxu0 %v15555_v7  ;;  %v17593_v22 = vld [vmem:[%s19018_s20 + $0x60] ss:$16 sps:$4 sm:$0xff]  }
 0xa3e   : > { %10736 = vmatprep.subr.bf16.mxu1 %v15811_v4  ;;  %v17596_v7 = vld [vmem:[%s19018_s20 + $0x260] ss:$16 sps:$4 sm:$0xff]   ;;  %v17601_v4 = vld [vmem:[%s19018_s20 + $0x44] ss:$16 sps:$4 sm:$0xff]  }
 0xa40   : > { %10694 = vmatpush2.bf16.msra.mxu0 %v15554_v27  ;;  %v17602_v27 = vld [vmem:[%s19018_s20 + $0x240] ss:$16 sps:$4 sm:$0xff]  }
 0xa41   : > { %10737 = vmatpush2.bf16.msra.mxu1 %v15810_v47  ;;  %13869 = vmatprep.subr.bf16.mxu0 %v17571_v12  ;;  %v17610_v47 = vld [vmem:[%s19018_s20 + $0x224] ss:$16 sps:$4 sm:$0xff]   ;;  %v17605_v12 = vld [vmem:[%s19018_s20 + $0x20] ss:$16 sps:$4 sm:$0xff]  }
 0xa42   : > { %13912 = vmatprep.subr.bf16.mxu1 %v17574_v25  ;;  %v17613_v25 = vld [vmem:[%s19018_s20 + $0x4] ss:$16 sps:$4 sm:$0xff]  }
 0xa43   : > { %v10439_v18 = vpop.f32.mrf.mxu0  ;;  %10696 = vmatmul.mubr.bf16.vlgmr.msra.gmra.mxu0 %v20249_v31  ;;  %v17583_v31 = vld [vmem:[%s19018_s20 + $0xa4] ss:$16 sps:$4 sm:$0xff]  }
 0xa44   : > { %v10482_v58 = vpop.f32.mrf.mxu1  ;;  %10739 = vmatmul.mubr.bf16.vlgmr.msra.gmra.mxu1 %v20253_v60  ;;  %13870 = vmatpush1.bf16.msra.mxu0 %v17569_v11  ;;  %v17586_v60 = vld [vmem:[%s19018_s20 + $0x2a4] ss:$16 sps:$4 sm:$0xff]   ;;  %v17614_v11 = vld [vmem:[%s19018_s20 + $0x200] ss:$16 sps:$4 sm:$0xff]  }
 0xa45   : > { %v10483_v37 = vadd.f32 %v10482_v58, %v10439_v18  ;;  %13901 = vmatprep.mubr.bf16.mxu0 %v20778_v8  ;;  %13913 = vmatpush1.bf16.msra.mxu1 %v17572_v43  ;;  %v20787_v48 = vpop.f32.mrf.mxu0  ;;  %v17622_v43 = vld [vmem:[%s19018_s20 + $0x3e4] ss:$16 sps:$4 sm:$0xff]   ;;  %v17623_v58 = vld [vmem:[%s19018_s20 + $0x1c0] ss:$16 sps:$4 sm:$0xff]  }
 0xa46   : > { %13944 = vmatprep.mubr.bf16.mxu1 %v20782_v39  ;;  %v20792_v33 = vpop.f32.mrf.mxu1  ;;  %13871 = vmatprep.subr.bf16.mxu0 %v17577_v14  ;;  %v17620_v14 = vld [vmem:[%s19018_s20 + $0x3e0] ss:$16 sps:$4 sm:$0xff]   ;;  %v17625_v18 = vld [vmem:[%s19018_s20 + $0x1c4] ss:$16 sps:$4 sm:$0xff]  }
 0xa47   : > { %v10443_v28 = vpop.f32.mrf.mxu0  ;;  %13914 = vmatprep.subr.bf16.mxu1 %v17580_v19  ;;  %v10757_v34 = vmax.f32 %v10483_v37, 0.0  ;;  %v17628_v19 = vld [vmem:[%s19018_s20 + $0x3c4] ss:$16 sps:$4 sm:$0xff]  }
 0xa48   : > { %v10486_v35 = vpop.f32.mrf.mxu1  ;;  %13872 = vmatpush1.bf16.msra.mxu0 %v17575_v41  ;;  %v17626_v41 = vld [vmem:[%s19018_s20 + $0x3c0] ss:$16 sps:$4 sm:$0xff]   ;;  %v17631_v37 = vld [vmem:[%s19018_s20 + $0x1a4] ss:$16 sps:$4 sm:$0xff]  }
 0xa49   : > { %v10487_v16 = vadd.f32 %v10486_v35, %v10443_v28  ;;  %13915 = vmatpush1.bf16.msra.mxu1 %v17578_v32  ;;  %13873 = vmatprep.subr.bf16.mxu0 %v17583_v31  ;;  %v17634_v32 = vld [vmem:[%s19018_s20 + $0x3a4] ss:$16 sps:$4 sm:$0xff]   ;;  %v17629_v31 = vld [vmem:[%s19018_s20 + $0x1a0] ss:$16 sps:$4 sm:$0xff]  }
 0xa4a   : > { %13916 = vmatprep.subr.bf16.mxu1 %v17586_v60  ;;  %v17632_v60 = vld [vmem:[%s19018_s20 + $0x3a0] ss:$16 sps:$4 sm:$0xff]   ;;  %v17637_v28 = vld [vmem:[%s19018_s20 + $0x184] ss:$16 sps:$4 sm:$0xff]  }
 0xa4b   : > { %v10773_v10 = vmax.f32 %v10487_v16, 0.0  ;;  %v17640_v35 = vld [vmem:[%s19018_s20 + $0x384] ss:$16 sps:$4 sm:$0xff]   ;;  %v17638_v16 = vld [vmem:[%s19018_s20 + $0x380] ss:$16 sps:$4 sm:$0xff]  }
 0xa4c   : > { %13874 = vmatpush1.bf16.msra.mxu0 %v17581_v45  ;;  %v17635_v45 = vld [vmem:[%s19018_s20 + $0x180] ss:$16 sps:$4 sm:$0xff]  }
 0xa4d   : > { %v20800_v52 = vpack.c.bf16 %v10773_v10, %v10757_v34  ;;  %13917 = vmatpush1.bf16.msra.mxu1 %v17584_v36  ;;  %13875 = vmatprep.subr.bf16.mxu0 %v17589_v0  ;;  %v17643_v36 = vld [vmem:[%s19018_s20 + $0x164] ss:$16 sps:$4 sm:$0xff]   ;;  %v17644_v34 = vld [vmem:[%s19018_s20 + $0x360] ss:$16 sps:$4 sm:$0xff]  }
 0xa4e   : > { %13918 = vmatprep.subr.bf16.mxu1 %v17592_v54  ;;  %v17646_v0 = vld [vmem:[%s19018_s20 + $0x364] ss:$16 sps:$4 sm:$0xff]   ;;  %v17641_v54 = vld [vmem:[%s19018_s20 + $0x160] ss:$16 sps:$4 sm:$0xff]  }
 0xa4f   : > { %v17649_v10 = vld [vmem:[%s19018_s20 + $0x144] ss:$16 sps:$4 sm:$0xff]  }
 0xa50   : > { %13876 = vmatpush1.bf16.msra.mxu0 %v17587_v15  ;;  %v17652_v15 = vld [vmem:[%s19018_s20 + $0x344] ss:$16 sps:$4 sm:$0xff]  }
 0xa51   : > { %13919 = vmatpush1.bf16.msra.mxu1 %v17590_v13  ;;  %13877 = vmatprep.subr.bf16.mxu0 %v17595_v56  ;;  %v17647_v13 = vld [vmem:[%s19018_s20 + $0x140] ss:$16 sps:$4 sm:$0xff]  }
 0xa52   : > { %13920 = vmatprep.subr.bf16.mxu1 %v17598_v63  ;;  %v17650_v56 = vld [vmem:[%s19018_s20 + $0x340] ss:$16 sps:$4 sm:$0xff]   ;;  %v17655_v63 = vld [vmem:[%s19018_s20 + $0x124] ss:$16 sps:$4 sm:$0xff]  }
 0xa54   : > { %13878 = vmatpush1.bf16.msra.mxu0 %v17593_v22  ;;  %v17658_v22 = vld [vmem:[%s19018_s20 + $0x324] ss:$16 sps:$4 sm:$0xff]  }
 0xa55   : > { %13921 = vmatpush1.bf16.msra.mxu1 %v17596_v7  ;;  %13879 = vmatprep.subr.bf16.mxu0 %v17601_v4  ;;  %v17653_v7 = vld [vmem:[%s19018_s20 + $0x120] ss:$16 sps:$4 sm:$0xff]  }
 0xa56   : > { %13922 = vmatprep.subr.bf16.mxu1 %v17604_v1  ;;  %v17656_v4 = vld [vmem:[%s19018_s20 + $0x320] ss:$16 sps:$4 sm:$0xff]   ;;  %v17661_v1 = vld [vmem:[%s19018_s20 + $0x104] ss:$16 sps:$4 sm:$0xff]  }
 0xa58   : > { %13880 = vmatpush1.bf16.msra.mxu0 %v17599_v44  ;;  %v17664_v44 = vld [vmem:[%s19018_s20 + $0x304] ss:$16 sps:$4 sm:$0xff]  }
 0xa59   : > { %13923 = vmatpush1.bf16.msra.mxu1 %v17602_v27  ;;  %13881 = vmatprep.subr.bf16.mxu0 %v17607_v40  ;;  %v10317_v27 = vadd.f32 %v20693_v46, %v20691_v42  ;;  %v10403_v40 = vadd.f32 %v20775_v17, %v20772_v20  ;;  %v17665_v20 = vld [vmem:[%s19018_s20 + $0x4e0] ss:$16 sps:$4 sm:$0xff]  }
 0xa5a   : > { %13924 = vmatprep.subr.bf16.mxu1 %v17610_v47  ;;  %v17659_v47 = vld [vmem:[%s19018_s20 + $0x100] ss:$16 sps:$4 sm:$0xff]  }
 0xa5b   : > { %v10770_v42 = vmax.f32 %v10317_v27, 0.0  ;;  %v10772_v46 = vmax.f32 %v10403_v40, 0.0  ;;  %v17695_v27 = vld [vmem:[%s19018_s20 + $0x440] ss:$16 sps:$4 sm:$0xff]  }
 0xa5c   : > { %13882 = vmatpush1.bf16.msra.mxu0 %v17605_v12  ;;  %v10313_v12 = vadd.f32 %v20627_v55, %v20624_v50  ;;  %v17668_v50 = vld [vmem:[%s19018_s20 + $0x6e0] ss:$16 sps:$4 sm:$0xff]  }
 0xa5d   : > { %13925 = vmatpush1.bf16.msra.mxu1 %v17608_v9  ;;  %13883 = vmatprep.subr.bf16.mxu0 %v17613_v25  ;;  %v17662_v9 = vld [vmem:[%s19018_s20 + $0x300] ss:$16 sps:$4 sm:$0xff]   ;;  %v17667_v25 = vld [vmem:[%s19018_s20 + $0x4e4] ss:$16 sps:$4 sm:$0xff]  }
 0xa5e   : > { %13926 = vmatprep.subr.bf16.mxu1 %v17616_v5  ;;  %v10399_v5 = vadd.f32 %v20705_v53, %v20702_v59  ;;  %v10754_v17 = vmax.f32 %v10313_v12, 0.0  ;;  %v17673_v59 = vld [vmem:[%s19018_s20 + $0x4c4] ss:$16 sps:$4 sm:$0xff]   ;;  %v17698_v40 = vld [vmem:[%s19018_s20 + $0x640] ss:$16 sps:$4 sm:$0xff]  }
 0xa5f   : > { %v17706_v12 = vld [vmem:[%s19018_s20 + $0x624] ss:$16 sps:$4 sm:$0xff]  }
 0xa60   : > { %13884 = vmatpush1.bf16.msra.mxu0 %v17611_v38  ;;  %v17670_v38 = vld [vmem:[%s19018_s20 + $0x6e4] ss:$16 sps:$4 sm:$0xff]   ;;  %v10756_v55 = vmax.f32 %v10399_v5, 0.0  ;;  %v20868_v53 = vpack.c.bf16 %v10770_v42, %v10754_v17  ;;  %v17707_v42 = vld [vmem:[%s19018_s20 + $0x400] ss:$16 sps:$4 sm:$0xff]  }
 0xa61   : > { %13927 = vmatpush1.bf16.msra.mxu1 %v17614_v11  ;;  %13885 = vmatprep.subr.bf16.mxu0 %v17619_v61  ;;  %v20862_v11 = vpop.f32.mrf.mxu0  ;;  %v20865_v61 = vpop.f32.mrf.mxu1  ;;  %v17709_v5 = vld [vmem:[%s19018_s20 + $0x404] ss:$16 sps:$4 sm:$0xff]  }
 0xa62   : > { %13928 = vmatprep.subr.bf16.mxu1 %v17622_v43  ;;  %v17718_v17 = vld [vmem:[%s19018_s20 + $0x7e4] ss:$16 sps:$4 sm:$0xff]  }
 0xa64   : > { %13886 = vmatpush2.bf16.msra.mxu0 %v17617_v23  ;;  %v17676_v23 = vld [vmem:[%s19018_s20 + $0x6c4] ss:$16 sps:$4 sm:$0xff]  }
 0xa65   : > { %13929 = vmatpush2.bf16.msra.mxu1 %v17620_v14  ;;  %13887 = vmatprep.subr.bf16.mxu0 %v17625_v18  ;;  %v20872_v14 = vpack.c.bf16 %v10772_v46, %v10756_v55  ;;  %v17710_v46 = vld [vmem:[%s19018_s20 + $0x600] ss:$16 sps:$4 sm:$0xff]  }
 0xa66   : > { %13930 = vmatprep.subr.bf16.mxu1 %v17628_v19  ;;  %v17671_v19 = vld [vmem:[%s19018_s20 + $0x4c0] ss:$16 sps:$4 sm:$0xff]  }
 0xa67   : > { %v17716_v55 = vld [vmem:[%s19018_s20 + $0x7e0] ss:$16 sps:$4 sm:$0xff]  }
 0xa68   : > { %13888 = vmatpush2.bf16.msra.mxu0 %v17623_v58 }
 0xa69   : > { %13931 = vmatpush2.bf16.msra.mxu1 %v17626_v41  ;;  %13889 = vmatprep.subr.bf16.mxu0 %v17631_v37  ;;  %v17674_v37 = vld [vmem:[%s19018_s20 + $0x6c0] ss:$16 sps:$4 sm:$0xff]  }
 0xa6a   : > { %13932 = vmatprep.subr.bf16.mxu1 %v17634_v32  ;;  %v17679_v32 = vld [vmem:[%s19018_s20 + $0x4a4] ss:$16 sps:$4 sm:$0xff]  }
 0xa6c   : > { %13890 = vmatpush2.bf16.msra.mxu0 %v17629_v31 }
 0xa6d   : > { %13933 = vmatpush2.bf16.msra.mxu1 %v17632_v60  ;;  %13891 = vmatprep.subr.bf16.mxu0 %v17637_v28  ;;  %v17682_v60 = vld [vmem:[%s19018_s20 + $0x6a4] ss:$16 sps:$4 sm:$0xff]  }
 0xa6e   : > { %13934 = vmatprep.subr.bf16.mxu1 %v17640_v35 }
 0xa70   : > { %13892 = vmatpush2.bf16.msra.mxu0 %v17635_v45  ;;  %v17677_v45 = vld [vmem:[%s19018_s20 + $0x4a0] ss:$16 sps:$4 sm:$0xff]  }
 0xa71   : > { %13935 = vmatpush2.bf16.msra.mxu1 %v17638_v16  ;;  %13893 = vmatprep.subr.bf16.mxu0 %v17643_v36  ;;  %v17680_v36 = vld [vmem:[%s19018_s20 + $0x6a0] ss:$16 sps:$4 sm:$0xff]  }
 0xa72   : > { %13936 = vmatprep.subr.bf16.mxu1 %v17646_v0  ;;  %v17685_v0 = vld [vmem:[%s19018_s20 + $0x484] ss:$16 sps:$4 sm:$0xff]  }
 0xa74   : > { %13894 = vmatpush2.bf16.msra.mxu0 %v17641_v54  ;;  %v17688_v54 = vld [vmem:[%s19018_s20 + $0x684] ss:$16 sps:$4 sm:$0xff]  }
 0xa75   : > { %13937 = vmatpush2.bf16.msra.mxu1 %v17644_v34  ;;  %13895 = vmatprep.subr.bf16.mxu0 %v17649_v10 }
 0xa76   : > { %13938 = vmatprep.subr.bf16.mxu1 %v17652_v15  ;;  %v17683_v15 = vld [vmem:[%s19018_s20 + $0x480] ss:$16 sps:$4 sm:$0xff]  }
 0xa78   : > { %13896 = vmatpush2.bf16.msra.mxu0 %v17647_v13 }
 0xa79   : > { %13939 = vmatpush2.bf16.msra.mxu1 %v17650_v56  ;;  %13897 = vmatprep.subr.bf16.mxu0 %v17655_v63  ;;  %v17686_v56 = vld [vmem:[%s19018_s20 + $0x680] ss:$16 sps:$4 sm:$0xff]   ;;  %v17691_v63 = vld [vmem:[%s19018_s20 + $0x464] ss:$16 sps:$4 sm:$0xff]  }
 0xa7a   : > { %13940 = vmatprep.subr.bf16.mxu1 %v17658_v22  ;;  %v17694_v22 = vld [vmem:[%s19018_s20 + $0x664] ss:$16 sps:$4 sm:$0xff]  }
 0xa7c   : > { %13898 = vmatpush2.bf16.msra.mxu0 %v17653_v7  ;;  %v17689_v7 = vld [vmem:[%s19018_s20 + $0x460] ss:$16 sps:$4 sm:$0xff]  }
 0xa7d   : > { %13941 = vmatpush2.bf16.msra.mxu1 %v17656_v4  ;;  %13899 = vmatprep.subr.bf16.mxu0 %v17661_v1  ;;  %v17692_v4 = vld [vmem:[%s19018_s20 + $0x660] ss:$16 sps:$4 sm:$0xff]   ;;  %v17697_v1 = vld [vmem:[%s19018_s20 + $0x444] ss:$16 sps:$4 sm:$0xff]  }
 0xa7e   : > { %13942 = vmatprep.subr.bf16.mxu1 %v17664_v44  ;;  %v17700_v44 = vld [vmem:[%s19018_s20 + $0x644] ss:$16 sps:$4 sm:$0xff]  }
 0xa80   : > { %13900 = vmatpush2.bf16.msra.mxu0 %v17659_v47  ;;  %v17703_v47 = vld [vmem:[%s19018_s20 + $0x424] ss:$16 sps:$4 sm:$0xff]  }
 0xa81   : > { %13943 = vmatpush2.bf16.msra.mxu1 %v17662_v9  ;;  %13955 = vmatprep.subr.bf16.mxu0 %v17667_v25  ;;  %v17701_v9 = vld [vmem:[%s19018_s20 + $0x420] ss:$16 sps:$4 sm:$0xff]  }
 0xa82   : > { %13998 = vmatprep.subr.bf16.mxu1 %v17670_v38  ;;  %v17704_v25 = vld [vmem:[%s19018_s20 + $0x620] ss:$16 sps:$4 sm:$0xff]   ;;  %v17712_v38 = vld [vmem:[%s19018_s20 + $0x604] ss:$16 sps:$4 sm:$0xff]  }
 0xa83   : > { %v10525_v43 = vpop.f32.mrf.mxu0  ;;  %13902 = vmatmul.mubr.bf16.vlgmr.msra.gmra.mxu0 %v20481_v62 }
 0xa84   : > { %v10568_v18 = vpop.f32.mrf.mxu1  ;;  %13945 = vmatmul.mubr.bf16.vlgmr.msra.gmra.mxu1 %v20559_v6  ;;  %13956 = vmatpush1.bf16.msra.mxu0 %v17665_v20  ;;  %v17715_v20 = vld [vmem:[%s19018_s20 + $0x5e4] ss:$16 sps:$4 sm:$0xff]  }
 0xa85   : > { %v10569_v58 = vadd.f32 %v10568_v18, %v10525_v43  ;;  %13987 = vmatprep.mubr.bf16.mxu0 %v20868_v53  ;;  %13999 = vmatpush1.bf16.msra.mxu1 %v17668_v50  ;;  %v20877_v41 = vpop.f32.mrf.mxu0  ;;  %v17713_v50 = vld [vmem:[%s19018_s20 + $0x5e0] ss:$16 sps:$4 sm:$0xff]   ;;  %v17724_v43 = vld [vmem:[%s19018_s20 + $0x7c4] ss:$16 sps:$4 sm:$0xff]  }
 0xa86   : > { %14030 = vmatprep.mubr.bf16.mxu1 %v20872_v14  ;;  %v20882_v31 = vpop.f32.mrf.mxu1  ;;  %13957 = vmatprep.subr.bf16.mxu0 %v17673_v59  ;;  %v17721_v59 = vld [vmem:[%s19018_s20 + $0x5c4] ss:$16 sps:$4 sm:$0xff]   ;;  %v17722_v18 = vld [vmem:[%s19018_s20 + $0x7c0] ss:$16 sps:$4 sm:$0xff]  }
 0xa87   : > { %v10529_v28 = vpop.f32.mrf.mxu0  ;;  %14000 = vmatprep.subr.bf16.mxu1 %v17676_v23  ;;  %v10759_v34 = vmax.f32 %v10569_v58, 0.0  ;;  %v17719_v23 = vld [vmem:[%s19018_s20 + $0x5c0] ss:$16 sps:$4 sm:$0xff]   ;;  %v17730_v58 = vld [vmem:[%s19018_s20 + $0x7a4] ss:$16 sps:$4 sm:$0xff]  }
 0xa88   : > { %v10572_v35 = vpop.f32.mrf.mxu1  ;;  %13958 = vmatpush1.bf16.msra.mxu0 %v17671_v19  ;;  %v17727_v19 = vld [vmem:[%s19018_s20 + $0x5a4] ss:$16 sps:$4 sm:$0xff]  }
 0xa89   : > { %v10573_v16 = vadd.f32 %v10572_v35, %v10529_v28  ;;  %14001 = vmatpush1.bf16.msra.mxu1 %v17674_v37  ;;  %13959 = vmatprep.subr.bf16.mxu0 %v17679_v32  ;;  %v17725_v37 = vld [vmem:[%s19018_s20 + $0x5a0] ss:$16 sps:$4 sm:$0xff]   ;;  %v17736_v28 = vld [vmem:[%s19018_s20 + $0x784] ss:$16 sps:$4 sm:$0xff]  }
 0xa8a   : > { %14002 = vmatprep.subr.bf16.mxu1 %v17682_v60  ;;  %v17728_v32 = vld [vmem:[%s19018_s20 + $0x7a0] ss:$16 sps:$4 sm:$0xff]   ;;  %v17733_v60 = vld [vmem:[%s19018_s20 + $0x584] ss:$16 sps:$4 sm:$0xff]  }
 0xa8b   : > { %v10775_v10 = vmax.f32 %v10573_v16, 0.0  ;;  %v17731_v35 = vld [vmem:[%s19018_s20 + $0x580] ss:$16 sps:$4 sm:$0xff]   ;;  %v17739_v16 = vld [vmem:[%s19018_s20 + $0x564] ss:$16 sps:$4 sm:$0xff]  }
 0xa8c   : > { %13960 = vmatpush1.bf16.msra.mxu0 %v17677_v45  ;;  %v17734_v45 = vld [vmem:[%s19018_s20 + $0x780] ss:$16 sps:$4 sm:$0xff]  }
 0xa8d   : > { %v20890_v13 = vpack.c.bf16 %v10775_v10, %v10759_v34  ;;  %14003 = vmatpush1.bf16.msra.mxu1 %v17680_v36  ;;  %13961 = vmatprep.subr.bf16.mxu0 %v17685_v0  ;;  %v17742_v36 = vld [vmem:[%s19018_s20 + $0x764] ss:$16 sps:$4 sm:$0xff]   ;;  %v17737_v0 = vld [vmem:[%s19018_s20 + $0x560] ss:$16 sps:$4 sm:$0xff]  }
 0xa8e   : > { %14004 = vmatprep.subr.bf16.mxu1 %v17688_v54  ;;  %v17740_v54 = vld [vmem:[%s19018_s20 + $0x760] ss:$16 sps:$4 sm:$0xff]   ;;  %v17745_v34 = vld [vmem:[%s19018_s20 + $0x544] ss:$16 sps:$4 sm:$0xff]  }
 0xa8f   : > { %v17748_v10 = vld [vmem:[%s19018_s20 + $0x744] ss:$16 sps:$4 sm:$0xff]  }
 0xa90   : > { %13962 = vmatpush1.bf16.msra.mxu0 %v17683_v15  ;;  %v17743_v15 = vld [vmem:[%s19018_s20 + $0x540] ss:$16 sps:$4 sm:$0xff]  }
 0xa91   : > { %14005 = vmatpush1.bf16.msra.mxu1 %v17686_v56  ;;  %13963 = vmatprep.subr.bf16.mxu0 %v17691_v63  ;;  %v17746_v56 = vld [vmem:[%s19018_s20 + $0x740] ss:$16 sps:$4 sm:$0xff]   ;;  %v17751_v63 = vld [vmem:[%s19018_s20 + $0x524] ss:$16 sps:$4 sm:$0xff]  }
 0xa92   : > { %14006 = vmatprep.subr.bf16.mxu1 %v17694_v22  ;;  %v17754_v22 = vld [vmem:[%s19018_s20 + $0x724] ss:$16 sps:$4 sm:$0xff]  }
 0xa94   : > { %13964 = vmatpush1.bf16.msra.mxu0 %v17689_v7  ;;  %v17749_v7 = vld [vmem:[%s19018_s20 + $0x520] ss:$16 sps:$4 sm:$0xff]  }
 0xa95   : > { %14007 = vmatpush1.bf16.msra.mxu1 %v17692_v4  ;;  %13965 = vmatprep.subr.bf16.mxu0 %v17697_v1  ;;  %v10531_v4 = vpop.f32.mrf.mxu0  ;;  %v10574_v1 = vpop.f32.mrf.mxu1 }
 0xa96   : > { %14008 = vmatprep.subr.bf16.mxu1 %v17700_v44  ;;  %v17752_v44 = vld [vmem:[%s19018_s20 + $0x720] ss:$16 sps:$4 sm:$0xff]  }
 0xa98   : > { %13966 = vmatpush1.bf16.msra.mxu0 %v17695_v27  ;;  %v17757_v27 = vld [vmem:[%s19018_s20 + $0x504] ss:$16 sps:$4 sm:$0xff]  }
 0xa99   : > { %14009 = vmatpush1.bf16.msra.mxu1 %v17698_v40  ;;  %13967 = vmatprep.subr.bf16.mxu0 %v17703_v47  ;;  %v17760_v40 = vld [vmem:[%s19018_s20 + $0x704] ss:$16 sps:$4 sm:$0xff]   ;;  %v10489_v47 = vadd.f32 %v20865_v61, %v20862_v11  ;;  %v17761_v61 = vld [vmem:[%s19018_s20 + $0x8e0] ss:$16 sps:$4 sm:$0xff]  }
 0xa9a   : > { %14010 = vmatprep.subr.bf16.mxu1 %v17706_v12  ;;  %v10575_v12 = vadd.f32 %v10574_v1, %v10531_v4  ;;  %v17785_v4 = vld [vmem:[%s19018_s20 + $0x860] ss:$16 sps:$4 sm:$0xff]  }
 0xa9b   : > { %v17788_v1 = vld [vmem:[%s19018_s20 + $0xa60] ss:$16 sps:$4 sm:$0xff]  }
 0xa9c   : > { %13968 = vmatpush1.bf16.msra.mxu0 %v17701_v9  ;;  %v17755_v9 = vld [vmem:[%s19018_s20 + $0x500] ss:$16 sps:$4 sm:$0xff]   ;;  %v10776_v11 = vmax.f32 %v10575_v12, 0.0  ;;  %v17799_v12 = vld [vmem:[%s19018_s20 + $0x824] ss:$16 sps:$4 sm:$0xff]  }
 0xa9d   : > { %14011 = vmatpush1.bf16.msra.mxu1 %v17704_v25  ;;  %13969 = vmatprep.subr.bf16.mxu0 %v17709_v5  ;;  %v10485_v25 = vadd.f32 %v20792_v33, %v20787_v48  ;;  %v17758_v5 = vld [vmem:[%s19018_s20 + $0x700] ss:$16 sps:$4 sm:$0xff]  }
 0xa9e   : > { %14012 = vmatprep.subr.bf16.mxu1 %v17712_v38  ;;  %v17763_v38 = vld [vmem:[%s19018_s20 + $0x8e4] ss:$16 sps:$4 sm:$0xff]   ;;  %v17764_v48 = vld [vmem:[%s19018_s20 + $0xae0] ss:$16 sps:$4 sm:$0xff]  }
 0xaa0   : > { %13970 = vmatpush1.bf16.msra.mxu0 %v17707_v42  ;;  %v10571_v42 = vadd.f32 %v20882_v31, %v20877_v41  ;;  %v17772_v31 = vld [vmem:[%s19018_s20 + $0xac4] ss:$16 sps:$4 sm:$0xff]  }
 0xaa1   : > { %14013 = vmatpush1.bf16.msra.mxu1 %v17710_v46  ;;  %13971 = vmatprep.subr.bf16.mxu0 %v17715_v20  ;;  %v17766_v46 = vld [vmem:[%s19018_s20 + $0xae4] ss:$16 sps:$4 sm:$0xff]   ;;  %v10774_v20 = vmax.f32 %v10489_v47, 0.0  ;;  %v17794_v47 = vld [vmem:[%s19018_s20 + $0xa40] ss:$16 sps:$4 sm:$0xff]  }
 0xaa2   : > { %14014 = vmatprep.subr.bf16.mxu1 %v17718_v17  ;;  %v10758_v17 = vmax.f32 %v10485_v25, 0.0  ;;  %v10760_v33 = vmax.f32 %v10571_v42, 0.0  ;;  %v17797_v25 = vld [vmem:[%s19018_s20 + $0x820] ss:$16 sps:$4 sm:$0xff]   ;;  %v17808_v42 = vld [vmem:[%s19018_s20 + $0xa04] ss:$16 sps:$4 sm:$0xff]  }
 0xaa4   : > { %13972 = vmatpush2.bf16.msra.mxu0 %v17713_v50  ;;  %v17769_v50 = vld [vmem:[%s19018_s20 + $0x8c4] ss:$16 sps:$4 sm:$0xff]  }
 0xaa5   : > { %14015 = vmatpush2.bf16.msra.mxu1 %v17716_v55  ;;  %13973 = vmatprep.subr.bf16.mxu0 %v17721_v59  ;;  %v20952_v55 = vpack.c.bf16 %v10774_v20, %v10758_v17  ;;  %v20956_v59 = vpack.c.bf16 %v10776_v11, %v10760_v33  ;;  %v17806_v20 = vld [vmem:[%s19018_s20 + $0xa00] ss:$16 sps:$4 sm:$0xff]   ;;  %v17811_v11 = vld [vmem:[%s19018_s20 + $0x9e4] ss:$16 sps:$4 sm:$0xff]  }
 0xaa6   : > { %14016 = vmatprep.subr.bf16.mxu1 %v17724_v43  ;;  %v17809_v17 = vld [vmem:[%s19018_s20 + $0x9e0] ss:$16 sps:$4 sm:$0xff]   ;;  %v17817_v33 = vld [vmem:[%s19018_s20 + $0x9c4] ss:$16 sps:$4 sm:$0xff]  }
 0xaa8   : > { %13974 = vmatpush2.bf16.msra.mxu0 %v17719_v23  ;;  %v17767_v23 = vld [vmem:[%s19018_s20 + $0x8c0] ss:$16 sps:$4 sm:$0xff]  }
 0xaa9   : > { %14017 = vmatpush2.bf16.msra.mxu1 %v17722_v18  ;;  %13975 = vmatprep.subr.bf16.mxu0 %v17727_v19 }
 0xaaa   : > { %14018 = vmatprep.subr.bf16.mxu1 %v17730_v58  ;;  %v17770_v58 = vld [vmem:[%s19018_s20 + $0xac0] ss:$16 sps:$4 sm:$0xff]  }
 0xaac   : > { %13976 = vmatpush2.bf16.msra.mxu0 %v17725_v37  ;;  %v17775_v37 = vld [vmem:[%s19018_s20 + $0x8a4] ss:$16 sps:$4 sm:$0xff]  }
 0xaad   : > { %14019 = vmatpush2.bf16.msra.mxu1 %v17728_v32  ;;  %13977 = vmatprep.subr.bf16.mxu0 %v17733_v60  ;;  %v17778_v60 = vld [vmem:[%s19018_s20 + $0xaa4] ss:$16 sps:$4 sm:$0xff]  }
 0xaae   : > { %14020 = vmatprep.subr.bf16.mxu1 %v17736_v28 }
 0xab0   : > { %13978 = vmatpush2.bf16.msra.mxu0 %v17731_v35 }
 0xab1   : > { %14021 = vmatpush2.bf16.msra.mxu1 %v17734_v45  ;;  %13979 = vmatprep.subr.bf16.mxu0 %v17739_v16  ;;  %v17773_v45 = vld [vmem:[%s19018_s20 + $0x8a0] ss:$16 sps:$4 sm:$0xff]  }
 0xab2   : > { %14022 = vmatprep.subr.bf16.mxu1 %v17742_v36  ;;  %v17776_v36 = vld [vmem:[%s19018_s20 + $0xaa0] ss:$16 sps:$4 sm:$0xff]  }
 0xab4   : > { %13980 = vmatpush2.bf16.msra.mxu0 %v17737_v0  ;;  %v17781_v0 = vld [vmem:[%s19018_s20 + $0x884] ss:$16 sps:$4 sm:$0xff]  }
 0xab5   : > { %14023 = vmatpush2.bf16.msra.mxu1 %v17740_v54  ;;  %13981 = vmatprep.subr.bf16.mxu0 %v17745_v34  ;;  %v17784_v54 = vld [vmem:[%s19018_s20 + $0xa84] ss:$16 sps:$4 sm:$0xff]  }
 0xab6   : > { %14024 = vmatprep.subr.bf16.mxu1 %v17748_v10 }
 0xab8   : > { %13982 = vmatpush2.bf16.msra.mxu0 %v17743_v15  ;;  %v17779_v15 = vld [vmem:[%s19018_s20 + $0x880] ss:$16 sps:$4 sm:$0xff]  }
 0xab9   : > { %14025 = vmatpush2.bf16.msra.mxu1 %v17746_v56  ;;  %13983 = vmatprep.subr.bf16.mxu0 %v17751_v63  ;;  %v17782_v63 = vld [vmem:[%s19018_s20 + $0xa80] ss:$16 sps:$4 sm:$0xff]  }
 0xaba   : > { %14026 = vmatprep.subr.bf16.mxu1 %v17754_v22  ;;  %v17787_v22 = vld [vmem:[%s19018_s20 + $0x864] ss:$16 sps:$4 sm:$0xff]  }
 0xabc   : > { %13984 = vmatpush2.bf16.msra.mxu0 %v17749_v7  ;;  %v17790_v7 = vld [vmem:[%s19018_s20 + $0xa64] ss:$16 sps:$4 sm:$0xff]  }
 0xabd   : > { %14027 = vmatpush2.bf16.msra.mxu1 %v17752_v44  ;;  %13985 = vmatprep.subr.bf16.mxu0 %v17757_v27  ;;  %v17793_v44 = vld [vmem:[%s19018_s20 + $0x844] ss:$16 sps:$4 sm:$0xff]  }
 0xabe   : > { %14028 = vmatprep.subr.bf16.mxu1 %v17760_v40  ;;  %v17796_v27 = vld [vmem:[%s19018_s20 + $0xa44] ss:$16 sps:$4 sm:$0xff]   ;;  %v17791_v40 = vld [vmem:[%s19018_s20 + $0x840] ss:$16 sps:$4 sm:$0xff]  }
 0xac0   : > { %13986 = vmatpush2.bf16.msra.mxu0 %v17755_v9  ;;  %v17802_v9 = vld [vmem:[%s19018_s20 + $0xa24] ss:$16 sps:$4 sm:$0xff]  }
 0xac1   : > { %14029 = vmatpush2.bf16.msra.mxu1 %v17758_v5  ;;  %14041 = vmatprep.subr.bf16.mxu0 %v17763_v38  ;;  %v17800_v5 = vld [vmem:[%s19018_s20 + $0xa20] ss:$16 sps:$4 sm:$0xff]   ;;  %v17805_v38 = vld [vmem:[%s19018_s20 + $0x804] ss:$16 sps:$4 sm:$0xff]  }
 0xac2   : > { %14084 = vmatprep.subr.bf16.mxu1 %v17766_v46  ;;  %v17803_v46 = vld [vmem:[%s19018_s20 + $0x800] ss:$16 sps:$4 sm:$0xff]  }
 0xac3   : > { %v10611_v41 = vpop.f32.mrf.mxu0  ;;  %13988 = vmatmul.mubr.bf16.vlgmr.msra.gmra.mxu0 %v20637_v57 }
 0xac4   : > { %v10654_v43 = vpop.f32.mrf.mxu1  ;;  %14031 = vmatmul.mubr.bf16.vlgmr.msra.gmra.mxu1 %v20715_v26  ;;  %14042 = vmatpush1.bf16.msra.mxu0 %v17761_v61  ;;  %v17814_v61 = vld [vmem:[%s19018_s20 + $0xbe4] ss:$16 sps:$4 sm:$0xff]  }
 0xac5   : > { %v10655_v18 = vadd.f32 %v10654_v43, %v10611_v41  ;;  %14073 = vmatprep.mubr.bf16.mxu0 %v20952_v55  ;;  %14085 = vmatpush1.bf16.msra.mxu1 %v17764_v48  ;;  %v20961_v19 = vpop.f32.mrf.mxu0  ;;  %v17812_v48 = vld [vmem:[%s19018_s20 + $0xbe0] ss:$16 sps:$4 sm:$0xff]   ;;  %v17823_v43 = vld [vmem:[%s19018_s20 + $0x9a4] ss:$16 sps:$4 sm:$0xff]  }
 0xac6   : > { %14116 = vmatprep.mubr.bf16.mxu1 %v20956_v59  ;;  %v20966_v32 = vpop.f32.mrf.mxu1  ;;  %14043 = vmatprep.subr.bf16.mxu0 %v17769_v50  ;;  %v17820_v50 = vld [vmem:[%s19018_s20 + $0xbc4] ss:$16 sps:$4 sm:$0xff]   ;;  %v17815_v41 = vld [vmem:[%s19018_s20 + $0x9c0] ss:$16 sps:$4 sm:$0xff]  }
 0xac7   : > { %v10615_v28 = vpop.f32.mrf.mxu0  ;;  %14086 = vmatprep.subr.bf16.mxu1 %v17772_v31  ;;  %v10761_v34 = vmax.f32 %v10655_v18, 0.0  ;;  %v17818_v31 = vld [vmem:[%s19018_s20 + $0xbc0] ss:$16 sps:$4 sm:$0xff]  }
 0xac8   : > { %v10658_v35 = vpop.f32.mrf.mxu1  ;;  %14044 = vmatpush1.bf16.msra.mxu0 %v17767_v23  ;;  %v17826_v23 = vld [vmem:[%s19018_s20 + $0xba4] ss:$16 sps:$4 sm:$0xff]   ;;  %v17821_v18 = vld [vmem:[%s19018_s20 + $0x9a0] ss:$16 sps:$4 sm:$0xff]  }
 0xac9   : > { %v10659_v16 = vadd.f32 %v10658_v35, %v10615_v28  ;;  %14087 = vmatpush1.bf16.msra.mxu1 %v17770_v58  ;;  %14045 = vmatprep.subr.bf16.mxu0 %v17775_v37  ;;  %v17824_v58 = vld [vmem:[%s19018_s20 + $0xba0] ss:$16 sps:$4 sm:$0xff]   ;;  %v17829_v37 = vld [vmem:[%s19018_s20 + $0x984] ss:$16 sps:$4 sm:$0xff]  }
 0xaca   : > { %14088 = vmatprep.subr.bf16.mxu1 %v17778_v60  ;;  %v17832_v60 = vld [vmem:[%s19018_s20 + $0xb84] ss:$16 sps:$4 sm:$0xff]   ;;  %v17827_v28 = vld [vmem:[%s19018_s20 + $0x980] ss:$16 sps:$4 sm:$0xff]  }
 0xacb   : > { %v10777_v10 = vmax.f32 %v10659_v16, 0.0  ;;  %v17830_v35 = vld [vmem:[%s19018_s20 + $0xb80] ss:$16 sps:$4 sm:$0xff]   ;;  %v17838_v16 = vld [vmem:[%s19018_s20 + $0xb64] ss:$16 sps:$4 sm:$0xff]  }
 0xacc   : > { %14046 = vmatpush1.bf16.msra.mxu0 %v17773_v45  ;;  %v17835_v45 = vld [vmem:[%s19018_s20 + $0x964] ss:$16 sps:$4 sm:$0xff]  }
 0xacd   : > { %v20974_v56 = vpack.c.bf16 %v10777_v10, %v10761_v34  ;;  %14089 = vmatpush1.bf16.msra.mxu1 %v17776_v36  ;;  %14047 = vmatprep.subr.bf16.mxu0 %v17781_v0  ;;  %v17833_v36 = vld [vmem:[%s19018_s20 + $0x960] ss:$16 sps:$4 sm:$0xff]   ;;  %v17844_v34 = vld [vmem:[%s19018_s20 + $0xb44] ss:$16 sps:$4 sm:$0xff]  }
 0xace   : > { %14090 = vmatprep.subr.bf16.mxu1 %v17784_v54  ;;  %v17836_v0 = vld [vmem:[%s19018_s20 + $0xb60] ss:$16 sps:$4 sm:$0xff]   ;;  %v17841_v54 = vld [vmem:[%s19018_s20 + $0x944] ss:$16 sps:$4 sm:$0xff]  }
 0xacf   : > { %v17839_v10 = vld [vmem:[%s19018_s20 + $0x940] ss:$16 sps:$4 sm:$0xff]  }
 0xad0   : > { %14048 = vmatpush1.bf16.msra.mxu0 %v17779_v15  ;;  %v17842_v15 = vld [vmem:[%s19018_s20 + $0xb40] ss:$16 sps:$4 sm:$0xff]  }
 0xad1   : > { %14091 = vmatpush1.bf16.msra.mxu1 %v17782_v63  ;;  %14049 = vmatprep.subr.bf16.mxu0 %v17787_v22  ;;  %v17847_v63 = vld [vmem:[%s19018_s20 + $0x924] ss:$16 sps:$4 sm:$0xff]  }
 0xad2   : > { %14092 = vmatprep.subr.bf16.mxu1 %v17790_v7  ;;  %v17850_v22 = vld [vmem:[%s19018_s20 + $0xb24] ss:$16 sps:$4 sm:$0xff]   ;;  %v10617_v7 = vpop.f32.mrf.mxu0 }
 0xad4   : > { %14050 = vmatpush1.bf16.msra.mxu0 %v17785_v4  ;;  %v10660_v4 = vpop.f32.mrf.mxu1 }
 0xad5   : > { %14093 = vmatpush1.bf16.msra.mxu1 %v17788_v1  ;;  %14051 = vmatprep.subr.bf16.mxu0 %v17793_v44  ;;  %v17845_v1 = vld [vmem:[%s19018_s20 + $0x920] ss:$16 sps:$4 sm:$0xff]  }
 0xad6   : > { %14094 = vmatprep.subr.bf16.mxu1 %v17796_v27  ;;  %v17848_v44 = vld [vmem:[%s19018_s20 + $0xb20] ss:$16 sps:$4 sm:$0xff]   ;;  %v17853_v27 = vld [vmem:[%s19018_s20 + $0x904] ss:$16 sps:$4 sm:$0xff]  }
 0xad8   : > { %14052 = vmatpush1.bf16.msra.mxu0 %v17791_v40  ;;  %v17856_v40 = vld [vmem:[%s19018_s20 + $0xb04] ss:$16 sps:$4 sm:$0xff]  }
 0xad9   : > { %14095 = vmatpush1.bf16.msra.mxu1 %v17794_v47  ;;  %14053 = vmatprep.subr.bf16.mxu0 %v17799_v12  ;;  %v10661_v47 = vadd.f32 %v10660_v4, %v10617_v7  ;;  %v17851_v12 = vld [vmem:[%s19018_s20 + $0x900] ss:$16 sps:$4 sm:$0xff]  }
 0xada   : > { %14096 = vmatprep.subr.bf16.mxu1 %v17802_v9  ;;  %v10657_v9 = vadd.f32 %v20966_v32, %v20961_v19  ;;  %v17868_v19 = vld [vmem:[%s19018_s20 + $0xec4] ss:$16 sps:$4 sm:$0xff]   ;;  %v17881_v4 = vld [vmem:[%s19018_s20 + $0xc60] ss:$16 sps:$4 sm:$0xff]  }
 0xadc   : > { %14054 = vmatpush1.bf16.msra.mxu0 %v17797_v25  ;;  %v17854_v25 = vld [vmem:[%s19018_s20 + $0xb00] ss:$16 sps:$4 sm:$0xff]  }
 0xadd   : > { %14097 = vmatpush1.bf16.msra.mxu1 %v17800_v5  ;;  %14055 = vmatprep.subr.bf16.mxu0 %v17805_v38  ;;  %v17859_v5 = vld [vmem:[%s19018_s20 + $0xce4] ss:$16 sps:$4 sm:$0xff]  }
 0xade   : > { %14098 = vmatprep.subr.bf16.mxu1 %v17808_v42  ;;  %v17862_v38 = vld [vmem:[%s19018_s20 + $0xee4] ss:$16 sps:$4 sm:$0xff]   ;;  %v10778_v42 = vmax.f32 %v10661_v47, 0.0  ;;  %v17890_v47 = vld [vmem:[%s19018_s20 + $0xe40] ss:$16 sps:$4 sm:$0xff]  }
 0xae0   : > { %14056 = vmatpush1.bf16.msra.mxu0 %v17803_v46  ;;  %v17857_v46 = vld [vmem:[%s19018_s20 + $0xce0] ss:$16 sps:$4 sm:$0xff]  }
 0xae1   : > { %14099 = vmatpush1.bf16.msra.mxu1 %v17806_v20  ;;  %14057 = vmatprep.subr.bf16.mxu0 %v17811_v11  ;;  %v10762_v20 = vmax.f32 %v10657_v9, 0.0  ;;  %v17860_v11 = vld [vmem:[%s19018_s20 + $0xee0] ss:$16 sps:$4 sm:$0xff]   ;;  %v17898_v9 = vld [vmem:[%s19018_s20 + $0xe24] ss:$16 sps:$4 sm:$0xff]  }
 0xae2   : > { %14100 = vmatprep.subr.bf16.mxu1 %v17814_v61  ;;  %v17865_v61 = vld [vmem:[%s19018_s20 + $0xcc4] ss:$16 sps:$4 sm:$0xff]  }
 0xae3   : > { %v21033_v32 = vpack.c.bf16 %v10778_v42, %v10762_v20  ;;  %v17904_v42 = vld [vmem:[%s19018_s20 + $0xe04] ss:$16 sps:$4 sm:$0xff]   ;;  %v17902_v20 = vld [vmem:[%s19018_s20 + $0xe00] ss:$16 sps:$4 sm:$0xff]  }
 0xae4   : > { %14058 = vmatpush2.bf16.msra.mxu0 %v17809_v17 }
 0xae5   : > { %14101 = vmatpush2.bf16.msra.mxu1 %v17812_v48  ;;  %14059 = vmatprep.subr.bf16.mxu0 %v17817_v33  ;;  %v17863_v33 = vld [vmem:[%s19018_s20 + $0xcc0] ss:$16 sps:$4 sm:$0xff]  }
 0xae6   : > { %14102 = vmatprep.subr.bf16.mxu1 %v17820_v50 }
 0xae8   : > { %14060 = vmatpush2.bf16.msra.mxu0 %v17815_v41  ;;  %v17866_v41 = vld [vmem:[%s19018_s20 + $0xec0] ss:$16 sps:$4 sm:$0xff]  }
 0xae9   : > { %14103 = vmatpush2.bf16.msra.mxu1 %v17818_v31  ;;  %14061 = vmatprep.subr.bf16.mxu0 %v17823_v43  ;;  %v17871_v31 = vld [vmem:[%s19018_s20 + $0xca4] ss:$16 sps:$4 sm:$0xff]  }
 0xaea   : > { %14104 = vmatprep.subr.bf16.mxu1 %v17826_v23  ;;  %v17874_v23 = vld [vmem:[%s19018_s20 + $0xea4] ss:$16 sps:$4 sm:$0xff]  }
 0xaec   : > { %14062 = vmatpush2.bf16.msra.mxu0 %v17821_v18 }
 0xaed   : > { %14105 = vmatpush2.bf16.msra.mxu1 %v17824_v58  ;;  %14063 = vmatprep.subr.bf16.mxu0 %v17829_v37  ;;  %v17869_v37 = vld [vmem:[%s19018_s20 + $0xca0] ss:$16 sps:$4 sm:$0xff]  }
 0xaee   : > { %14106 = vmatprep.subr.bf16.mxu1 %v17832_v60 }
 0xaf0   : > { %14064 = vmatpush2.bf16.msra.mxu0 %v17827_v28 }
 0xaf1   : > { %14107 = vmatpush2.bf16.msra.mxu1 %v17830_v35  ;;  %14065 = vmatprep.subr.bf16.mxu0 %v17835_v45  ;;  %v17872_v35 = vld [vmem:[%s19018_s20 + $0xea0] ss:$16 sps:$4 sm:$0xff]   ;;  %v17877_v45 = vld [vmem:[%s19018_s20 + $0xc84] ss:$16 sps:$4 sm:$0xff]  }
 0xaf2   : > { %14108 = vmatprep.subr.bf16.mxu1 %v17838_v16 }
 0xaf4   : > { %14066 = vmatpush2.bf16.msra.mxu0 %v17833_v36  ;;  %v17880_v36 = vld [vmem:[%s19018_s20 + $0xe84] ss:$16 sps:$4 sm:$0xff]  }
 0xaf5   : > { %14109 = vmatpush2.bf16.msra.mxu1 %v17836_v0  ;;  %14067 = vmatprep.subr.bf16.mxu0 %v17841_v54  ;;  %v17875_v54 = vld [vmem:[%s19018_s20 + $0xc80] ss:$16 sps:$4 sm:$0xff]  }
 0xaf6   : > { %14110 = vmatprep.subr.bf16.mxu1 %v17844_v34 }
 0xaf8   : > { %14068 = vmatpush2.bf16.msra.mxu0 %v17839_v10 }
 0xaf9   : > { %14111 = vmatpush2.bf16.msra.mxu1 %v17842_v15  ;;  %14069 = vmatprep.subr.bf16.mxu0 %v17847_v63  ;;  %v17878_v15 = vld [vmem:[%s19018_s20 + $0xe80] ss:$16 sps:$4 sm:$0xff]   ;;  %v17883_v63 = vld [vmem:[%s19018_s20 + $0xc64] ss:$16 sps:$4 sm:$0xff]  }
 0xafa   : > { %14112 = vmatprep.subr.bf16.mxu1 %v17850_v22  ;;  %v17886_v22 = vld [vmem:[%s19018_s20 + $0xe64] ss:$16 sps:$4 sm:$0xff]  }
 0xafc   : > { %14070 = vmatpush2.bf16.msra.mxu0 %v17845_v1  ;;  %v17884_v1 = vld [vmem:[%s19018_s20 + $0xe60] ss:$16 sps:$4 sm:$0xff]  }
 0xafd   : > { %14113 = vmatpush2.bf16.msra.mxu1 %v17848_v44  ;;  %14071 = vmatprep.subr.bf16.mxu0 %v17853_v27  ;;  %v17889_v44 = vld [vmem:[%s19018_s20 + $0xc44] ss:$16 sps:$4 sm:$0xff]  }
 0xafe   : > { %14114 = vmatprep.subr.bf16.mxu1 %v17856_v40  ;;  %v17892_v27 = vld [vmem:[%s19018_s20 + $0xe44] ss:$16 sps:$4 sm:$0xff]   ;;  %v17887_v40 = vld [vmem:[%s19018_s20 + $0xc40] ss:$16 sps:$4 sm:$0xff]  }
 0xb00   : > { %14072 = vmatpush2.bf16.msra.mxu0 %v17851_v12  ;;  %v17895_v12 = vld [vmem:[%s19018_s20 + $0xc24] ss:$16 sps:$4 sm:$0xff]  }
 0xb01   : > { %14115 = vmatpush2.bf16.msra.mxu1 %v17854_v25  ;;  %14127 = vmatprep.subr.bf16.mxu0 %v17859_v5  ;;  %v17893_v25 = vld [vmem:[%s19018_s20 + $0xc20] ss:$16 sps:$4 sm:$0xff]  }
 0xb02   : > { %14170 = vmatprep.subr.bf16.mxu1 %v17862_v38  ;;  %v17896_v5 = vld [vmem:[%s19018_s20 + $0xe20] ss:$16 sps:$4 sm:$0xff]   ;;  %v17901_v38 = vld [vmem:[%s19018_s20 + $0xc04] ss:$16 sps:$4 sm:$0xff]  }
 0xb03   : > { %v21035_v17 = vpop.f32.mrf.mxu0  ;;  %14074 = vmatmul.mubr.bf16.vlgmr.msra.gmra.mxu0 %v20800_v52 }
 0xb04   : > { %v21038_v48 = vpop.f32.mrf.mxu1  ;;  %14117 = vmatmul.mubr.bf16.vlgmr.msra.gmra.mxu1 %v20890_v13  ;;  %14128 = vmatpush1.bf16.msra.mxu0 %v17857_v46  ;;  %v17899_v46 = vld [vmem:[%s19018_s20 + $0xc00] ss:$16 sps:$4 sm:$0xff]  }
 0xb05   : > { %14159 = vmatprep.mubr.bf16.mxu0 %v21033_v32  ;;  %14171 = vmatpush1.bf16.msra.mxu1 %v17860_v11  ;;  %v10699_v50 = vpop.f32.mrf.mxu0  ;;  %v17907_v11 = vld [vmem:[%s19018_s20 + $0xde4] ss:$16 sps:$4 sm:$0xff]  }
 0xb06   : > { %v10742_v43 = vpop.f32.mrf.mxu1  ;;  %14129 = vmatprep.subr.bf16.mxu0 %v17865_v61  ;;  %14172 = vmatprep.subr.bf16.mxu1 %v17868_v19  ;;  %v17910_v61 = vld [vmem:[%s19018_s20 + $0xfe4] ss:$16 sps:$4 sm:$0xff]   ;;  %v17905_v19 = vld [vmem:[%s19018_s20 + $0xde0] ss:$16 sps:$4 sm:$0xff]  }
 0xb07   : > { %v21046_v18 = vpop.f32.mrf.mxu0  ;;  %v10743_v60 = vadd.f32 %v10742_v43, %v10699_v50  ;;  %v17913_v50 = vld [vmem:[%s19018_s20 + $0xdc4] ss:$16 sps:$4 sm:$0xff]   ;;  %v17914_v43 = vld [vmem:[%s19018_s20 + $0xfc0] ss:$16 sps:$4 sm:$0xff]  }
 0xb08   : > { %v21048_v58 = vpop.f32.mrf.mxu1  ;;  %14130 = vmatpush1.bf16.msra.mxu0 %v17863_v33  ;;  %v17908_v33 = vld [vmem:[%s19018_s20 + $0xfe0] ss:$16 sps:$4 sm:$0xff]  }
 0xb09   : > { %14173 = vmatpush1.bf16.msra.mxu1 %v17866_v41  ;;  %v10703_v28 = vpop.f32.mrf.mxu0  ;;  %14131 = vmatprep.subr.bf16.mxu0 %v17871_v31  ;;  %v10764_v34 = vmax.f32 %v10743_v60, 0.0  ;;  %v17916_v41 = vld [vmem:[%s19018_s20 + $0xfc4] ss:$16 sps:$4 sm:$0xff]   ;;  %v17911_v31 = vld [vmem:[%s19018_s20 + $0xdc0] ss:$16 sps:$4 sm:$0xff]  }
 0xb0a   : > { %v10746_v16 = vpop.f32.mrf.mxu1  ;;  %14174 = vmatprep.subr.bf16.mxu1 %v17874_v23  ;;  %v17919_v23 = vld [vmem:[%s19018_s20 + $0xda4] ss:$16 sps:$4 sm:$0xff]   ;;  %v17917_v60 = vld [vmem:[%s19018_s20 + $0xda0] ss:$16 sps:$4 sm:$0xff]  }
 0xb0b   : > { %v10747_v0 = vadd.f32 %v10746_v16, %v10703_v28  ;;  %v17920_v28 = vld [vmem:[%s19018_s20 + $0xfa0] ss:$16 sps:$4 sm:$0xff]  }
 0xb0c   : > { %14132 = vmatpush1.bf16.msra.mxu0 %v17869_v37  ;;  %v17922_v37 = vld [vmem:[%s19018_s20 + $0xfa4] ss:$16 sps:$4 sm:$0xff]   ;;  %v17923_v16 = vld [vmem:[%s19018_s20 + $0xd80] ss:$16 sps:$4 sm:$0xff]  }
 0xb0d   : > { %v10780_v10 = vmax.f32 %v10747_v0, 0.0  ;;  %14175 = vmatpush1.bf16.msra.mxu1 %v17872_v35  ;;  %14133 = vmatprep.subr.bf16.mxu0 %v17877_v45  ;;  %v17925_v35 = vld [vmem:[%s19018_s20 + $0xd84] ss:$16 sps:$4 sm:$0xff]  }
 0xb0e   : > { %14176 = vmatprep.subr.bf16.mxu1 %v17880_v36  ;;  %v17928_v45 = vld [vmem:[%s19018_s20 + $0xf84] ss:$16 sps:$4 sm:$0xff]   ;;  %v17926_v36 = vld [vmem:[%s19018_s20 + $0xf80] ss:$16 sps:$4 sm:$0xff]  }
 0xb0f   : > { %v21058_v7 = vpack.c.bf16 %v10780_v10, %v10764_v34  ;;  %v17931_v0 = vld [vmem:[%s19018_s20 + $0xd64] ss:$16 sps:$4 sm:$0xff]   ;;  %v17929_v34 = vld [vmem:[%s19018_s20 + $0xd60] ss:$16 sps:$4 sm:$0xff]  }
 0xb10   : > { %14134 = vmatpush1.bf16.msra.mxu0 %v17875_v54  ;;  %v17934_v54 = vld [vmem:[%s19018_s20 + $0xf64] ss:$16 sps:$4 sm:$0xff]   ;;  %v17932_v10 = vld [vmem:[%s19018_s20 + $0xf60] ss:$16 sps:$4 sm:$0xff]  }
 0xb11   : > { %14177 = vmatpush1.bf16.msra.mxu1 %v17878_v15  ;;  %14202 = vmatprep.mubr.bf16.mxu1 %v21058_v7  ;;  %v17937_v15 = vld [vmem:[%s19018_s20 + $0xd44] ss:$16 sps:$4 sm:$0xff]  }
 0xb12   : > { %14135 = vmatprep.subr.bf16.mxu0 %v17883_v63  ;;  %14178 = vmatprep.subr.bf16.mxu1 %v17886_v22  ;;  %v17940_v63 = vld [vmem:[%s19018_s20 + $0xf44] ss:$16 sps:$4 sm:$0xff]   ;;  %v17935_v22 = vld [vmem:[%s19018_s20 + $0xd40] ss:$16 sps:$4 sm:$0xff]  }
 0xb14   : > { %14136 = vmatpush1.bf16.msra.mxu0 %v17881_v4  ;;  %v17938_v4 = vld [vmem:[%s19018_s20 + $0xf40] ss:$16 sps:$4 sm:$0xff]  }
 0xb15   : > { %14179 = vmatpush1.bf16.msra.mxu1 %v17884_v1  ;;  %14137 = vmatprep.subr.bf16.mxu0 %v17889_v44  ;;  %v17943_v1 = vld [vmem:[%s19018_s20 + $0xd24] ss:$16 sps:$4 sm:$0xff]  }
 0xb16   : > { %14180 = vmatprep.subr.bf16.mxu1 %v17892_v27  ;;  %v17946_v44 = vld [vmem:[%s19018_s20 + $0xf24] ss:$16 sps:$4 sm:$0xff]   ;;  %v17941_v27 = vld [vmem:[%s19018_s20 + $0xd20] ss:$16 sps:$4 sm:$0xff]  }
 0xb18   : > { %14138 = vmatpush1.bf16.msra.mxu0 %v17887_v40  ;;  %v17944_v40 = vld [vmem:[%s19018_s20 + $0xf20] ss:$16 sps:$4 sm:$0xff]  }
 0xb19   : > { %14181 = vmatpush1.bf16.msra.mxu1 %v17890_v47  ;;  %14139 = vmatprep.subr.bf16.mxu0 %v17895_v12  ;;  %v17949_v47 = vld [vmem:[%s19018_s20 + $0xd04] ss:$16 sps:$4 sm:$0xff]   ;;  %v10745_v12 = vadd.f32 %v21048_v58, %v21046_v18  ;;  %v17953_v18 = vld [vmem:[%s19018_s20 + $0xe8] ss:$16 sps:$4 sm:$0xff]   ;;  %v17961_v58 = vld [vmem:[%s19018_s20 + $0xcc] ss:$16 sps:$4 sm:$0xff]  }
 0xb1a   : > { %14182 = vmatprep.subr.bf16.mxu1 %v17898_v9  ;;  %v17952_v9 = vld [vmem:[%s19018_s20 + $0xf04] ss:$16 sps:$4 sm:$0xff]  }
 0xb1c   : > { %14140 = vmatpush1.bf16.msra.mxu0 %v17893_v25  ;;  %v10741_v25 = vadd.f32 %v21038_v48, %v21035_v17  ;;  %v17956_v17 = vld [vmem:[%s19018_s20 + $0x2e8] ss:$16 sps:$4 sm:$0xff]  }
 0xb1d   : > { %14183 = vmatpush1.bf16.msra.mxu1 %v17896_v5  ;;  %14141 = vmatprep.subr.bf16.mxu0 %v17901_v38  ;;  %v17947_v5 = vld [vmem:[%s19018_s20 + $0xd00] ss:$16 sps:$4 sm:$0xff]  }
 0xb1e   : > { %14184 = vmatprep.subr.bf16.mxu1 %v17904_v42  ;;  %v17950_v38 = vld [vmem:[%s19018_s20 + $0xf00] ss:$16 sps:$4 sm:$0xff]   ;;  %v17955_v42 = vld [vmem:[%s19018_s20 + $0xec] ss:$16 sps:$4 sm:$0xff]  }
 0xb20   : > { %14142 = vmatpush1.bf16.msra.mxu0 %v17899_v46  ;;  %v10779_v46 = vmax.f32 %v10745_v12, 0.0  ;;  %v18004_v12 = vld [vmem:[%s19018_s20 + $0x3e8] ss:$16 sps:$4 sm:$0xff]  }
 0xb21   : > { %14185 = vmatpush1.bf16.msra.mxu1 %v17902_v20  ;;  %14143 = vmatprep.subr.bf16.mxu0 %v17907_v11  ;;  %v17958_v20 = vld [vmem:[%s19018_s20 + $0x2ec] ss:$16 sps:$4 sm:$0xff]   ;;  %v10763_v11 = vmax.f32 %v10741_v25, 0.0 }
 0xb22   : > { %14186 = vmatprep.subr.bf16.mxu1 %v17910_v61  ;;  %v17964_v61 = vld [vmem:[%s19018_s20 + $0x2cc] ss:$16 sps:$4 sm:$0xff]  }
 0xb23   : > { %v21115_v48 = vpack.c.bf16 %v10779_v46, %v10763_v11  ;;  %v18012_v25 = vld [vmem:[%s19018_s20 + $0x3cc] ss:$16 sps:$4 sm:$0xff]   ;;  %v18016_v11 = vld [vmem:[%s19018_s20 + $0x3a8] ss:$16 sps:$4 sm:$0xff]  }
 0xb24   : > { %14144 = vmatpush2.bf16.msra.mxu0 %v17905_v19  ;;  %v17959_v19 = vld [vmem:[%s19018_s20 + $0xc8] ss:$16 sps:$4 sm:$0xff]   ;;  %v18018_v46 = vld [vmem:[%s19018_s20 + $0x3ac] ss:$16 sps:$4 sm:$0xff]  }
 0xb25   : > { %14187 = vmatpush2.bf16.msra.mxu1 %v17908_v33  ;;  %14145 = vmatprep.subr.bf16.mxu0 %v17913_v50  ;;  %v17962_v33 = vld [vmem:[%s19018_s20 + $0x2c8] ss:$16 sps:$4 sm:$0xff]   ;;  %v17967_v50 = vld [vmem:[%s19018_s20 + $0xac] ss:$16 sps:$4 sm:$0xff]  }
 0xb26   : > { %14188 = vmatprep.subr.bf16.mxu1 %v17916_v41  ;;  %v17970_v41 = vld [vmem:[%s19018_s20 + $0x2ac] ss:$16 sps:$4 sm:$0xff]  }
 0xb28   : > { %14146 = vmatpush2.bf16.msra.mxu0 %v17911_v31  ;;  %v17965_v31 = vld [vmem:[%s19018_s20 + $0xa8] ss:$16 sps:$4 sm:$0xff]  }
 0xb29   : > { %14189 = vmatpush2.bf16.msra.mxu1 %v17914_v43  ;;  %14147 = vmatprep.subr.bf16.mxu0 %v17919_v23  ;;  %v17968_v43 = vld [vmem:[%s19018_s20 + $0x2a8] ss:$16 sps:$4 sm:$0xff]   ;;  %v17976_v23 = vld [vmem:[%s19018_s20 + $0x28c] ss:$16 sps:$4 sm:$0xff]  }
 0xb2a   : > { %14190 = vmatprep.subr.bf16.mxu1 %v17922_v37  ;;  %v17974_v37 = vld [vmem:[%s19018_s20 + $0x288] ss:$16 sps:$4 sm:$0xff]  }
 0xb2c   : > { %14148 = vmatpush2.bf16.msra.mxu0 %v17917_v60  ;;  %v17979_v60 = vld [vmem:[%s19018_s20 + $0x6c] ss:$16 sps:$4 sm:$0xff]  }
 0xb2d   : > { %14191 = vmatpush2.bf16.msra.mxu1 %v17920_v28  ;;  %14149 = vmatprep.subr.bf16.mxu0 %v17925_v35  ;;  %v17982_v28 = vld [vmem:[%s19018_s20 + $0x26c] ss:$16 sps:$4 sm:$0xff]   ;;  %v17977_v35 = vld [vmem:[%s19018_s20 + $0x68] ss:$16 sps:$4 sm:$0xff]  }
 0xb2e   : > { %14192 = vmatprep.subr.bf16.mxu1 %v17928_v45  ;;  %v17980_v45 = vld [vmem:[%s19018_s20 + $0x268] ss:$16 sps:$4 sm:$0xff]  }
 0xb30   : > { %14150 = vmatpush2.bf16.msra.mxu0 %v17923_v16  ;;  %v17985_v16 = vld [vmem:[%s19018_s20 + $0x4c] ss:$16 sps:$4 sm:$0xff]  }
 0xb31   : > { %14193 = vmatpush2.bf16.msra.mxu1 %v17926_v36  ;;  %14151 = vmatprep.subr.bf16.mxu0 %v17931_v0  ;;  %v17988_v36 = vld [vmem:[%s19018_s20 + $0x24c] ss:$16 sps:$4 sm:$0xff]   ;;  %v17983_v0 = vld [vmem:[%s19018_s20 + $0x48] ss:$16 sps:$4 sm:$0xff]  }
 0xb32   : > { %14194 = vmatprep.subr.bf16.mxu1 %v17934_v54  ;;  %v17986_v54 = vld [vmem:[%s19018_s20 + $0x248] ss:$16 sps:$4 sm:$0xff]  }
 0xb34   : > { %14152 = vmatpush2.bf16.msra.mxu0 %v17929_v34  ;;  %v17991_v34 = vld [vmem:[%s19018_s20 + $0x2c] ss:$16 sps:$4 sm:$0xff]  }
 0xb35   : > { %14195 = vmatpush2.bf16.msra.mxu1 %v17932_v10  ;;  %14153 = vmatprep.subr.bf16.mxu0 %v17937_v15  ;;  %v17994_v10 = vld [vmem:[%s19018_s20 + $0x22c] ss:$16 sps:$4 sm:$0xff]   ;;  %v17989_v15 = vld [vmem:[%s19018_s20 + $0x28] ss:$16 sps:$4 sm:$0xff]  }
 0xb36   : > { %14196 = vmatprep.subr.bf16.mxu1 %v17940_v63  ;;  %v17992_v63 = vld [vmem:[%s19018_s20 + $0x228] ss:$16 sps:$4 sm:$0xff]  }
 0xb38   : > { %14154 = vmatpush2.bf16.msra.mxu0 %v17935_v22  ;;  %v17997_v22 = vld [vmem:[%s19018_s20 + $0xc] ss:$16 sps:$4 sm:$0xff]  }
 0xb39   : > { %14197 = vmatpush2.bf16.msra.mxu1 %v17938_v4  ;;  %14155 = vmatprep.subr.bf16.mxu0 %v17943_v1  ;;  %v18000_v4 = vld [vmem:[%s19018_s20 + $0x20c] ss:$16 sps:$4 sm:$0xff]   ;;  %v17995_v1 = vld [vmem:[%s19018_s20 + $0x8] ss:$16 sps:$4 sm:$0xff]  }
 0xb3a   : > { %14198 = vmatprep.subr.bf16.mxu1 %v17946_v44  ;;  %v17998_v44 = vld [vmem:[%s19018_s20 + $0x208] ss:$16 sps:$4 sm:$0xff]  }
 0xb3c   : > { %14156 = vmatpush2.bf16.msra.mxu0 %v17941_v27  ;;  %v18003_v27 = vld [vmem:[%s19018_s20 + $0x1ec] ss:$16 sps:$4 sm:$0xff]  }
 0xb3d   : > { %14199 = vmatpush2.bf16.msra.mxu1 %v17944_v40  ;;  %14157 = vmatprep.subr.bf16.mxu0 %v17949_v47  ;;  %v18006_v40 = vld [vmem:[%s19018_s20 + $0x3ec] ss:$16 sps:$4 sm:$0xff]   ;;  %v18001_v47 = vld [vmem:[%s19018_s20 + $0x1e8] ss:$16 sps:$4 sm:$0xff]  }
 0xb3e   : > { %14200 = vmatprep.subr.bf16.mxu1 %v17952_v9  ;;  %v18009_v9 = vld [vmem:[%s19018_s20 + $0x1cc] ss:$16 sps:$4 sm:$0xff]  }
 0xb40   : > { %14158 = vmatpush2.bf16.msra.mxu0 %v17947_v5  ;;  %v18007_v5 = vld [vmem:[%s19018_s20 + $0x1c8] ss:$16 sps:$4 sm:$0xff]  }
 0xb41   : > { %14201 = vmatpush2.bf16.msra.mxu1 %v17950_v38  ;;  %14213 = vmatprep.subr.bf16.mxu0 %v17955_v42  ;;  %v18010_v38 = vld [vmem:[%s19018_s20 + $0x3c8] ss:$16 sps:$4 sm:$0xff]   ;;  %v18015_v42 = vld [vmem:[%s19018_s20 + $0x1ac] ss:$16 sps:$4 sm:$0xff]  }
 0xb42   : > { %14256 = vmatprep.subr.bf16.mxu1 %v17958_v20  ;;  %v18013_v20 = vld [vmem:[%s19018_s20 + $0x1a8] ss:$16 sps:$4 sm:$0xff]  }
 0xb43   : > { %14160 = vmatmul.mubr.bf16.vlgmr.msra.gmra.mxu0 %v20974_v56 }
 0xb44   : > { %14203 = vmatmul.mubr.bf16.vlgmr.msra.gmra.mxu1 %v21115_v48  ;;  %14214 = vmatpush1.bf16.msra.mxu0 %v17953_v18  ;;  %v18021_v18 = vld [vmem:[%s19018_s20 + $0x18c] ss:$16 sps:$4 sm:$0xff]  }
 0xb45   : > { %14245 = vmatprep.mubr.bf16.mxu0 %v20778_v8  ;;  %14257 = vmatpush1.bf16.msra.mxu1 %v17956_v17  ;;  %v17973_v8 = vld [vmem:[%s19018_s20 + $0x8c] ss:$16 sps:$4 sm:$0xff]  }
 0xb46   : > { %14288 = vmatprep.mubr.bf16.mxu1 %v20782_v39  ;;  %14215 = vmatprep.subr.bf16.mxu0 %v17961_v58  ;;  %v17971_v39 = vld [vmem:[%s19018_s20 + $0x88] ss:$16 sps:$4 sm:$0xff]   ;;  %v18024_v17 = vld [vmem:[%s19018_s20 + $0x38c] ss:$16 sps:$4 sm:$0xff]  }
 0xb47   : > { %14258 = vmatprep.subr.bf16.mxu1 %v17964_v61  ;;  %v18019_v58 = vld [vmem:[%s19018_s20 + $0x188] ss:$16 sps:$4 sm:$0xff]  }
 0xb48   : > { %14216 = vmatpush1.bf16.msra.mxu0 %v17959_v19  ;;  %v18022_v61 = vld [vmem:[%s19018_s20 + $0x388] ss:$16 sps:$4 sm:$0xff]   ;;  %v18027_v19 = vld [vmem:[%s19018_s20 + $0x16c] ss:$16 sps:$4 sm:$0xff]  }
 0xb49   : > { %14259 = vmatpush1.bf16.msra.mxu1 %v17962_v33  ;;  %14217 = vmatprep.subr.bf16.mxu0 %v17967_v50  ;;  %v18030_v33 = vld [vmem:[%s19018_s20 + $0x36c] ss:$16 sps:$4 sm:$0xff]   ;;  %v18025_v50 = vld [vmem:[%s19018_s20 + $0x168] ss:$16 sps:$4 sm:$0xff]  }
 0xb4a   : > { %14260 = vmatprep.subr.bf16.mxu1 %v17970_v41  ;;  %v18028_v41 = vld [vmem:[%s19018_s20 + $0x368] ss:$16 sps:$4 sm:$0xff]  }
 0xb4c   : > { %14218 = vmatpush1.bf16.msra.mxu0 %v17965_v31  ;;  %v18033_v31 = vld [vmem:[%s19018_s20 + $0x14c] ss:$16 sps:$4 sm:$0xff]  }
 0xb4d   : > { %14261 = vmatpush1.bf16.msra.mxu1 %v17968_v43  ;;  %14219 = vmatprep.subr.bf16.mxu0 %v17973_v8  ;;  %v18036_v43 = vld [vmem:[%s19018_s20 + $0x34c] ss:$16 sps:$4 sm:$0xff]   ;;  %v18031_v8 = vld [vmem:[%s19018_s20 + $0x148] ss:$16 sps:$4 sm:$0xff]  }
 0xb4e   : > { %14262 = vmatprep.subr.bf16.mxu1 %v17976_v23  ;;  %v18034_v23 = vld [vmem:[%s19018_s20 + $0x348] ss:$16 sps:$4 sm:$0xff]  }
 0xb50   : > { %14220 = vmatpush1.bf16.msra.mxu0 %v17971_v39  ;;  %v18039_v39 = vld [vmem:[%s19018_s20 + $0x12c] ss:$16 sps:$4 sm:$0xff]  }
 0xb51   : > { %14263 = vmatpush1.bf16.msra.mxu1 %v17974_v37  ;;  %14221 = vmatprep.subr.bf16.mxu0 %v17979_v60  ;;  %v18042_v37 = vld [vmem:[%s19018_s20 + $0x32c] ss:$16 sps:$4 sm:$0xff]   ;;  %v18037_v60 = vld [vmem:[%s19018_s20 + $0x128] ss:$16 sps:$4 sm:$0xff]  }
 0xb52   : > { %14264 = vmatprep.subr.bf16.mxu1 %v17982_v28  ;;  %v18040_v28 = vld [vmem:[%s19018_s20 + $0x328] ss:$16 sps:$4 sm:$0xff]  }
 0xb54   : > { %14222 = vmatpush1.bf16.msra.mxu0 %v17977_v35  ;;  %v18045_v35 = vld [vmem:[%s19018_s20 + $0x10c] ss:$16 sps:$4 sm:$0xff]  }
 0xb55   : > { %14265 = vmatpush1.bf16.msra.mxu1 %v17980_v45  ;;  %14223 = vmatprep.subr.bf16.mxu0 %v17985_v16  ;;  %v18048_v45 = vld [vmem:[%s19018_s20 + $0x30c] ss:$16 sps:$4 sm:$0xff]   ;;  %v18043_v16 = vld [vmem:[%s19018_s20 + $0x108] ss:$16 sps:$4 sm:$0xff]  }
 0xb56   : > { %14266 = vmatprep.subr.bf16.mxu1 %v17988_v36  ;;  %v18046_v36 = vld [vmem:[%s19018_s20 + $0x308] ss:$16 sps:$4 sm:$0xff]  }
 0xb58   : > { %14224 = vmatpush1.bf16.msra.mxu0 %v17983_v0  ;;  %v18051_v0 = vld [vmem:[%s19018_s20 + $0x4ec] ss:$16 sps:$4 sm:$0xff]  }
 0xb59   : > { %14267 = vmatpush1.bf16.msra.mxu1 %v17986_v54  ;;  %14225 = vmatprep.subr.bf16.mxu0 %v17991_v34  ;;  %v18054_v54 = vld [vmem:[%s19018_s20 + $0x6ec] ss:$16 sps:$4 sm:$0xff]   ;;  %v18049_v34 = vld [vmem:[%s19018_s20 + $0x4e8] ss:$16 sps:$4 sm:$0xff]  }
 0xb5a   : > { %14268 = vmatprep.subr.bf16.mxu1 %v17994_v10  ;;  %v18052_v10 = vld [vmem:[%s19018_s20 + $0x6e8] ss:$16 sps:$4 sm:$0xff]  }
 0xb5c   : > { %14226 = vmatpush1.bf16.msra.mxu0 %v17989_v15  ;;  %v18057_v15 = vld [vmem:[%s19018_s20 + $0x4cc] ss:$16 sps:$4 sm:$0xff]  }
 0xb5d   : > { %14269 = vmatpush1.bf16.msra.mxu1 %v17992_v63  ;;  %14227 = vmatprep.subr.bf16.mxu0 %v17997_v22  ;;  %v18060_v63 = vld [vmem:[%s19018_s20 + $0x6cc] ss:$16 sps:$4 sm:$0xff]   ;;  %v18055_v22 = vld [vmem:[%s19018_s20 + $0x4c8] ss:$16 sps:$4 sm:$0xff]  }
 0xb5e   : > { %14270 = vmatprep.subr.bf16.mxu1 %v18000_v4  ;;  %v18058_v4 = vld [vmem:[%s19018_s20 + $0x6c8] ss:$16 sps:$4 sm:$0xff]  }
 0xb60   : > { %14228 = vmatpush1.bf16.msra.mxu0 %v17995_v1  ;;  %v18063_v1 = vld [vmem:[%s19018_s20 + $0x4ac] ss:$16 sps:$4 sm:$0xff]  }
 0xb61   : > { %14271 = vmatpush1.bf16.msra.mxu1 %v17998_v44  ;;  %14229 = vmatprep.subr.bf16.mxu0 %v18003_v27  ;;  %v18064_v44 = vld [vmem:[%s19018_s20 + $0x6a8] ss:$16 sps:$4 sm:$0xff]   ;;  %v18072_v27 = vld [vmem:[%s19018_s20 + $0x68c] ss:$16 sps:$4 sm:$0xff]  }
 0xb62   : > { %14272 = vmatprep.subr.bf16.mxu1 %v18006_v40  ;;  %v18070_v40 = vld [vmem:[%s19018_s20 + $0x688] ss:$16 sps:$4 sm:$0xff]  }
 0xb64   : > { %14230 = vmatpush2.bf16.msra.mxu0 %v18001_v47  ;;  %v18075_v47 = vld [vmem:[%s19018_s20 + $0x46c] ss:$16 sps:$4 sm:$0xff]  }
 0xb65   : > { %14273 = vmatpush2.bf16.msra.mxu1 %v18004_v12  ;;  %14231 = vmatprep.subr.bf16.mxu0 %v18009_v9  ;;  %v18078_v12 = vld [vmem:[%s19018_s20 + $0x66c] ss:$16 sps:$4 sm:$0xff]   ;;  %v18073_v9 = vld [vmem:[%s19018_s20 + $0x468] ss:$16 sps:$4 sm:$0xff]  }
 0xb66   : > { %14274 = vmatprep.subr.bf16.mxu1 %v18012_v25  ;;  %v18076_v25 = vld [vmem:[%s19018_s20 + $0x668] ss:$16 sps:$4 sm:$0xff]  }
 0xb68   : > { %14232 = vmatpush2.bf16.msra.mxu0 %v18007_v5  ;;  %v18081_v5 = vld [vmem:[%s19018_s20 + $0x44c] ss:$16 sps:$4 sm:$0xff]  }
 0xb69   : > { %14275 = vmatpush2.bf16.msra.mxu1 %v18010_v38  ;;  %14233 = vmatprep.subr.bf16.mxu0 %v18015_v42  ;;  %v18084_v38 = vld [vmem:[%s19018_s20 + $0x64c] ss:$16 sps:$4 sm:$0xff]   ;;  %v18079_v42 = vld [vmem:[%s19018_s20 + $0x448] ss:$16 sps:$4 sm:$0xff]  }
 0xb6a   : > { %14276 = vmatprep.subr.bf16.mxu1 %v18018_v46  ;;  %v18082_v46 = vld [vmem:[%s19018_s20 + $0x648] ss:$16 sps:$4 sm:$0xff]  }
 0xb6c   : > { %14234 = vmatpush2.bf16.msra.mxu0 %v18013_v20  ;;  %v18087_v20 = vld [vmem:[%s19018_s20 + $0x42c] ss:$16 sps:$4 sm:$0xff]  }
 0xb6d   : > { %14277 = vmatpush2.bf16.msra.mxu1 %v18016_v11  ;;  %14235 = vmatprep.subr.bf16.mxu0 %v18021_v18  ;;  %v18090_v11 = vld [vmem:[%s19018_s20 + $0x62c] ss:$16 sps:$4 sm:$0xff]   ;;  %v18085_v18 = vld [vmem:[%s19018_s20 + $0x428] ss:$16 sps:$4 sm:$0xff]  }
 0xb6e   : > { %14278 = vmatprep.subr.bf16.mxu1 %v18024_v17  ;;  %v18088_v17 = vld [vmem:[%s19018_s20 + $0x628] ss:$16 sps:$4 sm:$0xff]  }
 0xb70   : > { %14236 = vmatpush2.bf16.msra.mxu0 %v18019_v58  ;;  %v18093_v58 = vld [vmem:[%s19018_s20 + $0x40c] ss:$16 sps:$4 sm:$0xff]  }
 0xb71   : > { %14279 = vmatpush2.bf16.msra.mxu1 %v18022_v61  ;;  %14237 = vmatprep.subr.bf16.mxu0 %v18027_v19  ;;  %v18096_v61 = vld [vmem:[%s19018_s20 + $0x60c] ss:$16 sps:$4 sm:$0xff]   ;;  %v18091_v19 = vld [vmem:[%s19018_s20 + $0x408] ss:$16 sps:$4 sm:$0xff]  }
 0xb72   : > { %14280 = vmatprep.subr.bf16.mxu1 %v18030_v33  ;;  %v18094_v33 = vld [vmem:[%s19018_s20 + $0x608] ss:$16 sps:$4 sm:$0xff]  }
 0xb74   : > { %14238 = vmatpush2.bf16.msra.mxu0 %v18025_v50  ;;  %v18099_v50 = vld [vmem:[%s19018_s20 + $0x5ec] ss:$16 sps:$4 sm:$0xff]  }
 0xb75   : > { %14281 = vmatpush2.bf16.msra.mxu1 %v18028_v41  ;;  %14239 = vmatprep.subr.bf16.mxu0 %v18033_v31  ;;  %v18102_v41 = vld [vmem:[%s19018_s20 + $0x7ec] ss:$16 sps:$4 sm:$0xff]   ;;  %v18097_v31 = vld [vmem:[%s19018_s20 + $0x5e8] ss:$16 sps:$4 sm:$0xff]  }
 0xb76   : > { %14282 = vmatprep.subr.bf16.mxu1 %v18036_v43  ;;  %v18100_v43 = vld [vmem:[%s19018_s20 + $0x7e8] ss:$16 sps:$4 sm:$0xff]  }
 0xb78   : > { %14240 = vmatpush2.bf16.msra.mxu0 %v18031_v8  ;;  %v18105_v8 = vld [vmem:[%s19018_s20 + $0x5cc] ss:$16 sps:$4 sm:$0xff]  }
 0xb79   : > { %14283 = vmatpush2.bf16.msra.mxu1 %v18034_v23  ;;  %14241 = vmatprep.subr.bf16.mxu0 %v18039_v39  ;;  %v18108_v23 = vld [vmem:[%s19018_s20 + $0x7cc] ss:$16 sps:$4 sm:$0xff]   ;;  %v18103_v39 = vld [vmem:[%s19018_s20 + $0x5c8] ss:$16 sps:$4 sm:$0xff]  }
 0xb7a   : > { %14284 = vmatprep.subr.bf16.mxu1 %v18042_v37  ;;  %v18106_v37 = vld [vmem:[%s19018_s20 + $0x7c8] ss:$16 sps:$4 sm:$0xff]  }
 0xb7c   : > { %14242 = vmatpush2.bf16.msra.mxu0 %v18037_v60  ;;  %v18111_v60 = vld [vmem:[%s19018_s20 + $0x5ac] ss:$16 sps:$4 sm:$0xff]  }
 0xb7d   : > { %14285 = vmatpush2.bf16.msra.mxu1 %v18040_v28  ;;  %14243 = vmatprep.subr.bf16.mxu0 %v18045_v35  ;;  %v18114_v28 = vld [vmem:[%s19018_s20 + $0x7ac] ss:$16 sps:$4 sm:$0xff]   ;;  %v18109_v35 = vld [vmem:[%s19018_s20 + $0x5a8] ss:$16 sps:$4 sm:$0xff]  }
 0xb7e   : > { %14286 = vmatprep.subr.bf16.mxu1 %v18048_v45  ;;  %v18112_v45 = vld [vmem:[%s19018_s20 + $0x7a8] ss:$16 sps:$4 sm:$0xff]  }
 0xb80   : > { %14244 = vmatpush2.bf16.msra.mxu0 %v18043_v16  ;;  %v18117_v16 = vld [vmem:[%s19018_s20 + $0x58c] ss:$16 sps:$4 sm:$0xff]  }
 0xb81   : > { %14287 = vmatpush2.bf16.msra.mxu1 %v18046_v36  ;;  %14299 = vmatprep.subr.bf16.mxu0 %v18051_v0  ;;  %v18120_v36 = vld [vmem:[%s19018_s20 + $0x78c] ss:$16 sps:$4 sm:$0xff]   ;;  %v18115_v0 = vld [vmem:[%s19018_s20 + $0x588] ss:$16 sps:$4 sm:$0xff]  }
 0xb82   : > { %14342 = vmatprep.subr.bf16.mxu1 %v18054_v54  ;;  %v18118_v54 = vld [vmem:[%s19018_s20 + $0x788] ss:$16 sps:$4 sm:$0xff]  }
 0xb83   : > { %14246 = vmatmul.mubr.bf16.vlgmr.msra.gmra.mxu0 %v20481_v62  ;;  %v18066_v62 = vld [vmem:[%s19018_s20 + $0x6ac] ss:$16 sps:$4 sm:$0xff]  }
 0xb84   : > { %14289 = vmatmul.mubr.bf16.vlgmr.msra.gmra.mxu1 %v20559_v6  ;;  %14300 = vmatpush1.bf16.msra.mxu0 %v18049_v34  ;;  %v18061_v6 = vld [vmem:[%s19018_s20 + $0x4a8] ss:$16 sps:$4 sm:$0xff]   ;;  %v18123_v34 = vld [vmem:[%s19018_s20 + $0x56c] ss:$16 sps:$4 sm:$0xff]  }
 0xb85   : > { %14331 = vmatprep.mubr.bf16.mxu0 %v20868_v53  ;;  %14343 = vmatpush1.bf16.msra.mxu1 %v18052_v10  ;;  %v18069_v53 = vld [vmem:[%s19018_s20 + $0x48c] ss:$16 sps:$4 sm:$0xff]  }
 0xb86   : > { %14374 = vmatprep.mubr.bf16.mxu1 %v20872_v14  ;;  %14301 = vmatprep.subr.bf16.mxu0 %v18057_v15  ;;  %v18067_v14 = vld [vmem:[%s19018_s20 + $0x488] ss:$16 sps:$4 sm:$0xff]   ;;  %v18126_v10 = vld [vmem:[%s19018_s20 + $0x76c] ss:$16 sps:$4 sm:$0xff]  }
 0xb87   : > { %14344 = vmatprep.subr.bf16.mxu1 %v18060_v63  ;;  %v18121_v15 = vld [vmem:[%s19018_s20 + $0x568] ss:$16 sps:$4 sm:$0xff]  }
 0xb88   : > { %14302 = vmatpush1.bf16.msra.mxu0 %v18055_v22  ;;  %v18124_v63 = vld [vmem:[%s19018_s20 + $0x768] ss:$16 sps:$4 sm:$0xff]   ;;  %v18129_v22 = vld [vmem:[%s19018_s20 + $0x54c] ss:$16 sps:$4 sm:$0xff]  }
 0xb89   : > { %14345 = vmatpush1.bf16.msra.mxu1 %v18058_v4  ;;  %14303 = vmatprep.subr.bf16.mxu0 %v18063_v1  ;;  %v18132_v4 = vld [vmem:[%s19018_s20 + $0x74c] ss:$16 sps:$4 sm:$0xff]   ;;  %v18127_v1 = vld [vmem:[%s19018_s20 + $0x548] ss:$16 sps:$4 sm:$0xff]  }
 0xb8a   : > { %14346 = vmatprep.subr.bf16.mxu1 %v18066_v62  ;;  %v18130_v62 = vld [vmem:[%s19018_s20 + $0x748] ss:$16 sps:$4 sm:$0xff]  }
 0xb8c   : > { %14304 = vmatpush1.bf16.msra.mxu0 %v18061_v6  ;;  %v18135_v6 = vld [vmem:[%s19018_s20 + $0x52c] ss:$16 sps:$4 sm:$0xff]  }
 0xb8d   : > { %14347 = vmatpush1.bf16.msra.mxu1 %v18064_v44  ;;  %14305 = vmatprep.subr.bf16.mxu0 %v18069_v53  ;;  %v18138_v44 = vld [vmem:[%s19018_s20 + $0x72c] ss:$16 sps:$4 sm:$0xff]   ;;  %v18133_v53 = vld [vmem:[%s19018_s20 + $0x528] ss:$16 sps:$4 sm:$0xff]  }
 0xb8e   : > { %14348 = vmatprep.subr.bf16.mxu1 %v18072_v27  ;;  %v18136_v27 = vld [vmem:[%s19018_s20 + $0x728] ss:$16 sps:$4 sm:$0xff]  }
 0xb90   : > { %14306 = vmatpush1.bf16.msra.mxu0 %v18067_v14  ;;  %v18141_v14 = vld [vmem:[%s19018_s20 + $0x50c] ss:$16 sps:$4 sm:$0xff]  }
 0xb91   : > { %14349 = vmatpush1.bf16.msra.mxu1 %v18070_v40  ;;  %14307 = vmatprep.subr.bf16.mxu0 %v18075_v47  ;;  %v18144_v40 = vld [vmem:[%s19018_s20 + $0x70c] ss:$16 sps:$4 sm:$0xff]   ;;  %v18139_v47 = vld [vmem:[%s19018_s20 + $0x508] ss:$16 sps:$4 sm:$0xff]  }
 0xb92   : > { %14350 = vmatprep.subr.bf16.mxu1 %v18078_v12  ;;  %v18142_v12 = vld [vmem:[%s19018_s20 + $0x708] ss:$16 sps:$4 sm:$0xff]  }
 0xb94   : > { %14308 = vmatpush1.bf16.msra.mxu0 %v18073_v9  ;;  %v18147_v9 = vld [vmem:[%s19018_s20 + $0x8ec] ss:$16 sps:$4 sm:$0xff]  }
 0xb95   : > { %14351 = vmatpush1.bf16.msra.mxu1 %v18076_v25  ;;  %14309 = vmatprep.subr.bf16.mxu0 %v18081_v5  ;;  %v18150_v25 = vld [vmem:[%s19018_s20 + $0xaec] ss:$16 sps:$4 sm:$0xff]   ;;  %v18145_v5 = vld [vmem:[%s19018_s20 + $0x8e8] ss:$16 sps:$4 sm:$0xff]  }
 0xb96   : > { %14352 = vmatprep.subr.bf16.mxu1 %v18084_v38  ;;  %v18148_v38 = vld [vmem:[%s19018_s20 + $0xae8] ss:$16 sps:$4 sm:$0xff]  }
 0xb98   : > { %14310 = vmatpush1.bf16.msra.mxu0 %v18079_v42  ;;  %v18153_v42 = vld [vmem:[%s19018_s20 + $0x8cc] ss:$16 sps:$4 sm:$0xff]  }
 0xb99   : > { %14353 = vmatpush1.bf16.msra.mxu1 %v18082_v46  ;;  %14311 = vmatprep.subr.bf16.mxu0 %v18087_v20  ;;  %v18156_v46 = vld [vmem:[%s19018_s20 + $0xacc] ss:$16 sps:$4 sm:$0xff]   ;;  %v18151_v20 = vld [vmem:[%s19018_s20 + $0x8c8] ss:$16 sps:$4 sm:$0xff]  }
 0xb9a   : > { %14354 = vmatprep.subr.bf16.mxu1 %v18090_v11  ;;  %v18154_v11 = vld [vmem:[%s19018_s20 + $0xac8] ss:$16 sps:$4 sm:$0xff]  }
 0xb9c   : > { %14312 = vmatpush1.bf16.msra.mxu0 %v18085_v18  ;;  %v18159_v18 = vld [vmem:[%s19018_s20 + $0x8ac] ss:$16 sps:$4 sm:$0xff]  }
 0xb9d   : > { %14355 = vmatpush1.bf16.msra.mxu1 %v18088_v17  ;;  %14313 = vmatprep.subr.bf16.mxu0 %v18093_v58  ;;  %v18160_v17 = vld [vmem:[%s19018_s20 + $0xaa8] ss:$16 sps:$4 sm:$0xff]   ;;  %v18168_v58 = vld [vmem:[%s19018_s20 + $0xa8c] ss:$16 sps:$4 sm:$0xff]  }
 0xb9e   : > { %14356 = vmatprep.subr.bf16.mxu1 %v18096_v61  ;;  %v18166_v61 = vld [vmem:[%s19018_s20 + $0xa88] ss:$16 sps:$4 sm:$0xff]  }
 0xba0   : > { %14314 = vmatpush1.bf16.msra.mxu0 %v18091_v19  ;;  %v18171_v19 = vld [vmem:[%s19018_s20 + $0x86c] ss:$16 sps:$4 sm:$0xff]  }
 0xba1   : > { %14357 = vmatpush1.bf16.msra.mxu1 %v18094_v33  ;;  %14315 = vmatprep.subr.bf16.mxu0 %v18099_v50  ;;  %v18174_v33 = vld [vmem:[%s19018_s20 + $0xa6c] ss:$16 sps:$4 sm:$0xff]   ;;  %v18169_v50 = vld [vmem:[%s19018_s20 + $0x868] ss:$16 sps:$4 sm:$0xff]  }
 0xba2   : > { %14358 = vmatprep.subr.bf16.mxu1 %v18102_v41  ;;  %v18172_v41 = vld [vmem:[%s19018_s20 + $0xa68] ss:$16 sps:$4 sm:$0xff]  }
 0xba4   : > { %14316 = vmatpush2.bf16.msra.mxu0 %v18097_v31  ;;  %v18177_v31 = vld [vmem:[%s19018_s20 + $0x84c] ss:$16 sps:$4 sm:$0xff]  }
 0xba5   : > { %14359 = vmatpush2.bf16.msra.mxu1 %v18100_v43  ;;  %14317 = vmatprep.subr.bf16.mxu0 %v18105_v8  ;;  %v18180_v43 = vld [vmem:[%s19018_s20 + $0xa4c] ss:$16 sps:$4 sm:$0xff]   ;;  %v18175_v8 = vld [vmem:[%s19018_s20 + $0x848] ss:$16 sps:$4 sm:$0xff]  }
 0xba6   : > { %14360 = vmatprep.subr.bf16.mxu1 %v18108_v23  ;;  %v18178_v23 = vld [vmem:[%s19018_s20 + $0xa48] ss:$16 sps:$4 sm:$0xff]  }
 0xba8   : > { %14318 = vmatpush2.bf16.msra.mxu0 %v18103_v39  ;;  %v18183_v39 = vld [vmem:[%s19018_s20 + $0x82c] ss:$16 sps:$4 sm:$0xff]  }
 0xba9   : > { %14361 = vmatpush2.bf16.msra.mxu1 %v18106_v37  ;;  %14319 = vmatprep.subr.bf16.mxu0 %v18111_v60  ;;  %v18186_v37 = vld [vmem:[%s19018_s20 + $0xa2c] ss:$16 sps:$4 sm:$0xff]   ;;  %v18181_v60 = vld [vmem:[%s19018_s20 + $0x828] ss:$16 sps:$4 sm:$0xff]  }
 0xbaa   : > { %14362 = vmatprep.subr.bf16.mxu1 %v18114_v28  ;;  %v18184_v28 = vld [vmem:[%s19018_s20 + $0xa28] ss:$16 sps:$4 sm:$0xff]  }
 0xbac   : > { %14320 = vmatpush2.bf16.msra.mxu0 %v18109_v35  ;;  %v18189_v35 = vld [vmem:[%s19018_s20 + $0x80c] ss:$16 sps:$4 sm:$0xff]  }
 0xbad   : > { %14363 = vmatpush2.bf16.msra.mxu1 %v18112_v45  ;;  %14321 = vmatprep.subr.bf16.mxu0 %v18117_v16  ;;  %v18192_v45 = vld [vmem:[%s19018_s20 + $0xa0c] ss:$16 sps:$4 sm:$0xff]   ;;  %v18187_v16 = vld [vmem:[%s19018_s20 + $0x808] ss:$16 sps:$4 sm:$0xff]  }
 0xbae   : > { %14364 = vmatprep.subr.bf16.mxu1 %v18120_v36  ;;  %v18190_v36 = vld [vmem:[%s19018_s20 + $0xa08] ss:$16 sps:$4 sm:$0xff]  }
 0xbb0   : > { %14322 = vmatpush2.bf16.msra.mxu0 %v18115_v0  ;;  %v18195_v0 = vld [vmem:[%s19018_s20 + $0x9ec] ss:$16 sps:$4 sm:$0xff]  }
 0xbb1   : > { %14365 = vmatpush2.bf16.msra.mxu1 %v18118_v54  ;;  %14323 = vmatprep.subr.bf16.mxu0 %v18123_v34  ;;  %v18198_v54 = vld [vmem:[%s19018_s20 + $0xbec] ss:$16 sps:$4 sm:$0xff]   ;;  %v18193_v34 = vld [vmem:[%s19018_s20 + $0x9e8] ss:$16 sps:$4 sm:$0xff]  }
 0xbb2   : > { %14366 = vmatprep.subr.bf16.mxu1 %v18126_v10  ;;  %v18196_v10 = vld [vmem:[%s19018_s20 + $0xbe8] ss:$16 sps:$4 sm:$0xff]  }
 0xbb4   : > { %14324 = vmatpush2.bf16.msra.mxu0 %v18121_v15  ;;  %v18201_v15 = vld [vmem:[%s19018_s20 + $0x9cc] ss:$16 sps:$4 sm:$0xff]  }
 0xbb5   : > { %14367 = vmatpush2.bf16.msra.mxu1 %v18124_v63  ;;  %14325 = vmatprep.subr.bf16.mxu0 %v18129_v22  ;;  %v18204_v63 = vld [vmem:[%s19018_s20 + $0xbcc] ss:$16 sps:$4 sm:$0xff]   ;;  %v18199_v22 = vld [vmem:[%s19018_s20 + $0x9c8] ss:$16 sps:$4 sm:$0xff]  }
 0xbb6   : > { %14368 = vmatprep.subr.bf16.mxu1 %v18132_v4  ;;  %v18202_v4 = vld [vmem:[%s19018_s20 + $0xbc8] ss:$16 sps:$4 sm:$0xff]  }
 0xbb8   : > { %14326 = vmatpush2.bf16.msra.mxu0 %v18127_v1  ;;  %v18207_v1 = vld [vmem:[%s19018_s20 + $0x9ac] ss:$16 sps:$4 sm:$0xff]  }
 0xbb9   : > { %14369 = vmatpush2.bf16.msra.mxu1 %v18130_v62  ;;  %14327 = vmatprep.subr.bf16.mxu0 %v18135_v6  ;;  %v18210_v62 = vld [vmem:[%s19018_s20 + $0xbac] ss:$16 sps:$4 sm:$0xff]   ;;  %v18205_v6 = vld [vmem:[%s19018_s20 + $0x9a8] ss:$16 sps:$4 sm:$0xff]  }
 0xbba   : > { %14370 = vmatprep.subr.bf16.mxu1 %v18138_v44  ;;  %v18208_v44 = vld [vmem:[%s19018_s20 + $0xba8] ss:$16 sps:$4 sm:$0xff]  }
 0xbbc   : > { %14328 = vmatpush2.bf16.msra.mxu0 %v18133_v53  ;;  %v18213_v53 = vld [vmem:[%s19018_s20 + $0x98c] ss:$16 sps:$4 sm:$0xff]  }
 0xbbd   : > { %14371 = vmatpush2.bf16.msra.mxu1 %v18136_v27  ;;  %14329 = vmatprep.subr.bf16.mxu0 %v18141_v14  ;;  %v18216_v27 = vld [vmem:[%s19018_s20 + $0xb8c] ss:$16 sps:$4 sm:$0xff]   ;;  %v18211_v14 = vld [vmem:[%s19018_s20 + $0x988] ss:$16 sps:$4 sm:$0xff]  }
 0xbbe   : > { %14372 = vmatprep.subr.bf16.mxu1 %v18144_v40  ;;  %v18214_v40 = vld [vmem:[%s19018_s20 + $0xb88] ss:$16 sps:$4 sm:$0xff]  }
 0xbc0   : > { %14330 = vmatpush2.bf16.msra.mxu0 %v18139_v47  ;;  %v18219_v47 = vld [vmem:[%s19018_s20 + $0x96c] ss:$16 sps:$4 sm:$0xff]  }
 0xbc1   : > { %14373 = vmatpush2.bf16.msra.mxu1 %v18142_v12  ;;  %14385 = vmatprep.subr.bf16.mxu0 %v18147_v9  ;;  %v18222_v12 = vld [vmem:[%s19018_s20 + $0xb6c] ss:$16 sps:$4 sm:$0xff]   ;;  %v18217_v9 = vld [vmem:[%s19018_s20 + $0x968] ss:$16 sps:$4 sm:$0xff]  }
 0xbc2   : > { %14428 = vmatprep.subr.bf16.mxu1 %v18150_v25  ;;  %v18220_v25 = vld [vmem:[%s19018_s20 + $0xb68] ss:$16 sps:$4 sm:$0xff]  }
 0xbc3   : > { %14332 = vmatmul.mubr.bf16.vlgmr.msra.gmra.mxu0 %v20637_v57  ;;  %v18162_v57 = vld [vmem:[%s19018_s20 + $0xaac] ss:$16 sps:$4 sm:$0xff]  }
 0xbc4   : > { %14375 = vmatmul.mubr.bf16.vlgmr.msra.gmra.mxu1 %v20715_v26  ;;  %14386 = vmatpush1.bf16.msra.mxu0 %v18145_v5  ;;  %v18157_v26 = vld [vmem:[%s19018_s20 + $0x8a8] ss:$16 sps:$4 sm:$0xff]   ;;  %v18225_v5 = vld [vmem:[%s19018_s20 + $0x94c] ss:$16 sps:$4 sm:$0xff]  }
 0xbc5   : > { %14417 = vmatprep.mubr.bf16.mxu0 %v20952_v55  ;;  %14429 = vmatpush1.bf16.msra.mxu1 %v18148_v38  ;;  %v18165_v55 = vld [vmem:[%s19018_s20 + $0x88c] ss:$16 sps:$4 sm:$0xff]  }
 0xbc6   : > { %14460 = vmatprep.mubr.bf16.mxu1 %v20956_v59  ;;  %14387 = vmatprep.subr.bf16.mxu0 %v18153_v42  ;;  %v18163_v59 = vld [vmem:[%s19018_s20 + $0x888] ss:$16 sps:$4 sm:$0xff]   ;;  %v18228_v38 = vld [vmem:[%s19018_s20 + $0xb4c] ss:$16 sps:$4 sm:$0xff]  }
 0xbc7   : > { %14430 = vmatprep.subr.bf16.mxu1 %v18156_v46  ;;  %v18223_v42 = vld [vmem:[%s19018_s20 + $0x948] ss:$16 sps:$4 sm:$0xff]  }
 0xbc8   : > { %14388 = vmatpush1.bf16.msra.mxu0 %v18151_v20  ;;  %v18226_v46 = vld [vmem:[%s19018_s20 + $0xb48] ss:$16 sps:$4 sm:$0xff]   ;;  %v18231_v20 = vld [vmem:[%s19018_s20 + $0x92c] ss:$16 sps:$4 sm:$0xff]  }
 0xbc9   : > { %14431 = vmatpush1.bf16.msra.mxu1 %v18154_v11  ;;  %14389 = vmatprep.subr.bf16.mxu0 %v18159_v18  ;;  %v18234_v11 = vld [vmem:[%s19018_s20 + $0xb2c] ss:$16 sps:$4 sm:$0xff]   ;;  %v18229_v18 = vld [vmem:[%s19018_s20 + $0x928] ss:$16 sps:$4 sm:$0xff]  }
 0xbca   : > { %14432 = vmatprep.subr.bf16.mxu1 %v18162_v57  ;;  %v18232_v57 = vld [vmem:[%s19018_s20 + $0xb28] ss:$16 sps:$4 sm:$0xff]  }
 0xbcc   : > { %14390 = vmatpush1.bf16.msra.mxu0 %v18157_v26  ;;  %v18237_v26 = vld [vmem:[%s19018_s20 + $0x90c] ss:$16 sps:$4 sm:$0xff]  }
 0xbcd   : > { %14433 = vmatpush1.bf16.msra.mxu1 %v18160_v17  ;;  %14391 = vmatprep.subr.bf16.mxu0 %v18165_v55  ;;  %v18240_v17 = vld [vmem:[%s19018_s20 + $0xb0c] ss:$16 sps:$4 sm:$0xff]   ;;  %v18235_v55 = vld [vmem:[%s19018_s20 + $0x908] ss:$16 sps:$4 sm:$0xff]  }
 0xbce   : > { %14434 = vmatprep.subr.bf16.mxu1 %v18168_v58  ;;  %v18238_v58 = vld [vmem:[%s19018_s20 + $0xb08] ss:$16 sps:$4 sm:$0xff]  }
 0xbd0   : > { %14392 = vmatpush1.bf16.msra.mxu0 %v18163_v59  ;;  %v18243_v59 = vld [vmem:[%s19018_s20 + $0xcec] ss:$16 sps:$4 sm:$0xff]  }
 0xbd1   : > { %14435 = vmatpush1.bf16.msra.mxu1 %v18166_v61  ;;  %14393 = vmatprep.subr.bf16.mxu0 %v18171_v19  ;;  %v18246_v61 = vld [vmem:[%s19018_s20 + $0xeec] ss:$16 sps:$4 sm:$0xff]   ;;  %v18241_v19 = vld [vmem:[%s19018_s20 + $0xce8] ss:$16 sps:$4 sm:$0xff]  }
 0xbd2   : > { %14436 = vmatprep.subr.bf16.mxu1 %v18174_v33  ;;  %v18244_v33 = vld [vmem:[%s19018_s20 + $0xee8] ss:$16 sps:$4 sm:$0xff]  }
 0xbd4   : > { %14394 = vmatpush1.bf16.msra.mxu0 %v18169_v50  ;;  %v18249_v50 = vld [vmem:[%s19018_s20 + $0xccc] ss:$16 sps:$4 sm:$0xff]  }
 0xbd5   : > { %14437 = vmatpush1.bf16.msra.mxu1 %v18172_v41  ;;  %14395 = vmatprep.subr.bf16.mxu0 %v18177_v31  ;;  %v18252_v41 = vld [vmem:[%s19018_s20 + $0xecc] ss:$16 sps:$4 sm:$0xff]   ;;  %v18247_v31 = vld [vmem:[%s19018_s20 + $0xcc8] ss:$16 sps:$4 sm:$0xff]  }
 0xbd6   : > { %14438 = vmatprep.subr.bf16.mxu1 %v18180_v43  ;;  %v18250_v43 = vld [vmem:[%s19018_s20 + $0xec8] ss:$16 sps:$4 sm:$0xff]  }
 0xbd8   : > { %14396 = vmatpush1.bf16.msra.mxu0 %v18175_v8  ;;  %v18255_v8 = vld [vmem:[%s19018_s20 + $0xcac] ss:$16 sps:$4 sm:$0xff]  }
 0xbd9   : > { %14439 = vmatpush1.bf16.msra.mxu1 %v18178_v23  ;;  %14397 = vmatprep.subr.bf16.mxu0 %v18183_v39  ;;  %v18256_v23 = vld [vmem:[%s19018_s20 + $0xea8] ss:$16 sps:$4 sm:$0xff]   ;;  %v18264_v39 = vld [vmem:[%s19018_s20 + $0xe8c] ss:$16 sps:$4 sm:$0xff]  }
 0xbda   : > { %14440 = vmatprep.subr.bf16.mxu1 %v18186_v37  ;;  %v18262_v37 = vld [vmem:[%s19018_s20 + $0xe88] ss:$16 sps:$4 sm:$0xff]  }
 0xbdc   : > { %14398 = vmatpush1.bf16.msra.mxu0 %v18181_v60  ;;  %v18267_v60 = vld [vmem:[%s19018_s20 + $0xc6c] ss:$16 sps:$4 sm:$0xff]  }
 0xbdd   : > { %14441 = vmatpush1.bf16.msra.mxu1 %v18184_v28  ;;  %14399 = vmatprep.subr.bf16.mxu0 %v18189_v35  ;;  %v18270_v28 = vld [vmem:[%s19018_s20 + $0xe6c] ss:$16 sps:$4 sm:$0xff]   ;;  %v18265_v35 = vld [vmem:[%s19018_s20 + $0xc68] ss:$16 sps:$4 sm:$0xff]  }
 0xbde   : > { %14442 = vmatprep.subr.bf16.mxu1 %v18192_v45  ;;  %v18268_v45 = vld [vmem:[%s19018_s20 + $0xe68] ss:$16 sps:$4 sm:$0xff]  }
 0xbe0   : > { %14400 = vmatpush1.bf16.msra.mxu0 %v18187_v16  ;;  %v18273_v16 = vld [vmem:[%s19018_s20 + $0xc4c] ss:$16 sps:$4 sm:$0xff]  }
 0xbe1   : > { %14443 = vmatpush1.bf16.msra.mxu1 %v18190_v36  ;;  %14401 = vmatprep.subr.bf16.mxu0 %v18195_v0  ;;  %v18276_v36 = vld [vmem:[%s19018_s20 + $0xe4c] ss:$16 sps:$4 sm:$0xff]   ;;  %v18271_v0 = vld [vmem:[%s19018_s20 + $0xc48] ss:$16 sps:$4 sm:$0xff]  }
 0xbe2   : > { %14444 = vmatprep.subr.bf16.mxu1 %v18198_v54  ;;  %v18274_v54 = vld [vmem:[%s19018_s20 + $0xe48] ss:$16 sps:$4 sm:$0xff]  }
 0xbe4   : > { %14402 = vmatpush2.bf16.msra.mxu0 %v18193_v34  ;;  %v18279_v34 = vld [vmem:[%s19018_s20 + $0xc2c] ss:$16 sps:$4 sm:$0xff]  }
 0xbe5   : > { %14445 = vmatpush2.bf16.msra.mxu1 %v18196_v10  ;;  %14403 = vmatprep.subr.bf16.mxu0 %v18201_v15  ;;  %v18282_v10 = vld [vmem:[%s19018_s20 + $0xe2c] ss:$16 sps:$4 sm:$0xff]   ;;  %v18277_v15 = vld [vmem:[%s19018_s20 + $0xc28] ss:$16 sps:$4 sm:$0xff]  }
 0xbe6   : > { %14446 = vmatprep.subr.bf16.mxu1 %v18204_v63  ;;  %v18280_v63 = vld [vmem:[%s19018_s20 + $0xe28] ss:$16 sps:$4 sm:$0xff]  }
 0xbe8   : > { %14404 = vmatpush2.bf16.msra.mxu0 %v18199_v22  ;;  %v18285_v22 = vld [vmem:[%s19018_s20 + $0xc0c] ss:$16 sps:$4 sm:$0xff]  }
 0xbe9   : > { %14447 = vmatpush2.bf16.msra.mxu1 %v18202_v4  ;;  %14405 = vmatprep.subr.bf16.mxu0 %v18207_v1  ;;  %v18288_v4 = vld [vmem:[%s19018_s20 + $0xe0c] ss:$16 sps:$4 sm:$0xff]   ;;  %v18283_v1 = vld [vmem:[%s19018_s20 + $0xc08] ss:$16 sps:$4 sm:$0xff]  }
 0xbea   : > { %14448 = vmatprep.subr.bf16.mxu1 %v18210_v62  ;;  %v18286_v62 = vld [vmem:[%s19018_s20 + $0xe08] ss:$16 sps:$4 sm:$0xff]  }
 0xbec   : > { %14406 = vmatpush2.bf16.msra.mxu0 %v18205_v6  ;;  %v18291_v6 = vld [vmem:[%s19018_s20 + $0xdec] ss:$16 sps:$4 sm:$0xff]  }
 0xbed   : > { %14449 = vmatpush2.bf16.msra.mxu1 %v18208_v44  ;;  %14407 = vmatprep.subr.bf16.mxu0 %v18213_v53  ;;  %v18294_v44 = vld [vmem:[%s19018_s20 + $0xfec] ss:$16 sps:$4 sm:$0xff]   ;;  %v18289_v53 = vld [vmem:[%s19018_s20 + $0xde8] ss:$16 sps:$4 sm:$0xff]  }
 0xbee   : > { %14450 = vmatprep.subr.bf16.mxu1 %v18216_v27  ;;  %v18292_v27 = vld [vmem:[%s19018_s20 + $0xfe8] ss:$16 sps:$4 sm:$0xff]  }
 0xbf0   : > { %14408 = vmatpush2.bf16.msra.mxu0 %v18211_v14  ;;  %v18297_v14 = vld [vmem:[%s19018_s20 + $0xdcc] ss:$16 sps:$4 sm:$0xff]  }
 0xbf1   : > { %14451 = vmatpush2.bf16.msra.mxu1 %v18214_v40  ;;  %14409 = vmatprep.subr.bf16.mxu0 %v18219_v47  ;;  %v18300_v40 = vld [vmem:[%s19018_s20 + $0xfcc] ss:$16 sps:$4 sm:$0xff]   ;;  %v18295_v47 = vld [vmem:[%s19018_s20 + $0xdc8] ss:$16 sps:$4 sm:$0xff]  }
 0xbf2   : > { %14452 = vmatprep.subr.bf16.mxu1 %v18222_v12  ;;  %v18298_v12 = vld [vmem:[%s19018_s20 + $0xfc8] ss:$16 sps:$4 sm:$0xff]  }
 0xbf4   : > { %14410 = vmatpush2.bf16.msra.mxu0 %v18217_v9  ;;  %v18303_v9 = vld [vmem:[%s19018_s20 + $0xdac] ss:$16 sps:$4 sm:$0xff]  }
 0xbf5   : > { %14453 = vmatpush2.bf16.msra.mxu1 %v18220_v25  ;;  %14411 = vmatprep.subr.bf16.mxu0 %v18225_v5  ;;  %v18306_v25 = vld [vmem:[%s19018_s20 + $0xfac] ss:$16 sps:$4 sm:$0xff]   ;;  %v18301_v5 = vld [vmem:[%s19018_s20 + $0xda8] ss:$16 sps:$4 sm:$0xff]  }
 0xbf6   : > { %14454 = vmatprep.subr.bf16.mxu1 %v18228_v38  ;;  %v18304_v38 = vld [vmem:[%s19018_s20 + $0xfa8] ss:$16 sps:$4 sm:$0xff]  }
 0xbf8   : > { %14412 = vmatpush2.bf16.msra.mxu0 %v18223_v42  ;;  %v18309_v42 = vld [vmem:[%s19018_s20 + $0xd8c] ss:$16 sps:$4 sm:$0xff]  }
 0xbf9   : > { %14455 = vmatpush2.bf16.msra.mxu1 %v18226_v46  ;;  %14413 = vmatprep.subr.bf16.mxu0 %v18231_v20  ;;  %v18312_v46 = vld [vmem:[%s19018_s20 + $0xf8c] ss:$16 sps:$4 sm:$0xff]   ;;  %v18307_v20 = vld [vmem:[%s19018_s20 + $0xd88] ss:$16 sps:$4 sm:$0xff]  }
 0xbfa   : > { %14456 = vmatprep.subr.bf16.mxu1 %v18234_v11  ;;  %v18310_v11 = vld [vmem:[%s19018_s20 + $0xf88] ss:$16 sps:$4 sm:$0xff]  }
 0xbfc   : > { %14414 = vmatpush2.bf16.msra.mxu0 %v18229_v18  ;;  %v18315_v18 = vld [vmem:[%s19018_s20 + $0xd6c] ss:$16 sps:$4 sm:$0xff]  }
 0xbfd   : > { %14457 = vmatpush2.bf16.msra.mxu1 %v18232_v57  ;;  %14415 = vmatprep.subr.bf16.mxu0 %v18237_v26  ;;  %v18318_v57 = vld [vmem:[%s19018_s20 + $0xf6c] ss:$16 sps:$4 sm:$0xff]   ;;  %v18313_v26 = vld [vmem:[%s19018_s20 + $0xd68] ss:$16 sps:$4 sm:$0xff]  }
 0xbfe   : > { %14458 = vmatprep.subr.bf16.mxu1 %v18240_v17  ;;  %v18316_v17 = vld [vmem:[%s19018_s20 + $0xf68] ss:$16 sps:$4 sm:$0xff]  }
 0xc00   : > { %14416 = vmatpush2.bf16.msra.mxu0 %v18235_v55  ;;  %v18321_v55 = vld [vmem:[%s19018_s20 + $0xd4c] ss:$16 sps:$4 sm:$0xff]  }
 0xc01   : > { %14459 = vmatpush2.bf16.msra.mxu1 %v18238_v58  ;;  %14471 = vmatprep.subr.bf16.mxu0 %v18243_v59  ;;  %v18324_v58 = vld [vmem:[%s19018_s20 + $0xf4c] ss:$16 sps:$4 sm:$0xff]   ;;  %v18319_v59 = vld [vmem:[%s19018_s20 + $0xd48] ss:$16 sps:$4 sm:$0xff]  }
 0xc02   : > { %14514 = vmatprep.subr.bf16.mxu1 %v18246_v61  ;;  %v18322_v61 = vld [vmem:[%s19018_s20 + $0xf48] ss:$16 sps:$4 sm:$0xff]  }
 0xc03   : > { %14418 = vmatmul.mubr.bf16.vlgmr.msra.gmra.mxu0 %v20800_v52  ;;  %v18258_v52 = vld [vmem:[%s19018_s20 + $0xeac] ss:$16 sps:$4 sm:$0xff]  }
 0xc04   : > { %14461 = vmatmul.mubr.bf16.vlgmr.msra.gmra.mxu1 %v20890_v13  ;;  %14472 = vmatpush1.bf16.msra.mxu0 %v18241_v19  ;;  %v18253_v13 = vld [vmem:[%s19018_s20 + $0xca8] ss:$16 sps:$4 sm:$0xff]   ;;  %v18327_v19 = vld [vmem:[%s19018_s20 + $0xd2c] ss:$16 sps:$4 sm:$0xff]  }
 0xc05   : > { %14503 = vmatprep.mubr.bf16.mxu0 %v21033_v32  ;;  %14515 = vmatpush1.bf16.msra.mxu1 %v18244_v33  ;;  %v18261_v32 = vld [vmem:[%s19018_s20 + $0xc8c] ss:$16 sps:$4 sm:$0xff]  }
 0xc06   : > { %14546 = vmatprep.mubr.bf16.mxu1 %v21058_v7  ;;  %14473 = vmatprep.subr.bf16.mxu0 %v18249_v50  ;;  %v18259_v7 = vld [vmem:[%s19018_s20 + $0xc88] ss:$16 sps:$4 sm:$0xff]   ;;  %v18330_v33 = vld [vmem:[%s19018_s20 + $0xf2c] ss:$16 sps:$4 sm:$0xff]  }
 0xc07   : > { %14516 = vmatprep.subr.bf16.mxu1 %v18252_v41  ;;  %v18325_v50 = vld [vmem:[%s19018_s20 + $0xd28] ss:$16 sps:$4 sm:$0xff]  }
 0xc08   : > { %14474 = vmatpush1.bf16.msra.mxu0 %v18247_v31  ;;  %v18328_v41 = vld [vmem:[%s19018_s20 + $0xf28] ss:$16 sps:$4 sm:$0xff]   ;;  %v18333_v31 = vld [vmem:[%s19018_s20 + $0xd0c] ss:$16 sps:$4 sm:$0xff]  }
 0xc09   : > { %14517 = vmatpush1.bf16.msra.mxu1 %v18250_v43  ;;  %14475 = vmatprep.subr.bf16.mxu0 %v18255_v8  ;;  %v18336_v43 = vld [vmem:[%s19018_s20 + $0xf0c] ss:$16 sps:$4 sm:$0xff]   ;;  %v18331_v8 = vld [vmem:[%s19018_s20 + $0xd08] ss:$16 sps:$4 sm:$0xff]  }
 0xc0a   : > { %14518 = vmatprep.subr.bf16.mxu1 %v18258_v52  ;;  %v18334_v52 = vld [vmem:[%s19018_s20 + $0xf08] ss:$16 sps:$4 sm:$0xff]  }
 0xc0c   : > { %14476 = vmatpush1.bf16.msra.mxu0 %v18253_v13  ;;  %v13903_v13 = vpop.f32.mrf.mxu0 }
 0xc0d   : > { %14519 = vmatpush1.bf16.msra.mxu1 %v18256_v23  ;;  %14477 = vmatprep.subr.bf16.mxu0 %v18261_v32  ;;  %v13946_v23 = vpop.f32.mrf.mxu1 }
 0xc0e   : > { %14520 = vmatprep.subr.bf16.mxu1 %v18264_v39  ;;  %v13905_v32 = vpop.f32.mrf.mxu0 }
 0xc0f   : > { %v13948_v39 = vpop.f32.mrf.mxu1 }
 0xc10   : > { %14478 = vmatpush1.bf16.msra.mxu0 %v18259_v7  ;;  %v13907_v7 = vpop.f32.mrf.mxu0 }
 0xc11   : > { %14521 = vmatpush1.bf16.msra.mxu1 %v18262_v37  ;;  %14479 = vmatprep.subr.bf16.mxu0 %v18267_v60  ;;  %v13950_v37 = vpop.f32.mrf.mxu1 }
 0xc12   : > { %14522 = vmatprep.subr.bf16.mxu1 %v18270_v28  ;;  %v13909_v60 = vpop.f32.mrf.mxu0 }
 0xc13   : > { %v13952_v28 = vpop.f32.mrf.mxu1 }
 0xc14   : > { %14480 = vmatpush1.bf16.msra.mxu0 %v18265_v35  ;;  %v13989_v35 = vpop.f32.mrf.mxu0 }
 0xc15   : > { %14523 = vmatpush1.bf16.msra.mxu1 %v18268_v45  ;;  %14481 = vmatprep.subr.bf16.mxu0 %v18273_v16  ;;  %v14032_v45 = vpop.f32.mrf.mxu1 }
 0xc16   : > { %14524 = vmatprep.subr.bf16.mxu1 %v18276_v36  ;;  %v13991_v16 = vpop.f32.mrf.mxu0 }
 0xc17   : > { %v14034_v36 = vpop.f32.mrf.mxu1 }
 0xc18   : > { %14482 = vmatpush1.bf16.msra.mxu0 %v18271_v0  ;;  %v13993_v0 = vpop.f32.mrf.mxu0 }
 0xc19   : > { %14525 = vmatpush1.bf16.msra.mxu1 %v18274_v54  ;;  %14483 = vmatprep.subr.bf16.mxu0 %v18279_v34  ;;  %v14036_v54 = vpop.f32.mrf.mxu1 }
 0xc1a   : > { %14526 = vmatprep.subr.bf16.mxu1 %v18282_v10  ;;  %v13995_v34 = vpop.f32.mrf.mxu0 }
 0xc1b   : > { %v14038_v10 = vpop.f32.mrf.mxu1 }
 0xc1c   : > { %14484 = vmatpush1.bf16.msra.mxu0 %v18277_v15  ;;  %v14075_v15 = vpop.f32.mrf.mxu0 }
 0xc1d   : > { %14527 = vmatpush1.bf16.msra.mxu1 %v18280_v63  ;;  %14485 = vmatprep.subr.bf16.mxu0 %v18285_v22 }
 0xc1e   : > { %14528 = vmatprep.subr.bf16.mxu1 %v18288_v4  ;;  %v14077_v63 = vpop.f32.mrf.mxu0 }
 0xc20   : > { %14486 = vmatpush1.bf16.msra.mxu0 %v18283_v1  ;;  %v14079_v22 = vpop.f32.mrf.mxu0 }
 0xc21   : > { %14529 = vmatpush1.bf16.msra.mxu1 %v18286_v62  ;;  %14487 = vmatprep.subr.bf16.mxu0 %v18291_v6 }
 0xc22   : > { %14530 = vmatprep.subr.bf16.mxu1 %v18294_v44  ;;  %v14081_v1 = vpop.f32.mrf.mxu0 }
 0xc24   : > { %14488 = vmatpush2.bf16.msra.mxu0 %v18289_v53  ;;  %v14161_v6 = vpop.f32.mrf.mxu0 }
 0xc25   : > { %14531 = vmatpush2.bf16.msra.mxu1 %v18292_v27  ;;  %14489 = vmatprep.subr.bf16.mxu0 %v18297_v14 }
 0xc26   : > { %14532 = vmatprep.subr.bf16.mxu1 %v18300_v40  ;;  %v14163_v53 = vpop.f32.mrf.mxu0 }
 0xc28   : > { %14490 = vmatpush2.bf16.msra.mxu0 %v18295_v47  ;;  %v21391_v14 = vpop.f32.mrf.mxu0 }
 0xc29   : > { %14533 = vmatpush2.bf16.msra.mxu1 %v18298_v12  ;;  %14491 = vmatprep.subr.bf16.mxu0 %v18303_v9 }
 0xc2a   : > { %14534 = vmatprep.subr.bf16.mxu1 %v18306_v25  ;;  %v14167_v47 = vpop.f32.mrf.mxu0 }
 0xc2c   : > { %14492 = vmatpush2.bf16.msra.mxu0 %v18301_v5 }
 0xc2d   : > { %14535 = vmatpush2.bf16.msra.mxu1 %v18304_v38  ;;  %14493 = vmatprep.subr.bf16.mxu0 %v18309_v42 }
 0xc2e   : > { %14536 = vmatprep.subr.bf16.mxu1 %v18312_v46 }
 0xc30   : > { %14494 = vmatpush2.bf16.msra.mxu0 %v18307_v20 }
 0xc31   : > { %14537 = vmatpush2.bf16.msra.mxu1 %v18310_v11  ;;  %14495 = vmatprep.subr.bf16.mxu0 %v18315_v18 }
 0xc32   : > { %14538 = vmatprep.subr.bf16.mxu1 %v18318_v57 }
 0xc34   : > { %14496 = vmatpush2.bf16.msra.mxu0 %v18313_v26 }
 0xc35   : > { %14539 = vmatpush2.bf16.msra.mxu1 %v18316_v17  ;;  %14497 = vmatprep.subr.bf16.mxu0 %v18321_v55  ;;  %v13949_v55 = vadd.f32 %v13948_v39, %v13905_v32 }
 0xc36   : > { %14540 = vmatprep.subr.bf16.mxu1 %v18324_v58  ;;  %v13947_v58 = vadd.f32 %v13946_v23, %v13903_v13 }
 0xc38   : > { %14498 = vmatpush2.bf16.msra.mxu0 %v18319_v59  ;;  %v13992_v59 = vadd.f32 %v13991_v16, %v13949_v55 }
 0xc39   : > { %14541 = vmatpush2.bf16.msra.mxu1 %v18322_v61  ;;  %14499 = vmatprep.subr.bf16.mxu0 %v18327_v19 }
 0xc3a   : > { %14542 = vmatprep.subr.bf16.mxu1 %v18330_v33  ;;  %v13953_v33 = vadd.f32 %v13952_v28, %v13909_v60 }
 0xc3c   : > { %14500 = vmatpush2.bf16.msra.mxu0 %v18325_v50  ;;  %v13990_v50 = vadd.f32 %v13989_v35, %v13947_v58  ;;  %v21538_v58 = vld [vmem:[#allocation27_spill] sm:$0xff] }
 0xc3d   : > { %14543 = vmatpush2.bf16.msra.mxu1 %v18328_v41  ;;  %14501 = vmatprep.subr.bf16.mxu0 %v18333_v31  ;;  %v13951_v41 = vadd.f32 %v13950_v37, %v13907_v7  ;;  %v14035_v31 = vadd.f32 %v14034_v36, %v13992_v59 }
 0xc3e   : > { %14544 = vmatprep.subr.bf16.mxu1 %v18336_v43  ;;  %v13996_v43 = vadd.f32 %v13995_v34, %v13953_v33  ;;  %v14033_v29 = vadd.f32 %v14032_v45, %v13990_v50 }
 0xc3f   : > { %v13994_v30 = vadd.f32 %v13993_v0, %v13951_v41  ;;  %v14078_v24 = vadd.f32 %v14077_v63, %v14035_v31  ;;  %v21540_v31 = vld [vmem:[#allocation29_spill] sm:$0xff] }
 0xc40   : > { %14502 = vmatpush2.bf16.msra.mxu0 %v18331_v8  ;;  %v14076_v2 = vadd.f32 %v14075_v15, %v14033_v29 }
 0xc41   : > { %14545 = vmatpush2.bf16.msra.mxu1 %v18334_v52  ;;  %v14037_v23 = vadd.f32 %v14036_v54, %v13994_v30 }
 0xc43   : > { %14504 = vmatmul.mubr.bf16.vlgmr.msra.gmra.mxu0 %v20974_v56  ;;  %v14118_v56 = vpop.f32.mrf.mxu1  ;;  %v14247_v9 = vpop.f32.mrf.mxu0  ;;  %v14080_v36 = vadd.f32 %v14079_v22, %v14037_v23 }
 0xc44   : > { %14547 = vmatmul.mubr.bf16.vlgmr.msra.gmra.mxu1 %v21115_v48  ;;  %v14119_v35 = vadd.f32 %v14118_v56, %v14076_v2 }
 0xc45   : > { %v14120_v48 = vpop.f32.mrf.mxu1  ;;  %v14249_v5 = vpop.f32.mrf.mxu0 }
 0xc46   : > { %v14121_v39 = vadd.f32 %v14120_v48, %v14078_v24 }
 0xc47   : > { %v21387_v4 = vpop.f32.mrf.mxu1  ;;  %v14251_v42 = vpop.f32.mrf.mxu0 }
 0xc48   : > { %v14164_v34 = vadd.f32 %v14163_v53, %v14121_v39  ;;  %v14123_v24 = vadd.f32 %v21387_v4, %v14080_v36  ;;  %v21543_v36 = vld [vmem:[#allocation28_spill] sm:$0xff] }
 0xc49   : > { %v14124_v62 = vpop.f32.mrf.mxu1  ;;  %v14253_v20 = vpop.f32.mrf.mxu0 }
 0xc4a   : > { %v14166_v56 = vadd.f32 %v21391_v14, %v14123_v24 }
 0xc4b   : > { %v21389_v44 = vpop.f32.mrf.mxu1 }
 0xc4d   : > { %v14206_v27 = vpop.f32.mrf.mxu1 }
 0xc4e   : > { %v14207_v30 = vadd.f32 %v14206_v27, %v14164_v34 }
 0xc4f   : > { %v21393_v40 = vpop.f32.mrf.mxu1 }
 0xc50   : > { %21535 = vst [vmem:[#allocation31_spill] sm:$0xff] %v21393_v40  ;;  %v14039_v40 = vadd.f32 %v14038_v10, %v13996_v43 }
 0xc51   : > { %v21395_v12 = vpop.f32.mrf.mxu1 }
 0xc52   : > { %v14082_v16 = vadd.f32 %v14081_v1, %v14039_v40 }
 0xc53   : > { %v14290_v25 = vpop.f32.mrf.mxu1 }
 0xc54   : > { %v14291_v49 = vadd.f32 %v14290_v25, %v14247_v9  ;;  %v14125_v55 = vadd.f32 %v14124_v62, %v14082_v16  ;;  %v14162_v9 = vadd.f32 %v14161_v6, %v14119_v35 }
 0xc55   : > { %v14292_v38 = vpop.f32.mrf.mxu1 }
 0xc56   : > { %v14293_v32 = vadd.f32 %v14292_v38, %v14249_v5  ;;  %v14168_v54 = vadd.f32 %v14167_v47, %v14125_v55  ;;  %v14205_v2 = vadd.f32 %v21389_v44, %v14162_v9  ;;  %v14558_v5 = vadd.f32 %v14207_v30, %v20212_v51 }
 0xc57   : > { %v14294_v46 = vpop.f32.mrf.mxu1 }
 0xc58   : > { %v14295_v28 = vadd.f32 %v14294_v46, %v14251_v42  ;;  %v21536_v46 = vld [vmem:[#allocation25_spill] sm:$0xff] }
 0xc59   : > { %v14296_v11 = vpop.f32.mrf.mxu1 }
 0xc5a   : > { %v14297_v45 = vadd.f32 %v14296_v11, %v14253_v20  ;;  %v14557_v20 = vadd.f32 %v14205_v2, %v21536_v46  ;;  %v21537_v11 = vld [vmem:[#allocation31_spill] sm:$0xff] }
 0xc5b   : > { %v14209_v44 = vadd.f32 %v21537_v11, %v14166_v56 }
 0xc5d   : > { %v14561_v43 = vadd.f32 %v14209_v44, %v21540_v31 }
 0xc83   : > { %v14333_v18 = vpop.f32.mrf.mxu0 }
 0xc84   : > { %v14376_v57 = vpop.f32.mrf.mxu1  ;;  %v14334_v13 = vadd.f32 %v14333_v18, %v14291_v49 }
 0xc85   : > { %v14335_v26 = vpop.f32.mrf.mxu0 }
 0xc86   : > { %v14378_v17 = vpop.f32.mrf.mxu1  ;;  %v14336_v7 = vadd.f32 %v14335_v26, %v14293_v32  ;;  %v14377_v0 = vadd.f32 %v14376_v57, %v14334_v13 }
 0xc87   : > { %v14337_v61 = vpop.f32.mrf.mxu0 }
 0xc88   : > { %v14380_v19 = vpop.f32.mrf.mxu1  ;;  %v14338_v63 = vadd.f32 %v14337_v61, %v14295_v28  ;;  %v14379_v10 = vadd.f32 %v14378_v17, %v14336_v7  ;;  %v14565_v17 = vadd.f32 %v14558_v5, %v14557_v20  ;;  %v21542_v28 = vld [vmem:[#allocation30_spill] sm:$0xff] }
 0xc89   : > { %v14339_v8 = vpop.f32.mrf.mxu0 }
 0xc8a   : > { %v14382_v52 = vpop.f32.mrf.mxu1  ;;  %v14340_v29 = vadd.f32 %v14339_v8, %v14297_v45  ;;  %v14381_v48 = vadd.f32 %v14380_v19, %v14338_v63 }
 0xc8c   : > { %v14383_v53 = vadd.f32 %v14382_v52, %v14340_v29  ;;  %v21541_v52 = vld [vmem:[#allocation24_spill] sm:$0xff] }
 0xcc3   : > { %v14419_v21 = vpop.f32.mrf.mxu0 }
 0xcc4   : > { %v14462_v3 = vpop.f32.mrf.mxu1  ;;  %v14420_v15 = vadd.f32 %v14419_v21, %v14377_v0  ;;  %v14211_v21 = vadd.f32 %v21395_v12, %v14168_v54  ;;  %v21539_v12 = vld [vmem:[#allocation26_spill] sm:$0xff] }
 0xcc5   : > { %v14421_v60 = vpop.f32.mrf.mxu0 }
 0xcc6   : > { %v14464_v37 = vpop.f32.mrf.mxu1  ;;  %v14422_v1 = vadd.f32 %v14421_v60, %v14379_v10  ;;  %v14463_v40 = vadd.f32 %v14462_v3, %v14420_v15  ;;  %v14562_v59 = vadd.f32 %v14211_v21, %v21538_v58 }
 0xcc7   : > { %v14423_v25 = vpop.f32.mrf.mxu0 }
 0xcc8   : > { %v14466_v49 = vpop.f32.mrf.mxu1  ;;  %v14424_v62 = vadd.f32 %v14423_v25, %v14381_v48  ;;  %v14465_v42 = vadd.f32 %v14464_v37, %v14422_v1  ;;  %v14570_v60 = vadd.f32 %v14562_v59, %v14561_v43 }
 0xcc9   : > { %v14425_v22 = vpop.f32.mrf.mxu0 }
 0xcca   : > { %v14468_v6 = vpop.f32.mrf.mxu1  ;;  %v14426_v4 = vadd.f32 %v14425_v22, %v14383_v53  ;;  %v14467_v14 = vadd.f32 %v14466_v49, %v14424_v62 }
 0xccc   : > { %v14469_v61 = vadd.f32 %v14468_v6, %v14426_v4 }
 0xd03   : > { %v14505_v38 = vpop.f32.mrf.mxu0 }
 0xd04   : > { %v14506_v27 = vadd.f32 %v14505_v38, %v14463_v40  ;;  %v14548_v47 = vpop.f32.mrf.mxu1 }
 0xd05   : > { %v14507_v18 = vpop.f32.mrf.mxu0 }
 0xd06   : > { %v14549_v57 = vadd.f32 %v14548_v47, %v14506_v27  ;;  %v14508_v26 = vadd.f32 %v14507_v18, %v14465_v42  ;;  %v14550_v3 = vpop.f32.mrf.mxu1 }
 0xd07   : > { %v14509_v51 = vpop.f32.mrf.mxu0 }
 0xd08   : > { %v14559_v19 = vadd.f32 %v14549_v57, %v21539_v12  ;;  %v14551_v33 = vadd.f32 %v14550_v3, %v14508_v26  ;;  %v14510_v50 = vadd.f32 %v14509_v51, %v14467_v14  ;;  %v14552_v41 = vpop.f32.mrf.mxu1 }
 0xd09   : > { %v14511_v8 = vpop.f32.mrf.mxu0 }
 0xd0a   : > { %v14560_v32 = vadd.f32 %v14551_v33, %v21541_v52  ;;  %v14553_v13 = vadd.f32 %v14552_v41, %v14510_v50  ;;  %v14512_v23 = vadd.f32 %v14511_v8, %v14469_v61  ;;  %v14566_v39 = vadd.f32 %v14565_v17, %v14559_v19  ;;  %v14554_v16 = vpop.f32.mrf.mxu1 }
 0xd0c   : > { %v14563_v7 = vadd.f32 %v14553_v13, %v21542_v28  ;;  %v14555_v37 = vadd.f32 %v14554_v16, %v14512_v23  ;;  %v14567_v35 = vadd.f32 %v14566_v39, %v14560_v32 }
 0xd0e   : > { %v14564_v34 = vadd.f32 %v14555_v37, %v21543_v36  ;;  %14568 = vadd.xlane.f32.xlu1 %v14567_v35  ;;  %v14571_v45 = vadd.f32 %v14570_v60, %v14563_v7 }
 0xd10   : > { %v14572_v0 = vadd.f32 %v14571_v45, %v14564_v34 }
 0xd12   : > { %14573 = vadd.xlane.f32.xlu0 %v14572_v0 }
 0xd97   : > { %v14569_v63 = vpop.xlane.xlu1 %14568 }
 0xd98   : > { %v14575_v55 = vmul.f32 0.001953125, %v14569_v63 }
 0xd9a   : > { %v14577_v9 = vsub.f32 %v14557_v20, %v14575_v55  ;;  %v14578_v25 = vsub.f32 %v14558_v5, %v14575_v55  ;;  %v14579_v10 = vsub.f32 %v14559_v19, %v14575_v55  ;;  %v14580_v15 = vsub.f32 %v14560_v32, %v14575_v55 }
 0xd9b   : > { %v14574_v29 = vpop.xlane.xlu0 %14573 }
 0xd9c   : > { %v14576_v49 = vmul.f32 0.001953125, %v14574_v29  ;;  %v14585_v24 = vmul.f32 %v14577_v9, %v14577_v9  ;;  %v14586_v30 = vmul.f32 %v14578_v25, %v14578_v25  ;;  %v14587_v54 = vmul.f32 %v14579_v10, %v14579_v10 }
 0xd9d   : > { %v14588_v22 = vmul.f32 %v14580_v15, %v14580_v15 }
 0xd9e   : > { %v14581_v48 = vsub.f32 %v14561_v43, %v14576_v49  ;;  %v14582_v1 = vsub.f32 %v14562_v59, %v14576_v49  ;;  %v14593_v2 = vadd.f32 %v14586_v30, %v14585_v24  ;;  %v14583_v56 = vsub.f32 %v14563_v7, %v14576_v49 }
 0xd9f   : > { %v14584_v40 = vsub.f32 %v14564_v34, %v14576_v49 }
 0xda0   : > { %v14594_v53 = vadd.f32 %v14593_v2, %v14587_v54  ;;  %v14589_v62 = vmul.f32 %v14581_v48, %v14581_v48  ;;  %v14590_v6 = vmul.f32 %v14582_v1, %v14582_v1  ;;  %v14591_v38 = vmul.f32 %v14583_v56, %v14583_v56 }
 0xda1   : > { %v14592_v5 = vmul.f32 %v14584_v40, %v14584_v40 }
 0xda2   : > { %v14595_v21 = vadd.f32 %v14594_v53, %v14588_v22  ;;  %v14598_v42 = vadd.f32 %v14590_v6, %v14589_v62 }
 0xda4   : > { %14596 = vadd.xlane.f32.xlu1 %v14595_v21  ;;  %v14599_v4 = vadd.f32 %v14598_v42, %v14591_v38 }
 0xda6   : > { %v14600_v27 = vadd.f32 %v14599_v4, %v14592_v5 }
 0xda8   : > { %14601 = vadd.xlane.f32.xlu0 %v14600_v27 }
 0xe2d   : > { %v14597_v47 = vpop.xlane.xlu1 %14596 }
 0xe2e   : > { %v14603_v46 = vmul.f32 0.001953125, %v14597_v47 }
 0xe30   : > { %v14605_v20 = vadd.f32 1e-05, %v14603_v46 }
 0xe31   : > { %v14602_v11 = vpop.xlane.xlu0 %14601 }
 0xe32   : > { %18405 = vrsqrt.f32 %v14605_v20  ;;  %v14604_v44 = vmul.f32 0.001953125, %v14602_v11 }
 0xe34   : > { %v14606_v18 = vadd.f32 1e-05, %v14604_v44 }
 0xe36   : > { %18407 = vrsqrt.f32 %v14606_v18 }
 0xe3f   : > { %v18406_v14 = vpop.eup %18405 }
 0xe40   : > { %v14609_v57 = vmul.f32 %v18406_v14, %v14577_v9  ;;  %v14610_v26 = vmul.f32 %v18406_v14, %v14578_v25  ;;  %v14611_v3 = vmul.f32 %v18406_v14, %v14579_v10  ;;  %v14612_v17 = vmul.f32 %v18406_v14, %v14580_v15 }
 0xe42   : > { %14617 = vst [vmem:[#allocation2 + $0x30] sm:$0xff] %v14609_v57  ;;  %14618 = vst [vmem:[#allocation2] sm:$0xff] %v14610_v26 }
 0xe43   : > { %14619 = vst [vmem:[#allocation2 + $0x18] sm:$0xff] %v14611_v3  ;;  %14620 = vst [vmem:[#allocation2 + $0x10] sm:$0xff] %v14612_v17  ;;  %v18408_v58 = vpop.eup %18407  ;;  %14628 = sbr.rel (%p16436_p9) target bundleno = 3660 (0xe4c), region = 76 }
 0xe44   : > { %v14613_v59 = vmul.f32 %v18408_v58, %v14581_v48  ;;  %v14614_v51 = vmul.f32 %v18408_v58, %v14582_v1  ;;  %v14615_v61 = vmul.f32 %v18408_v58, %v14583_v56  ;;  %v14616_v12 = vmul.f32 %v18408_v58, %v14584_v40 }
 0xe46   : > { %14621 = vst [vmem:[#allocation2 + $0x8] sm:$0xff] %v14613_v59  ;;  %14622 = vst [vmem:[#allocation2 + $0x20] sm:$0xff] %v14614_v51 }
 0xe47   : > { %14623 = vst [vmem:[#allocation2 + $0x28] sm:$0xff] %v14615_v61  ;;  %14624 = vst [vmem:[#allocation2 + $0x38] sm:$0xff] %v14616_v12 }
 0xe48   : > { %14629 = vst [vmem:[#allocation12] sm:$0xff] %v14609_v57  ;;  %14630 = vst [vmem:[#allocation12 + $0x8] sm:$0xff] %v14610_v26 }
 0xe49   : > { %14631 = vst [vmem:[#allocation12 + $0x10] sm:$0xff] %v14611_v3  ;;  %14632 = vst [vmem:[#allocation12 + $0x18] sm:$0xff] %v14612_v17 }
 0xe4a   : > { %14633 = vst [vmem:[#allocation12 + $0x20] sm:$0xff] %v14613_v59  ;;  %14634 = vst [vmem:[#allocation12 + $0x28] sm:$0xff] %v14614_v51 }
 0xe4b   : > { %14635 = vst [vmem:[#allocation12 + $0x30] sm:$0xff] %v14615_v61  ;;  %14636 = vst [vmem:[#allocation12 + $0x38] sm:$0xff] %v14616_v12 }
 0xe4c PF: > { %s18702_s11 = smov [#allocation12]   ;;  %p21544_p5 = scmp.eq.s32.totalorder %s18769_s28, 5 }
 0xe4d   : > { %s14648_s2 = sshll.u32 %s18702_s11, 4  ;;  %s14649_s2 = int_to_ptr.vmem [resolvable:$true] %s14648_s2 }
 0xe4e   : > { %s18581_s9 = scalar_lea.vmem %s14649_s2, 1024  ;;  %p18588_p13 = scmp.lt.s32.totalorder %s14649_s2, %s14649_s2 }
 0xe4f   : > { %p18582_p10 = scmp.ne.s32.totalorder %s14649_s2, %s18581_s9  ;;  %p18589_p0 = scmp.lt.s32.totalorder %s18581_s9, %s18581_s9 }
 0xe51   : > { %p18583_p7 = pnand %p18582_p10, %p21544_p5  ;;  %p18590_p6 = por %p18589_p0, %p18588_p13 }
 0xe53   : > { %p18584_p4 = pneg %p18583_p7 }
 0xe55   : > { %p18591_p8 = pnand %p18590_p6, %p18584_p4 }
 0xe57   : > { %18594 = shalt.err (!%p18591_p8)
}
 0xe58   : > { %s18703_s17 = smov 512   ;;  %s18704_s0 = smov 32  }
 0xe59   : > { %p21545_p11 = pmov %p21544_p5  ;;  %s16447_s8 = sshll.u32 %s18769_s28, 11 }
 0xe5a   : > { %s14664_s15 = sshll.u32 %s19020_s21, 4  ;;  %s21423_s10 = scalar_lea.hbm %s21478_s7, %s16447_s8  ;;  %s21425_s15 = int_to_ptr.vmem [resolvable:$true] %s14664_s15 }
 0xe5b   : > { %16692 = dma.vmem_to_hbm [thread:$0]  (%p21545_p11), %s14649_s2, 1024, %s21477_s6, [#allocation5], %s18703_s17, %s18703_s17, %s18704_s0  }
 0xe5c   : > { %s14638_s23 = scalar_lea.sflag [#allocation14], %s19002_s22  ;;  %s18605_s26 = scalar_lea.vmem %s21425_s15, 2048 }
 0xe5d   : > { %p18606_p12 = scmp.ne.s32.totalorder %s21425_s15, %s18605_s26  ;;  %p21546_p1 = scmp.ne.s32.totalorder %s21507_s13, 0 }
 0xe5e   : > { %s18705_s18 = smov [#allocation13]  }
 0xe5f   : > { %p18607_p2 = pnand %p18606_p12, %p21546_p1  ;;  %s18609_s16 = sshll.u32 %s18705_s18, 4  ;;  %s18610_s16 = int_to_ptr.vmem [resolvable:$false] %s18609_s16 }
 0xe60   : > { %s18611_s20 = scalar_lea.vmem %s18610_s16, 4096  ;;  %p18612_p9 = scmp.lt.s32.totalorder %s21425_s15, %s18610_s16 }
 0xe61   : > { %p18608_p3 = pneg %p18607_p2  ;;  %p18613_p10 = scmp.lt.s32.totalorder %s18611_s20, %s18605_s26 }
 0xe63   : > { %p18614_p5 = por %p18613_p10, %p18612_p9 }
 0xe65   : > { %p18615_p7 = pnand %p18614_p5, %p18608_p3 }
 0xe67   : > { %18618 = shalt.err (!%p18615_p7)
}
 0xe68   : > { %s18619_s21 = scalar_lea.hbm %s21423_s10, 2048  ;;  %s18623_s2 = scalar_lea.hbm %s21478_s7, 12288 }
 0xe69   : > { %p18620_p4 = scmp.ne.s32.totalorder %s21423_s10, %s18619_s21  ;;  %p18624_p6 = scmp.lt.s32.totalorder %s21423_s10, %s21478_s7 }
 0xe6a   : > { %p18625_p8 = scmp.lt.s32.totalorder %s18623_s2, %s18619_s21 }
 0xe6b   : > { %p18621_p13 = pnand %p18620_p4, %p21546_p1 }
 0xe6c   : > { %p18626_p11 = por %p18625_p8, %p18624_p6 }
 0xe6d   : > { %p18622_p0 = pneg %p18621_p13 }
 0xe6f   : > { %p18627_p12 = pnand %p18626_p11, %p18622_p0 }
 0xe71   : > { %18630 = shalt.err (!%p18627_p12)
}
 0xe72   : > { %s18706_s0 = smov 128   ;;  %s18707_s14 = smov 8  }
 0xe73   : > { %16693 = dma.vmem_to_hbm [thread:$0]  (%p21546_p1), %s21425_s15, 2048, %s21423_s10, %s14638_s23, %s18706_s0, %s18706_s0, %s18707_s14  }
 0xe74   : > { %p21547_p2 = scmp.eq.s32.totalorder %s18769_s28, 5 }
 0xe76   : > { %18660 = dma.done.wait (%p21547_p2), [#allocation5], 1024   ;;  %p21548_p3 = pmov %p21547_p2 }
 0xe78   : > { %18662 = vsyncadd (%p21548_p3), [#allocation5], 4294966272 }
 0xe79 PF: > { %s21549_s19 = sld [smem:[#allocation23_spill]]  ;;  %p16728_p9 = scmp.ge.s32.totalorder %s18681_s27, 2 }
 0xe7a   : > { %s14683_s8 = sand.u32 1, %s18669_s24  }
 0xe7b   : > { %s14684_s29 = scalar_lea.sflag [#allocation14], %s14683_s8 }
 0xe7f   : > { %p21550_p10 = scmp.ne.s32.totalorder %s21549_s19, 0 }
 0xe81   : > { %p16718_p5 = pnand %p16728_p9, %p21550_p10 }
 0xe83   : > { %p16719_p7 = pneg %p16718_p5 }
 0xe85   : > { %18664 = dma.done.wait (%p16719_p7), %s14684_s29, 2048  }
 0xe86   : > { %18666 = vsyncadd (%p16719_p7), %s14684_s29, 4294965248  ;;  %s21551_s27 = sld [smem:[#allocation21_spill]]  ;;  %s21554_s24 = smov %s18673_s25 }
 0xe87   : > { %s21552_s13 = sld [smem:[#allocation20_spill]] }
 0xe88   : > { %s21553_s26 = sld [smem:[#allocation22_spill]] }
 0xe8c   : > { %p21_p1 = scmp.ge.s32.totalorder %s21551_s27, 8  }
 0xe8d   : > { %s21555_s25 = smov %s21552_s13 }
 0xe8e   :  { %23 = sbr.rel (!%p21_p1) target bundleno = 9 (0x9), region = 146 }
 0xe93   :  { %14689 = vsyncpa [#allocation4], 1 }
 0xe94   :  { %14691 = vsyncpa [#allocation4 + $0x1], 1 }
 0xe95   :  { %14692 = vsyncpa [#allocation7], 1 }
 0xe96   :  { %14693 = vsyncpa [#allocation5], 1 }
 0xe97   :  { %14695 = vsyncpa [#allocation5 + $0x1], 1 }
 0xe98   :  { %14696 = vsyncpa [#allocation14], 1 }
 0xe99   :  { %14698 = vsyncpa [#allocation14 + $0x1], 1 }

</bundles_post_ra>
